<compile_context>
chip_gen: v7x
topology: tpu7x:2x2x1
jax: 0.10.0
libtpu: 0.0.40
codegen_flags: <defaults>
</compile_context>

<pallas_src>
import jax
import jax.numpy as jnp
from jax.experimental import pallas as pl
from jax.experimental.pallas import tpu as pltpu

# Fixed by the module: nn.Linear(24840, 3000), nn.Linear(3000, 6).
IN_FEATURES = 24840
HIDDEN = 3000
OUT_FEATURES = 6

# fc1 tiling.
TM = 8        # batch tile (batch=2 padded to 8 per call; ~KBs, negligible)
TK = 2048     # reduction tile
TN = 1536     # output tile -> 2 j-tiles => megacore split on v7x


def _ceil_to(n, m):
    return ((n + m - 1) // m) * m


KP1 = _ceil_to(IN_FEATURES, TK)    # 26624
NP1 = _ceil_to(HIDDEN, TN)         # 3072
KP2 = NP1                          # fc3 consumes fc1's padded output directly
NP2 = 128                          # fc3 out lanes padded 6 -> 128 (pre-padded)


# ----------------------------------------------------------------------------
# fc1: y = relu(relu(x) @ W1 + b1), tiled over (M, N, K), K innermost.
# ----------------------------------------------------------------------------
def _fc1_kernel(x_ref, w_ref, b_ref, o_ref):
    k = pl.program_id(2)

    @pl.when(k == 0)
    def _():
        o_ref[...] = jnp.zeros_like(o_ref)

    x = jnp.maximum(x_ref[...], 0.0)               # fused F.relu(x)
    o_ref[...] += jnp.dot(x, w_ref[...], preferred_element_type=jnp.float32)

    @pl.when(k == pl.num_programs(2) - 1)
    def _():
        o_ref[...] = jnp.maximum(o_ref[...] + b_ref[...], 0.0)   # bias + relu


def _fc1(xp, w1p, b1p):
    Mp, Kp = xp.shape
    _, Np = w1p.shape
    grid = (Mp // TM, Np // TN, Kp // TK)

    cost = pl.CostEstimate(
        flops=2 * Mp * Kp * Np,
        transcendentals=0,
        bytes_accessed=Kp * Np * 4 + Mp * Kp * 4 + Mp * Np * 4,
    )

    return pl.pallas_call(
        _fc1_kernel,
        out_shape=jax.ShapeDtypeStruct((Mp, Np), jnp.float32),
        grid_spec=pltpu.PrefetchScalarGridSpec(
            num_scalar_prefetch=0,
            grid=grid,
            in_specs=[
                pl.BlockSpec((TM, TK), lambda i, j, k: (i, k)),
                pl.BlockSpec((TK, TN), lambda i, j, k: (k, j)),
                pl.BlockSpec((1, TN), lambda i, j, k: (0, j)),
            ],
            out_specs=pl.BlockSpec((TM, TN), lambda i, j, k: (i, j)),
        ),
        compiler_params=pltpu.CompilerParams(
            dimension_semantics=("parallel", "parallel", "arbitrary"),
            vmem_limit_bytes=40 << 20,
        ),
        cost_estimate=cost,
    )(xp, w1p, b1p)


# ----------------------------------------------------------------------------
# fc3: y = h @ W2 + b2, single grid step, full-array blocks (tiny: ~1.6 MB).
# ----------------------------------------------------------------------------
def _fc3_kernel(h_ref, w_ref, b_ref, o_ref):
    o_ref[...] = (
        jnp.dot(h_ref[...], w_ref[...], preferred_element_type=jnp.float32)
        + b_ref[...]
    )


def _fc3(h, w2p, b2p):
    Mp, Kp = h.shape
    _, Np = w2p.shape
    return pl.pallas_call(
        _fc3_kernel,
        out_shape=jax.ShapeDtypeStruct((Mp, Np), jnp.float32),
        grid_spec=pltpu.PrefetchScalarGridSpec(
            num_scalar_prefetch=0,
            grid=(1,),
            in_specs=[
                pl.BlockSpec((Mp, Kp), lambda i: (0, 0)),
                pl.BlockSpec((Kp, Np), lambda i: (0, 0)),
                pl.BlockSpec((1, Np), lambda i: (0, 0)),
            ],
            out_specs=pl.BlockSpec((Mp, Np), lambda i: (0, 0)),
        ),
    )(h, w2p, b2p)


# ----------------------------------------------------------------------------
# Parameters: PyTorch-equivalent shapes, stored transposed ((in, out)) and
# pre-padded ONCE to the tile grid so the hot path never copies the weights.
# ----------------------------------------------------------------------------
def init_fcn_params(key):
    k1, k2, k3, k4 = jax.random.split(key, 4)
    s1 = 1.0 / jnp.sqrt(jnp.float32(IN_FEATURES))
    s2 = 1.0 / jnp.sqrt(jnp.float32(HIDDEN))
    w1 = jax.random.uniform(k1, (IN_FEATURES, HIDDEN), jnp.float32, -s1, s1)
    b1 = jax.random.uniform(k2, (HIDDEN,), jnp.float32, -s1, s1)
    w2 = jax.random.uniform(k3, (HIDDEN, OUT_FEATURES), jnp.float32, -s2, s2)
    b2 = jax.random.uniform(k4, (OUT_FEATURES,), jnp.float32, -s2, s2)
    return w1, b1, w2, b2


def pad_fcn_params(w1, b1, w2, b2):
    """One-time pre-padding to the tile grid (zero-pad: relu(0)=0, 0-rows of W
    contribute nothing, padded bias/output columns are sliced off)."""
    w1p = jnp.pad(w1, ((0, KP1 - IN_FEATURES), (0, NP1 - HIDDEN)))
    b1p = jnp.pad(b1, ((0, NP1 - HIDDEN),)).reshape(1, NP1)
    w2p = jnp.pad(w2, ((0, KP2 - HIDDEN), (0, NP2 - OUT_FEATURES)))
    b2p = jnp.pad(b2, ((0, NP2 - OUT_FEATURES),)).reshape(1, NP2)
    return w1p, b1p, w2p, b2p


@jax.jit
def fcn_forward(x, w1p, b1p, w2p, b2p):
    M, K = x.shape
    assert K == IN_FEATURES, K
    Mp = _ceil_to(M, TM)
    # Only the tiny activation tensor is padded per call (~0.8 MB vs ~300 MB
    # of pre-padded weights streamed from HBM).
    xp = jnp.pad(x, ((0, Mp - M), (0, KP1 - K)))
    h = _fc1(xp, w1p, b1p)          # (Mp, NP1); padded columns are exactly 0
    y = _fc3(h, w2p, b2p)           # (Mp, NP2)
    return y[:M, :OUT_FEATURES]


def _reference_forward(x, w1, b1, w2, b2):
    h = jnp.maximum(x, 0.0)
    h = jnp.maximum(h @ w1 + b1, 0.0)
    return h @ w2 + b2


if __name__ == "__main__":
    key = jax.random.PRNGKey(0)
    kx, kp = jax.random.split(key)

    batch = 2
    x = jax.random.normal(kx, (batch, IN_FEATURES), jnp.float32)

    w1, b1, w2, b2 = init_fcn_params(kp)
    w1p, b1p, w2p, b2p = pad_fcn_params(w1, b1, w2, b2)

    y = fcn_forward(x, w1p, b1p, w2p, b2p)
    y = jax.block_until_ready(y)

    y_ref = _reference_forward(x, w1, b1, w2, b2)
    assert y.shape == (batch, OUT_FEATURES), y.shape
    assert jnp.allclose(y, y_ref, rtol=1e-4, atol=1e-4), "mismatch vs reference"

    print("KERNEL_OK")
</pallas_src>

<mosaic_0001>
module attributes {stable_mosaic.version = 11 : i64} {
  func.func @_fc1_kernel(%arg0: i32, %arg1: i32, %arg2: i32, %arg3: memref<8x2048xf32, #tpu.memory_space<vmem>>, %arg4: memref<2048x1536xf32, #tpu.memory_space<vmem>>, %arg5: memref<1x1536xf32, #tpu.memory_space<vmem>>, %arg6: memref<8x1536xf32, #tpu.memory_space<vmem>>) attributes {dimension_semantics = [#tpu.dimension_semantics<parallel>, #tpu.dimension_semantics<parallel>, #tpu.dimension_semantics<arbitrary>], iteration_bounds = array<i64: 1, 2, 13>, scalar_prefetch = 0 : i64, scratch_operands = 0 : i64, tpu.core_type = #tpu.core_type<tc>, window_params = [{transform_indices = @transform_0, window_bounds = array<i64: 8, 2048>}, {transform_indices = @transform_1, window_bounds = array<i64: 2048, 1536>}, {transform_indices = @transform_2, window_bounds = array<i64: 1, 1536>}, {transform_indices = @transform_3, window_bounds = array<i64: 8, 1536>}]} {
    %c0_i32 = arith.constant 0 : i32
    %0 = arith.cmpi eq, %arg2, %c0_i32 : i32
    %1 = arith.extui %0 : i1 to i32
    %c0_i32_0 = arith.constant 0 : i32
    %2 = arith.cmpi ne, %1, %c0_i32_0 : i32
    scf.if %2 {
      %cst_10 = arith.constant 0.000000e+00 : f32
      %14 = vector.broadcast %cst_10 : f32 to vector<8x1536xf32>
      %c0_11 = arith.constant 0 : index
      %c0_12 = arith.constant 0 : index
      %15 = vector.load %arg6[%c0_11, %c0_12] : memref<8x1536xf32, #tpu.memory_space<vmem>>, vector<8x1536xf32>
      tpu.vector_store %arg6[%c0_11, %c0_12], %14 {strides = array<i32>} : memref<8x1536xf32, #tpu.memory_space<vmem>>, vector<8x1536xf32>,
    } else {
    }
    %c0 = arith.constant 0 : index
    %c0_1 = arith.constant 0 : index
    %3 = vector.load %arg3[%c0, %c0_1] : memref<8x2048xf32, #tpu.memory_space<vmem>>, vector<8x2048xf32>
    %cst = arith.constant 0.000000e+00 : f32
    %4 = vector.broadcast %cst : f32 to vector<8x2048xf32>
    %5 = arith.maximumf %3, %4 : vector<8x2048xf32>
    %c0_2 = arith.constant 0 : index
    %c0_3 = arith.constant 0 : index
    %6 = vector.load %arg6[%c0_2, %c0_3] : memref<8x1536xf32, #tpu.memory_space<vmem>>, vector<8x1536xf32>
    %c0_4 = arith.constant 0 : index
    %c0_5 = arith.constant 0 : index
    %7 = vector.load %arg4[%c0_4, %c0_5] : memref<2048x1536xf32, #tpu.memory_space<vmem>>, vector<2048x1536xf32>
    %cst_6 = arith.constant dense<0.000000e+00> : vector<8x1536xf32>
    %8 = tpu.matmul %5, %7, %cst_6 {dimension_numbers = #tpu.dot_dimension_numbers<[1], [0], [0], [1], [0, 0, 1, 1], [], []>} : vector<8x2048xf32>, vector<2048x1536xf32>, vector<8x1536xf32> -> vector<8x1536xf32>
    %9 = arith.addf %6, %8 : vector<8x1536xf32>
    %c0_7 = arith.constant 0 : index
    %c0_8 = arith.constant 0 : index
    %10 = vector.load %arg6[%c0_7, %c0_8] : memref<8x1536xf32, #tpu.memory_space<vmem>>, vector<8x1536xf32>
    tpu.vector_store %arg6[%c0_7, %c0_8], %9 {strides = array<i32>} : memref<8x1536xf32, #tpu.memory_space<vmem>>, vector<8x1536xf32>,
    %c12_i32 = arith.constant 12 : i32
    %11 = arith.cmpi eq, %arg2, %c12_i32 : i32
    %12 = arith.extui %11 : i1 to i32
    %c0_i32_9 = arith.constant 0 : i32
    %13 = arith.cmpi ne, %12, %c0_i32_9 : i32
    scf.if %13 {
      %c0_10 = arith.constant 0 : index
      %c0_11 = arith.constant 0 : index
      %14 = vector.load %arg6[%c0_10, %c0_11] : memref<8x1536xf32, #tpu.memory_space<vmem>>, vector<8x1536xf32>
      %c0_12 = arith.constant 0 : index
      %c0_13 = arith.constant 0 : index
      %15 = vector.load %arg5[%c0_12, %c0_13] : memref<1x1536xf32, #tpu.memory_space<vmem>>, vector<1x1536xf32>
      %16 = vector.broadcast %15 : vector<1x1536xf32> to vector<8x1536xf32>
      %17 = arith.addf %14, %16 : vector<8x1536xf32>
      %cst_14 = arith.constant 0.000000e+00 : f32
      %18 = vector.broadcast %cst_14 : f32 to vector<8x1536xf32>
      %19 = arith.maximumf %17, %18 : vector<8x1536xf32>
      %c0_15 = arith.constant 0 : index
      %c0_16 = arith.constant 0 : index
      %20 = vector.load %arg6[%c0_15, %c0_16] : memref<8x1536xf32, #tpu.memory_space<vmem>>, vector<8x1536xf32>
      tpu.vector_store %arg6[%c0_15, %c0_16], %19 {strides = array<i32>} : memref<8x1536xf32, #tpu.memory_space<vmem>>, vector<8x1536xf32>,
    } else {
    }
    return
  }
  func.func @transform_0(%arg0: i32, %arg1: i32, %arg2: i32) -> (i32, i32) {
    %c0_i32 = arith.constant 0 : i32
    return %arg0, %arg2 : i32, i32
  }
  func.func @transform_1(%arg0: i32, %arg1: i32, %arg2: i32) -> (i32, i32) {
    %c0_i32 = arith.constant 0 : i32
    return %arg2, %arg1 : i32, i32
  }
  func.func @transform_2(%arg0: i32, %arg1: i32, %arg2: i32) -> (i32, i32) {
    %c0_i32 = arith.constant 0 : i32
    %c0_i32_0 = arith.constant 0 : i32
    return %c0_i32, %arg1 : i32, i32
  }
  func.func @transform_3(%arg0: i32, %arg1: i32, %arg2: i32) -> (i32, i32) {
    %c0_i32 = arith.constant 0 : i32
    return %arg0, %arg1 : i32, i32
  }
}

module attributes {stable_mosaic.version = 11 : i64} {
  func.func @_fc3_kernel(%arg0: i32, %arg1: memref<8x3072xf32, #tpu.memory_space<vmem>>, %arg2: memref<3072x128xf32, #tpu.memory_space<vmem>>, %arg3: memref<1x128xf32, #tpu.memory_space<vmem>>, %arg4: memref<8x128xf32, #tpu.memory_space<vmem>>) attributes {dimension_semantics = [#tpu.dimension_semantics<arbitrary>], iteration_bounds = array<i64: 1>, scalar_prefetch = 0 : i64, scratch_operands = 0 : i64, tpu.core_type = #tpu.core_type<tc>, window_params = [{pipeline_mode = #tpu.pipeline_mode<synchronous>, transform_indices = @transform_0, window_bounds = array<i64: 8, 3072>}, {pipeline_mode = #tpu.pipeline_mode<synchronous>, transform_indices = @transform_1, window_bounds = array<i64: 3072, 128>}, {pipeline_mode = #tpu.pipeline_mode<synchronous>, transform_indices = @transform_2, window_bounds = array<i64: 1, 128>}, {pipeline_mode = #tpu.pipeline_mode<synchronous>, transform_indices = @transform_3, window_bounds = array<i64: 8, 128>}]} {
    %c0 = arith.constant 0 : index
    %c0_0 = arith.constant 0 : index
    %0 = vector.load %arg1[%c0, %c0_0] : memref<8x3072xf32, #tpu.memory_space<vmem>>, vector<8x3072xf32>
    %c0_1 = arith.constant 0 : index
    %c0_2 = arith.constant 0 : index
    %1 = vector.load %arg2[%c0_1, %c0_2] : memref<3072x128xf32, #tpu.memory_space<vmem>>, vector<3072x128xf32>
    %cst = arith.constant dense<0.000000e+00> : vector<8x128xf32>
    %2 = tpu.matmul %0, %1, %cst {dimension_numbers = #tpu.dot_dimension_numbers<[1], [0], [0], [1], [0, 0, 1, 1], [], []>} : vector<8x3072xf32>, vector<3072x128xf32>, vector<8x128xf32> -> vector<8x128xf32>
    %c0_3 = arith.constant 0 : index
    %c0_4 = arith.constant 0 : index
    %3 = vector.load %arg3[%c0_3, %c0_4] : memref<1x128xf32, #tpu.memory_space<vmem>>, vector<1x128xf32>
    %4 = vector.broadcast %3 : vector<1x128xf32> to vector<8x128xf32>
    %5 = arith.addf %2, %4 : vector<8x128xf32>
    %c0_5 = arith.constant 0 : index
    %c0_6 = arith.constant 0 : index
    %6 = vector.load %arg4[%c0_5, %c0_6] : memref<8x128xf32, #tpu.memory_space<vmem>>, vector<8x128xf32>
    tpu.vector_store %arg4[%c0_5, %c0_6], %5 {strides = array<i32>} : memref<8x128xf32, #tpu.memory_space<vmem>>, vector<8x128xf32>,
    return
  }
  func.func @transform_0(%arg0: i32) -> (i32, i32) {
    %c0_i32 = arith.constant 0 : i32
    %c0_i32_0 = arith.constant 0 : i32
    %c0_i32_1 = arith.constant 0 : i32
    return %c0_i32, %c0_i32_0 : i32, i32
  }
  func.func @transform_1(%arg0: i32) -> (i32, i32) {
    %c0_i32 = arith.constant 0 : i32
    %c0_i32_0 = arith.constant 0 : i32
    %c0_i32_1 = arith.constant 0 : i32
    return %c0_i32, %c0_i32_0 : i32, i32
  }
  func.func @transform_2(%arg0: i32) -> (i32, i32) {
    %c0_i32 = arith.constant 0 : i32
    %c0_i32_0 = arith.constant 0 : i32
    %c0_i32_1 = arith.constant 0 : i32
    return %c0_i32, %c0_i32_0 : i32, i32
  }
  func.func @transform_3(%arg0: i32) -> (i32, i32) {
    %c0_i32 = arith.constant 0 : i32
    %c0_i32_0 = arith.constant 0 : i32
    %c0_i32_1 = arith.constant 0 : i32
    return %c0_i32, %c0_i32_0 : i32, i32
  }
}

</mosaic_0001>

<bundles_post_ra>
// kernel: fcn_forward.3
= control target key start
LH: loop header
LB: loop body
LE: loop exit
PB: predicated region body
PF: predicated region fallthrough
CT: control target
= control target key end

     0   :  { %s3329_s1 = inlined_call_operand.vmem [shape: f32[3072,128], index: 1, kind: input, shape index: {}]   ;;  %s3330_s0 = inlined_call_operand.vmem [shape: f32[8,3072], index: 0, kind: input, shape index: {}]   ;;  %s3331_s2 = inlined_call_operand.vmem [shape: f32[1,128], index: 2, kind: input, shape index: {}]   ;;  %s3332_s3 = inlined_call_operand.vmem [shape: f32[8,128], index: 3, kind: output, shape index: {}]  }
   0x1   :  { %v54_v0 = vld [vmem:[%s3329_s1 + $0x80] sm:$0xff]  ;;  %v55_v1 = vld [vmem:[%s3329_s1 + $0x88] sm:$0xff]  ;;  %v56_v11 = vld [vmem:[%s3329_s1 + $0x90] sm:$0xff] }
   0x2   :  { %v38_v2 = vld [vmem:[%s3329_s1] sm:$0xff]  ;;  %v1695_v3 = vpack.c.bf16 %v55_v1, %v54_v0  ;;  %v39_v4 = vld [vmem:[%s3329_s1 + $0x8] sm:$0xff]  ;;  %v57_v13 = vld [vmem:[%s3329_s1 + $0x98] sm:$0xff] }
   0x3   :  { %v86_v5 = vld [vmem:[%s3329_s1 + $0x180] sm:$0xff]  ;;  %v87_v6 = vld [vmem:[%s3329_s1 + $0x188] sm:$0xff]  ;;  %v1697_v7 = vpack.c.bf16 %v39_v4, %v38_v2  ;;  %v40_v14 = vld [vmem:[%s3329_s1 + $0x10] sm:$0xff]  ;;  %v1699_v16 = vpack.c.bf16 %v57_v13, %v56_v11 }
   0x4   :  { %v1727_v8 = vpack.c.bf16 %v87_v6, %v86_v5  ;;  %v70_v9 = vld [vmem:[%s3329_s1 + $0x100] sm:$0xff]  ;;  %v71_v10 = vld [vmem:[%s3329_s1 + $0x108] sm:$0xff]  ;;  %1696 = vmatprep.subr.bf16.mxu0 %v1695_v3  ;;  %v41_v15 = vld [vmem:[%s3329_s1 + $0x18] sm:$0xff] }
   0x5   :  { %v1729_v12 = vpack.c.bf16 %v71_v10, %v70_v9  ;;  %1698 = vmatpush3.bf16.msra.mxu0 %v1697_v7  ;;  %v1701_v17 = vpack.c.bf16 %v41_v15, %v40_v14  ;;  %v88_v18 = vld [vmem:[%s3329_s1 + $0x190] sm:$0xff]  ;;  %v89_v19 = vld [vmem:[%s3329_s1 + $0x198] sm:$0xff]  ;;  %v58_v23 = vld [vmem:[%s3329_s1 + $0xa0] sm:$0xff] }
   0x6   :  { %1728 = vmatprep.subr.bf16.mxu1 %v1727_v8  ;;  %v72_v20 = vld [vmem:[%s3329_s1 + $0x110] sm:$0xff]  ;;  %v1731_v21 = vpack.c.bf16 %v89_v19, %v88_v18  ;;  %v73_v22 = vld [vmem:[%s3329_s1 + $0x118] sm:$0xff]  ;;  %v59_v24 = vld [vmem:[%s3329_s1 + $0xa8] sm:$0xff]  ;;  %1700 = vmatprep.subr.bf16.mxu0 %v1699_v16 }
   0x7   :  { %1730 = vmatpush3.bf16.msra.mxu1 %v1729_v12  ;;  %v1733_v25 = vpack.c.bf16 %v73_v22, %v72_v20  ;;  %v1703_v26 = vpack.c.bf16 %v59_v24, %v58_v23  ;;  %v42_v27 = vld [vmem:[%s3329_s1 + $0x20] sm:$0xff]  ;;  %v43_v28 = vld [vmem:[%s3329_s1 + $0x28] sm:$0xff]  ;;  %v60_v35 = vld [vmem:[%s3329_s1 + $0xb0] sm:$0xff] }
   0x8   :  { %v90_v29 = vld [vmem:[%s3329_s1 + $0x1a0] sm:$0xff]  ;;  %1732 = vmatprep.subr.bf16.mxu1 %v1731_v21  ;;  %v91_v30 = vld [vmem:[%s3329_s1 + $0x1a8] sm:$0xff]  ;;  %v1705_v33 = vpack.c.bf16 %v43_v28, %v42_v27  ;;  %v61_v36 = vld [vmem:[%s3329_s1 + $0xb8] sm:$0xff] }
   0x9   :  { %v74_v31 = vld [vmem:[%s3329_s1 + $0x120] sm:$0xff]  ;;  %v75_v32 = vld [vmem:[%s3329_s1 + $0x128] sm:$0xff]  ;;  %1702 = vmatpush3.bf16.msra.mxu0 %v1701_v17  ;;  %v1735_v34 = vpack.c.bf16 %v91_v30, %v90_v29  ;;  %v44_v37 = vld [vmem:[%s3329_s1 + $0x30] sm:$0xff]  ;;  %v1707_v39 = vpack.c.bf16 %v61_v36, %v60_v35 }
   0xa   :  { %1704 = vmatprep.subr.bf16.mxu0 %v1703_v26  ;;  %v1737_v38 = vpack.c.bf16 %v75_v32, %v74_v31  ;;  %v45_v40 = vld [vmem:[%s3329_s1 + $0x38] sm:$0xff]  ;;  %v92_v41 = vld [vmem:[%s3329_s1 + $0x1b0] sm:$0xff]  ;;  %v62_v46 = vld [vmem:[%s3329_s1 + $0xc0] sm:$0xff] }
   0xb   :  { %1734 = vmatpush3.bf16.msra.mxu1 %v1733_v25  ;;  %v93_v42 = vld [vmem:[%s3329_s1 + $0x1b8] sm:$0xff]  ;;  %v76_v44 = vld [vmem:[%s3329_s1 + $0x130] sm:$0xff]  ;;  %v63_v47 = vld [vmem:[%s3329_s1 + $0xc8] sm:$0xff]  ;;  %v1709_v48 = vpack.c.bf16 %v45_v40, %v44_v37 }
   0xc   :  { %1736 = vmatprep.subr.bf16.mxu1 %v1735_v34  ;;  %v1739_v43 = vpack.c.bf16 %v93_v42, %v92_v41  ;;  %v77_v45 = vld [vmem:[%s3329_s1 + $0x138] sm:$0xff]  ;;  %v94_v49 = vld [vmem:[%s3329_s1 + $0x1c0] sm:$0xff]  ;;  %v95_v50 = vld [vmem:[%s3329_s1 + $0x1c8] sm:$0xff]  ;;  %v1711_v52 = vpack.c.bf16 %v63_v47, %v62_v46 }
   0xd   :  { %1706 = vmatpush3.bf16.msra.mxu0 %v1705_v33  ;;  %v1741_v51 = vpack.c.bf16 %v77_v45, %v76_v44  ;;  %v46_v53 = vld [vmem:[%s3329_s1 + $0x40] sm:$0xff]  ;;  %v47_v54 = vld [vmem:[%s3329_s1 + $0x48] sm:$0xff]  ;;  %v1743_v56 = vpack.c.bf16 %v95_v50, %v94_v49  ;;  %v64_v58 = vld [vmem:[%s3329_s1 + $0xd0] sm:$0xff] }
   0xe   :  { %1708 = vmatprep.subr.bf16.mxu0 %v1707_v39  ;;  %v78_v55 = vld [vmem:[%s3329_s1 + $0x140] sm:$0xff]  ;;  %v79_v57 = vld [vmem:[%s3329_s1 + $0x148] sm:$0xff]  ;;  %v65_v59 = vld [vmem:[%s3329_s1 + $0xd8] sm:$0xff]  ;;  %v1713_v62 = vpack.c.bf16 %v47_v54, %v46_v53 }
   0xf   :  { %1738 = vmatpush3.bf16.msra.mxu1 %v1737_v38  ;;  %v96_v60 = vld [vmem:[%s3329_s1 + $0x1d0] sm:$0xff]  ;;  %v97_v61 = vld [vmem:[%s3329_s1 + $0x1d8] sm:$0xff]  ;;  %v1745_v63 = vpack.c.bf16 %v79_v57, %v78_v55  ;;  %v1715_v0 = vpack.c.bf16 %v65_v59, %v64_v58  ;;  %v66_v6 = vld [vmem:[%s3329_s1 + $0xe0] sm:$0xff] }
  0x10   :  { %1740 = vmatprep.subr.bf16.mxu1 %v1739_v43  ;;  %v48_v1 = vld [vmem:[%s3329_s1 + $0x50] sm:$0xff]  ;;  %v49_v2 = vld [vmem:[%s3329_s1 + $0x58] sm:$0xff]  ;;  %v1747_v4 = vpack.c.bf16 %v97_v61, %v96_v60  ;;  %v67_v7 = vld [vmem:[%s3329_s1 + $0xe8] sm:$0xff] }
  0x11   :  { %1710 = vmatpush3.bf16.msra.mxu0 %v1709_v48  ;;  %v80_v3 = vld [vmem:[%s3329_s1 + $0x150] sm:$0xff]  ;;  %v81_v5 = vld [vmem:[%s3329_s1 + $0x158] sm:$0xff]  ;;  %v98_v8 = vld [vmem:[%s3329_s1 + $0x1e0] sm:$0xff]  ;;  %v1717_v10 = vpack.c.bf16 %v49_v2, %v48_v1  ;;  %v1719_v14 = vpack.c.bf16 %v67_v7, %v66_v6 }
  0x12   :  { %1712 = vmatprep.subr.bf16.mxu0 %v1711_v52  ;;  %v99_v9 = vld [vmem:[%s3329_s1 + $0x1e8] sm:$0xff]  ;;  %v50_v11 = vld [vmem:[%s3329_s1 + $0x60] sm:$0xff]  ;;  %v1749_v13 = vpack.c.bf16 %v81_v5, %v80_v3  ;;  %v68_v19 = vld [vmem:[%s3329_s1 + $0xf0] sm:$0xff] }
  0x13   :  { %1742 = vmatpush3.bf16.msra.mxu1 %v1741_v51  ;;  %v51_v12 = vld [vmem:[%s3329_s1 + $0x68] sm:$0xff]  ;;  %v82_v15 = vld [vmem:[%s3329_s1 + $0x160] sm:$0xff]  ;;  %v1751_v18 = vpack.c.bf16 %v99_v9, %v98_v8  ;;  %v69_v20 = vld [vmem:[%s3329_s1 + $0xf8] sm:$0xff] }
  0x14   :  { %1744 = vmatprep.subr.bf16.mxu1 %v1743_v56  ;;  %v83_v16 = vld [vmem:[%s3329_s1 + $0x168] sm:$0xff]  ;;  %v17_v21 = vld [vmem:[%s3330_s0 + $0x18] sm:$0xff]  ;;  %v100_v22 = vld [vmem:[%s3329_s1 + $0x1f0] sm:$0xff]  ;;  %v1721_v24 = vpack.c.bf16 %v51_v12, %v50_v11  ;;  %v1723_v26 = vpack.c.bf16 %v69_v20, %v68_v19 }
  0x15   :  { %1714 = vmatpush3.bf16.msra.mxu0 %v1713_v62  ;;  %v15_v17 = vld [vmem:[%s3330_s0 + $0x8] sm:$0xff]  ;;  %v101_v23 = vld [vmem:[%s3329_s1 + $0x1f8] sm:$0xff]  ;;  %563 = vmatprep.mubr.f32.mxu1 %v17_v21  ;;  %v1753_v25 = vpack.c.bf16 %v83_v16, %v82_v15  ;;  %v52_v27 = vld [vmem:[%s3329_s1 + $0x70] sm:$0xff] }
  0x16   :  { %1716 = vmatprep.subr.bf16.mxu0 %v1715_v0  ;;  %493 = vmatprep.mubr.f32.mxu0 %v15_v17  ;;  %v53_v28 = vld [vmem:[%s3329_s1 + $0x78] sm:$0xff]  ;;  %v84_v29 = vld [vmem:[%s3329_s1 + $0x170] sm:$0xff]  ;;  %v1755_v30 = vpack.c.bf16 %v101_v23, %v100_v22  ;;  %v118_v32 = vld [vmem:[%s3329_s1 + $0x280] sm:$0xff] }
  0x17   :  { %1746 = vmatpush3.bf16.msra.mxu1 %v1745_v63  ;;  %v85_v31 = vld [vmem:[%s3329_s1 + $0x178] sm:$0xff]  ;;  %v119_v33 = vld [vmem:[%s3329_s1 + $0x288] sm:$0xff]  ;;  %v150_v34 = vld [vmem:[%s3329_s1 + $0x380] sm:$0xff]  ;;  %v1725_v36 = vpack.c.bf16 %v53_v28, %v52_v27 }
  0x18   :  { %1748 = vmatprep.subr.bf16.mxu1 %v1747_v4  ;;  %v151_v35 = vld [vmem:[%s3329_s1 + $0x388] sm:$0xff]  ;;  %v1757_v37 = vpack.c.bf16 %v85_v31, %v84_v29  ;;  %v1759_v38 = vpack.c.bf16 %v119_v33, %v118_v32  ;;  %v102_v39 = vld [vmem:[%s3329_s1 + $0x200] sm:$0xff]  ;;  %v120_v44 = vld [vmem:[%s3329_s1 + $0x290] sm:$0xff] }
  0x19   :  { %1718 = vmatpush3.bf16.msra.mxu0 %v1717_v10  ;;  %v103_v40 = vld [vmem:[%s3329_s1 + $0x208] sm:$0xff]  ;;  %v134_v41 = vld [vmem:[%s3329_s1 + $0x300] sm:$0xff]  ;;  %v1791_v42 = vpack.c.bf16 %v151_v35, %v150_v34  ;;  %v121_v45 = vld [vmem:[%s3329_s1 + $0x298] sm:$0xff] }
  0x1a   :  { %1720 = vmatprep.subr.bf16.mxu0 %v1719_v14  ;;  %v135_v43 = vld [vmem:[%s3329_s1 + $0x308] sm:$0xff]  ;;  %v152_v46 = vld [vmem:[%s3329_s1 + $0x390] sm:$0xff]  ;;  %v153_v47 = vld [vmem:[%s3329_s1 + $0x398] sm:$0xff]  ;;  %v1761_v49 = vpack.c.bf16 %v103_v40, %v102_v39  ;;  %v1763_v52 = vpack.c.bf16 %v121_v45, %v120_v44 }
  0x1b   :  { %1750 = vmatpush3.bf16.msra.mxu1 %v1749_v13  ;;  %v14_v48 = vld [vmem:[%s3330_s0] sm:$0xff]  ;;  %v16_v50 = vld [vmem:[%s3330_s0 + $0x10] sm:$0xff]  ;;  %v1793_v51 = vpack.c.bf16 %v135_v43, %v134_v41  ;;  %v105_v54 = vld [vmem:[%s3329_s1 + $0x218] sm:$0xff]  ;;  %v1795_v56 = vpack.c.bf16 %v153_v47, %v152_v46 }
  0x1c   :  { %1752 = vmatprep.subr.bf16.mxu1 %v1751_v18  ;;  %v104_v53 = vld [vmem:[%s3329_s1 + $0x210] sm:$0xff]  ;;  %v137_v57 = vld [vmem:[%s3329_s1 + $0x318] sm:$0xff]  ;;  %v122_v58 = vld [vmem:[%s3329_s1 + $0x2a0] sm:$0xff] }
  0x1d   :  { %1722 = vmatpush3.bf16.msra.mxu0 %v1721_v24  ;;  %v136_v55 = vld [vmem:[%s3329_s1 + $0x310] sm:$0xff]  ;;  %v123_v59 = vld [vmem:[%s3329_s1 + $0x2a8] sm:$0xff]  ;;  %v154_v60 = vld [vmem:[%s3329_s1 + $0x3a0] sm:$0xff]  ;;  %v1765_v62 = vpack.c.bf16 %v105_v54, %v104_v53 }
  0x1e   :  { %1724 = vmatprep.subr.bf16.mxu0 %v1723_v26  ;;  %v155_v61 = vld [vmem:[%s3329_s1 + $0x3a8] sm:$0xff]  ;;  %v1797_v63 = vpack.c.bf16 %v137_v57, %v136_v55  ;;  %v1767_v0 = vpack.c.bf16 %v123_v59, %v122_v58  ;;  %v106_v1 = vld [vmem:[%s3329_s1 + $0x220] sm:$0xff]  ;;  %v124_v6 = vld [vmem:[%s3329_s1 + $0x2b0] sm:$0xff] }
  0x1f   :  { %1754 = vmatpush3.bf16.msra.mxu1 %v1753_v25  ;;  %v107_v2 = vld [vmem:[%s3329_s1 + $0x228] sm:$0xff]  ;;  %v138_v3 = vld [vmem:[%s3329_s1 + $0x320] sm:$0xff]  ;;  %v1799_v4 = vpack.c.bf16 %v155_v61, %v154_v60  ;;  %v125_v7 = vld [vmem:[%s3329_s1 + $0x2b8] sm:$0xff] }
  0x20   :  { %1756 = vmatprep.subr.bf16.mxu1 %v1755_v30  ;;  %v139_v5 = vld [vmem:[%s3329_s1 + $0x328] sm:$0xff]  ;;  %v156_v8 = vld [vmem:[%s3329_s1 + $0x3b0] sm:$0xff]  ;;  %v157_v9 = vld [vmem:[%s3329_s1 + $0x3b8] sm:$0xff]  ;;  %v1769_v10 = vpack.c.bf16 %v107_v2, %v106_v1  ;;  %v1771_v12 = vpack.c.bf16 %v125_v7, %v124_v6 }
  0x21   :  { %1726 = vmatpush3.bf16.msra.mxu0 %v1725_v36  ;;  %v1801_v11 = vpack.c.bf16 %v139_v5, %v138_v3  ;;  %v108_v13 = vld [vmem:[%s3329_s1 + $0x230] sm:$0xff]  ;;  %v109_v14 = vld [vmem:[%s3329_s1 + $0x238] sm:$0xff]  ;;  %v1803_v16 = vpack.c.bf16 %v157_v9, %v156_v8  ;;  %v126_v18 = vld [vmem:[%s3329_s1 + $0x2c0] sm:$0xff] }
  0x22   :  { %1760 = vmatprep.subr.bf16.mxu0 %v1759_v38  ;;  %v140_v15 = vld [vmem:[%s3329_s1 + $0x330] sm:$0xff]  ;;  %v141_v17 = vld [vmem:[%s3329_s1 + $0x338] sm:$0xff]  ;;  %v127_v19 = vld [vmem:[%s3329_s1 + $0x2c8] sm:$0xff]  ;;  %v1773_v22 = vpack.c.bf16 %v109_v14, %v108_v13 }
  0x23   :  { %1758 = vmatpush3.bf16.msra.mxu1 %v1757_v37  ;;  %v158_v20 = vld [vmem:[%s3329_s1 + $0x3c0] sm:$0xff]  ;;  %v159_v21 = vld [vmem:[%s3329_s1 + $0x3c8] sm:$0xff]  ;;  %v1805_v25 = vpack.c.bf16 %v141_v17, %v140_v15  ;;  %v1775_v26 = vpack.c.bf16 %v127_v19, %v126_v18  ;;  %v21_v29 = vld [vmem:[%s3330_s0 + $0x38] sm:$0xff] }
  0x24   :  { %1792 = vmatprep.subr.bf16.mxu1 %v1791_v42  ;;  %494 = vmatmul.mubr.f32.vlgmr.msra.gmra.mrb[0].mxu0 %v14_v48  ;;  %v110_v23 = vld [vmem:[%s3329_s1 + $0x240] sm:$0xff]  ;;  %v19_v24 = vld [vmem:[%s3330_s0 + $0x28] sm:$0xff]  ;;  %v1807_v30 = vpack.c.bf16 %v159_v21, %v158_v20  ;;  %v128_v32 = vld [vmem:[%s3329_s1 + $0x2d0] sm:$0xff] }
  0x25   :  { %1762 = vmatpush3.bf16.msra.mxu0 %v1761_v49  ;;  %v111_v27 = vld [vmem:[%s3329_s1 + $0x248] sm:$0xff]  ;;  %v142_v28 = vld [vmem:[%s3329_s1 + $0x340] sm:$0xff]  ;;  %v129_v33 = vld [vmem:[%s3329_s1 + $0x2d8] sm:$0xff]  ;;  %633 = vmatprep.mubr.f32.mxu0 %v19_v24 }
  0x26   :  { %564 = vmatmul.mubr.f32.vlgmr.msra.gmra.mrb[0].mxu1 %v16_v50  ;;  %1764 = vmatprep.subr.bf16.mxu0 %v1763_v52  ;;  %v143_v31 = vld [vmem:[%s3329_s1 + $0x348] sm:$0xff]  ;;  %v160_v34 = vld [vmem:[%s3329_s1 + $0x3d0] sm:$0xff]  ;;  %v161_v35 = vld [vmem:[%s3329_s1 + $0x3d8] sm:$0xff]  ;;  %v1777_v36 = vpack.c.bf16 %v111_v27, %v110_v23  ;;  %v1779_v38 = vpack.c.bf16 %v129_v33, %v128_v32 }
  0x27   :  { %1794 = vmatpush3.bf16.msra.mxu1 %v1793_v51  ;;  %703 = vmatprep.mubr.f32.mxu1 %v21_v29  ;;  %v1809_v37 = vpack.c.bf16 %v143_v31, %v142_v28  ;;  %v112_v39 = vld [vmem:[%s3329_s1 + $0x250] sm:$0xff]  ;;  %v113_v40 = vld [vmem:[%s3329_s1 + $0x258] sm:$0xff]  ;;  %v1811_v42 = vpack.c.bf16 %v161_v35, %v160_v34  ;;  %v130_v44 = vld [vmem:[%s3329_s1 + $0x2e0] sm:$0xff] }
  0x28   :  { %1796 = vmatprep.subr.bf16.mxu1 %v1795_v56  ;;  %v144_v41 = vld [vmem:[%s3329_s1 + $0x350] sm:$0xff]  ;;  %v145_v43 = vld [vmem:[%s3329_s1 + $0x358] sm:$0xff]  ;;  %v131_v45 = vld [vmem:[%s3329_s1 + $0x2e8] sm:$0xff]  ;;  %v1781_v48 = vpack.c.bf16 %v113_v40, %v112_v39 }
  0x29   :  { %1766 = vmatpush3.bf16.msra.mxu0 %v1765_v62  ;;  %v162_v46 = vld [vmem:[%s3329_s1 + $0x3e0] sm:$0xff]  ;;  %v163_v47 = vld [vmem:[%s3329_s1 + $0x3e8] sm:$0xff]  ;;  %v1813_v49 = vpack.c.bf16 %v145_v43, %v144_v41  ;;  %v1783_v50 = vpack.c.bf16 %v131_v45, %v130_v44  ;;  %v132_v56 = vld [vmem:[%s3329_s1 + $0x2f0] sm:$0xff] }
  0x2a   :  { %1768 = vmatprep.subr.bf16.mxu0 %v1767_v0  ;;  %v114_v51 = vld [vmem:[%s3329_s1 + $0x260] sm:$0xff]  ;;  %v115_v52 = vld [vmem:[%s3329_s1 + $0x268] sm:$0xff]  ;;  %v1815_v54 = vpack.c.bf16 %v163_v47, %v162_v46  ;;  %v133_v57 = vld [vmem:[%s3329_s1 + $0x2f8] sm:$0xff] }
  0x2b   :  { %1798 = vmatpush3.bf16.msra.mxu1 %v1797_v63  ;;  %v146_v53 = vld [vmem:[%s3329_s1 + $0x360] sm:$0xff]  ;;  %v147_v55 = vld [vmem:[%s3329_s1 + $0x368] sm:$0xff]  ;;  %v164_v58 = vld [vmem:[%s3329_s1 + $0x3f0] sm:$0xff]  ;;  %v1785_v60 = vpack.c.bf16 %v115_v52, %v114_v51  ;;  %v1787_v62 = vpack.c.bf16 %v133_v57, %v132_v56 }
  0x2c   :  { %1800 = vmatprep.subr.bf16.mxu1 %v1799_v4  ;;  %v165_v59 = vld [vmem:[%s3329_s1 + $0x3f8] sm:$0xff]  ;;  %v1817_v61 = vpack.c.bf16 %v147_v55, %v146_v53  ;;  %v116_v63 = vld [vmem:[%s3329_s1 + $0x270] sm:$0xff]  ;;  %v182_v4 = vld [vmem:[%s3329_s1 + $0x480] sm:$0xff] }
  0x2d   :  { %1770 = vmatpush3.bf16.msra.mxu0 %v1769_v10  ;;  %v117_v0 = vld [vmem:[%s3329_s1 + $0x278] sm:$0xff]  ;;  %v148_v1 = vld [vmem:[%s3329_s1 + $0x370] sm:$0xff]  ;;  %v1819_v2 = vpack.c.bf16 %v165_v59, %v164_v58  ;;  %v183_v5 = vld [vmem:[%s3329_s1 + $0x488] sm:$0xff] }
  0x2e   :  { %1772 = vmatprep.subr.bf16.mxu0 %v1771_v12  ;;  %v149_v3 = vld [vmem:[%s3329_s1 + $0x378] sm:$0xff]  ;;  %v214_v6 = vld [vmem:[%s3329_s1 + $0x580] sm:$0xff]  ;;  %v215_v7 = vld [vmem:[%s3329_s1 + $0x588] sm:$0xff]  ;;  %v1789_v8 = vpack.c.bf16 %v117_v0, %v116_v63  ;;  %v1823_v10 = vpack.c.bf16 %v183_v5, %v182_v4 }
  0x2f   :  { %1802 = vmatpush3.bf16.msra.mxu1 %v1801_v11  ;;  %v1821_v9 = vpack.c.bf16 %v149_v3, %v148_v1  ;;  %v166_v11 = vld [vmem:[%s3329_s1 + $0x400] sm:$0xff]  ;;  %v167_v12 = vld [vmem:[%s3329_s1 + $0x408] sm:$0xff]  ;;  %v1855_v14 = vpack.c.bf16 %v215_v7, %v214_v6  ;;  %v185_v17 = vld [vmem:[%s3329_s1 + $0x498] sm:$0xff] }
  0x30   :  { %1804 = vmatprep.subr.bf16.mxu1 %v1803_v16  ;;  %v198_v13 = vld [vmem:[%s3329_s1 + $0x500] sm:$0xff]  ;;  %v199_v15 = vld [vmem:[%s3329_s1 + $0x508] sm:$0xff]  ;;  %v184_v16 = vld [vmem:[%s3329_s1 + $0x490] sm:$0xff]  ;;  %v1825_v21 = vpack.c.bf16 %v167_v12, %v166_v11 }
  0x31   :  { %1774 = vmatpush3.bf16.msra.mxu0 %v1773_v22  ;;  %v216_v18 = vld [vmem:[%s3329_s1 + $0x590] sm:$0xff]  ;;  %v217_v19 = vld [vmem:[%s3329_s1 + $0x598] sm:$0xff]  ;;  %v18_v20 = vld [vmem:[%s3330_s0 + $0x20] sm:$0xff]  ;;  %v1857_v23 = vpack.c.bf16 %v199_v15, %v198_v13  ;;  %v1827_v24 = vpack.c.bf16 %v185_v17, %v184_v16 }
  0x32   :  { %1776 = vmatprep.subr.bf16.mxu0 %v1775_v26  ;;  %v20_v22 = vld [vmem:[%s3330_s0 + $0x30] sm:$0xff]  ;;  %v169_v26 = vld [vmem:[%s3329_s1 + $0x418] sm:$0xff]  ;;  %v1859_v28 = vpack.c.bf16 %v217_v19, %v216_v18  ;;  %v187_v31 = vld [vmem:[%s3329_s1 + $0x4a8] sm:$0xff] }
  0x33   :  { %1806 = vmatpush3.bf16.msra.mxu1 %v1805_v25  ;;  %v168_v25 = vld [vmem:[%s3329_s1 + $0x410] sm:$0xff]  ;;  %v201_v29 = vld [vmem:[%s3329_s1 + $0x518] sm:$0xff]  ;;  %v218_v32 = vld [vmem:[%s3329_s1 + $0x5a0] sm:$0xff] }
  0x34   :  { %1808 = vmatprep.subr.bf16.mxu1 %v1807_v30  ;;  %v200_v27 = vld [vmem:[%s3329_s1 + $0x510] sm:$0xff]  ;;  %v186_v30 = vld [vmem:[%s3329_s1 + $0x4a0] sm:$0xff]  ;;  %v219_v33 = vld [vmem:[%s3329_s1 + $0x5a8] sm:$0xff]  ;;  %v1829_v35 = vpack.c.bf16 %v169_v26, %v168_v25 }
  0x35   :  { %1778 = vmatpush3.bf16.msra.mxu0 %v1777_v36  ;;  %v23_v34 = vld [vmem:[%s3330_s0 + $0x48] sm:$0xff]  ;;  %v25_v36 = vld [vmem:[%s3330_s0 + $0x58] sm:$0xff]  ;;  %v170_v39 = vld [vmem:[%s3329_s1 + $0x420] sm:$0xff] }
  0x36   :  { %1780 = vmatprep.subr.bf16.mxu0 %v1779_v38  ;;  %v1831_v38 = vpack.c.bf16 %v187_v31, %v186_v30  ;;  %v171_v40 = vld [vmem:[%s3329_s1 + $0x428] sm:$0xff]  ;;  %v202_v41 = vld [vmem:[%s3329_s1 + $0x520] sm:$0xff]  ;;  %v188_v44 = vld [vmem:[%s3329_s1 + $0x4b0] sm:$0xff] }
  0x37   :  { %1810 = vmatpush3.bf16.msra.mxu1 %v1809_v37  ;;  %v1861_v37 = vpack.c.bf16 %v201_v29, %v200_v27  ;;  %v203_v43 = vld [vmem:[%s3329_s1 + $0x528] sm:$0xff]  ;;  %v189_v45 = vld [vmem:[%s3329_s1 + $0x4b8] sm:$0xff]  ;;  %v220_v46 = vld [vmem:[%s3329_s1 + $0x5b0] sm:$0xff] }
  0x38   :  { %1812 = vmatprep.subr.bf16.mxu1 %v1811_v42  ;;  %v1863_v42 = vpack.c.bf16 %v219_v33, %v218_v32  ;;  %v221_v47 = vld [vmem:[%s3329_s1 + $0x5b8] sm:$0xff]  ;;  %v172_v51 = vld [vmem:[%s3329_s1 + $0x430] sm:$0xff]  ;;  %v190_v56 = vld [vmem:[%s3329_s1 + $0x4c0] sm:$0xff] }
  0x39   :  { %1782 = vmatpush3.bf16.msra.mxu0 %v1781_v48  ;;  %v1833_v48 = vpack.c.bf16 %v171_v40, %v170_v39  ;;  %v173_v52 = vld [vmem:[%s3329_s1 + $0x438] sm:$0xff]  ;;  %v204_v53 = vld [vmem:[%s3329_s1 + $0x530] sm:$0xff]  ;;  %v191_v57 = vld [vmem:[%s3329_s1 + $0x4c8] sm:$0xff] }
  0x3a   :  { %1784 = vmatprep.subr.bf16.mxu0 %v1783_v50  ;;  %v1835_v50 = vpack.c.bf16 %v189_v45, %v188_v44  ;;  %v205_v55 = vld [vmem:[%s3329_s1 + $0x538] sm:$0xff]  ;;  %v222_v58 = vld [vmem:[%s3329_s1 + $0x5c0] sm:$0xff]  ;;  %v223_v59 = vld [vmem:[%s3329_s1 + $0x5c8] sm:$0xff] }
  0x3b   :  { %1814 = vmatpush3.bf16.msra.mxu1 %v1813_v49  ;;  %v1865_v49 = vpack.c.bf16 %v203_v43, %v202_v41  ;;  %v174_v63 = vld [vmem:[%s3329_s1 + $0x440] sm:$0xff]  ;;  %v175_v0 = vld [vmem:[%s3329_s1 + $0x448] sm:$0xff]  ;;  %v192_v4 = vld [vmem:[%s3329_s1 + $0x4d0] sm:$0xff] }
  0x3c   :  { %1816 = vmatprep.subr.bf16.mxu1 %v1815_v54  ;;  %v1867_v54 = vpack.c.bf16 %v221_v47, %v220_v46  ;;  %v206_v1 = vld [vmem:[%s3329_s1 + $0x540] sm:$0xff]  ;;  %v207_v3 = vld [vmem:[%s3329_s1 + $0x548] sm:$0xff]  ;;  %v193_v5 = vld [vmem:[%s3329_s1 + $0x4d8] sm:$0xff] }
  0x3d   :  { %1786 = vmatpush3.bf16.msra.mxu0 %v1785_v60  ;;  %v1837_v60 = vpack.c.bf16 %v173_v52, %v172_v51  ;;  %v224_v6 = vld [vmem:[%s3329_s1 + $0x5d0] sm:$0xff]  ;;  %v225_v7 = vld [vmem:[%s3329_s1 + $0x5d8] sm:$0xff]  ;;  %v194_v16 = vld [vmem:[%s3329_s1 + $0x4e0] sm:$0xff] }
  0x3e   :  { %1788 = vmatprep.subr.bf16.mxu0 %v1787_v62  ;;  %v1839_v62 = vpack.c.bf16 %v191_v57, %v190_v56  ;;  %v176_v11 = vld [vmem:[%s3329_s1 + $0x450] sm:$0xff]  ;;  %v177_v12 = vld [vmem:[%s3329_s1 + $0x458] sm:$0xff]  ;;  %v195_v17 = vld [vmem:[%s3329_s1 + $0x4e8] sm:$0xff] }
  0x3f   :  { %1818 = vmatpush3.bf16.msra.mxu1 %v1817_v61  ;;  %v1869_v61 = vpack.c.bf16 %v205_v55, %v204_v53  ;;  %v208_v13 = vld [vmem:[%s3329_s1 + $0x550] sm:$0xff]  ;;  %v209_v15 = vld [vmem:[%s3329_s1 + $0x558] sm:$0xff]  ;;  %v226_v18 = vld [vmem:[%s3329_s1 + $0x5e0] sm:$0xff] }
  0x40   :  { %1820 = vmatprep.subr.bf16.mxu1 %v1819_v2  ;;  %v1871_v2 = vpack.c.bf16 %v223_v59, %v222_v58  ;;  %v227_v19 = vld [vmem:[%s3329_s1 + $0x5e8] sm:$0xff]  ;;  %v210_v25 = vld [vmem:[%s3329_s1 + $0x560] sm:$0xff]  ;;  %v197_v29 = vld [vmem:[%s3329_s1 + $0x4f8] sm:$0xff] }
  0x41   :  { %1790 = vmatpush3.bf16.msra.mxu0 %v1789_v8  ;;  %v1841_v8 = vpack.c.bf16 %v175_v0, %v174_v63  ;;  %v1879_v26 = vpack.c.bf16 %v227_v19, %v226_v18  ;;  %v211_v27 = vld [vmem:[%s3329_s1 + $0x568] sm:$0xff]  ;;  %v228_v30 = vld [vmem:[%s3329_s1 + $0x5f0] sm:$0xff]  ;;  %v229_v31 = vld [vmem:[%s3329_s1 + $0x5f8] sm:$0xff] }
  0x42   :  { %1824 = vmatprep.subr.bf16.mxu0 %v1823_v10  ;;  %v1843_v10 = vpack.c.bf16 %v193_v5, %v192_v4  ;;  %v1881_v33 = vpack.c.bf16 %v211_v27, %v210_v25  ;;  %v213_v39 = vld [vmem:[%s3329_s1 + $0x578] sm:$0xff]  ;;  %v246_v40 = vld [vmem:[%s3329_s1 + $0x680] sm:$0xff]  ;;  %v247_v41 = vld [vmem:[%s3329_s1 + $0x688] sm:$0xff] }
  0x43   :  { %1822 = vmatpush3.bf16.msra.mxu1 %v1821_v9  ;;  %v1873_v9 = vpack.c.bf16 %v207_v3, %v206_v1  ;;  %v279_v43 = vld [vmem:[%s3329_s1 + $0x788] sm:$0xff]  ;;  %v1887_v46 = vpack.c.bf16 %v247_v41, %v246_v40  ;;  %v230_v47 = vld [vmem:[%s3329_s1 + $0x600] sm:$0xff]  ;;  %v248_v52 = vld [vmem:[%s3329_s1 + $0x690] sm:$0xff] }
  0x44   :  { %1856 = vmatprep.subr.bf16.mxu1 %v1855_v14  ;;  %634 = vmatmul.mubr.f32.vlgmr.msra.gmra.mrb[2].mxu0 %v18_v20  ;;  %v1875_v14 = vpack.c.bf16 %v225_v7, %v224_v6  ;;  %v1845_v20 = vpack.c.bf16 %v177_v12, %v176_v11  ;;  %v263_v51 = vld [vmem:[%s3329_s1 + $0x708] sm:$0xff]  ;;  %v249_v53 = vld [vmem:[%s3329_s1 + $0x698] sm:$0xff]  ;;  %v22_v56 = vld [vmem:[%s3330_s0 + $0x40] sm:$0xff] }
  0x45   :  { %1826 = vmatpush3.bf16.msra.mxu0 %v1825_v21  ;;  %773 = vmatprep.mubr.f32.mxu0 %v23_v34  ;;  %v1877_v21 = vpack.c.bf16 %v209_v15, %v208_v13  ;;  %v281_v55 = vld [vmem:[%s3329_s1 + $0x798] sm:$0xff]  ;;  %v24_v58 = vld [vmem:[%s3330_s0 + $0x50] sm:$0xff]  ;;  %v251_v3 = vld [vmem:[%s3329_s1 + $0x6a8] sm:$0xff] }
  0x46   :  { %704 = vmatmul.mubr.f32.vlgmr.msra.gmra.mrb[2].mxu1 %v20_v22  ;;  %1828 = vmatprep.subr.bf16.mxu0 %v1827_v24  ;;  %v1847_v22 = vpack.c.bf16 %v195_v17, %v194_v16  ;;  %v179_v24 = vld [vmem:[%s3329_s1 + $0x468] sm:$0xff]  ;;  %v264_v63 = vld [vmem:[%s3329_s1 + $0x710] sm:$0xff]  ;;  %v265_v1 = vld [vmem:[%s3329_s1 + $0x718] sm:$0xff] }
  0x47   :  { %1858 = vmatpush3.bf16.msra.mxu1 %v1857_v23  ;;  %843 = vmatprep.mubr.f32.mxu1 %v25_v36  ;;  %v178_v23 = vld [vmem:[%s3329_s1 + $0x460] sm:$0xff]  ;;  %v181_v36 = vld [vmem:[%s3329_s1 + $0x478] sm:$0xff]  ;;  %v283_v5 = vld [vmem:[%s3329_s1 + $0x7a8] sm:$0xff] }
  0x48   :  { %1860 = vmatprep.subr.bf16.mxu1 %v1859_v28  ;;  %v196_v28 = vld [vmem:[%s3329_s1 + $0x4f0] sm:$0xff]  ;;  %v1849_v32 = vpack.c.bf16 %v179_v24, %v178_v23  ;;  %v282_v4 = vld [vmem:[%s3329_s1 + $0x7a0] sm:$0xff]  ;;  %v27_v6 = vld [vmem:[%s3330_s0 + $0x68] sm:$0xff] }
  0x49   :  { %1830 = vmatpush3.bf16.msra.mxu0 %v1829_v35  ;;  %v1851_v34 = vpack.c.bf16 %v197_v29, %v196_v28  ;;  %v180_v35 = vld [vmem:[%s3329_s1 + $0x470] sm:$0xff]  ;;  %v234_v11 = vld [vmem:[%s3329_s1 + $0x620] sm:$0xff]  ;;  %v235_v12 = vld [vmem:[%s3329_s1 + $0x628] sm:$0xff] }
  0x4a   :  { %1832 = vmatprep.subr.bf16.mxu0 %v1831_v38  ;;  %v1883_v38 = vpack.c.bf16 %v229_v31, %v228_v30  ;;  %v1853_v44 = vpack.c.bf16 %v181_v36, %v180_v35  ;;  %v266_v13 = vld [vmem:[%s3329_s1 + $0x720] sm:$0xff]  ;;  %v267_v15 = vld [vmem:[%s3329_s1 + $0x728] sm:$0xff]  ;;  %v252_v16 = vld [vmem:[%s3329_s1 + $0x6b0] sm:$0xff] }
  0x4b   :  { %1862 = vmatpush3.bf16.msra.mxu1 %v1861_v37  ;;  %v212_v37 = vld [vmem:[%s3329_s1 + $0x570] sm:$0xff]  ;;  %v253_v17 = vld [vmem:[%s3329_s1 + $0x6b8] sm:$0xff]  ;;  %v254_v28 = vld [vmem:[%s3329_s1 + $0x6c0] sm:$0xff] }
  0x4c   :  { %1864 = vmatprep.subr.bf16.mxu1 %v1863_v42  ;;  %v278_v42 = vld [vmem:[%s3329_s1 + $0x780] sm:$0xff]  ;;  %v1885_v45 = vpack.c.bf16 %v213_v39, %v212_v37  ;;  %v284_v18 = vld [vmem:[%s3329_s1 + $0x7b0] sm:$0xff]  ;;  %v285_v19 = vld [vmem:[%s3329_s1 + $0x7b8] sm:$0xff] }
  0x4d   :  { %1834 = vmatpush3.bf16.msra.mxu0 %v1833_v48  ;;  %v231_v48 = vld [vmem:[%s3329_s1 + $0x608] sm:$0xff]  ;;  %v236_v23 = vld [vmem:[%s3329_s1 + $0x630] sm:$0xff]  ;;  %v237_v24 = vld [vmem:[%s3329_s1 + $0x638] sm:$0xff] }
  0x4e   :  { %1836 = vmatprep.subr.bf16.mxu0 %v1835_v50  ;;  %v1919_v50 = vpack.c.bf16 %v279_v43, %v278_v42  ;;  %v1889_v57 = vpack.c.bf16 %v231_v48, %v230_v47  ;;  %v268_v25 = vld [vmem:[%s3329_s1 + $0x730] sm:$0xff]  ;;  %v269_v27 = vld [vmem:[%s3329_s1 + $0x738] sm:$0xff]  ;;  %v255_v29 = vld [vmem:[%s3329_s1 + $0x6c8] sm:$0xff] }
  0x4f   :  { %1866 = vmatpush3.bf16.msra.mxu1 %v1865_v49  ;;  %v262_v49 = vld [vmem:[%s3329_s1 + $0x700] sm:$0xff]  ;;  %v287_v31 = vld [vmem:[%s3329_s1 + $0x7c8] sm:$0xff]  ;;  %v256_v40 = vld [vmem:[%s3329_s1 + $0x6d0] sm:$0xff] }
  0x50   :  { %1868 = vmatprep.subr.bf16.mxu1 %v1867_v54  ;;  %v280_v54 = vld [vmem:[%s3329_s1 + $0x790] sm:$0xff]  ;;  %v1921_v59 = vpack.c.bf16 %v263_v51, %v262_v49  ;;  %v286_v30 = vld [vmem:[%s3329_s1 + $0x7c0] sm:$0xff]  ;;  %v239_v36 = vld [vmem:[%s3329_s1 + $0x648] sm:$0xff] }
  0x51   :  { %1838 = vmatpush3.bf16.msra.mxu0 %v1837_v60  ;;  %v1891_v60 = vpack.c.bf16 %v249_v53, %v248_v52  ;;  %v1923_v0 = vpack.c.bf16 %v281_v55, %v280_v54  ;;  %v238_v35 = vld [vmem:[%s3329_s1 + $0x640] sm:$0xff]  ;;  %v271_v39 = vld [vmem:[%s3329_s1 + $0x748] sm:$0xff]  ;;  %v257_v41 = vld [vmem:[%s3329_s1 + $0x6d8] sm:$0xff] }
  0x52   :  { %1840 = vmatprep.subr.bf16.mxu0 %v1839_v62  ;;  %v233_v62 = vld [vmem:[%s3329_s1 + $0x618] sm:$0xff]  ;;  %v270_v37 = vld [vmem:[%s3329_s1 + $0x740] sm:$0xff]  ;;  %v288_v42 = vld [vmem:[%s3329_s1 + $0x7d0] sm:$0xff] }
  0x53   :  { %1870 = vmatpush3.bf16.msra.mxu1 %v1869_v61  ;;  %v232_v61 = vld [vmem:[%s3329_s1 + $0x610] sm:$0xff]  ;;  %v289_v43 = vld [vmem:[%s3329_s1 + $0x7d8] sm:$0xff]  ;;  %v258_v52 = vld [vmem:[%s3329_s1 + $0x6e0] sm:$0xff] }
  0x54   :  { %1872 = vmatprep.subr.bf16.mxu1 %v1871_v2  ;;  %v250_v2 = vld [vmem:[%s3329_s1 + $0x6a0] sm:$0xff]  ;;  %v1893_v7 = vpack.c.bf16 %v233_v62, %v232_v61  ;;  %v240_v47 = vld [vmem:[%s3329_s1 + $0x650] sm:$0xff]  ;;  %v241_v48 = vld [vmem:[%s3329_s1 + $0x658] sm:$0xff] }
  0x55   :  { %1842 = vmatpush3.bf16.msra.mxu0 %v1841_v8  ;;  %v29_v8 = vld [vmem:[%s3330_s0 + $0x78] sm:$0xff]  ;;  %v272_v49 = vld [vmem:[%s3329_s1 + $0x750] sm:$0xff]  ;;  %v259_v53 = vld [vmem:[%s3329_s1 + $0x6e8] sm:$0xff] }
  0x56   :  { %1844 = vmatprep.subr.bf16.mxu0 %v1843_v10  ;;  %v1895_v10 = vpack.c.bf16 %v251_v3, %v250_v2  ;;  %v273_v51 = vld [vmem:[%s3329_s1 + $0x758] sm:$0xff]  ;;  %v290_v54 = vld [vmem:[%s3329_s1 + $0x7e0] sm:$0xff]  ;;  %v291_v55 = vld [vmem:[%s3329_s1 + $0x7e8] sm:$0xff] }
  0x57   :  { %1874 = vmatpush3.bf16.msra.mxu1 %v1873_v9  ;;  %v1925_v9 = vpack.c.bf16 %v265_v1, %v264_v63  ;;  %v274_v61 = vld [vmem:[%s3329_s1 + $0x760] sm:$0xff]  ;;  %v1943_v62 = vpack.c.bf16 %v291_v55, %v290_v54  ;;  %v275_v63 = vld [vmem:[%s3329_s1 + $0x768] sm:$0xff]  ;;  %v261_v1 = vld [vmem:[%s3329_s1 + $0x6f8] sm:$0xff] }
  0x58   :  { %1876 = vmatprep.subr.bf16.mxu1 %v1875_v14  ;;  %v1927_v14 = vpack.c.bf16 %v283_v5, %v282_v4  ;;  %v292_v2 = vld [vmem:[%s3329_s1 + $0x7f0] sm:$0xff]  ;;  %v293_v3 = vld [vmem:[%s3329_s1 + $0x7f8] sm:$0xff]  ;;  %v1945_v5 = vpack.c.bf16 %v275_v63, %v274_v61 }
  0x59   :  { %1846 = vmatpush3.bf16.msra.mxu0 %v1845_v20  ;;  %v1897_v20 = vpack.c.bf16 %v235_v12, %v234_v11  ;;  %v277_v11 = vld [vmem:[%s3329_s1 + $0x778] sm:$0xff]  ;;  %v310_v12 = vld [vmem:[%s3329_s1 + $0x880] sm:$0xff]  ;;  %v348_v54 = vld [vmem:[%s3329_s1 + $0x9b0] sm:$0xff] }
  0x5a   :  { %1848 = vmatprep.subr.bf16.mxu0 %v1847_v22  ;;  %v1899_v22 = vpack.c.bf16 %v253_v17, %v252_v16  ;;  %v349_v55 = vld [vmem:[%s3329_s1 + $0x9b8] sm:$0xff]  ;;  %v332_v61 = vld [vmem:[%s3329_s1 + $0x930] sm:$0xff] }
  0x5b   :  { %1878 = vmatpush3.bf16.msra.mxu1 %v1877_v21  ;;  %v1929_v21 = vpack.c.bf16 %v267_v15, %v266_v13  ;;  %v311_v13 = vld [vmem:[%s3329_s1 + $0x888] sm:$0xff]  ;;  %v333_v63 = vld [vmem:[%s3329_s1 + $0x938] sm:$0xff] }
  0x5c   :  { %1880 = vmatprep.subr.bf16.mxu1 %v1879_v26  ;;  %v1931_v26 = vpack.c.bf16 %v285_v19, %v284_v18  ;;  %v343_v15 = vld [vmem:[%s3329_s1 + $0x988] sm:$0xff]  ;;  %v1951_v18 = vpack.c.bf16 %v311_v13, %v310_v12  ;;  %v294_v19 = vld [vmem:[%s3329_s1 + $0x800] sm:$0xff]  ;;  %v320_v12 = vld [vmem:[%s3329_s1 + $0x8d0] sm:$0xff] }
  0x5d   :  { %1850 = vmatpush3.bf16.msra.mxu0 %v1849_v32  ;;  %v1901_v32 = vpack.c.bf16 %v237_v24, %v236_v23  ;;  %v327_v23 = vld [vmem:[%s3329_s1 + $0x908] sm:$0xff]  ;;  %v312_v24 = vld [vmem:[%s3329_s1 + $0x890] sm:$0xff]  ;;  %v321_v13 = vld [vmem:[%s3329_s1 + $0x8d8] sm:$0xff] }
  0x5e   :  { %1852 = vmatprep.subr.bf16.mxu0 %v1851_v34  ;;  %v1903_v34 = vpack.c.bf16 %v255_v29, %v254_v28  ;;  %v26_v28 = vld [vmem:[%s3330_s0 + $0x60] sm:$0xff] }
  0x5f   :  { %1882 = vmatpush3.bf16.msra.mxu1 %v1881_v33  ;;  %v1933_v33 = vpack.c.bf16 %v269_v27, %v268_v25  ;;  %v313_v25 = vld [vmem:[%s3329_s1 + $0x898] sm:$0xff] }
  0x60   :  { %1884 = vmatprep.subr.bf16.mxu1 %v1883_v38  ;;  %v1935_v38 = vpack.c.bf16 %v287_v31, %v286_v30  ;;  %v345_v27 = vld [vmem:[%s3329_s1 + $0x998] sm:$0xff]  ;;  %v28_v30 = vld [vmem:[%s3330_s0 + $0x70] sm:$0xff] }
  0x61   :  { %1854 = vmatpush3.bf16.msra.mxu0 %v1853_v44  ;;  %v1905_v44 = vpack.c.bf16 %v239_v36, %v238_v35  ;;  %v328_v35 = vld [vmem:[%s3329_s1 + $0x910] sm:$0xff] }
  0x62   :  { %1888 = vmatprep.subr.bf16.mxu0 %v1887_v46  ;;  %v1907_v46 = vpack.c.bf16 %v257_v41, %v256_v40  ;;  %v346_v40 = vld [vmem:[%s3329_s1 + $0x9a0] sm:$0xff]  ;;  %v347_v41 = vld [vmem:[%s3329_s1 + $0x9a8] sm:$0xff] }
  0x63   :  { %1886 = vmatpush3.bf16.msra.mxu1 %v1885_v45  ;;  %v1937_v45 = vpack.c.bf16 %v271_v39, %v270_v37  ;;  %v329_v37 = vld [vmem:[%s3329_s1 + $0x918] sm:$0xff]  ;;  %v315_v39 = vld [vmem:[%s3329_s1 + $0x8a8] sm:$0xff] }
  0x64   :  { %1920 = vmatprep.subr.bf16.mxu1 %v1919_v50  ;;  %774 = vmatmul.mubr.f32.vlgmr.msra.gmra.mrb[4].mxu0 %v22_v56  ;;  %v1939_v50 = vpack.c.bf16 %v289_v43, %v288_v42  ;;  %v1909_v56 = vpack.c.bf16 %v241_v48, %v240_v47  ;;  %v31_v42 = vld [vmem:[%s3330_s0 + $0x88] sm:$0xff]  ;;  %v298_v47 = vld [vmem:[%s3329_s1 + $0x820] sm:$0xff] }
  0x65   :  { %1890 = vmatpush3.bf16.msra.mxu0 %v1889_v57  ;;  %913 = vmatprep.mubr.f32.mxu0 %v27_v6  ;;  %v1941_v57 = vpack.c.bf16 %v273_v51, %v272_v49  ;;  %v299_v48 = vld [vmem:[%s3329_s1 + $0x828] sm:$0xff]  ;;  %v330_v49 = vld [vmem:[%s3329_s1 + $0x920] sm:$0xff] }
  0x66   :  { %844 = vmatmul.mubr.f32.vlgmr.msra.gmra.mrb[4].mxu1 %v24_v58  ;;  %1892 = vmatprep.subr.bf16.mxu0 %v1891_v60  ;;  %v1911_v58 = vpack.c.bf16 %v259_v53, %v258_v52  ;;  %v243_v60 = vld [vmem:[%s3329_s1 + $0x668] sm:$0xff]  ;;  %v316_v52 = vld [vmem:[%s3329_s1 + $0x8b0] sm:$0xff]  ;;  %v317_v53 = vld [vmem:[%s3329_s1 + $0x8b8] sm:$0xff] }
  0x67   :  { %1922 = vmatpush3.bf16.msra.mxu1 %v1921_v59  ;;  %983 = vmatprep.mubr.f32.mxu1 %v29_v8  ;;  %v242_v59 = vld [vmem:[%s3329_s1 + $0x660] sm:$0xff]  ;;  %v245_v8 = vld [vmem:[%s3329_s1 + $0x678] sm:$0xff]  ;;  %v331_v51 = vld [vmem:[%s3329_s1 + $0x928] sm:$0xff] }
  0x68   :  { %1924 = vmatprep.subr.bf16.mxu1 %v1923_v0  ;;  %v260_v0 = vld [vmem:[%s3329_s1 + $0x6f0] sm:$0xff]  ;;  %v1913_v4 = vpack.c.bf16 %v243_v60, %v242_v59  ;;  %v301_v60 = vld [vmem:[%s3329_s1 + $0x838] sm:$0xff] }
  0x69   :  { %1894 = vmatpush3.bf16.msra.mxu0 %v1893_v7  ;;  %v1915_v6 = vpack.c.bf16 %v261_v1, %v260_v0  ;;  %v244_v7 = vld [vmem:[%s3329_s1 + $0x670] sm:$0xff]  ;;  %v318_v0 = vld [vmem:[%s3329_s1 + $0x8c0] sm:$0xff]  ;;  %v319_v1 = vld [vmem:[%s3329_s1 + $0x8c8] sm:$0xff] }
  0x6a   :  { %1896 = vmatprep.subr.bf16.mxu0 %v1895_v10  ;;  %v1947_v10 = vpack.c.bf16 %v293_v3, %v292_v2  ;;  %v1917_v16 = vpack.c.bf16 %v245_v8, %v244_v7  ;;  %v300_v59 = vld [vmem:[%s3329_s1 + $0x830] sm:$0xff]  ;;  %v350_v2 = vld [vmem:[%s3329_s1 + $0x9c0] sm:$0xff]  ;;  %v351_v3 = vld [vmem:[%s3329_s1 + $0x9c8] sm:$0xff] }
  0x6b   :  { %1926 = vmatpush3.bf16.msra.mxu1 %v1925_v9  ;;  %v276_v9 = vld [vmem:[%s3329_s1 + $0x770] sm:$0xff]  ;;  %v302_v7 = vld [vmem:[%s3329_s1 + $0x840] sm:$0xff]  ;;  %v303_v8 = vld [vmem:[%s3329_s1 + $0x848] sm:$0xff] }
  0x6c   :  { %1928 = vmatprep.subr.bf16.mxu1 %v1927_v14  ;;  %v342_v14 = vld [vmem:[%s3329_s1 + $0x980] sm:$0xff]  ;;  %v1949_v17 = vpack.c.bf16 %v277_v11, %v276_v9  ;;  %v335_v11 = vld [vmem:[%s3329_s1 + $0x948] sm:$0xff] }
  0x6d   :  { %1898 = vmatpush3.bf16.msra.mxu0 %v1897_v20  ;;  %v295_v20 = vld [vmem:[%s3329_s1 + $0x808] sm:$0xff]  ;;  %v334_v9 = vld [vmem:[%s3329_s1 + $0x940] sm:$0xff] }
  0x6e   :  { %1900 = vmatprep.subr.bf16.mxu0 %v1899_v22  ;;  %v1983_v22 = vpack.c.bf16 %v343_v15, %v342_v14  ;;  %v1953_v29 = vpack.c.bf16 %v295_v20, %v294_v19  ;;  %v352_v14 = vld [vmem:[%s3329_s1 + $0x9d0] sm:$0xff]  ;;  %v353_v15 = vld [vmem:[%s3329_s1 + $0x9d8] sm:$0xff] }
  0x6f   :  { %1930 = vmatpush3.bf16.msra.mxu1 %v1929_v21  ;;  %v326_v21 = vld [vmem:[%s3329_s1 + $0x900] sm:$0xff]  ;;  %v304_v19 = vld [vmem:[%s3329_s1 + $0x850] sm:$0xff]  ;;  %v305_v20 = vld [vmem:[%s3329_s1 + $0x858] sm:$0xff] }
  0x70   :  { %1932 = vmatprep.subr.bf16.mxu1 %v1931_v26  ;;  %v344_v26 = vld [vmem:[%s3329_s1 + $0x990] sm:$0xff]  ;;  %v1985_v31 = vpack.c.bf16 %v327_v23, %v326_v21  ;;  %v337_v23 = vld [vmem:[%s3329_s1 + $0x958] sm:$0xff] }
  0x71   :  { %1902 = vmatpush3.bf16.msra.mxu0 %v1901_v32  ;;  %v1955_v32 = vpack.c.bf16 %v313_v25, %v312_v24  ;;  %v1987_v36 = vpack.c.bf16 %v345_v27, %v344_v26  ;;  %v336_v21 = vld [vmem:[%s3329_s1 + $0x950] sm:$0xff]  ;;  %v322_v24 = vld [vmem:[%s3329_s1 + $0x8e0] sm:$0xff]  ;;  %v323_v25 = vld [vmem:[%s3329_s1 + $0x8e8] sm:$0xff] }
  0x72   :  { %1904 = vmatprep.subr.bf16.mxu0 %v1903_v34  ;;  %v297_v34 = vld [vmem:[%s3329_s1 + $0x818] sm:$0xff]  ;;  %v354_v26 = vld [vmem:[%s3329_s1 + $0x9e0] sm:$0xff]  ;;  %v355_v27 = vld [vmem:[%s3329_s1 + $0x9e8] sm:$0xff] }
  0x73   :  { %1934 = vmatpush3.bf16.msra.mxu1 %v1933_v33  ;;  %v296_v33 = vld [vmem:[%s3329_s1 + $0x810] sm:$0xff] }
  0x74   :  { %1936 = vmatprep.subr.bf16.mxu1 %v1935_v38  ;;  %v314_v38 = vld [vmem:[%s3329_s1 + $0x8a0] sm:$0xff]  ;;  %v1957_v43 = vpack.c.bf16 %v297_v34, %v296_v33  ;;  %v2007_v34 = vpack.c.bf16 %v355_v27, %v354_v26  ;;  %v412_v26 = vld [vmem:[%s3329_s1 + $0xbb0] sm:$0xff]  ;;  %v413_v27 = vld [vmem:[%s3329_s1 + $0xbb8] sm:$0xff] }
  0x75   :  { %1906 = vmatpush3.bf16.msra.mxu0 %v1905_v44  ;;  %v33_v44 = vld [vmem:[%s3330_s0 + $0x98] sm:$0xff]  ;;  %v338_v33 = vld [vmem:[%s3329_s1 + $0x960] sm:$0xff] }
  0x76   :  { %1908 = vmatprep.subr.bf16.mxu0 %v1907_v46  ;;  %v1959_v46 = vpack.c.bf16 %v315_v39, %v314_v38  ;;  %v356_v38 = vld [vmem:[%s3329_s1 + $0x9f0] sm:$0xff]  ;;  %v357_v39 = vld [vmem:[%s3329_s1 + $0x9f8] sm:$0xff] }
  0x77   :  { %1938 = vmatpush3.bf16.msra.mxu1 %v1937_v45  ;;  %v1989_v45 = vpack.c.bf16 %v329_v37, %v328_v35  ;;  %v339_v35 = vld [vmem:[%s3329_s1 + $0x968] sm:$0xff]  ;;  %v325_v37 = vld [vmem:[%s3329_s1 + $0x8f8] sm:$0xff] }
  0x78   :  { %1940 = vmatprep.subr.bf16.mxu1 %v1939_v50  ;;  %v1991_v50 = vpack.c.bf16 %v347_v41, %v346_v40  ;;  %v2009_v41 = vpack.c.bf16 %v339_v35, %v338_v33  ;;  %v396_v33 = vld [vmem:[%s3329_s1 + $0xb30] sm:$0xff]  ;;  %v397_v35 = vld [vmem:[%s3329_s1 + $0xb38] sm:$0xff] }
  0x79   :  { %1910 = vmatpush3.bf16.msra.mxu0 %v1909_v56  ;;  %v1961_v56 = vpack.c.bf16 %v299_v48, %v298_v47  ;;  %v341_v47 = vld [vmem:[%s3329_s1 + $0x978] sm:$0xff]  ;;  %v374_v48 = vld [vmem:[%s3329_s1 + $0xa80] sm:$0xff] }
  0x7a   :  { %1912 = vmatprep.subr.bf16.mxu0 %v1911_v58  ;;  %v1963_v58 = vpack.c.bf16 %v317_v53, %v316_v52 }
  0x7b   :  { %1942 = vmatpush3.bf16.msra.mxu1 %v1941_v57  ;;  %v1993_v57 = vpack.c.bf16 %v331_v51, %v330_v49  ;;  %v375_v49 = vld [vmem:[%s3329_s1 + $0xa88] sm:$0xff] }
  0x7c   :  { %1944 = vmatprep.subr.bf16.mxu1 %v1943_v62  ;;  %v1995_v62 = vpack.c.bf16 %v349_v55, %v348_v54  ;;  %v407_v51 = vld [vmem:[%s3329_s1 + $0xb88] sm:$0xff]  ;;  %v2015_v54 = vpack.c.bf16 %v375_v49, %v374_v48  ;;  %v358_v55 = vld [vmem:[%s3329_s1 + $0xa00] sm:$0xff]  ;;  %v384_v48 = vld [vmem:[%s3329_s1 + $0xad0] sm:$0xff] }
  0x7d   :  { %1914 = vmatpush3.bf16.msra.mxu0 %v1913_v4  ;;  %v1965_v4 = vpack.c.bf16 %v301_v60, %v300_v59  ;;  %v391_v59 = vld [vmem:[%s3329_s1 + $0xb08] sm:$0xff]  ;;  %v376_v60 = vld [vmem:[%s3329_s1 + $0xa90] sm:$0xff]  ;;  %v385_v49 = vld [vmem:[%s3329_s1 + $0xad8] sm:$0xff] }
  0x7e   :  { %1916 = vmatprep.subr.bf16.mxu0 %v1915_v6  ;;  %v1967_v6 = vpack.c.bf16 %v319_v1, %v318_v0  ;;  %v30_v0 = vld [vmem:[%s3330_s0 + $0x80] sm:$0xff] }
  0x7f   :  { %1946 = vmatpush3.bf16.msra.mxu1 %v1945_v5  ;;  %v1997_v5 = vpack.c.bf16 %v333_v63, %v332_v61  ;;  %v377_v61 = vld [vmem:[%s3329_s1 + $0xa98] sm:$0xff] }
  0x80   :  { %1948 = vmatprep.subr.bf16.mxu1 %v1947_v10  ;;  %v1999_v10 = vpack.c.bf16 %v351_v3, %v350_v2  ;;  %v409_v63 = vld [vmem:[%s3329_s1 + $0xb98] sm:$0xff]  ;;  %v32_v2 = vld [vmem:[%s3330_s0 + $0x90] sm:$0xff] }
  0x81   :  { %1918 = vmatpush3.bf16.msra.mxu0 %v1917_v16  ;;  %v1969_v16 = vpack.c.bf16 %v303_v8, %v302_v7  ;;  %v392_v7 = vld [vmem:[%s3329_s1 + $0xb10] sm:$0xff] }
  0x82   :  { %1952 = vmatprep.subr.bf16.mxu0 %v1951_v18  ;;  %v1971_v18 = vpack.c.bf16 %v321_v13, %v320_v12  ;;  %v410_v12 = vld [vmem:[%s3329_s1 + $0xba0] sm:$0xff]  ;;  %v411_v13 = vld [vmem:[%s3329_s1 + $0xba8] sm:$0xff] }
  0x83   :  { %1950 = vmatpush3.bf16.msra.mxu1 %v1949_v17  ;;  %v2001_v17 = vpack.c.bf16 %v335_v11, %v334_v9  ;;  %v393_v9 = vld [vmem:[%s3329_s1 + $0xb18] sm:$0xff]  ;;  %v379_v11 = vld [vmem:[%s3329_s1 + $0xaa8] sm:$0xff] }
  0x84   :  { %1984 = vmatprep.subr.bf16.mxu1 %v1983_v22  ;;  %914 = vmatmul.mubr.f32.vlgmr.msra.gmra.mrb[6].mxu0 %v26_v28  ;;  %v2003_v22 = vpack.c.bf16 %v353_v15, %v352_v14  ;;  %v1973_v28 = vpack.c.bf16 %v305_v20, %v304_v19  ;;  %v35_v14 = vld [vmem:[%s3330_s0 + $0xa8] sm:$0xff]  ;;  %v362_v19 = vld [vmem:[%s3329_s1 + $0xa20] sm:$0xff] }
  0x85   :  { %1954 = vmatpush3.bf16.msra.mxu0 %v1953_v29  ;;  %1053 = vmatprep.mubr.f32.mxu0 %v31_v42  ;;  %v2005_v29 = vpack.c.bf16 %v337_v23, %v336_v21  ;;  %v363_v20 = vld [vmem:[%s3329_s1 + $0xa28] sm:$0xff]  ;;  %v394_v21 = vld [vmem:[%s3329_s1 + $0xb20] sm:$0xff] }
  0x86   :  { %984 = vmatmul.mubr.f32.vlgmr.msra.gmra.mrb[6].mxu1 %v28_v30  ;;  %1956 = vmatprep.subr.bf16.mxu0 %v1955_v32  ;;  %v1975_v30 = vpack.c.bf16 %v323_v25, %v322_v24  ;;  %v307_v32 = vld [vmem:[%s3329_s1 + $0x868] sm:$0xff]  ;;  %v380_v24 = vld [vmem:[%s3329_s1 + $0xab0] sm:$0xff]  ;;  %v381_v25 = vld [vmem:[%s3329_s1 + $0xab8] sm:$0xff] }
  0x87   :  { %1986 = vmatpush3.bf16.msra.mxu1 %v1985_v31  ;;  %1123 = vmatprep.mubr.f32.mxu1 %v33_v44  ;;  %v306_v31 = vld [vmem:[%s3329_s1 + $0x860] sm:$0xff]  ;;  %v309_v44 = vld [vmem:[%s3329_s1 + $0x878] sm:$0xff]  ;;  %v395_v23 = vld [vmem:[%s3329_s1 + $0xb28] sm:$0xff] }
  0x88   :  { %1988 = vmatprep.subr.bf16.mxu1 %v1987_v36  ;;  %v324_v36 = vld [vmem:[%s3329_s1 + $0x8f0] sm:$0xff]  ;;  %v1977_v40 = vpack.c.bf16 %v307_v32, %v306_v31  ;;  %v365_v32 = vld [vmem:[%s3329_s1 + $0xa38] sm:$0xff] }
  0x89   :  { %1958 = vmatpush3.bf16.msra.mxu0 %v1957_v43  ;;  %v1979_v42 = vpack.c.bf16 %v325_v37, %v324_v36  ;;  %v308_v43 = vld [vmem:[%s3329_s1 + $0x870] sm:$0xff]  ;;  %v382_v36 = vld [vmem:[%s3329_s1 + $0xac0] sm:$0xff]  ;;  %v383_v37 = vld [vmem:[%s3329_s1 + $0xac8] sm:$0xff] }
  0x8a   :  { %1960 = vmatprep.subr.bf16.mxu0 %v1959_v46  ;;  %v2011_v46 = vpack.c.bf16 %v357_v39, %v356_v38  ;;  %v1981_v52 = vpack.c.bf16 %v309_v44, %v308_v43  ;;  %v364_v31 = vld [vmem:[%s3329_s1 + $0xa30] sm:$0xff]  ;;  %v414_v38 = vld [vmem:[%s3329_s1 + $0xbc0] sm:$0xff]  ;;  %v415_v39 = vld [vmem:[%s3329_s1 + $0xbc8] sm:$0xff] }
  0x8b   :  { %1990 = vmatpush3.bf16.msra.mxu1 %v1989_v45  ;;  %v340_v45 = vld [vmem:[%s3329_s1 + $0x970] sm:$0xff]  ;;  %v366_v43 = vld [vmem:[%s3329_s1 + $0xa40] sm:$0xff]  ;;  %v367_v44 = vld [vmem:[%s3329_s1 + $0xa48] sm:$0xff] }
  0x8c   :  { %1992 = vmatprep.subr.bf16.mxu1 %v1991_v50  ;;  %v406_v50 = vld [vmem:[%s3329_s1 + $0xb80] sm:$0xff]  ;;  %v2013_v53 = vpack.c.bf16 %v341_v47, %v340_v45  ;;  %v399_v47 = vld [vmem:[%s3329_s1 + $0xb48] sm:$0xff] }
  0x8d   :  { %1962 = vmatpush3.bf16.msra.mxu0 %v1961_v56  ;;  %v359_v56 = vld [vmem:[%s3329_s1 + $0xa08] sm:$0xff]  ;;  %v398_v45 = vld [vmem:[%s3329_s1 + $0xb40] sm:$0xff] }
  0x8e   :  { %1964 = vmatprep.subr.bf16.mxu0 %v1963_v58  ;;  %v2047_v58 = vpack.c.bf16 %v407_v51, %v406_v50  ;;  %v2017_v1 = vpack.c.bf16 %v359_v56, %v358_v55  ;;  %v416_v50 = vld [vmem:[%s3329_s1 + $0xbd0] sm:$0xff]  ;;  %v417_v51 = vld [vmem:[%s3329_s1 + $0xbd8] sm:$0xff] }
  0x8f   :  { %1994 = vmatpush3.bf16.msra.mxu1 %v1993_v57  ;;  %v390_v57 = vld [vmem:[%s3329_s1 + $0xb00] sm:$0xff]  ;;  %v368_v55 = vld [vmem:[%s3329_s1 + $0xa50] sm:$0xff]  ;;  %v369_v56 = vld [vmem:[%s3329_s1 + $0xa58] sm:$0xff] }
  0x90   :  { %1996 = vmatprep.subr.bf16.mxu1 %v1995_v62  ;;  %v408_v62 = vld [vmem:[%s3329_s1 + $0xb90] sm:$0xff]  ;;  %v2049_v3 = vpack.c.bf16 %v391_v59, %v390_v57  ;;  %v401_v59 = vld [vmem:[%s3329_s1 + $0xb58] sm:$0xff] }
  0x91   :  { %1966 = vmatpush3.bf16.msra.mxu0 %v1965_v4  ;;  %v2019_v4 = vpack.c.bf16 %v377_v61, %v376_v60  ;;  %v2051_v8 = vpack.c.bf16 %v409_v63, %v408_v62  ;;  %v400_v57 = vld [vmem:[%s3329_s1 + $0xb50] sm:$0xff]  ;;  %v386_v60 = vld [vmem:[%s3329_s1 + $0xae0] sm:$0xff]  ;;  %v387_v61 = vld [vmem:[%s3329_s1 + $0xae8] sm:$0xff] }
  0x92   :  { %1968 = vmatprep.subr.bf16.mxu0 %v1967_v6  ;;  %v361_v6 = vld [vmem:[%s3329_s1 + $0xa18] sm:$0xff]  ;;  %v418_v62 = vld [vmem:[%s3329_s1 + $0xbe0] sm:$0xff]  ;;  %v419_v63 = vld [vmem:[%s3329_s1 + $0xbe8] sm:$0xff] }
  0x93   :  { %1998 = vmatpush3.bf16.msra.mxu1 %v1997_v5  ;;  %v360_v5 = vld [vmem:[%s3329_s1 + $0xa10] sm:$0xff] }
  0x94   :  { %2000 = vmatprep.subr.bf16.mxu1 %v1999_v10  ;;  %v378_v10 = vld [vmem:[%s3329_s1 + $0xaa0] sm:$0xff]  ;;  %v2021_v15 = vpack.c.bf16 %v361_v6, %v360_v5  ;;  %v2071_v6 = vpack.c.bf16 %v419_v63, %v418_v62 }
  0x95   :  { %1970 = vmatpush3.bf16.msra.mxu0 %v1969_v16  ;;  %v37_v16 = vld [vmem:[%s3330_s0 + $0xb8] sm:$0xff]  ;;  %v402_v5 = vld [vmem:[%s3329_s1 + $0xb60] sm:$0xff] }
  0x96   :  { %1972 = vmatprep.subr.bf16.mxu0 %v1971_v18  ;;  %v2023_v18 = vpack.c.bf16 %v379_v11, %v378_v10  ;;  %v420_v10 = vld [vmem:[%s3329_s1 + $0xbf0] sm:$0xff]  ;;  %v421_v11 = vld [vmem:[%s3329_s1 + $0xbf8] sm:$0xff] }
  0x97   :  { %2002 = vmatpush3.bf16.msra.mxu1 %v2001_v17  ;;  %v2053_v17 = vpack.c.bf16 %v393_v9, %v392_v7  ;;  %v403_v7 = vld [vmem:[%s3329_s1 + $0xb68] sm:$0xff]  ;;  %v389_v9 = vld [vmem:[%s3329_s1 + $0xaf8] sm:$0xff] }
  0x98   :  { %2004 = vmatprep.subr.bf16.mxu1 %v2003_v22  ;;  %v2055_v22 = vpack.c.bf16 %v411_v13, %v410_v12  ;;  %v2073_v13 = vpack.c.bf16 %v403_v7, %v402_v5 }
  0x99   :  { %1974 = vmatpush3.bf16.msra.mxu0 %v1973_v28  ;;  %v2025_v28 = vpack.c.bf16 %v363_v20, %v362_v19  ;;  %v405_v19 = vld [vmem:[%s3329_s1 + $0xb78] sm:$0xff] }
  0x9a   :  { %1976 = vmatprep.subr.bf16.mxu0 %v1975_v30  ;;  %v2027_v30 = vpack.c.bf16 %v381_v25, %v380_v24  ;;  %v1274_v25 = vld [vmem:[%s3331_s2] ss:$0 sm:$0xff] }
  0x9b   :  { %2006 = vmatpush3.bf16.msra.mxu1 %v2005_v29  ;;  %v2057_v29 = vpack.c.bf16 %v395_v23, %v394_v21  ;;  %v36_v23 = vld [vmem:[%s3330_s0 + $0xb0] sm:$0xff] }
  0x9c   :  { %2008 = vmatprep.subr.bf16.mxu1 %v2007_v34  ;;  %v2059_v34 = vpack.c.bf16 %v413_v27, %v412_v26 }
  0x9d   :  { %1978 = vmatpush3.bf16.msra.mxu0 %v1977_v40  ;;  %v2029_v40 = vpack.c.bf16 %v365_v32, %v364_v31 }
  0x9e   :  { %1980 = vmatprep.subr.bf16.mxu0 %v1979_v42  ;;  %v2031_v42 = vpack.c.bf16 %v383_v37, %v382_v36 }
  0x9f   :  { %2010 = vmatpush3.bf16.msra.mxu1 %v2009_v41  ;;  %v2061_v41 = vpack.c.bf16 %v397_v35, %v396_v33 }
  0xa0   :  { %2012 = vmatprep.subr.bf16.mxu1 %v2011_v46  ;;  %v2063_v46 = vpack.c.bf16 %v415_v39, %v414_v38 }
  0xa1   :  { %1982 = vmatpush3.bf16.msra.mxu0 %v1981_v52  ;;  %v2033_v52 = vpack.c.bf16 %v367_v44, %v366_v43 }
  0xa2   :  { %2016 = vmatprep.subr.bf16.mxu0 %v2015_v54  ;;  %v2035_v54 = vpack.c.bf16 %v385_v49, %v384_v48 }
  0xa3   :  { %2014 = vmatpush3.bf16.msra.mxu1 %v2013_v53  ;;  %v2065_v53 = vpack.c.bf16 %v399_v47, %v398_v45 }
  0xa4   :  { %2048 = vmatprep.subr.bf16.mxu1 %v2047_v58  ;;  %1054 = vmatmul.mubr.f32.vlgmr.msra.gmra.mrb[8].mxu0 %v30_v0  ;;  %v2067_v58 = vpack.c.bf16 %v417_v51, %v416_v50  ;;  %v2037_v0 = vpack.c.bf16 %v369_v56, %v368_v55 }
  0xa5   :  { %2018 = vmatpush3.bf16.msra.mxu0 %v2017_v1  ;;  %1193 = vmatprep.mubr.f32.mxu0 %v35_v14  ;;  %v2069_v1 = vpack.c.bf16 %v401_v59, %v400_v57 }
  0xa6   :  { %1124 = vmatmul.mubr.f32.vlgmr.msra.gmra.mrb[8].mxu1 %v32_v2  ;;  %2020 = vmatprep.subr.bf16.mxu0 %v2019_v4  ;;  %v2039_v2 = vpack.c.bf16 %v387_v61, %v386_v60  ;;  %v371_v4 = vld [vmem:[%s3329_s1 + $0xa68] sm:$0xff] }
  0xa7   :  { %2050 = vmatpush3.bf16.msra.mxu1 %v2049_v3  ;;  %1263 = vmatprep.mubr.f32.mxu1 %v37_v16  ;;  %v370_v3 = vld [vmem:[%s3329_s1 + $0xa60] sm:$0xff]  ;;  %v373_v16 = vld [vmem:[%s3329_s1 + $0xa78] sm:$0xff] }
  0xa8   :  { %2052 = vmatprep.subr.bf16.mxu1 %v2051_v8  ;;  %v388_v8 = vld [vmem:[%s3329_s1 + $0xaf0] sm:$0xff]  ;;  %v2041_v12 = vpack.c.bf16 %v371_v4, %v370_v3 }
  0xa9   :  { %2022 = vmatpush3.bf16.msra.mxu0 %v2021_v15  ;;  %v2043_v14 = vpack.c.bf16 %v389_v9, %v388_v8  ;;  %v372_v15 = vld [vmem:[%s3329_s1 + $0xa70] sm:$0xff] }
  0xaa   :  { %2024 = vmatprep.subr.bf16.mxu0 %v2023_v18  ;;  %v404_v18 = vld [vmem:[%s3329_s1 + $0xb70] sm:$0xff]  ;;  %v2045_v20 = vpack.c.bf16 %v373_v16, %v372_v15 }
  0xab   :  { %2054 = vmatpush3.bf16.msra.mxu1 %v2053_v17  ;;  %v2075_v17 = vpack.c.bf16 %v421_v11, %v420_v10  ;;  %v2077_v21 = vpack.c.bf16 %v405_v19, %v404_v18 }
  0xac   :  { %2056 = vmatprep.subr.bf16.mxu1 %v2055_v22  ;;  %v34_v22 = vld [vmem:[%s3330_s0 + $0xa0] sm:$0xff] }
  0xad   :  { %2026 = vmatpush3.bf16.msra.mxu0 %v2025_v28 }
  0xae   :  { %2028 = vmatprep.subr.bf16.mxu0 %v2027_v30 }
  0xaf   :  { %2058 = vmatpush3.bf16.msra.mxu1 %v2057_v29 }
  0xb0   :  { %2060 = vmatprep.subr.bf16.mxu1 %v2059_v34 }
  0xb1   :  { %2030 = vmatpush3.bf16.msra.mxu0 %v2029_v40 }
  0xb2   :  { %2032 = vmatprep.subr.bf16.mxu0 %v2031_v42 }
  0xb3   :  { %2062 = vmatpush3.bf16.msra.mxu1 %v2061_v41 }
  0xb4   :  { %2064 = vmatprep.subr.bf16.mxu1 %v2063_v46 }
  0xb5   :  { %2034 = vmatpush3.bf16.msra.mxu0 %v2033_v52 }
  0xb6   :  { %2036 = vmatprep.subr.bf16.mxu0 %v2035_v54 }
  0xb7   :  { %2066 = vmatpush3.bf16.msra.mxu1 %v2065_v53 }
  0xb8   :  { %2068 = vmatprep.subr.bf16.mxu1 %v2067_v58 }
  0xb9   :  { %2038 = vmatpush3.bf16.msra.mxu0 %v2037_v0 }
  0xba   :  { %2040 = vmatprep.subr.bf16.mxu0 %v2039_v2 }
  0xbb   :  { %2070 = vmatpush3.bf16.msra.mxu1 %v2069_v1 }
  0xbc   :  { %2072 = vmatprep.subr.bf16.mxu1 %v2071_v6 }
  0xbd   :  { %2042 = vmatpush3.bf16.msra.mxu0 %v2041_v12 }
  0xbe   :  { %2044 = vmatprep.subr.bf16.mxu0 %v2043_v14 }
  0xbf   :  { %2074 = vmatpush3.bf16.msra.mxu1 %v2073_v13 }
  0xc0   :  { %2076 = vmatprep.subr.bf16.mxu1 %v2075_v17 }
  0xc1   :  { %2046 = vmatpush3.bf16.msra.mxu0 %v2045_v20 }
  0xc3   :  { %2078 = vmatpush3.bf16.msra.mxu1 %v2077_v21 }
  0xc4   :  { %1194 = vmatmul.mubr.f32.vlgmr.msra.gmra.mrb[10].mxu0 %v34_v22 }
  0xc6   :  { %1264 = vmatmul.mubr.f32.vlgmr.msra.gmra.mrb[10].mxu1 %v36_v23 }
  0xf7   :  { %v1307_v24 = vpop.f32.mrb[0].mxu0 }
  0xf8   :  { %v1308_v26 = vpop.f32.mrb[1].mxu0 }
  0xf9   :  { %v1342_v27 = vpop.f32.mrb[0].mxu1  ;;  %v1309_v28 = vadd.f32 %v1308_v26, %v1307_v24 }
  0xfa   :  { %v1343_v29 = vpop.f32.mrb[1].mxu1 }
  0xfb   :  { %v1344_v30 = vadd.f32 %v1343_v29, %v1342_v27  ;;  %v496_v31 = vadd.f32 %v1309_v28, %v1274_v25 }
  0xfd   :  { %v566_v32 = vadd.f32 %v1344_v30, %v496_v31 }
 0x117   :  { %v1377_v33 = vpop.f32.mrb[2].mxu0 }
 0x118   :  { %v1378_v34 = vpop.f32.mrb[3].mxu0 }
 0x119   :  { %v1412_v35 = vpop.f32.mrb[2].mxu1  ;;  %v1379_v36 = vadd.f32 %v1378_v34, %v1377_v33 }
 0x11a   :  { %v1413_v37 = vpop.f32.mrb[3].mxu1 }
 0x11b   :  { %v1414_v38 = vadd.f32 %v1413_v37, %v1412_v35  ;;  %v636_v39 = vadd.f32 %v1379_v36, %v566_v32 }
 0x11d   :  { %v706_v40 = vadd.f32 %v1414_v38, %v636_v39 }
 0x137   :  { %v1447_v41 = vpop.f32.mrb[4].mxu0 }
 0x138   :  { %v1448_v42 = vpop.f32.mrb[5].mxu0 }
 0x139   :  { %v1482_v43 = vpop.f32.mrb[4].mxu1  ;;  %v1449_v44 = vadd.f32 %v1448_v42, %v1447_v41 }
 0x13a   :  { %v1483_v45 = vpop.f32.mrb[5].mxu1 }
 0x13b   :  { %v1484_v46 = vadd.f32 %v1483_v45, %v1482_v43  ;;  %v776_v47 = vadd.f32 %v1449_v44, %v706_v40 }
 0x13d   :  { %v846_v48 = vadd.f32 %v1484_v46, %v776_v47 }
 0x157   :  { %v1517_v49 = vpop.f32.mrb[6].mxu0 }
 0x158   :  { %v1518_v50 = vpop.f32.mrb[7].mxu0 }
 0x159   :  { %v1552_v51 = vpop.f32.mrb[6].mxu1  ;;  %v1519_v52 = vadd.f32 %v1518_v50, %v1517_v49 }
 0x15a   :  { %v1553_v53 = vpop.f32.mrb[7].mxu1 }
 0x15b   :  { %v1554_v54 = vadd.f32 %v1553_v53, %v1552_v51  ;;  %v916_v55 = vadd.f32 %v1519_v52, %v846_v48 }
 0x15d   :  { %v986_v56 = vadd.f32 %v1554_v54, %v916_v55 }
 0x177   :  { %v1587_v57 = vpop.f32.mrb[8].mxu0 }
 0x178   :  { %v1588_v58 = vpop.f32.mrb[9].mxu0 }
 0x179   :  { %v1622_v59 = vpop.f32.mrb[8].mxu1  ;;  %v1589_v60 = vadd.f32 %v1588_v58, %v1587_v57 }
 0x17a   :  { %v1623_v61 = vpop.f32.mrb[9].mxu1 }
 0x17b   :  { %v1624_v62 = vadd.f32 %v1623_v61, %v1622_v59  ;;  %v1056_v63 = vadd.f32 %v1589_v60, %v986_v56 }
 0x17d   :  { %v1126_v0 = vadd.f32 %v1624_v62, %v1056_v63 }
 0x197   :  { %v1657_v1 = vpop.f32.mrb[10].mxu0 }
 0x198   :  { %v1658_v2 = vpop.f32.mrb[11].mxu0 }
 0x199   :  { %v1692_v3 = vpop.f32.mrb[10].mxu1  ;;  %v1659_v4 = vadd.f32 %v1658_v2, %v1657_v1 }
 0x19a   :  { %v1693_v5 = vpop.f32.mrb[11].mxu1 }
 0x19b   :  { %v1694_v6 = vadd.f32 %v1693_v5, %v1692_v3  ;;  %v1196_v7 = vadd.f32 %v1659_v4, %v1126_v0 }
 0x19d   :  { %v1266_v8 = vadd.f32 %v1694_v6, %v1196_v7 }
 0x19f   :  { %1269 = vst [vmem:[%s3332_s3] sm:$0xff] %v1266_v8 }

// kernel: fcn_forward.2
= control target key start
LH: loop header
LB: loop body
LE: loop exit
PB: predicated region body
PF: predicated region fallthrough
CT: control target
= control target key end

     0   :  { %s14143_s0 = inlined_call_operand.vmem [shape: f32[8,26624], index: 0, kind: input, shape index: {}]   ;;  %s14144_s1 = inlined_call_operand.hbm [shape: f32[26624,3072], index: 1, kind: input, shape index: {}]   ;;  %s14145_s2 = inlined_call_operand.hbm [shape: f32[1,3072], index: 2, kind: input, shape index: {}]   ;;  %s14146_s3 = inlined_call_operand.vmem [shape: f32[8,3072], index: 3, kind: output, shape index: {}]  }
   0x1   :  { %14152 = sst [smem:[#allocation9_spill]] %s14144_s1 }
   0x2   :  { %8 = vsyncpa [#allocation3], 0 }
   0x3   :  { %10 = vsyncpa [#allocation3 + $0x1], 0 }
   0x4   :  { %11 = vsyncpa [#allocation5], 0 }
   0x5   :  { %13 = vsyncpa [#allocation5 + $0x1], 0  ;;  %s10589_s12 = smov 0   ;;  %s10591_s13 = smov 0  }
   0x6   :  { %s10593_s14 = smov 0   ;;  %s10595_s15 = smov 0  }
   0x7   :  { %s10597_s16 = smov 0   ;;  %s10599_s17 = smov 0  }
   0x8   :  { %s10601_s18 = smov 0   ;;  %s10603_s19 = smov 0  }
   0x9   :  { %s10605_s20 = smov 0   ;;  %s10607_s21 = smov 0  }
   0xa   :  { %s10609_s22 = smov 0  }
   0xb LB: > { %s31_s23 = sadd.s32 1, %s10553_s20  ;;  %p82_p1 = scmp.ne.s32.totalorder %s10541_s17, %s10537_s16  ;;  %s10561_s22 = sphi %s10609_s22, %s19_s22   ;;  %s10557_s21 = sphi %s10607_s21, %s14179_s21   ;;  %s10553_s20 = sphi %s10605_s20, %s14178_s20   ;;  %s10549_s19 = sphi %s10603_s19, %s14177_s19   ;;  %s10545_s18 = sphi %s10601_s18, %s14176_s18   ;;  %s10541_s17 = sphi %s10599_s17, %s14175_s17   ;;  %s10537_s16 = sphi %s10597_s16, %s14174_s16   ;;  %s10533_s15 = sphi %s10595_s15, %s14173_s15   ;;  %s10529_s14 = sphi %s10593_s14, %s14172_s14   ;;  %s10525_s13 = sphi %s10591_s13, %s14171_s13   ;;  %s10521_s12 = sphi %s10589_s12, %s14170_s12  }
   0xc   : > { %p10646_p0 = scmp.ge.s32.totalorder %s31_s23, 13  ;;  %p14148_p2 = scmp.eq.s32.totalorder %s10561_s22, 0 }
   0xd   : > { %p14147_p4 = scmp.lt.s32.totalorder %s10561_s22, 26  ;;  %s179_s27 = sand.u32 1, %s10541_s17  }
   0xe   : > { %s14181_s23 = smov (%p10646_p0, %s31_s23), 0  ;;  %p84_p3 = por %p14148_p2, %p82_p1 }
   0xf   : > { %s10298_s28 = smul.u32 24576, %s179_s27  ;;  %s14155_s1 = sld [smem:[#allocation9_spill]] }
  0x10   : > { %s185_s29 = smul.u32 12, %s10557_s21  ;;  %p10666_p5 = pnand %p14147_p4, %p84_p3 }
  0x11   : > { %s10299_s4 = smul.u32 6144, %s10553_s20  ;;  %s183_s5 = scalar_lea.vmem [#allocation2], %s10298_s28 }
  0x12   : > { %s193_s6 = sshll.u32 %s183_s5, 4  ;;  %s10679_s24 = scalar_lea.sflag [#allocation3], %s179_s27  ;;  %s10671_s6 = int_to_ptr.vmem [resolvable:$true] %s193_s6 }
  0x13   : > { %s190_s7 = sadd.s32 %s10299_s4, %s185_s29  ;;  %p10409_p8 = pneg %p10666_p5 }
  0x14   : > { %s7131_s8 = sshll.u32 %s190_s7, 7 }
  0x15   : > { %s10676_s11 = scalar_lea.hbm %s14155_s1, %s7131_s8  ;;  %s10412_s4 = scalar_lea.hbm %s14155_s1, 10223616 }
  0x16   : > { %s10407_s26 = scalar_lea.hbm %s10676_s11, 393216  ;;  %p10413_p11 = scmp.lt.u32.totalorder %s10676_s11, %s14155_s1 }
  0x17   : > { %p10408_p7 = scmp.ne.s32.totalorder %s10676_s11, %s10407_s26  ;;  %p10414_p12 = scmp.lt.u32.totalorder %s10412_s4, %s10407_s26 }
  0x18   : > { %p10416_p1 = scmp.lt.u32.totalorder %s10407_s26, %s10676_s11 }
  0x19   : > { %p10410_p9 = pnand %p10409_p8, %p10408_p7  ;;  %p10415_p13 = por %p10414_p12, %p10413_p11 }
  0x1b   : > { %p10411_p10 = pneg %p10410_p9  ;;  %p10417_p3 = por %p10416_p1, %p10415_p13 }
  0x1d   : > { %p10418_p4 = pnand %p10417_p3, %p10411_p10 }
  0x1f   : > { %10421 = shalt.err (!%p10418_p4)
}
  0x20   : > { %s10422_s27 = scalar_lea.vmem %s10671_s6, 393216  ;;  %s10563_s8 = smov [#allocation2]  }
  0x21   : > { %p10423_p7 = scmp.ne.s32.totalorder %s10671_s6, %s10422_s27  ;;  %s10427_s9 = sshll.u32 %s10563_s8, 4  ;;  %s10428_s9 = int_to_ptr.vmem [resolvable:$false] %s10427_s9 }
  0x22   : > { %s10429_s10 = scalar_lea.vmem %s10428_s9, 786432  ;;  %p10430_p6 = scmp.lt.s32.totalorder %s10671_s6, %s10428_s9 }
  0x23   : > { %p10425_p9 = pnand %p10423_p7, %p10409_p8  ;;  %p10431_p11 = scmp.lt.s32.totalorder %s10429_s10, %s10422_s27 }
  0x25   : > { %p10426_p2 = pneg %p10425_p9  ;;  %p10432_p12 = por %p10431_p11, %p10430_p6 }
  0x27   : > { %p10433_p13 = pnand %p10432_p12, %p10426_p2 }
  0x29   : > { %10436 = shalt.err (!%p10433_p13)
}
  0x2a   : > { %s10564_s26 = smov 3072   ;;  %s10565_s28 = smov 1536  }
  0x2b   : > { %s10566_s29 = smov 96   ;;  %p220_p2 = scmp.lt.s32.totalorder %s10561_s22, 27 }
  0x2c   : > { %10310 = dma.hbm_to_vmem [thread:$0]  (!%p10666_p5), %s10676_s11, 393216, %s10671_s6, %s10679_s24, %s10564_s26, %s10565_s28, %s10566_s29  }
  0x2d   : > { %p14156_p4 = scmp.ge.s32.totalorder %s10561_s22, 1  ;;  %s7125_s5 = sadd.s32 4294967295, %s10561_s22  }
  0x2e   : > { %s34_s7 = sadd.s32 1, %s10557_s21  ;;  %p88_p8 = scmp.ne.s32.totalorder %s10537_s16, %s10533_s15 }
  0x2f   : > { %p10710_p6 = pnand %p14156_p4, %p220_p2  ;;  %s14183_s7 = smov (!%p10646_p0, %s34_s7), %s10557_s21 }
  0x30   : > { %p10721_p10 = scmp.eq.s32.totalorder %s7125_s5, 0  ;;  %p36_p5 = scmp.ge.s32.totalorder %s14183_s7, 2 }
  0x31   : > { %s101_s24 = sadd.s32 1, %s10529_s14  ;;  %p108_p0 = scmp.ne.s32.totalorder %s10529_s14, %s10525_s13 }
  0x32   : > { %p10728_p1 = por %p10721_p10, %p88_p8  ;;  %s14185_s7 = smov (%p36_p5, %s14183_s7), 0 }
  0x33   : > { %14160 = sst [smem:[#allocation8_spill]] %s14185_s7  ;;  %p14161_p3 = scmp.eq.s32.totalorder %s10561_s22, 0 }
  0x34   : > { %s14159_s6 = scalar_select %p10728_p1, 1, 0 }
  0x35   : > { %p110_p7 = por %p108_p0, %p14161_p3  ;;  %p114_p9 = scmp.ne.s32.totalorder %s10525_s13, %s10521_s12 }
  0x36   : > { %s71_s15 = ssub.s32 %s10557_s21, %s14185_s7  ;;  %s203_s25 = sand.u32 1, %s10529_s14  }
  0x37   : > { %s14162_s11 = ssub.s32 %s10553_s20, %s14181_s23  ;;  %p99_p11 = scmp.eq.s32.totalorder %s71_s15, 0 }
  0x38   : > { %s72_s27 = sor.u32 %s71_s15, %s14162_s11  ;;  %p10748_p13 = por %p114_p9, %p10721_p10 }
  0x39   : > { %p73_p12 = scmp.eq.s32.totalorder %s72_s27, 0  ;;  %s14164_s10 = sadd.s32 1, %s10541_s17 }
  0x3a   : > { %s14163_s8 = scalar_select %p10748_p13, 1, 0 }
  0x3b   : > { %s10753_s9 = scalar_select %p99_p11, %s10529_s14, %s101_s24  }
  0x3c   : > { %s10758_s26 = scalar_select %p73_p12, %s10541_s17, %s14164_s10  }
  0x3d   : > { %s10300_s28 = smul.u32 12, %s203_s25  ;;  %p14165_p2 = scmp.lt.s32.totalorder %s10561_s22, 26 }
  0x3e   : > { %s7141_s29 = smul.u32 192, %s10557_s21  ;;  %s204_s27 = scalar_lea.sflag [#allocation5], %s203_s25 }
  0x3f   : > { %p10763_p4 = pnand %p14165_p2, %p110_p7  ;;  %s207_s24 = scalar_lea.vmem [#allocation4], %s10300_s28 }
  0x40   : > { %s10770_s30 = scalar_lea.hbm %s14145_s2, %s7141_s29  ;;  %s215_s11 = sshll.u32 %s207_s24, 4  ;;  %s10772_s11 = int_to_ptr.vmem [resolvable:$true] %s215_s11 }
  0x41   : > { %s10437_s10 = scalar_lea.hbm %s10770_s30, 192  ;;  %p10439_p10 = pneg %p10763_p4 }
  0x42   : > { %p10438_p8 = scmp.ne.s32.totalorder %s10770_s30, %s10437_s10  ;;  %s10442_s15 = scalar_lea.hbm %s14145_s2, 384 }
  0x43   : > { %p10443_p3 = scmp.lt.u32.totalorder %s10770_s30, %s14145_s2  ;;  %p10444_p7 = scmp.lt.u32.totalorder %s10442_s15, %s10437_s10 }
  0x44   : > { %p10440_p5 = pnand %p10439_p10, %p10438_p8  ;;  %p10446_p11 = scmp.lt.u32.totalorder %s10437_s10, %s10770_s30 }
  0x45   : > { %p10445_p9 = por %p10444_p7, %p10443_p3 }
  0x46   : > { %p10441_p0 = pneg %p10440_p5 }
  0x47   : > { %p10447_p12 = por %p10446_p11, %p10445_p9 }
  0x49   : > { %p10448_p2 = pnand %p10447_p12, %p10441_p0 }
  0x4b   : > { %10451 = shalt.err (!%p10448_p2)
}
  0x4c   : > { %s10452_s25 = scalar_lea.vmem %s10772_s11, 192  ;;  %s10567_s28 = smov [#allocation4]  }
  0x4d   : > { %p10453_p8 = scmp.ne.s32.totalorder %s10772_s11, %s10452_s25  ;;  %s10457_s24 = sshll.u32 %s10567_s28, 4  ;;  %s10458_s24 = int_to_ptr.vmem [resolvable:$false] %s10457_s24 }
  0x4e   : > { %s10459_s1 = scalar_lea.vmem %s10458_s24, 384  ;;  %p10460_p1 = scmp.lt.s32.totalorder %s10772_s11, %s10458_s24 }
  0x4f   : > { %p10455_p5 = pnand %p10453_p8, %p10439_p10  ;;  %p10461_p3 = scmp.lt.s32.totalorder %s10459_s1, %s10452_s25 }
  0x51   : > { %p10456_p13 = pneg %p10455_p5  ;;  %p10462_p7 = por %p10461_p3, %p10460_p1 }
  0x53   : > { %p10463_p9 = pnand %p10462_p7, %p10456_p13 }
  0x55   : > { %10466 = shalt.err (!%p10463_p9)
}
  0x56   : > { %10313 = dma.hbm_to_vmem [thread:$0]  (!%p10763_p4), %s10770_s30, 192, %s10772_s11, %s204_s27  }
  0x57   : > { %224 = sbr.rel (%p10710_p6) target bundleno = 1882 (0x75a), region = 32  ;;  %s226_s7 = sand.u32 (!%p10710_p6), 1, %s10537_s16  }
  0x58   : > { %s10301_s10 = smul.u32 (!%p10710_p6), 24576, %s226_s7  ;;  %s227_s5 = scalar_lea.sflag (!%p10710_p6), [#allocation3], %s226_s7 }
  0x59   : > { %p14167_p10 = scmp.ne.s32.totalorder (!%p10710_p6), %s14159_s6, 0 }
  0x5a   : > { %s10802_s29 = scalar_lea.vmem (!%p10710_p6), [#allocation2], %s10301_s10 }
  0x5e   : > { %10512 = dma.done.wait (%p14167_p10), %s227_s5, 393216  }
  0x5f   : > { %10514 = vsyncadd (%p14167_p10), %s227_s5, 4294574080  ;;  %s235_s12 = sand.u32 1, %s10525_s13   ;;  %p14168_p6 = scmp.ne.s32.totalorder %s14163_s8, 0 }
  0x60   : > { %s10809_s15 = smul.u32 12, %s235_s12  ;;  %s236_s4 = scalar_lea.sflag [#allocation5], %s235_s12 }
  0x62   : > { %s239_s30 = scalar_lea.vmem [#allocation4], %s10809_s15 }
  0x63   : > { %10516 = dma.done.wait (%p14168_p6), %s236_s4, 192  }
  0x64   : > { %10518 = vsyncadd (%p14168_p6), %s236_s4, 4294967104  ;;  %s7134_s11 = sshll.u32 %s10545_s18, 4  ;;  %s293_s27 = smul.u32 12, %s10549_s19 }
  0x65   : > { %p283_p1 = scmp.lt.s32.totalorder %s7134_s11, 207  ;;  %p7137_p4 = scmp.ne.s32.totalorder %s10545_s18, 0 }
  0x66   : > { %p296_p13 = scmp.lt.s32.totalorder %s293_s27, 23  ;;  %v10568_v0 = vmov (!%p7137_p4), 0.0  }
  0x67   : > { %s14187_s11 = smov (!%p283_p1, %s7134_s11), 207  ;;  %306 = sbr.rel (%p7137_p4) target bundleno = 113 (0x71), region = 44 }
  0x68   : > { %s14189_s27 = smov (!%p296_p13, %s293_s27), 23  ;;  %s7135_s6 = sshll.u32 %s14187_s11, 3 }
  0x69   : > { %s10821_s24 = scalar_lea.vmem %s14143_s0, %s7135_s6  ;;  %s7136_s1 = sshll.u32 %s14189_s27, 3 }
  0x6a   : > { %s10826_s8 = scalar_lea.vmem %s14146_s3, %s7136_s1 }
  0x6b   : > { %307 = vst [vmem:[%s10826_s8] sm:$0xff] (!%p7137_p4), %v10568_v0  ;;  %308 = vst [vmem:[%s10826_s8 + $0x8] sm:$0xff] (!%p7137_p4), %v10568_v0 }
  0x6c   : > { %309 = vst [vmem:[%s10826_s8 + $0x10] sm:$0xff] (!%p7137_p4), %v10568_v0  ;;  %310 = vst [vmem:[%s10826_s8 + $0x18] sm:$0xff] (!%p7137_p4), %v10568_v0 }
  0x6d   : > { %311 = vst [vmem:[%s10826_s8 + $0x20] sm:$0xff] (!%p7137_p4), %v10568_v0  ;;  %312 = vst [vmem:[%s10826_s8 + $0x28] sm:$0xff] (!%p7137_p4), %v10568_v0 }
  0x6e   : > { %313 = vst [vmem:[%s10826_s8 + $0x30] sm:$0xff] %v10568_v0  ;;  %314 = vst [vmem:[%s10826_s8 + $0x38] sm:$0xff] %v10568_v0 }
  0x6f   : > { %315 = vst [vmem:[%s10826_s8 + $0x40] sm:$0xff] %v10568_v0  ;;  %316 = vst [vmem:[%s10826_s8 + $0x48] sm:$0xff] %v10568_v0 }
  0x70   : > { %317 = vst [vmem:[%s10826_s8 + $0x50] sm:$0xff] %v10568_v0  ;;  %318 = vst [vmem:[%s10826_s8 + $0x58] sm:$0xff] %v10568_v0 }
  0x71 PF: > { %v364_v1 = vld [vmem:[%s10802_s29 + $0x8] sm:$0xff]  ;;  %v366_v3 = vld [vmem:[%s10802_s29 + $0x18] sm:$0xff]  ;;  %v363_v6 = vld [vmem:[%s10802_s29] sm:$0xff]  ;;  %p7138_p0 = scmp.ne.s32.totalorder %s10545_s18, 12 }
  0x72   : > { %v376_v2 = vld [vmem:[%s10802_s29 + $0x68] sm:$0xff]  ;;  %v378_v5 = vld [vmem:[%s10802_s29 + $0x78] sm:$0xff]  ;;  %v375_v7 = vld [vmem:[%s10802_s29 + $0x60] sm:$0xff] }
  0x73   : > { %v7142_v4 = vpack.c.bf16 %v376_v2, %v364_v1  ;;  %v7654_v8 = vpack.c.bf16 %v378_v5, %v366_v3  ;;  %v7144_v9 = vpack.c.bf16 %v375_v7, %v363_v6  ;;  %v365_v10 = vld [vmem:[%s10802_s29 + $0x10] sm:$0xff]  ;;  %v388_v12 = vld [vmem:[%s10802_s29 + $0xc8] sm:$0xff]  ;;  %v390_v15 = vld [vmem:[%s10802_s29 + $0xd8] sm:$0xff] }
  0x74   : > { %v377_v11 = vld [vmem:[%s10802_s29 + $0x70] sm:$0xff]  ;;  %v400_v14 = vld [vmem:[%s10802_s29 + $0x128] sm:$0xff]  ;;  %v402_v16 = vld [vmem:[%s10802_s29 + $0x138] sm:$0xff] }
  0x75   : > { %7143 = vmatprep.subr.bf16.mxu0 %v7142_v4  ;;  %v7656_v13 = vpack.c.bf16 %v377_v11, %v365_v10  ;;  %7655 = vmatprep.subr.bf16.mxu1 %v7654_v8  ;;  %v7146_v17 = vpack.c.bf16 %v400_v14, %v388_v12  ;;  %v7658_v18 = vpack.c.bf16 %v402_v16, %v390_v15  ;;  %v387_v19 = vld [vmem:[%s10802_s29 + $0xc0] sm:$0xff]  ;;  %v389_v21 = vld [vmem:[%s10802_s29 + $0xd0] sm:$0xff]  ;;  %v412_v24 = vld [vmem:[%s10802_s29 + $0x188] sm:$0xff] }
  0x76   : > { %7145 = vmatpush1.bf16.msra.mxu0 %v7144_v9  ;;  %v399_v20 = vld [vmem:[%s10802_s29 + $0x120] sm:$0xff]  ;;  %v401_v23 = vld [vmem:[%s10802_s29 + $0x130] sm:$0xff]  ;;  %v424_v25 = vld [vmem:[%s10802_s29 + $0x1e8] sm:$0xff] }
  0x77   : > { %7657 = vmatpush1.bf16.msra.mxu1 %v7656_v13  ;;  %v7148_v22 = vpack.c.bf16 %v399_v20, %v387_v19  ;;  %7147 = vmatprep.subr.bf16.mxu0 %v7146_v17  ;;  %v7660_v26 = vpack.c.bf16 %v401_v23, %v389_v21  ;;  %v7150_v27 = vpack.c.bf16 %v424_v25, %v412_v24  ;;  %v414_v28 = vld [vmem:[%s10802_s29 + $0x198] sm:$0xff]  ;;  %v411_v30 = vld [vmem:[%s10802_s29 + $0x180] sm:$0xff]  ;;  %v413_v33 = vld [vmem:[%s10802_s29 + $0x190] sm:$0xff] }
  0x78   : > { %7659 = vmatprep.subr.bf16.mxu1 %v7658_v18  ;;  %v426_v29 = vld [vmem:[%s10802_s29 + $0x1f8] sm:$0xff]  ;;  %v423_v32 = vld [vmem:[%s10802_s29 + $0x1e0] sm:$0xff]  ;;  %v425_v34 = vld [vmem:[%s10802_s29 + $0x1f0] sm:$0xff] }
  0x79   : > { %v7662_v31 = vpack.c.bf16 %v426_v29, %v414_v28  ;;  %v7152_v35 = vpack.c.bf16 %v423_v32, %v411_v30  ;;  %v436_v36 = vld [vmem:[%s10802_s29 + $0x248] sm:$0xff]  ;;  %v438_v38 = vld [vmem:[%s10802_s29 + $0x258] sm:$0xff]  ;;  %v7664_v39 = vpack.c.bf16 %v425_v34, %v413_v33  ;;  %v435_v42 = vld [vmem:[%s10802_s29 + $0x240] sm:$0xff] }
  0x7a   : > { %7149 = vmatpush1.bf16.msra.mxu0 %v7148_v22  ;;  %v448_v37 = vld [vmem:[%s10802_s29 + $0x2a8] sm:$0xff]  ;;  %v450_v41 = vld [vmem:[%s10802_s29 + $0x2b8] sm:$0xff]  ;;  %v447_v43 = vld [vmem:[%s10802_s29 + $0x2a0] sm:$0xff] }
  0x7b   : > { %7661 = vmatpush1.bf16.msra.mxu1 %v7660_v26  ;;  %7151 = vmatprep.subr.bf16.mxu0 %v7150_v27  ;;  %v7154_v40 = vpack.c.bf16 %v448_v37, %v436_v36  ;;  %v7666_v44 = vpack.c.bf16 %v450_v41, %v438_v38  ;;  %v437_v45 = vld [vmem:[%s10802_s29 + $0x250] sm:$0xff]  ;;  %v460_v47 = vld [vmem:[%s10802_s29 + $0x308] sm:$0xff]  ;;  %v462_v49 = vld [vmem:[%s10802_s29 + $0x318] sm:$0xff]  ;;  %v7156_v51 = vpack.c.bf16 %v447_v43, %v435_v42 }
  0x7c   : > { %7663 = vmatprep.subr.bf16.mxu1 %v7662_v31  ;;  %v449_v46 = vld [vmem:[%s10802_s29 + $0x2b0] sm:$0xff]  ;;  %v472_v48 = vld [vmem:[%s10802_s29 + $0x368] sm:$0xff]  ;;  %v474_v50 = vld [vmem:[%s10802_s29 + $0x378] sm:$0xff] }
  0x7d   : > { %v7668_v52 = vpack.c.bf16 %v449_v46, %v437_v45  ;;  %v7158_v53 = vpack.c.bf16 %v472_v48, %v460_v47  ;;  %v459_v54 = vld [vmem:[%s10802_s29 + $0x300] sm:$0xff]  ;;  %v461_v56 = vld [vmem:[%s10802_s29 + $0x310] sm:$0xff]  ;;  %v7670_v57 = vpack.c.bf16 %v474_v50, %v462_v49  ;;  %v484_v59 = vld [vmem:[%s10802_s29 + $0x3c8] sm:$0xff] }
  0x7e   : > { %7153 = vmatpush1.bf16.msra.mxu0 %v7152_v35  ;;  %v471_v55 = vld [vmem:[%s10802_s29 + $0x360] sm:$0xff]  ;;  %v473_v58 = vld [vmem:[%s10802_s29 + $0x370] sm:$0xff]  ;;  %v496_v60 = vld [vmem:[%s10802_s29 + $0x428] sm:$0xff] }
  0x7f   : > { %7665 = vmatpush1.bf16.msra.mxu1 %v7664_v39  ;;  %7155 = vmatprep.subr.bf16.mxu0 %v7154_v40  ;;  %v486_v61 = vld [vmem:[%s10802_s29 + $0x3d8] sm:$0xff]  ;;  %v7160_v63 = vpack.c.bf16 %v471_v55, %v459_v54  ;;  %v7672_v0 = vpack.c.bf16 %v473_v58, %v461_v56  ;;  %v7162_v1 = vpack.c.bf16 %v496_v60, %v484_v59  ;;  %v483_v2 = vld [vmem:[%s10802_s29 + $0x3c0] sm:$0xff]  ;;  %v485_v4 = vld [vmem:[%s10802_s29 + $0x3d0] sm:$0xff] }
  0x80   : > { %7667 = vmatprep.subr.bf16.mxu1 %v7666_v44  ;;  %v498_v62 = vld [vmem:[%s10802_s29 + $0x438] sm:$0xff]  ;;  %v495_v3 = vld [vmem:[%s10802_s29 + $0x420] sm:$0xff]  ;;  %v497_v6 = vld [vmem:[%s10802_s29 + $0x430] sm:$0xff] }
  0x81   : > { %v7674_v5 = vpack.c.bf16 %v498_v62, %v486_v61  ;;  %v508_v7 = vld [vmem:[%s10802_s29 + $0x488] sm:$0xff]  ;;  %v510_v9 = vld [vmem:[%s10802_s29 + $0x498] sm:$0xff]  ;;  %v7164_v11 = vpack.c.bf16 %v495_v3, %v483_v2  ;;  %v7676_v12 = vpack.c.bf16 %v497_v6, %v485_v4  ;;  %v507_v14 = vld [vmem:[%s10802_s29 + $0x480] sm:$0xff] }
  0x82   : > { %7157 = vmatpush1.bf16.msra.mxu0 %v7156_v51  ;;  %v520_v8 = vld [vmem:[%s10802_s29 + $0x4e8] sm:$0xff]  ;;  %v522_v10 = vld [vmem:[%s10802_s29 + $0x4f8] sm:$0xff]  ;;  %v519_v15 = vld [vmem:[%s10802_s29 + $0x4e0] sm:$0xff] }
  0x83   : > { %7669 = vmatpush1.bf16.msra.mxu1 %v7668_v52  ;;  %7159 = vmatprep.subr.bf16.mxu0 %v7158_v53  ;;  %v7166_v13 = vpack.c.bf16 %v520_v8, %v508_v7  ;;  %v509_v16 = vld [vmem:[%s10802_s29 + $0x490] sm:$0xff]  ;;  %v7678_v17 = vpack.c.bf16 %v522_v10, %v510_v9  ;;  %v532_v19 = vld [vmem:[%s10802_s29 + $0x548] sm:$0xff]  ;;  %v534_v21 = vld [vmem:[%s10802_s29 + $0x558] sm:$0xff]  ;;  %v7168_v23 = vpack.c.bf16 %v519_v15, %v507_v14 }
  0x84   : > { %7671 = vmatprep.subr.bf16.mxu1 %v7670_v57  ;;  %v521_v18 = vld [vmem:[%s10802_s29 + $0x4f0] sm:$0xff]  ;;  %v544_v20 = vld [vmem:[%s10802_s29 + $0x5a8] sm:$0xff]  ;;  %v546_v22 = vld [vmem:[%s10802_s29 + $0x5b8] sm:$0xff] }
  0x85   : > { %v7680_v24 = vpack.c.bf16 %v521_v18, %v509_v16  ;;  %v7170_v25 = vpack.c.bf16 %v544_v20, %v532_v19  ;;  %v531_v26 = vld [vmem:[%s10802_s29 + $0x540] sm:$0xff]  ;;  %v533_v28 = vld [vmem:[%s10802_s29 + $0x550] sm:$0xff]  ;;  %v7682_v29 = vpack.c.bf16 %v546_v22, %v534_v21  ;;  %v556_v31 = vld [vmem:[%s10802_s29 + $0x608] sm:$0xff] }
  0x86   : > { %7161 = vmatpush1.bf16.msra.mxu0 %v7160_v63  ;;  %v543_v27 = vld [vmem:[%s10802_s29 + $0x5a0] sm:$0xff]  ;;  %v545_v30 = vld [vmem:[%s10802_s29 + $0x5b0] sm:$0xff]  ;;  %v568_v32 = vld [vmem:[%s10802_s29 + $0x668] sm:$0xff] }
  0x87   : > { %7673 = vmatpush1.bf16.msra.mxu1 %v7672_v0  ;;  %7163 = vmatprep.subr.bf16.mxu0 %v7162_v1  ;;  %v558_v33 = vld [vmem:[%s10802_s29 + $0x618] sm:$0xff]  ;;  %v7172_v35 = vpack.c.bf16 %v543_v27, %v531_v26  ;;  %v7684_v36 = vpack.c.bf16 %v545_v30, %v533_v28  ;;  %v7174_v37 = vpack.c.bf16 %v568_v32, %v556_v31  ;;  %v555_v38 = vld [vmem:[%s10802_s29 + $0x600] sm:$0xff]  ;;  %v557_v40 = vld [vmem:[%s10802_s29 + $0x610] sm:$0xff] }
  0x88   : > { %7675 = vmatprep.subr.bf16.mxu1 %v7674_v5  ;;  %v570_v34 = vld [vmem:[%s10802_s29 + $0x678] sm:$0xff]  ;;  %v567_v39 = vld [vmem:[%s10802_s29 + $0x660] sm:$0xff]  ;;  %v569_v42 = vld [vmem:[%s10802_s29 + $0x670] sm:$0xff] }
  0x89   : > { %v7686_v41 = vpack.c.bf16 %v570_v34, %v558_v33  ;;  %v580_v43 = vld [vmem:[%s10802_s29 + $0x6c8] sm:$0xff]  ;;  %v582_v45 = vld [vmem:[%s10802_s29 + $0x6d8] sm:$0xff]  ;;  %v7176_v47 = vpack.c.bf16 %v567_v39, %v555_v38  ;;  %v7688_v48 = vpack.c.bf16 %v569_v42, %v557_v40  ;;  %v579_v50 = vld [vmem:[%s10802_s29 + $0x6c0] sm:$0xff] }
  0x8a   : > { %7165 = vmatpush1.bf16.msra.mxu0 %v7164_v11  ;;  %v592_v44 = vld [vmem:[%s10802_s29 + $0x728] sm:$0xff]  ;;  %v594_v46 = vld [vmem:[%s10802_s29 + $0x738] sm:$0xff]  ;;  %v591_v51 = vld [vmem:[%s10802_s29 + $0x720] sm:$0xff] }
  0x8b   : > { %7677 = vmatpush1.bf16.msra.mxu1 %v7676_v12  ;;  %7167 = vmatprep.subr.bf16.mxu0 %v7166_v13  ;;  %v7178_v49 = vpack.c.bf16 %v592_v44, %v580_v43  ;;  %v581_v52 = vld [vmem:[%s10802_s29 + $0x6d0] sm:$0xff]  ;;  %v7690_v53 = vpack.c.bf16 %v594_v46, %v582_v45  ;;  %v604_v55 = vld [vmem:[%s10802_s29 + $0x788] sm:$0xff]  ;;  %v606_v57 = vld [vmem:[%s10802_s29 + $0x798] sm:$0xff]  ;;  %v7180_v59 = vpack.c.bf16 %v591_v51, %v579_v50 }
  0x8c   : > { %7679 = vmatprep.subr.bf16.mxu1 %v7678_v17  ;;  %v593_v54 = vld [vmem:[%s10802_s29 + $0x730] sm:$0xff]  ;;  %v616_v56 = vld [vmem:[%s10802_s29 + $0x7e8] sm:$0xff]  ;;  %v618_v58 = vld [vmem:[%s10802_s29 + $0x7f8] sm:$0xff] }
  0x8d   : > { %v7692_v60 = vpack.c.bf16 %v593_v54, %v581_v52  ;;  %v7182_v61 = vpack.c.bf16 %v616_v56, %v604_v55  ;;  %v603_v62 = vld [vmem:[%s10802_s29 + $0x780] sm:$0xff]  ;;  %v605_v0 = vld [vmem:[%s10802_s29 + $0x790] sm:$0xff]  ;;  %v7694_v1 = vpack.c.bf16 %v618_v58, %v606_v57  ;;  %v628_v3 = vld [vmem:[%s10802_s29 + $0x848] sm:$0xff] }
  0x8e   : > { %7169 = vmatpush1.bf16.msra.mxu0 %v7168_v23  ;;  %v615_v63 = vld [vmem:[%s10802_s29 + $0x7e0] sm:$0xff]  ;;  %v617_v2 = vld [vmem:[%s10802_s29 + $0x7f0] sm:$0xff]  ;;  %v640_v4 = vld [vmem:[%s10802_s29 + $0x8a8] sm:$0xff] }
  0x8f   : > { %7681 = vmatpush1.bf16.msra.mxu1 %v7680_v24  ;;  %7171 = vmatprep.subr.bf16.mxu0 %v7170_v25  ;;  %v630_v5 = vld [vmem:[%s10802_s29 + $0x858] sm:$0xff]  ;;  %v7184_v7 = vpack.c.bf16 %v615_v63, %v603_v62  ;;  %v627_v8 = vld [vmem:[%s10802_s29 + $0x840] sm:$0xff]  ;;  %v7696_v9 = vpack.c.bf16 %v617_v2, %v605_v0  ;;  %v7186_v10 = vpack.c.bf16 %v640_v4, %v628_v3  ;;  %v629_v12 = vld [vmem:[%s10802_s29 + $0x850] sm:$0xff] }
  0x90   : > { %7683 = vmatprep.subr.bf16.mxu1 %v7682_v29  ;;  %v642_v6 = vld [vmem:[%s10802_s29 + $0x8b8] sm:$0xff]  ;;  %v639_v11 = vld [vmem:[%s10802_s29 + $0x8a0] sm:$0xff]  ;;  %v641_v13 = vld [vmem:[%s10802_s29 + $0x8b0] sm:$0xff] }
  0x91   : > { %v7698_v14 = vpack.c.bf16 %v642_v6, %v630_v5  ;;  %v652_v15 = vld [vmem:[%s10802_s29 + $0x908] sm:$0xff]  ;;  %v654_v18 = vld [vmem:[%s10802_s29 + $0x918] sm:$0xff]  ;;  %v7188_v21 = vpack.c.bf16 %v639_v11, %v627_v8  ;;  %v7700_v22 = vpack.c.bf16 %v641_v13, %v629_v12  ;;  %v651_v24 = vld [vmem:[%s10802_s29 + $0x900] sm:$0xff] }
  0x92   : > { %7173 = vmatpush1.bf16.msra.mxu0 %v7172_v35  ;;  %v664_v16 = vld [vmem:[%s10802_s29 + $0x968] sm:$0xff]  ;;  %v666_v19 = vld [vmem:[%s10802_s29 + $0x978] sm:$0xff]  ;;  %v663_v25 = vld [vmem:[%s10802_s29 + $0x960] sm:$0xff] }
  0x93   : > { %7685 = vmatpush1.bf16.msra.mxu1 %v7684_v36  ;;  %7175 = vmatprep.subr.bf16.mxu0 %v7174_v37  ;;  %v320_v17 = vld [vmem:[%s10821_s24 + $0x8] sm:$0xff]  ;;  %v7190_v23 = vpack.c.bf16 %v664_v16, %v652_v15  ;;  %v653_v26 = vld [vmem:[%s10802_s29 + $0x910] sm:$0xff]  ;;  %v7702_v27 = vpack.c.bf16 %v666_v19, %v654_v18  ;;  %v678_v31 = vld [vmem:[%s10802_s29 + $0x9d8] sm:$0xff]  ;;  %v7192_v33 = vpack.c.bf16 %v663_v25, %v651_v24 }
  0x94   : > { %7687 = vmatprep.subr.bf16.mxu1 %v7686_v41  ;;  %v10942_v20 = vmax.f32 %v320_v17, 0.0  ;;  %v665_v28 = vld [vmem:[%s10802_s29 + $0x970] sm:$0xff]  ;;  %v676_v29 = vld [vmem:[%s10802_s29 + $0x9c8] sm:$0xff]  ;;  %v690_v32 = vld [vmem:[%s10802_s29 + $0xa38] sm:$0xff] }
  0x95   : > { %v688_v30 = vld [vmem:[%s10802_s29 + $0xa28] sm:$0xff]  ;;  %v7704_v34 = vpack.c.bf16 %v665_v28, %v653_v26  ;;  %v675_v36 = vld [vmem:[%s10802_s29 + $0x9c0] sm:$0xff]  ;;  %v677_v38 = vld [vmem:[%s10802_s29 + $0x9d0] sm:$0xff]  ;;  %v7706_v39 = vpack.c.bf16 %v690_v32, %v678_v31 }
  0x96   : > { %7177 = vmatpush1.bf16.msra.mxu0 %v7176_v47  ;;  %3499 = vmatprep.mubr.f32.mxu0 %v10942_v20  ;;  %v7194_v35 = vpack.c.bf16 %v688_v30, %v676_v29  ;;  %v687_v37 = vld [vmem:[%s10802_s29 + $0xa20] sm:$0xff]  ;;  %v689_v40 = vld [vmem:[%s10802_s29 + $0xa30] sm:$0xff]  ;;  %v700_v41 = vld [vmem:[%s10802_s29 + $0xa88] sm:$0xff] }
  0x97   : > { %7689 = vmatpush1.bf16.msra.mxu1 %v7688_v48  ;;  %7179 = vmatprep.subr.bf16.mxu0 %v7178_v49  ;;  %v712_v42 = vld [vmem:[%s10802_s29 + $0xae8] sm:$0xff]  ;;  %v702_v43 = vld [vmem:[%s10802_s29 + $0xa98] sm:$0xff]  ;;  %v7196_v45 = vpack.c.bf16 %v687_v37, %v675_v36  ;;  %v7708_v46 = vpack.c.bf16 %v689_v40, %v677_v38  ;;  %v699_v48 = vld [vmem:[%s10802_s29 + $0xa80] sm:$0xff] }
  0x98   : > { %7691 = vmatprep.subr.bf16.mxu1 %v7690_v53  ;;  %4067 = vmatprep.mubr.f32.mxu1 %v10942_v20  ;;  %v714_v44 = vld [vmem:[%s10802_s29 + $0xaf8] sm:$0xff]  ;;  %v7198_v47 = vpack.c.bf16 %v712_v42, %v700_v41  ;;  %v711_v49 = vld [vmem:[%s10802_s29 + $0xae0] sm:$0xff]  ;;  %v701_v50 = vld [vmem:[%s10802_s29 + $0xa90] sm:$0xff] }
  0x99   : > { %v7710_v51 = vpack.c.bf16 %v714_v44, %v702_v43  ;;  %v713_v52 = vld [vmem:[%s10802_s29 + $0xaf0] sm:$0xff]  ;;  %v724_v53 = vld [vmem:[%s10802_s29 + $0xb48] sm:$0xff]  ;;  %v726_v55 = vld [vmem:[%s10802_s29 + $0xb58] sm:$0xff]  ;;  %v7200_v57 = vpack.c.bf16 %v711_v49, %v699_v48 }
  0x9a   : > { %7181 = vmatpush1.bf16.msra.mxu0 %v7180_v59  ;;  %v736_v54 = vld [vmem:[%s10802_s29 + $0xba8] sm:$0xff]  ;;  %v738_v56 = vld [vmem:[%s10802_s29 + $0xbb8] sm:$0xff]  ;;  %v7712_v58 = vpack.c.bf16 %v713_v52, %v701_v50  ;;  %v725_v62 = vld [vmem:[%s10802_s29 + $0xb50] sm:$0xff] }
  0x9b   : > { %7693 = vmatpush1.bf16.msra.mxu1 %v7692_v60  ;;  %7183 = vmatprep.subr.bf16.mxu0 %v7182_v61  ;;  %v7202_v59 = vpack.c.bf16 %v736_v54, %v724_v53  ;;  %v723_v60 = vld [vmem:[%s10802_s29 + $0xb40] sm:$0xff]  ;;  %v7714_v63 = vpack.c.bf16 %v738_v56, %v726_v55  ;;  %v737_v0 = vld [vmem:[%s10802_s29 + $0xbb0] sm:$0xff]  ;;  %v760_v2 = vld [vmem:[%s10802_s29 + $0xc68] sm:$0xff] }
  0x9c   : > { %7695 = vmatprep.subr.bf16.mxu1 %v7694_v1  ;;  %v735_v61 = vld [vmem:[%s10802_s29 + $0xba0] sm:$0xff]  ;;  %v748_v1 = vld [vmem:[%s10802_s29 + $0xc08] sm:$0xff]  ;;  %v750_v3 = vld [vmem:[%s10802_s29 + $0xc18] sm:$0xff] }
  0x9d   : > { %v762_v4 = vld [vmem:[%s10802_s29 + $0xc78] sm:$0xff]  ;;  %v7204_v5 = vpack.c.bf16 %v735_v61, %v723_v60  ;;  %v319_v6 = vld [vmem:[%s10821_s24] sm:$0xff]  ;;  %v7206_v8 = vpack.c.bf16 %v760_v2, %v748_v1  ;;  %v749_v11 = vld [vmem:[%s10802_s29 + $0xc10] sm:$0xff] }
  0x9e   : > { %7185 = vmatpush1.bf16.msra.mxu0 %v7184_v7  ;;  %v7716_v7 = vpack.c.bf16 %v737_v0, %v725_v62  ;;  %v7718_v12 = vpack.c.bf16 %v762_v4, %v750_v3  ;;  %v761_v13 = vld [vmem:[%s10802_s29 + $0xc70] sm:$0xff]  ;;  %v784_v15 = vld [vmem:[%s10802_s29 + $0xd28] sm:$0xff]  ;;  %v10985_v16 = vmax.f32 %v319_v6, 0.0  ;;  %v774_v17 = vld [vmem:[%s10802_s29 + $0xcd8] sm:$0xff] }
  0x9f   : > { %7697 = vmatpush1.bf16.msra.mxu1 %v7696_v9  ;;  %7187 = vmatprep.subr.bf16.mxu0 %v7186_v10  ;;  %v747_v9 = vld [vmem:[%s10802_s29 + $0xc00] sm:$0xff]  ;;  %v786_v18 = vld [vmem:[%s10802_s29 + $0xd38] sm:$0xff]  ;;  %v773_v25 = vld [vmem:[%s10802_s29 + $0xcd0] sm:$0xff] }
  0xa0   : > { %7699 = vmatprep.subr.bf16.mxu1 %v7698_v14  ;;  %v759_v10 = vld [vmem:[%s10802_s29 + $0xc60] sm:$0xff]  ;;  %v772_v14 = vld [vmem:[%s10802_s29 + $0xcc8] sm:$0xff]  ;;  %v7722_v26 = vpack.c.bf16 %v786_v18, %v774_v17  ;;  %v798_v30 = vld [vmem:[%s10802_s29 + $0xd98] sm:$0xff] }
  0xa1   : > { %v7208_v19 = vpack.c.bf16 %v759_v10, %v747_v9  ;;  %v783_v24 = vld [vmem:[%s10802_s29 + $0xd20] sm:$0xff]  ;;  %v796_v28 = vld [vmem:[%s10802_s29 + $0xd88] sm:$0xff]  ;;  %v810_v31 = vld [vmem:[%s10802_s29 + $0xdf8] sm:$0xff] }
  0xa2   : > { %7189 = vmatpush1.bf16.msra.mxu0 %v7188_v21  ;;  %v7720_v21 = vpack.c.bf16 %v761_v13, %v749_v11  ;;  %v808_v29 = vld [vmem:[%s10802_s29 + $0xde8] sm:$0xff]  ;;  %v807_v36 = vld [vmem:[%s10802_s29 + $0xde0] sm:$0xff]  ;;  %v797_v37 = vld [vmem:[%s10802_s29 + $0xd90] sm:$0xff]  ;;  %v7726_v38 = vpack.c.bf16 %v810_v31, %v798_v30 }
  0xa3   : > { %7701 = vmatpush1.bf16.msra.mxu1 %v7700_v22  ;;  %7191 = vmatprep.subr.bf16.mxu0 %v7190_v23  ;;  %v7210_v22 = vpack.c.bf16 %v784_v15, %v772_v14  ;;  %v771_v23 = vld [vmem:[%s10802_s29 + $0xcc0] sm:$0xff]  ;;  %v820_v40 = vld [vmem:[%s10802_s29 + $0xe48] sm:$0xff]  ;;  %v822_v42 = vld [vmem:[%s10802_s29 + $0xe58] sm:$0xff] }
  0xa4   : > { %7703 = vmatprep.subr.bf16.mxu1 %v7702_v27  ;;  %v785_v27 = vld [vmem:[%s10802_s29 + $0xd30] sm:$0xff]  ;;  %v7212_v32 = vpack.c.bf16 %v783_v24, %v771_v23  ;;  %v832_v41 = vld [vmem:[%s10802_s29 + $0xea8] sm:$0xff]  ;;  %v834_v43 = vld [vmem:[%s10802_s29 + $0xeb8] sm:$0xff] }
  0xa5   : > { %v831_v48 = vld [vmem:[%s10802_s29 + $0xea0] sm:$0xff]  ;;  %v821_v49 = vld [vmem:[%s10802_s29 + $0xe50] sm:$0xff]  ;;  %v7730_v50 = vpack.c.bf16 %v834_v43, %v822_v42  ;;  %v844_v52 = vld [vmem:[%s10802_s29 + $0xf08] sm:$0xff] }
  0xa6   : > { %7193 = vmatpush1.bf16.msra.mxu0 %v7192_v33  ;;  %v7724_v33 = vpack.c.bf16 %v785_v27, %v773_v25  ;;  %v856_v53 = vld [vmem:[%s10802_s29 + $0xf68] sm:$0xff]  ;;  %v846_v54 = vld [vmem:[%s10802_s29 + $0xf18] sm:$0xff]  ;;  %v855_v60 = vld [vmem:[%s10802_s29 + $0xf60] sm:$0xff] }
  0xa7   : > { %7705 = vmatpush1.bf16.msra.mxu1 %v7704_v34  ;;  %7195 = vmatprep.subr.bf16.mxu0 %v7194_v35  ;;  %v7214_v34 = vpack.c.bf16 %v808_v29, %v796_v28  ;;  %v795_v35 = vld [vmem:[%s10802_s29 + $0xd80] sm:$0xff]  ;;  %v858_v55 = vld [vmem:[%s10802_s29 + $0xf78] sm:$0xff]  ;;  %v845_v61 = vld [vmem:[%s10802_s29 + $0xf10] sm:$0xff] }
  0xa8   : > { %7707 = vmatprep.subr.bf16.mxu1 %v7706_v39  ;;  %v809_v39 = vld [vmem:[%s10802_s29 + $0xdf0] sm:$0xff]  ;;  %v7216_v44 = vpack.c.bf16 %v807_v36, %v795_v35  ;;  %v7734_v62 = vpack.c.bf16 %v858_v55, %v846_v54  ;;  %v868_v0 = vld [vmem:[%s10802_s29 + $0xfc8] sm:$0xff]  ;;  %v870_v2 = vld [vmem:[%s10802_s29 + $0xfd8] sm:$0xff] }
  0xa9   : > { %v880_v1 = vld [vmem:[%s10802_s29 + $0x1028] sm:$0xff]  ;;  %v882_v3 = vld [vmem:[%s10802_s29 + $0x1038] sm:$0xff]  ;;  %v869_v9 = vld [vmem:[%s10802_s29 + $0xfd0] sm:$0xff] }
  0xaa   : > { %7197 = vmatpush1.bf16.msra.mxu0 %v7196_v45  ;;  %v7728_v45 = vpack.c.bf16 %v809_v39, %v797_v37  ;;  %v7226_v6 = vpack.c.bf16 %v880_v1, %v868_v0  ;;  %v7738_v10 = vpack.c.bf16 %v882_v3, %v870_v2  ;;  %v881_v11 = vld [vmem:[%s10802_s29 + $0x1030] sm:$0xff]  ;;  %v904_v13 = vld [vmem:[%s10802_s29 + $0x10e8] sm:$0xff]  ;;  %v894_v14 = vld [vmem:[%s10802_s29 + $0x1098] sm:$0xff] }
  0xab   : > { %7709 = vmatpush1.bf16.msra.mxu1 %v7708_v46  ;;  %7199 = vmatprep.subr.bf16.mxu0 %v7198_v47  ;;  %v7218_v46 = vpack.c.bf16 %v832_v41, %v820_v40  ;;  %v819_v47 = vld [vmem:[%s10802_s29 + $0xe40] sm:$0xff]  ;;  %v906_v15 = vld [vmem:[%s10802_s29 + $0x10f8] sm:$0xff]  ;;  %v893_v23 = vld [vmem:[%s10802_s29 + $0x1090] sm:$0xff] }
  0xac   : > { %7711 = vmatprep.subr.bf16.mxu1 %v7710_v51  ;;  %v833_v51 = vld [vmem:[%s10802_s29 + $0xeb0] sm:$0xff]  ;;  %v7220_v56 = vpack.c.bf16 %v831_v48, %v819_v47  ;;  %v891_v18 = vld [vmem:[%s10802_s29 + $0x1080] sm:$0xff]  ;;  %v7742_v25 = vpack.c.bf16 %v906_v15, %v894_v14  ;;  %v928_v27 = vld [vmem:[%s10802_s29 + $0x11a8] sm:$0xff] }
  0xad   : > { %v905_v24 = vld [vmem:[%s10802_s29 + $0x10f0] sm:$0xff]  ;;  %v322_v28 = vld [vmem:[%s10821_s24 + $0x18] sm:$0xff]  ;;  %v915_v35 = vld [vmem:[%s10802_s29 + $0x1140] sm:$0xff] }
  0xae   : > { %7201 = vmatpush1.bf16.msra.mxu0 %v7200_v57  ;;  %v7732_v57 = vpack.c.bf16 %v833_v51, %v821_v49  ;;  %v918_v29 = vld [vmem:[%s10802_s29 + $0x1158] sm:$0xff]  ;;  %v11040_v31 = vmax.f32 %v322_v28, 0.0  ;;  %v927_v36 = vld [vmem:[%s10802_s29 + $0x11a0] sm:$0xff]  ;;  %v917_v37 = vld [vmem:[%s10802_s29 + $0x1150] sm:$0xff] }
  0xaf   : > { %7713 = vmatpush1.bf16.msra.mxu1 %v7712_v58  ;;  %7203 = vmatprep.subr.bf16.mxu0 %v7202_v59  ;;  %v7222_v58 = vpack.c.bf16 %v856_v53, %v844_v52  ;;  %v843_v59 = vld [vmem:[%s10802_s29 + $0xf00] sm:$0xff]  ;;  %v930_v30 = vld [vmem:[%s10802_s29 + $0x11b8] sm:$0xff]  ;;  %v929_v39 = vld [vmem:[%s10802_s29 + $0x11b0] sm:$0xff] }
  0xb0   : > { %7715 = vmatprep.subr.bf16.mxu1 %v7714_v63  ;;  %v857_v63 = vld [vmem:[%s10802_s29 + $0xf70] sm:$0xff]  ;;  %v7224_v4 = vpack.c.bf16 %v855_v60, %v843_v59  ;;  %v940_v40 = vld [vmem:[%s10802_s29 + $0x1208] sm:$0xff]  ;;  %v942_v42 = vld [vmem:[%s10802_s29 + $0x1218] sm:$0xff] }
  0xb1   : > { %v952_v41 = vld [vmem:[%s10802_s29 + $0x1268] sm:$0xff]  ;;  %v954_v43 = vld [vmem:[%s10802_s29 + $0x1278] sm:$0xff]  ;;  %v939_v47 = vld [vmem:[%s10802_s29 + $0x1200] sm:$0xff] }
  0xb2   : > { %7205 = vmatpush1.bf16.msra.mxu0 %v7204_v5  ;;  %v7736_v5 = vpack.c.bf16 %v857_v63, %v845_v61  ;;  %v951_v48 = vld [vmem:[%s10802_s29 + $0x1260] sm:$0xff]  ;;  %v941_v49 = vld [vmem:[%s10802_s29 + $0x1210] sm:$0xff]  ;;  %v964_v52 = vld [vmem:[%s10802_s29 + $0x12c8] sm:$0xff] }
  0xb3   : > { %7717 = vmatpush1.bf16.msra.mxu1 %v7716_v7  ;;  %7207 = vmatprep.subr.bf16.mxu0 %v7206_v8  ;;  %v867_v7 = vld [vmem:[%s10802_s29 + $0xfc0] sm:$0xff]  ;;  %v953_v51 = vld [vmem:[%s10802_s29 + $0x1270] sm:$0xff]  ;;  %v976_v53 = vld [vmem:[%s10802_s29 + $0x1328] sm:$0xff] }
  0xb4   : > { %7719 = vmatprep.subr.bf16.mxu1 %v7718_v12  ;;  %v879_v8 = vld [vmem:[%s10802_s29 + $0x1020] sm:$0xff]  ;;  %v892_v12 = vld [vmem:[%s10802_s29 + $0x1088] sm:$0xff]  ;;  %v966_v54 = vld [vmem:[%s10802_s29 + $0x12d8] sm:$0xff] }
  0xb5   : > { %3500 = vmatmul.mubr.f32.vlgmr.msra.gmra.mrb[0].mxu0 %v10985_v16  ;;  %v7228_v17 = vpack.c.bf16 %v879_v8, %v867_v7  ;;  %v978_v55 = vld [vmem:[%s10802_s29 + $0x1338] sm:$0xff]  ;;  %v963_v59 = vld [vmem:[%s10802_s29 + $0x12c0] sm:$0xff]  ;;  %v965_v61 = vld [vmem:[%s10802_s29 + $0x12d0] sm:$0xff] }
  0xb6   : > { %7209 = vmatpush1.bf16.msra.mxu0 %v7208_v19  ;;  %4068 = vmatmul.mubr.f32.vlgmr.msra.gmra.mrb[0].mxu1 %v10985_v16  ;;  %v7740_v19 = vpack.c.bf16 %v881_v11, %v869_v9  ;;  %v975_v60 = vld [vmem:[%s10802_s29 + $0x1320] sm:$0xff]  ;;  %v977_v63 = vld [vmem:[%s10802_s29 + $0x1330] sm:$0xff]  ;;  %v988_v0 = vld [vmem:[%s10802_s29 + $0x1388] sm:$0xff] }
  0xb7   : > { %7721 = vmatpush1.bf16.msra.mxu1 %v7720_v21  ;;  %7211 = vmatprep.subr.bf16.mxu0 %v7210_v22  ;;  %v7230_v21 = vpack.c.bf16 %v904_v13, %v892_v12  ;;  %v903_v22 = vld [vmem:[%s10802_s29 + $0x10e0] sm:$0xff]  ;;  %v1000_v1 = vld [vmem:[%s10802_s29 + $0x13e8] sm:$0xff]  ;;  %v990_v2 = vld [vmem:[%s10802_s29 + $0x1398] sm:$0xff] }
  0xb8   : > { %7723 = vmatprep.subr.bf16.mxu1 %v7722_v26  ;;  %v916_v26 = vld [vmem:[%s10802_s29 + $0x1148] sm:$0xff]  ;;  %3570 = vmatprep.mubr.f32.mxu0 %v11040_v31  ;;  %v1002_v3 = vld [vmem:[%s10802_s29 + $0x13f8] sm:$0xff]  ;;  %v987_v7 = vld [vmem:[%s10802_s29 + $0x1380] sm:$0xff] }
  0xb9   : > { %4138 = vmatprep.mubr.f32.mxu1 %v11040_v31  ;;  %v999_v8 = vld [vmem:[%s10802_s29 + $0x13e0] sm:$0xff]  ;;  %v989_v9 = vld [vmem:[%s10802_s29 + $0x1390] sm:$0xff]  ;;  %v1012_v12 = vld [vmem:[%s10802_s29 + $0x1448] sm:$0xff] }
  0xba   : > { %7213 = vmatpush1.bf16.msra.mxu0 %v7212_v32  ;;  %v7232_v32 = vpack.c.bf16 %v903_v22, %v891_v18  ;;  %v1001_v11 = vld [vmem:[%s10802_s29 + $0x13f0] sm:$0xff]  ;;  %v1024_v13 = vld [vmem:[%s10802_s29 + $0x14a8] sm:$0xff]  ;;  %v1014_v14 = vld [vmem:[%s10802_s29 + $0x1458] sm:$0xff] }
  0xbb   : > { %7725 = vmatpush1.bf16.msra.mxu1 %v7724_v33  ;;  %7215 = vmatprep.subr.bf16.mxu0 %v7214_v34  ;;  %v7744_v33 = vpack.c.bf16 %v905_v24, %v893_v23  ;;  %v7234_v34 = vpack.c.bf16 %v928_v27, %v916_v26  ;;  %v1026_v15 = vld [vmem:[%s10802_s29 + $0x14b8] sm:$0xff]  ;;  %v7760_v18 = vpack.c.bf16 %v1001_v11, %v989_v9  ;;  %v1023_v22 = vld [vmem:[%s10802_s29 + $0x14a0] sm:$0xff]  ;;  %v1013_v23 = vld [vmem:[%s10802_s29 + $0x1450] sm:$0xff] }
  0xbc   : > { %7727 = vmatprep.subr.bf16.mxu1 %v7726_v38  ;;  %v7746_v38 = vpack.c.bf16 %v930_v30, %v918_v29  ;;  %v7762_v24 = vpack.c.bf16 %v1026_v15, %v1014_v14  ;;  %v1036_v26 = vld [vmem:[%s10802_s29 + $0x1508] sm:$0xff]  ;;  %v1038_v28 = vld [vmem:[%s10802_s29 + $0x1518] sm:$0xff] }
  0xbd   : > { %v1048_v27 = vld [vmem:[%s10802_s29 + $0x1568] sm:$0xff]  ;;  %v1050_v29 = vld [vmem:[%s10802_s29 + $0x1578] sm:$0xff] }
  0xbe   : > { %7217 = vmatpush1.bf16.msra.mxu0 %v7216_v44  ;;  %v7236_v44 = vpack.c.bf16 %v927_v36, %v915_v35  ;;  %v1047_v35 = vld [vmem:[%s10802_s29 + $0x1560] sm:$0xff]  ;;  %v1037_v36 = vld [vmem:[%s10802_s29 + $0x1510] sm:$0xff]  ;;  %v1132_v11 = vld [vmem:[%s10802_s29 + $0x1808] sm:$0xff] }
  0xbf   : > { %7729 = vmatpush1.bf16.msra.mxu1 %v7728_v45  ;;  %7219 = vmatprep.subr.bf16.mxu0 %v7218_v46  ;;  %v7748_v45 = vpack.c.bf16 %v929_v39, %v917_v37  ;;  %v7238_v46 = vpack.c.bf16 %v952_v41, %v940_v40  ;;  %v7766_v37 = vpack.c.bf16 %v1050_v29, %v1038_v28  ;;  %v1060_v39 = vld [vmem:[%s10802_s29 + $0x15c8] sm:$0xff]  ;;  %v1062_v41 = vld [vmem:[%s10802_s29 + $0x15d8] sm:$0xff] }
  0xc0   : > { %7731 = vmatprep.subr.bf16.mxu1 %v7730_v50  ;;  %v7750_v50 = vpack.c.bf16 %v954_v43, %v942_v42  ;;  %v1072_v40 = vld [vmem:[%s10802_s29 + $0x1628] sm:$0xff]  ;;  %v1074_v42 = vld [vmem:[%s10802_s29 + $0x1638] sm:$0xff] }
  0xc1   : > { %v1146_v14 = vld [vmem:[%s10802_s29 + $0x1878] sm:$0xff] }
  0xc2   : > { %7221 = vmatpush1.bf16.msra.mxu0 %v7220_v56  ;;  %v7240_v56 = vpack.c.bf16 %v951_v48, %v939_v47  ;;  %v1071_v47 = vld [vmem:[%s10802_s29 + $0x1620] sm:$0xff]  ;;  %v1061_v48 = vld [vmem:[%s10802_s29 + $0x15d0] sm:$0xff]  ;;  %v1158_v29 = vld [vmem:[%s10802_s29 + $0x18d8] sm:$0xff] }
  0xc3   : > { %7733 = vmatpush1.bf16.msra.mxu1 %v7732_v57  ;;  %7223 = vmatprep.subr.bf16.mxu0 %v7222_v58  ;;  %v7752_v57 = vpack.c.bf16 %v953_v51, %v941_v49  ;;  %v7242_v58 = vpack.c.bf16 %v976_v53, %v964_v52  ;;  %v7770_v49 = vpack.c.bf16 %v1074_v42, %v1062_v41  ;;  %v1084_v51 = vld [vmem:[%s10802_s29 + $0x1688] sm:$0xff]  ;;  %v1086_v53 = vld [vmem:[%s10802_s29 + $0x1698] sm:$0xff] }
  0xc4   : > { %7735 = vmatprep.subr.bf16.mxu1 %v7734_v62  ;;  %v7754_v62 = vpack.c.bf16 %v978_v55, %v966_v54  ;;  %v1096_v52 = vld [vmem:[%s10802_s29 + $0x16e8] sm:$0xff]  ;;  %v1098_v54 = vld [vmem:[%s10802_s29 + $0x16f8] sm:$0xff] }
  0xc5   : > { %v1180_v41 = vld [vmem:[%s10802_s29 + $0x1988] sm:$0xff] }
  0xc6   : > { %7225 = vmatpush1.bf16.msra.mxu0 %v7224_v4  ;;  %v7244_v4 = vpack.c.bf16 %v975_v60, %v963_v59  ;;  %v1095_v59 = vld [vmem:[%s10802_s29 + $0x16e0] sm:$0xff]  ;;  %v1085_v60 = vld [vmem:[%s10802_s29 + $0x1690] sm:$0xff]  ;;  %v1192_v42 = vld [vmem:[%s10802_s29 + $0x19e8] sm:$0xff] }
  0xc7   : > { %7737 = vmatpush1.bf16.msra.mxu1 %v7736_v5  ;;  %7227 = vmatprep.subr.bf16.mxu0 %v7226_v6  ;;  %v7756_v5 = vpack.c.bf16 %v977_v63, %v965_v61  ;;  %v7246_v6 = vpack.c.bf16 %v1000_v1, %v988_v0  ;;  %v7774_v61 = vpack.c.bf16 %v1098_v54, %v1086_v53  ;;  %v1108_v63 = vld [vmem:[%s10802_s29 + $0x1748] sm:$0xff]  ;;  %v1110_v1 = vld [vmem:[%s10802_s29 + $0x1758] sm:$0xff]  ;;  %v1193_v53 = vld [vmem:[%s10802_s29 + $0x19f0] sm:$0xff] }
  0xc8   : > { %7739 = vmatprep.subr.bf16.mxu1 %v7738_v10  ;;  %v7758_v10 = vpack.c.bf16 %v1002_v3, %v990_v2  ;;  %v1120_v0 = vld [vmem:[%s10802_s29 + $0x17a8] sm:$0xff]  ;;  %v1122_v2 = vld [vmem:[%s10802_s29 + $0x17b8] sm:$0xff] }
  0xc9   : > { %v7778_v9 = vpack.c.bf16 %v1122_v2, %v1110_v1  ;;  %v1204_v54 = vld [vmem:[%s10802_s29 + $0x1a48] sm:$0xff]  ;;  %v1217_v1 = vld [vmem:[%s10802_s29 + $0x1ab0] sm:$0xff] }
  0xca   : > { %7229 = vmatpush1.bf16.msra.mxu0 %v7228_v17  ;;  %v7248_v17 = vpack.c.bf16 %v999_v8, %v987_v7  ;;  %v1119_v7 = vld [vmem:[%s10802_s29 + $0x17a0] sm:$0xff]  ;;  %v1109_v8 = vld [vmem:[%s10802_s29 + $0x1750] sm:$0xff]  ;;  %v1228_v2 = vld [vmem:[%s10802_s29 + $0x1b08] sm:$0xff] }
  0xcb   : > { %7741 = vmatpush1.bf16.msra.mxu1 %v7740_v19  ;;  %7231 = vmatprep.subr.bf16.mxu0 %v7230_v21  ;;  %v7250_v19 = vpack.c.bf16 %v1024_v13, %v1012_v12  ;;  %v1011_v21 = vld [vmem:[%s10802_s29 + $0x1440] sm:$0xff]  ;;  %v1144_v12 = vld [vmem:[%s10802_s29 + $0x1868] sm:$0xff]  ;;  %v1134_v13 = vld [vmem:[%s10802_s29 + $0x1818] sm:$0xff] }
  0xcc   : > { %7743 = vmatprep.subr.bf16.mxu1 %v7742_v25  ;;  %v1025_v25 = vld [vmem:[%s10802_s29 + $0x14b0] sm:$0xff]  ;;  %v7252_v30 = vpack.c.bf16 %v1023_v22, %v1011_v21  ;;  %v1131_v21 = vld [vmem:[%s10802_s29 + $0x1800] sm:$0xff] }
  0xcd   : > { %v1143_v22 = vld [vmem:[%s10802_s29 + $0x1860] sm:$0xff] }
  0xce   : > { %7233 = vmatpush1.bf16.msra.mxu0 %v7232_v32  ;;  %v7764_v32 = vpack.c.bf16 %v1025_v25, %v1013_v23  ;;  %v1133_v23 = vld [vmem:[%s10802_s29 + $0x1810] sm:$0xff] }
  0xcf   : > { %7745 = vmatpush1.bf16.msra.mxu1 %v7744_v33  ;;  %7235 = vmatprep.subr.bf16.mxu0 %v7234_v34  ;;  %v7254_v33 = vpack.c.bf16 %v1048_v27, %v1036_v26  ;;  %v1035_v34 = vld [vmem:[%s10802_s29 + $0x1500] sm:$0xff]  ;;  %v1145_v25 = vld [vmem:[%s10802_s29 + $0x1870] sm:$0xff]  ;;  %v1156_v26 = vld [vmem:[%s10802_s29 + $0x18c8] sm:$0xff] }
  0xd0   : > { %7747 = vmatprep.subr.bf16.mxu1 %v7746_v38  ;;  %v1049_v38 = vld [vmem:[%s10802_s29 + $0x1570] sm:$0xff]  ;;  %v7256_v43 = vpack.c.bf16 %v1047_v35, %v1035_v34  ;;  %v1168_v27 = vld [vmem:[%s10802_s29 + $0x1928] sm:$0xff]  ;;  %v7784_v34 = vpack.c.bf16 %v1145_v25, %v1133_v23  ;;  %v1251_v23 = vld [vmem:[%s10802_s29 + $0x1bc0] sm:$0xff] }
  0xd1   : > { %v7274_v35 = vpack.c.bf16 %v1168_v27, %v1156_v26  ;;  %v1253_v25 = vld [vmem:[%s10802_s29 + $0x1bd0] sm:$0xff] }
  0xd2   : > { %7237 = vmatpush1.bf16.msra.mxu0 %v7236_v44  ;;  %v7768_v44 = vpack.c.bf16 %v1049_v38, %v1037_v36  ;;  %v1167_v36 = vld [vmem:[%s10802_s29 + $0x1920] sm:$0xff]  ;;  %v324_v38 = vld [vmem:[%s10821_s24 + $0x28] sm:$0xff]  ;;  %v1265_v27 = vld [vmem:[%s10802_s29 + $0x1c30] sm:$0xff] }
  0xd3   : > { %7749 = vmatpush1.bf16.msra.mxu1 %v7748_v45  ;;  %7239 = vmatprep.subr.bf16.mxu0 %v7238_v46  ;;  %v7258_v45 = vpack.c.bf16 %v1072_v40, %v1060_v39  ;;  %v1059_v46 = vld [vmem:[%s10802_s29 + $0x15c0] sm:$0xff]  ;;  %v1169_v40 = vld [vmem:[%s10802_s29 + $0x1930] sm:$0xff] }
  0xd4   : > { %7751 = vmatprep.subr.bf16.mxu1 %v7750_v50  ;;  %v1073_v50 = vld [vmem:[%s10802_s29 + $0x1630] sm:$0xff]  ;;  %v7260_v55 = vpack.c.bf16 %v1071_v47, %v1059_v46 }
  0xd6   : > { %7241 = vmatpush1.bf16.msra.mxu0 %v7240_v56  ;;  %v7772_v56 = vpack.c.bf16 %v1073_v50, %v1061_v48  ;;  %v7278_v48 = vpack.c.bf16 %v1192_v42, %v1180_v41  ;;  %v1191_v50 = vld [vmem:[%s10802_s29 + $0x19e0] sm:$0xff]  ;;  %v1289_v41 = vld [vmem:[%s10802_s29 + $0x1cf0] sm:$0xff]  ;;  %v1300_v42 = vld [vmem:[%s10802_s29 + $0x1d48] sm:$0xff] }
  0xd7   : > { %7753 = vmatpush1.bf16.msra.mxu1 %v7752_v57  ;;  %7243 = vmatprep.subr.bf16.mxu0 %v7242_v58  ;;  %v7262_v57 = vpack.c.bf16 %v1096_v52, %v1084_v51  ;;  %v1083_v58 = vld [vmem:[%s10802_s29 + $0x1680] sm:$0xff]  ;;  %v1181_v51 = vld [vmem:[%s10802_s29 + $0x1990] sm:$0xff] }
  0xd8   : > { %7755 = vmatprep.subr.bf16.mxu1 %v7754_v62  ;;  %v1097_v62 = vld [vmem:[%s10802_s29 + $0x16f0] sm:$0xff]  ;;  %v7264_v3 = vpack.c.bf16 %v1095_v59, %v1083_v58  ;;  %v7792_v59 = vpack.c.bf16 %v1193_v53, %v1181_v51  ;;  %v1311_v51 = vld [vmem:[%s10802_s29 + $0x1da0] sm:$0xff] }
  0xda   : > { %7245 = vmatpush1.bf16.msra.mxu0 %v7244_v4  ;;  %v7776_v4 = vpack.c.bf16 %v1097_v62, %v1085_v60  ;;  %v1215_v62 = vld [vmem:[%s10802_s29 + $0x1aa0] sm:$0xff] }
  0xdb   : > { %7757 = vmatpush1.bf16.msra.mxu1 %v7756_v5  ;;  %7247 = vmatprep.subr.bf16.mxu0 %v7246_v6  ;;  %v7266_v5 = vpack.c.bf16 %v1120_v0, %v1108_v63  ;;  %v1107_v6 = vld [vmem:[%s10802_s29 + $0x1740] sm:$0xff]  ;;  %v1205_v63 = vld [vmem:[%s10802_s29 + $0x1a50] sm:$0xff] }
  0xdc   : > { %7759 = vmatprep.subr.bf16.mxu1 %v7758_v10  ;;  %v1121_v10 = vld [vmem:[%s10802_s29 + $0x17b0] sm:$0xff]  ;;  %v7268_v15 = vpack.c.bf16 %v1119_v7, %v1107_v6  ;;  %v7796_v7 = vpack.c.bf16 %v1217_v1, %v1205_v63  ;;  %v1335_v63 = vld [vmem:[%s10802_s29 + $0x1e60] sm:$0xff] }
  0xde   : > { %7249 = vmatpush1.bf16.msra.mxu0 %v7248_v17  ;;  %v321_v17 = vld [vmem:[%s10821_s24 + $0x10] sm:$0xff] }
  0xdf   : > { %7761 = vmatpush1.bf16.msra.mxu1 %v7760_v18  ;;  %7251 = vmatprep.subr.bf16.mxu0 %v7250_v19  ;;  %v7780_v18 = vpack.c.bf16 %v1121_v10, %v1109_v8  ;;  %v7270_v19 = vpack.c.bf16 %v1144_v12, %v1132_v11  ;;  %v11123_v28 = vmax.f32 %v321_v17, 0.0  ;;  %v1239_v10 = vld [vmem:[%s10802_s29 + $0x1b60] sm:$0xff]  ;;  %v1229_v11 = vld [vmem:[%s10802_s29 + $0x1b10] sm:$0xff]  ;;  %v1254_v17 = vld [vmem:[%s10802_s29 + $0x1bd8] sm:$0xff] }
  0xe0   : > { %7763 = vmatprep.subr.bf16.mxu1 %v7762_v24  ;;  %v7782_v24 = vpack.c.bf16 %v1146_v14, %v1134_v13  ;;  %v1241_v13 = vld [vmem:[%s10802_s29 + $0x1b70] sm:$0xff]  ;;  %v1252_v14 = vld [vmem:[%s10802_s29 + $0x1bc8] sm:$0xff] }
  0xe2   : > { %7253 = vmatpush1.bf16.msra.mxu0 %v7252_v30  ;;  %v1170_v30 = vld [vmem:[%s10802_s29 + $0x1938] sm:$0xff] }
  0xe3   : > { %7765 = vmatpush1.bf16.msra.mxu1 %v7764_v32  ;;  %7255 = vmatprep.subr.bf16.mxu0 %v7254_v33  ;;  %v7272_v32 = vpack.c.bf16 %v1143_v22, %v1131_v21  ;;  %v1155_v33 = vld [vmem:[%s10802_s29 + $0x18c0] sm:$0xff]  ;;  %v7786_v39 = vpack.c.bf16 %v1170_v30, %v1158_v29  ;;  %v7800_v21 = vpack.c.bf16 %v1241_v13, %v1229_v11  ;;  %v1276_v29 = vld [vmem:[%s10802_s29 + $0x1c88] sm:$0xff] }
  0xe4   : > { %7767 = vmatprep.subr.bf16.mxu1 %v7766_v37  ;;  %v1157_v37 = vld [vmem:[%s10802_s29 + $0x18d0] sm:$0xff]  ;;  %v7276_v46 = vpack.c.bf16 %v1167_v36, %v1155_v33  ;;  %v1288_v30 = vld [vmem:[%s10802_s29 + $0x1ce8] sm:$0xff]  ;;  %v1290_v33 = vld [vmem:[%s10802_s29 + $0x1cf8] sm:$0xff] }
  0xe5   : > { %v7788_v47 = vpack.c.bf16 %v1169_v40, %v1157_v37  ;;  %v7294_v36 = vpack.c.bf16 %v1288_v30, %v1276_v29  ;;  %v1275_v37 = vld [vmem:[%s10802_s29 + $0x1c80] sm:$0xff]  ;;  %v1385_v29 = vld [vmem:[%s10802_s29 + $0x1ff0] sm:$0xff]  ;;  %v1396_v30 = vld [vmem:[%s10802_s29 + $0x2048] sm:$0xff] }
  0xe6   : > { %7257 = vmatpush1.bf16.msra.mxu0 %v7256_v43  ;;  %v11134_v43 = vmax.f32 %v324_v38, 0.0  ;;  %v1287_v38 = vld [vmem:[%s10802_s29 + $0x1ce0] sm:$0xff] }
  0xe7   : > { %7769 = vmatpush1.bf16.msra.mxu1 %v7768_v44  ;;  %7259 = vmatprep.subr.bf16.mxu0 %v7258_v45  ;;  %v1182_v44 = vld [vmem:[%s10802_s29 + $0x1998] sm:$0xff]  ;;  %v1359_v11 = vld [vmem:[%s10802_s29 + $0x1f20] sm:$0xff] }
  0xe8   : > { %7771 = vmatprep.subr.bf16.mxu1 %v7770_v49  ;;  %v1194_v45 = vld [vmem:[%s10802_s29 + $0x19f8] sm:$0xff]  ;;  %v1179_v49 = vld [vmem:[%s10802_s29 + $0x1980] sm:$0xff] }
  0xe9   : > { %v7790_v52 = vpack.c.bf16 %v1194_v45, %v1182_v44  ;;  %v7280_v58 = vpack.c.bf16 %v1191_v50, %v1179_v49  ;;  %v1312_v44 = vld [vmem:[%s10802_s29 + $0x1da8] sm:$0xff]  ;;  %v1302_v45 = vld [vmem:[%s10802_s29 + $0x1d58] sm:$0xff]  ;;  %v1299_v50 = vld [vmem:[%s10802_s29 + $0x1d40] sm:$0xff] }
  0xea   : > { %7261 = vmatpush1.bf16.msra.mxu0 %v7260_v55  ;;  %v1216_v55 = vld [vmem:[%s10802_s29 + $0x1aa8] sm:$0xff]  ;;  %v7298_v49 = vpack.c.bf16 %v1312_v44, %v1300_v42  ;;  %v1409_v42 = vld [vmem:[%s10802_s29 + $0x20b0] sm:$0xff] }
  0xeb   : > { %7773 = vmatpush1.bf16.msra.mxu1 %v7772_v56  ;;  %7263 = vmatprep.subr.bf16.mxu0 %v7262_v57  ;;  %v1206_v56 = vld [vmem:[%s10802_s29 + $0x1a58] sm:$0xff]  ;;  %v7282_v60 = vpack.c.bf16 %v1216_v55, %v1204_v54  ;;  %v1313_v54 = vld [vmem:[%s10802_s29 + $0x1db0] sm:$0xff]  ;;  %v1324_v55 = vld [vmem:[%s10802_s29 + $0x1e08] sm:$0xff] }
  0xec   : > { %7775 = vmatprep.subr.bf16.mxu1 %v7774_v61  ;;  %v1218_v57 = vld [vmem:[%s10802_s29 + $0x1ab8] sm:$0xff]  ;;  %v1203_v61 = vld [vmem:[%s10802_s29 + $0x1a40] sm:$0xff]  ;;  %v1420_v44 = vld [vmem:[%s10802_s29 + $0x2108] sm:$0xff] }
  0xed   : > { %v7794_v0 = vpack.c.bf16 %v1218_v57, %v1206_v56  ;;  %v7284_v6 = vpack.c.bf16 %v1215_v62, %v1203_v61  ;;  %v1336_v56 = vld [vmem:[%s10802_s29 + $0x1e68] sm:$0xff]  ;;  %v1326_v57 = vld [vmem:[%s10802_s29 + $0x1e18] sm:$0xff]  ;;  %v1323_v62 = vld [vmem:[%s10802_s29 + $0x1e00] sm:$0xff] }
  0xee   : > { %7265 = vmatpush1.bf16.msra.mxu0 %v7264_v3  ;;  %v1240_v3 = vld [vmem:[%s10802_s29 + $0x1b68] sm:$0xff]  ;;  %v7302_v61 = vpack.c.bf16 %v1336_v56, %v1324_v55  ;;  %v1433_v55 = vld [vmem:[%s10802_s29 + $0x2170] sm:$0xff] }
  0xef   : > { %7777 = vmatpush1.bf16.msra.mxu1 %v7776_v4  ;;  %7267 = vmatprep.subr.bf16.mxu0 %v7266_v5  ;;  %v1230_v4 = vld [vmem:[%s10802_s29 + $0x1b18] sm:$0xff]  ;;  %v7286_v8 = vpack.c.bf16 %v1240_v3, %v1228_v2  ;;  %v1337_v2 = vld [vmem:[%s10802_s29 + $0x1e70] sm:$0xff]  ;;  %v1348_v3 = vld [vmem:[%s10802_s29 + $0x1ec8] sm:$0xff] }
  0xf0   : > { %7779 = vmatprep.subr.bf16.mxu1 %v7778_v9  ;;  %v1242_v5 = vld [vmem:[%s10802_s29 + $0x1b78] sm:$0xff]  ;;  %v1227_v9 = vld [vmem:[%s10802_s29 + $0x1b00] sm:$0xff]  ;;  %v1444_v56 = vld [vmem:[%s10802_s29 + $0x21c8] sm:$0xff] }
  0xf1   : > { %v7798_v12 = vpack.c.bf16 %v1242_v5, %v1230_v4  ;;  %v1360_v4 = vld [vmem:[%s10802_s29 + $0x1f28] sm:$0xff]  ;;  %v1350_v5 = vld [vmem:[%s10802_s29 + $0x1ed8] sm:$0xff] }
  0xf2   : > { %7269 = vmatpush1.bf16.msra.mxu0 %v7268_v15  ;;  %v1264_v15 = vld [vmem:[%s10802_s29 + $0x1c28] sm:$0xff] }
  0xf3   : > { %7781 = vmatpush1.bf16.msra.mxu1 %v7780_v18  ;;  %7271 = vmatprep.subr.bf16.mxu0 %v7270_v19  ;;  %v1266_v18 = vld [vmem:[%s10802_s29 + $0x1c38] sm:$0xff]  ;;  %v7288_v19 = vpack.c.bf16 %v1239_v10, %v1227_v9  ;;  %v7290_v22 = vpack.c.bf16 %v1264_v15, %v1252_v14  ;;  %v7306_v9 = vpack.c.bf16 %v1360_v4, %v1348_v3  ;;  %v1347_v10 = vld [vmem:[%s10802_s29 + $0x1ec0] sm:$0xff]  ;;  %v1361_v14 = vld [vmem:[%s10802_s29 + $0x1f30] sm:$0xff] }
  0xf4   : > { %7783 = vmatprep.subr.bf16.mxu1 %v7782_v24  ;;  %v1263_v24 = vld [vmem:[%s10802_s29 + $0x1c20] sm:$0xff]  ;;  %v7802_v26 = vpack.c.bf16 %v1266_v18, %v1254_v17  ;;  %v1372_v15 = vld [vmem:[%s10802_s29 + $0x1f88] sm:$0xff]  ;;  %v1374_v18 = vld [vmem:[%s10802_s29 + $0x1f98] sm:$0xff] }
  0xf5   : > { %3571 = vmatmul.mubr.f32.vlgmr.msra.gmra.mrb[0].mxu0 %v11123_v28  ;;  %v1384_v17 = vld [vmem:[%s10802_s29 + $0x1fe8] sm:$0xff]  ;;  %v1457_v3 = vld [vmem:[%s10802_s29 + $0x2230] sm:$0xff] }
  0xf6   : > { %7273 = vmatpush1.bf16.msra.mxu0 %v7272_v32  ;;  %4139 = vmatmul.mubr.f32.vlgmr.msra.gmra.mrb[0].mxu1 %v11123_v28  ;;  %v1278_v32 = vld [vmem:[%s10802_s29 + $0x1c98] sm:$0xff]  ;;  %v1468_v4 = vld [vmem:[%s10802_s29 + $0x2288] sm:$0xff] }
  0xf7   : > { %7785 = vmatpush1.bf16.msra.mxu1 %v7784_v34  ;;  %7275 = vmatprep.subr.bf16.mxu0 %v7274_v35  ;;  %v7292_v34 = vpack.c.bf16 %v1263_v24, %v1251_v23  ;;  %v7804_v35 = vpack.c.bf16 %v1265_v27, %v1253_v25  ;;  %v7806_v40 = vpack.c.bf16 %v1290_v33, %v1278_v32  ;;  %v1371_v24 = vld [vmem:[%s10802_s29 + $0x1f80] sm:$0xff]  ;;  %v1408_v32 = vld [vmem:[%s10802_s29 + $0x20a8] sm:$0xff]  ;;  %v1398_v33 = vld [vmem:[%s10802_s29 + $0x2058] sm:$0xff] }
  0xf8   : > { %7787 = vmatprep.subr.bf16.mxu1 %v7786_v39  ;;  %3641 = vmatprep.mubr.f32.mxu0 %v11134_v43  ;;  %v1277_v39 = vld [vmem:[%s10802_s29 + $0x1c90] sm:$0xff]  ;;  %v7310_v23 = vpack.c.bf16 %v1384_v17, %v1372_v15  ;;  %v1383_v25 = vld [vmem:[%s10802_s29 + $0x1fe0] sm:$0xff]  ;;  %v1492_v17 = vld [vmem:[%s10802_s29 + $0x2348] sm:$0xff] }
  0xf9   : > { %4209 = vmatprep.mubr.f32.mxu1 %v11134_v43  ;;  %v1481_v15 = vld [vmem:[%s10802_s29 + $0x22f0] sm:$0xff] }
  0xfa   : > { %7277 = vmatpush1.bf16.msra.mxu0 %v7276_v46  ;;  %v1314_v46 = vld [vmem:[%s10802_s29 + $0x1db8] sm:$0xff] }
  0xfb   : > { %7789 = vmatpush1.bf16.msra.mxu1 %v7788_v47  ;;  %7279 = vmatprep.subr.bf16.mxu0 %v7278_v48  ;;  %v7296_v47 = vpack.c.bf16 %v1287_v38, %v1275_v37  ;;  %v7808_v48 = vpack.c.bf16 %v1289_v41, %v1277_v39  ;;  %v7810_v53 = vpack.c.bf16 %v1314_v46, %v1302_v45  ;;  %v1395_v38 = vld [vmem:[%s10802_s29 + $0x2040] sm:$0xff]  ;;  %v1432_v45 = vld [vmem:[%s10802_s29 + $0x2168] sm:$0xff]  ;;  %v1422_v46 = vld [vmem:[%s10802_s29 + $0x2118] sm:$0xff] }
  0xfc   : > { %7791 = vmatprep.subr.bf16.mxu1 %v7790_v52  ;;  %v1301_v52 = vld [vmem:[%s10802_s29 + $0x1d50] sm:$0xff]  ;;  %v7314_v37 = vpack.c.bf16 %v1408_v32, %v1396_v30  ;;  %v1407_v39 = vld [vmem:[%s10802_s29 + $0x20a0] sm:$0xff]  ;;  %v1516_v32 = vld [vmem:[%s10802_s29 + $0x2408] sm:$0xff] }
  0xfd   : > { %v1505_v30 = vld [vmem:[%s10802_s29 + $0x23b0] sm:$0xff] }
  0xfe   : > { %7281 = vmatpush1.bf16.msra.mxu0 %v7280_v58  ;;  %v1338_v58 = vld [vmem:[%s10802_s29 + $0x1e78] sm:$0xff] }
  0xff   : > { %7793 = vmatpush1.bf16.msra.mxu1 %v7792_v59  ;;  %7283 = vmatprep.subr.bf16.mxu0 %v7282_v60  ;;  %v7300_v59 = vpack.c.bf16 %v1311_v51, %v1299_v50  ;;  %v7812_v60 = vpack.c.bf16 %v1313_v54, %v1301_v52  ;;  %v7814_v1 = vpack.c.bf16 %v1338_v58, %v1326_v57  ;;  %v1419_v51 = vld [vmem:[%s10802_s29 + $0x2100] sm:$0xff]  ;;  %v1456_v57 = vld [vmem:[%s10802_s29 + $0x2228] sm:$0xff]  ;;  %v1446_v58 = vld [vmem:[%s10802_s29 + $0x21d8] sm:$0xff] }
 0x100   : > { %7795 = vmatprep.subr.bf16.mxu1 %v7794_v0  ;;  %v1325_v0 = vld [vmem:[%s10802_s29 + $0x1e10] sm:$0xff]  ;;  %v7318_v50 = vpack.c.bf16 %v1432_v45, %v1420_v44  ;;  %v1431_v52 = vld [vmem:[%s10802_s29 + $0x2160] sm:$0xff] }
 0x101   : > { %v1529_v45 = vld [vmem:[%s10802_s29 + $0x2470] sm:$0xff] }
 0x102   : > { %7285 = vmatpush1.bf16.msra.mxu0 %v7284_v6  ;;  %v1362_v6 = vld [vmem:[%s10802_s29 + $0x1f38] sm:$0xff] }
 0x103   : > { %7797 = vmatpush1.bf16.msra.mxu1 %v7796_v7  ;;  %7287 = vmatprep.subr.bf16.mxu0 %v7286_v8  ;;  %v7304_v7 = vpack.c.bf16 %v1335_v63, %v1323_v62  ;;  %v7816_v8 = vpack.c.bf16 %v1337_v2, %v1325_v0  ;;  %v7818_v13 = vpack.c.bf16 %v1362_v6, %v1350_v5  ;;  %v1443_v63 = vld [vmem:[%s10802_s29 + $0x21c0] sm:$0xff]  ;;  %v1480_v5 = vld [vmem:[%s10802_s29 + $0x22e8] sm:$0xff]  ;;  %v1470_v6 = vld [vmem:[%s10802_s29 + $0x2298] sm:$0xff] }
 0x104   : > { %7799 = vmatprep.subr.bf16.mxu1 %v7798_v12  ;;  %v1349_v12 = vld [vmem:[%s10802_s29 + $0x1ed0] sm:$0xff]  ;;  %v7322_v62 = vpack.c.bf16 %v1456_v57, %v1444_v56  ;;  %v1455_v0 = vld [vmem:[%s10802_s29 + $0x2220] sm:$0xff] }
 0x105   : > { %v1551_v56 = vld [vmem:[%s10802_s29 + $0x2520] sm:$0xff]  ;;  %v1541_v57 = vld [vmem:[%s10802_s29 + $0x24d0] sm:$0xff] }
 0x106   : > { %7289 = vmatpush1.bf16.msra.mxu0 %v7288_v19  ;;  %v1386_v19 = vld [vmem:[%s10802_s29 + $0x1ff8] sm:$0xff] }
 0x107   : > { %7801 = vmatpush1.bf16.msra.mxu1 %v7800_v21  ;;  %7291 = vmatprep.subr.bf16.mxu0 %v7290_v22  ;;  %v7308_v21 = vpack.c.bf16 %v1359_v11, %v1347_v10  ;;  %v7820_v22 = vpack.c.bf16 %v1361_v14, %v1349_v12  ;;  %v7822_v27 = vpack.c.bf16 %v1386_v19, %v1374_v18  ;;  %v1467_v11 = vld [vmem:[%s10802_s29 + $0x2280] sm:$0xff]  ;;  %v1504_v18 = vld [vmem:[%s10802_s29 + $0x23a8] sm:$0xff]  ;;  %v1494_v19 = vld [vmem:[%s10802_s29 + $0x2358] sm:$0xff] }
 0x108   : > { %7803 = vmatprep.subr.bf16.mxu1 %v7802_v26  ;;  %v1373_v26 = vld [vmem:[%s10802_s29 + $0x1f90] sm:$0xff]  ;;  %v7326_v10 = vpack.c.bf16 %v1480_v5, %v1468_v4  ;;  %v1479_v12 = vld [vmem:[%s10802_s29 + $0x22e0] sm:$0xff] }
 0x109   : > { %v1563_v4 = vld [vmem:[%s10802_s29 + $0x2580] sm:$0xff] }
 0x10a   : > { %7293 = vmatpush1.bf16.msra.mxu0 %v7292_v34  ;;  %v1410_v34 = vld [vmem:[%s10802_s29 + $0x20b8] sm:$0xff]  ;;  %v1575_v5 = vld [vmem:[%s10802_s29 + $0x25e0] sm:$0xff] }
 0x10b   : > { %7805 = vmatpush1.bf16.msra.mxu1 %v7804_v35  ;;  %7295 = vmatprep.subr.bf16.mxu0 %v7294_v36  ;;  %v7312_v35 = vpack.c.bf16 %v1383_v25, %v1371_v24  ;;  %v7824_v36 = vpack.c.bf16 %v1385_v29, %v1373_v26  ;;  %v7826_v41 = vpack.c.bf16 %v1410_v34, %v1398_v33  ;;  %v1491_v25 = vld [vmem:[%s10802_s29 + $0x2340] sm:$0xff]  ;;  %v1528_v33 = vld [vmem:[%s10802_s29 + $0x2468] sm:$0xff]  ;;  %v1518_v34 = vld [vmem:[%s10802_s29 + $0x2418] sm:$0xff] }
 0x10c   : > { %7807 = vmatprep.subr.bf16.mxu1 %v7806_v40  ;;  %v1397_v40 = vld [vmem:[%s10802_s29 + $0x2050] sm:$0xff]  ;;  %v7330_v24 = vpack.c.bf16 %v1504_v18, %v1492_v17  ;;  %v1503_v26 = vld [vmem:[%s10802_s29 + $0x23a0] sm:$0xff] }
 0x10d   : > { %v1587_v17 = vld [vmem:[%s10802_s29 + $0x2640] sm:$0xff] }
 0x10e   : > { %7297 = vmatpush1.bf16.msra.mxu0 %v7296_v47  ;;  %v1434_v47 = vld [vmem:[%s10802_s29 + $0x2178] sm:$0xff]  ;;  %v1599_v18 = vld [vmem:[%s10802_s29 + $0x26a0] sm:$0xff] }
 0x10f   : > { %7809 = vmatpush1.bf16.msra.mxu1 %v7808_v48  ;;  %7299 = vmatprep.subr.bf16.mxu0 %v7298_v49  ;;  %v7316_v48 = vpack.c.bf16 %v1407_v39, %v1395_v38  ;;  %v7828_v49 = vpack.c.bf16 %v1409_v42, %v1397_v40  ;;  %v7830_v54 = vpack.c.bf16 %v1434_v47, %v1422_v46  ;;  %v1515_v40 = vld [vmem:[%s10802_s29 + $0x2400] sm:$0xff]  ;;  %v1517_v42 = vld [vmem:[%s10802_s29 + $0x2410] sm:$0xff]  ;;  %v1540_v46 = vld [vmem:[%s10802_s29 + $0x24c8] sm:$0xff] }
 0x110   : > { %7811 = vmatprep.subr.bf16.mxu1 %v7810_v53  ;;  %v1421_v53 = vld [vmem:[%s10802_s29 + $0x2110] sm:$0xff]  ;;  %v7334_v39 = vpack.c.bf16 %v1528_v33, %v1516_v32  ;;  %v1552_v47 = vld [vmem:[%s10802_s29 + $0x2528] sm:$0xff]  ;;  %v1611_v32 = vld [vmem:[%s10802_s29 + $0x2700] sm:$0xff] }
 0x111   : > { %v1623_v33 = vld [vmem:[%s10802_s29 + $0x2760] sm:$0xff] }
 0x112   : > { %7301 = vmatpush1.bf16.msra.mxu0 %v7300_v59  ;;  %v1458_v59 = vld [vmem:[%s10802_s29 + $0x2238] sm:$0xff] }
 0x113   : > { %7813 = vmatpush1.bf16.msra.mxu1 %v7812_v60  ;;  %7303 = vmatprep.subr.bf16.mxu0 %v7302_v61  ;;  %v7320_v60 = vpack.c.bf16 %v1431_v52, %v1419_v51  ;;  %v7832_v61 = vpack.c.bf16 %v1433_v55, %v1421_v53  ;;  %v7834_v2 = vpack.c.bf16 %v1458_v59, %v1446_v58  ;;  %v326_v51 = vld [vmem:[%s10821_s24 + $0x38] sm:$0xff]  ;;  %v1539_v55 = vld [vmem:[%s10802_s29 + $0x24c0] sm:$0xff]  ;;  %v1553_v59 = vld [vmem:[%s10802_s29 + $0x2530] sm:$0xff] }
 0x114   : > { %7815 = vmatprep.subr.bf16.mxu1 %v7814_v1  ;;  %v1445_v1 = vld [vmem:[%s10802_s29 + $0x21d0] sm:$0xff]  ;;  %v7848_v53 = vpack.c.bf16 %v1529_v45, %v1517_v42  ;;  %v1635_v45 = vld [vmem:[%s10802_s29 + $0x27c0] sm:$0xff] }
 0x116   : > { %7305 = vmatpush1.bf16.msra.mxu0 %v7304_v7  ;;  %v1482_v7 = vld [vmem:[%s10802_s29 + $0x22f8] sm:$0xff] }
 0x117   : > { %7817 = vmatpush1.bf16.msra.mxu1 %v7816_v8  ;;  %7307 = vmatprep.subr.bf16.mxu0 %v7306_v9  ;;  %v7324_v8 = vpack.c.bf16 %v1455_v0, %v1443_v63  ;;  %v7836_v9 = vpack.c.bf16 %v1457_v3, %v1445_v1  ;;  %v7838_v14 = vpack.c.bf16 %v1482_v7, %v1470_v6  ;;  %v1566_v63 = vld [vmem:[%s10802_s29 + $0x2598] sm:$0xff]  ;;  %v1565_v6 = vld [vmem:[%s10802_s29 + $0x2590] sm:$0xff] }
 0x118   : > { %7819 = vmatprep.subr.bf16.mxu1 %v7818_v13  ;;  %v1469_v13 = vld [vmem:[%s10802_s29 + $0x2290] sm:$0xff]  ;;  %v1578_v0 = vld [vmem:[%s10802_s29 + $0x25f8] sm:$0xff]  ;;  %v7340_v1 = vpack.c.bf16 %v1551_v56, %v1539_v55 }
 0x119   : > { %v7854_v7 = vpack.c.bf16 %v1578_v0, %v1566_v63  ;;  %v1673_v63 = vld [vmem:[%s10802_s29 + $0x28f0] sm:$0xff]  ;;  %v1684_v0 = vld [vmem:[%s10802_s29 + $0x2948] sm:$0xff] }
 0x11a   : > { %7309 = vmatpush1.bf16.msra.mxu0 %v7308_v21  ;;  %v1506_v21 = vld [vmem:[%s10802_s29 + $0x23b8] sm:$0xff] }
 0x11b   : > { %7821 = vmatpush1.bf16.msra.mxu1 %v7820_v22  ;;  %7311 = vmatprep.subr.bf16.mxu0 %v7310_v23  ;;  %v7328_v22 = vpack.c.bf16 %v1479_v12, %v1467_v11  ;;  %v7840_v23 = vpack.c.bf16 %v1481_v15, %v1469_v13  ;;  %v7842_v29 = vpack.c.bf16 %v1506_v21, %v1494_v19  ;;  %v1590_v11 = vld [vmem:[%s10802_s29 + $0x2658] sm:$0xff]  ;;  %v1589_v19 = vld [vmem:[%s10802_s29 + $0x2650] sm:$0xff] }
 0x11c   : > { %7823 = vmatprep.subr.bf16.mxu1 %v7822_v27  ;;  %v1493_v27 = vld [vmem:[%s10802_s29 + $0x2350] sm:$0xff]  ;;  %v1602_v12 = vld [vmem:[%s10802_s29 + $0x26b8] sm:$0xff]  ;;  %v7344_v13 = vpack.c.bf16 %v1575_v5, %v1563_v4 }
 0x11d   : > { %v7844_v38 = vpack.c.bf16 %v1505_v30, %v1493_v27  ;;  %v7858_v21 = vpack.c.bf16 %v1602_v12, %v1590_v11  ;;  %v7348_v27 = vpack.c.bf16 %v1599_v18, %v1587_v17  ;;  %v1697_v11 = vld [vmem:[%s10802_s29 + $0x29b0] sm:$0xff]  ;;  %v1708_v12 = vld [vmem:[%s10802_s29 + $0x2a08] sm:$0xff] }
 0x11e   : > { %7313 = vmatpush1.bf16.msra.mxu0 %v7312_v35  ;;  %v1530_v35 = vld [vmem:[%s10802_s29 + $0x2478] sm:$0xff] }
 0x11f   : > { %7825 = vmatpush1.bf16.msra.mxu1 %v7824_v36  ;;  %7315 = vmatprep.subr.bf16.mxu0 %v7314_v37  ;;  %v7332_v36 = vpack.c.bf16 %v1503_v26, %v1491_v25  ;;  %v323_v37 = vld [vmem:[%s10821_s24 + $0x20] sm:$0xff]  ;;  %v7846_v44 = vpack.c.bf16 %v1530_v35, %v1518_v34  ;;  %v1614_v25 = vld [vmem:[%s10802_s29 + $0x2718] sm:$0xff]  ;;  %v1613_v34 = vld [vmem:[%s10802_s29 + $0x2710] sm:$0xff] }
 0x120   : > { %7827 = vmatprep.subr.bf16.mxu1 %v7826_v41  ;;  %v1527_v41 = vld [vmem:[%s10802_s29 + $0x2460] sm:$0xff]  ;;  %v1626_v26 = vld [vmem:[%s10802_s29 + $0x2778] sm:$0xff] }
 0x121   : > { %v7336_v52 = vpack.c.bf16 %v1527_v41, %v1515_v40  ;;  %v7862_v35 = vpack.c.bf16 %v1626_v26, %v1614_v25  ;;  %v1650_v40 = vld [vmem:[%s10802_s29 + $0x2838] sm:$0xff]  ;;  %v7352_v41 = vpack.c.bf16 %v1623_v33, %v1611_v32  ;;  %v1721_v25 = vld [vmem:[%s10802_s29 + $0x2a70] sm:$0xff]  ;;  %v1732_v26 = vld [vmem:[%s10802_s29 + $0x2ac8] sm:$0xff] }
 0x122   : > { %7317 = vmatpush1.bf16.msra.mxu0 %v7316_v48  ;;  %v11261_v48 = vmax.f32 %v323_v37, 0.0  ;;  %v1636_v37 = vld [vmem:[%s10802_s29 + $0x27c8] sm:$0xff] }
 0x123   : > { %7829 = vmatpush1.bf16.msra.mxu1 %v7828_v49  ;;  %7319 = vmatprep.subr.bf16.mxu0 %v7318_v50  ;;  %v1542_v49 = vld [vmem:[%s10802_s29 + $0x24d8] sm:$0xff] }
 0x124   : > { %7831 = vmatprep.subr.bf16.mxu1 %v7830_v54  ;;  %v1554_v50 = vld [vmem:[%s10802_s29 + $0x2538] sm:$0xff]  ;;  %v7338_v54 = vpack.c.bf16 %v1552_v47, %v1540_v46  ;;  %v1647_v46 = vld [vmem:[%s10802_s29 + $0x2820] sm:$0xff]  ;;  %v1637_v47 = vld [vmem:[%s10802_s29 + $0x27d0] sm:$0xff] }
 0x125   : > { %v7850_v58 = vpack.c.bf16 %v1554_v50, %v1542_v49  ;;  %v1649_v50 = vld [vmem:[%s10802_s29 + $0x2830] sm:$0xff]  ;;  %v7356_v55 = vpack.c.bf16 %v1647_v46, %v1635_v45 }
 0x126   : > { %7321 = vmatpush1.bf16.msra.mxu0 %v7320_v60  ;;  %v1564_v60 = vld [vmem:[%s10802_s29 + $0x2588] sm:$0xff]  ;;  %v7868_v56 = vpack.c.bf16 %v1649_v50, %v1637_v47  ;;  %v1767_v50 = vld [vmem:[%s10802_s29 + $0x2be0] sm:$0xff] }
 0x127   : > { %7833 = vmatpush1.bf16.msra.mxu1 %v7832_v61  ;;  %7323 = vmatprep.subr.bf16.mxu0 %v7322_v62  ;;  %v1576_v61 = vld [vmem:[%s10802_s29 + $0x25e8] sm:$0xff]  ;;  %v11272_v62 = vmax.f32 %v326_v51, 0.0 }
 0x128   : > { %7835 = vmatprep.subr.bf16.mxu1 %v7834_v2  ;;  %v7852_v2 = vpack.c.bf16 %v1553_v59, %v1541_v57  ;;  %v7342_v3 = vpack.c.bf16 %v1576_v61, %v1564_v60  ;;  %v1660_v51 = vld [vmem:[%s10802_s29 + $0x2888] sm:$0xff]  ;;  %v1671_v59 = vld [vmem:[%s10802_s29 + $0x28e0] sm:$0xff]  ;;  %v1661_v60 = vld [vmem:[%s10802_s29 + $0x2890] sm:$0xff] }
 0x129   : > { %v7872_v5 = vpack.c.bf16 %v1673_v63, %v1661_v60  ;;  %v1791_v63 = vld [vmem:[%s10802_s29 + $0x2ca0] sm:$0xff] }
 0x12a   : > { %7325 = vmatpush1.bf16.msra.mxu0 %v7324_v8  ;;  %v1577_v8 = vld [vmem:[%s10802_s29 + $0x25f0] sm:$0xff] }
 0x12b   : > { %7837 = vmatpush1.bf16.msra.mxu1 %v7836_v9  ;;  %7327 = vmatprep.subr.bf16.mxu0 %v7326_v10  ;;  %v1588_v9 = vld [vmem:[%s10802_s29 + $0x2648] sm:$0xff] }
 0x12c   : > { %7839 = vmatprep.subr.bf16.mxu1 %v7838_v14  ;;  %v1600_v10 = vld [vmem:[%s10802_s29 + $0x26a8] sm:$0xff]  ;;  %v7856_v14 = vpack.c.bf16 %v1577_v8, %v1565_v6  ;;  %v1695_v8 = vld [vmem:[%s10802_s29 + $0x29a0] sm:$0xff] }
 0x12d   : > { %v7346_v15 = vpack.c.bf16 %v1600_v10, %v1588_v9  ;;  %v1685_v9 = vld [vmem:[%s10802_s29 + $0x2950] sm:$0xff] }
 0x12e   : > { %7329 = vmatpush1.bf16.msra.mxu0 %v7328_v22  ;;  %v1601_v22 = vld [vmem:[%s10802_s29 + $0x26b0] sm:$0xff]  ;;  %v7876_v18 = vpack.c.bf16 %v1697_v11, %v1685_v9  ;;  %v1815_v11 = vld [vmem:[%s10802_s29 + $0x2d60] sm:$0xff] }
 0x12f   : > { %7841 = vmatpush1.bf16.msra.mxu1 %v7840_v23  ;;  %7331 = vmatprep.subr.bf16.mxu0 %v7330_v24  ;;  %v1612_v23 = vld [vmem:[%s10802_s29 + $0x2708] sm:$0xff] }
 0x130   : > { %7843 = vmatprep.subr.bf16.mxu1 %v7842_v29  ;;  %v1624_v24 = vld [vmem:[%s10802_s29 + $0x2768] sm:$0xff]  ;;  %v7860_v29 = vpack.c.bf16 %v1601_v22, %v1589_v19  ;;  %v1719_v22 = vld [vmem:[%s10802_s29 + $0x2a60] sm:$0xff] }
 0x131   : > { %v7350_v30 = vpack.c.bf16 %v1624_v24, %v1612_v23  ;;  %v1709_v23 = vld [vmem:[%s10802_s29 + $0x2a10] sm:$0xff] }
 0x132   : > { %7333 = vmatpush1.bf16.msra.mxu0 %v7332_v36  ;;  %v1625_v36 = vld [vmem:[%s10802_s29 + $0x2770] sm:$0xff]  ;;  %v7880_v33 = vpack.c.bf16 %v1721_v25, %v1709_v23  ;;  %v1839_v25 = vld [vmem:[%s10802_s29 + $0x2e20] sm:$0xff] }
 0x133   : > { %7845 = vmatpush1.bf16.msra.mxu1 %v7844_v38  ;;  %7335 = vmatprep.subr.bf16.mxu0 %v7334_v39  ;;  %v1648_v38 = vld [vmem:[%s10802_s29 + $0x2828] sm:$0xff]  ;;  %v1638_v39 = vld [vmem:[%s10802_s29 + $0x27d8] sm:$0xff]  ;;  %v7864_v42 = vpack.c.bf16 %v1625_v36, %v1613_v34  ;;  %v1743_v36 = vld [vmem:[%s10802_s29 + $0x2b20] sm:$0xff] }
 0x134   : > { %7847 = vmatprep.subr.bf16.mxu1 %v7846_v44  ;;  %v7354_v44 = vpack.c.bf16 %v1648_v38, %v1636_v37  ;;  %v7866_v49 = vpack.c.bf16 %v1650_v40, %v1638_v39  ;;  %v1733_v37 = vld [vmem:[%s10802_s29 + $0x2ad0] sm:$0xff]  ;;  %v1756_v40 = vld [vmem:[%s10802_s29 + $0x2b88] sm:$0xff] }
 0x135   : > { %3642 = vmatmul.mubr.f32.vlgmr.msra.gmra.mrb[0].mxu0 %v11261_v48  ;;  %v1745_v39 = vld [vmem:[%s10802_s29 + $0x2b30] sm:$0xff] }
 0x136   : > { %7337 = vmatpush1.bf16.msra.mxu0 %v7336_v52  ;;  %4210 = vmatmul.mubr.f32.vlgmr.msra.gmra.mrb[0].mxu1 %v11261_v48  ;;  %v1672_v52 = vld [vmem:[%s10802_s29 + $0x28e8] sm:$0xff]  ;;  %v7884_v46 = vpack.c.bf16 %v1745_v39, %v1733_v37  ;;  %v1863_v39 = vld [vmem:[%s10802_s29 + $0x2ee0] sm:$0xff] }
 0x137   : > { %7849 = vmatpush1.bf16.msra.mxu1 %v7848_v53  ;;  %7339 = vmatprep.subr.bf16.mxu0 %v7338_v54  ;;  %v1662_v53 = vld [vmem:[%s10802_s29 + $0x2898] sm:$0xff]  ;;  %v7358_v57 = vpack.c.bf16 %v1672_v52, %v1660_v51  ;;  %v1757_v51 = vld [vmem:[%s10802_s29 + $0x2b90] sm:$0xff] }
 0x138   : > { %7851 = vmatprep.subr.bf16.mxu1 %v7850_v58  ;;  %3712 = vmatprep.mubr.f32.mxu0 %v11272_v62  ;;  %v1674_v54 = vld [vmem:[%s10802_s29 + $0x28f8] sm:$0xff]  ;;  %v1659_v58 = vld [vmem:[%s10802_s29 + $0x2880] sm:$0xff] }
 0x139   : > { %4280 = vmatprep.mubr.f32.mxu1 %v11272_v62  ;;  %v7870_v61 = vpack.c.bf16 %v1674_v54, %v1662_v53  ;;  %v7360_v4 = vpack.c.bf16 %v1671_v59, %v1659_v58  ;;  %v1769_v53 = vld [vmem:[%s10802_s29 + $0x2bf0] sm:$0xff]  ;;  %v1780_v54 = vld [vmem:[%s10802_s29 + $0x2c48] sm:$0xff] }
 0x13a   : > { %7341 = vmatpush1.bf16.msra.mxu0 %v7340_v1  ;;  %v1696_v1 = vld [vmem:[%s10802_s29 + $0x29a8] sm:$0xff]  ;;  %v7888_v59 = vpack.c.bf16 %v1769_v53, %v1757_v51  ;;  %v1887_v53 = vld [vmem:[%s10802_s29 + $0x2fa0] sm:$0xff] }
 0x13b   : > { %7853 = vmatpush1.bf16.msra.mxu1 %v7852_v2  ;;  %7343 = vmatprep.subr.bf16.mxu0 %v7342_v3  ;;  %v1686_v2 = vld [vmem:[%s10802_s29 + $0x2958] sm:$0xff]  ;;  %v7362_v6 = vpack.c.bf16 %v1696_v1, %v1684_v0  ;;  %v1781_v0 = vld [vmem:[%s10802_s29 + $0x2c50] sm:$0xff] }
 0x13c   : > { %7855 = vmatprep.subr.bf16.mxu1 %v7854_v7  ;;  %v1698_v3 = vld [vmem:[%s10802_s29 + $0x29b8] sm:$0xff]  ;;  %v1683_v7 = vld [vmem:[%s10802_s29 + $0x2940] sm:$0xff] }
 0x13d   : > { %v7874_v10 = vpack.c.bf16 %v1698_v3, %v1686_v2  ;;  %v7364_v17 = vpack.c.bf16 %v1695_v8, %v1683_v7  ;;  %v1793_v2 = vld [vmem:[%s10802_s29 + $0x2cb0] sm:$0xff]  ;;  %v1804_v3 = vld [vmem:[%s10802_s29 + $0x2d08] sm:$0xff] }
 0x13e   : > { %7345 = vmatpush1.bf16.msra.mxu0 %v7344_v13  ;;  %v1720_v13 = vld [vmem:[%s10802_s29 + $0x2a68] sm:$0xff]  ;;  %v7892_v8 = vpack.c.bf16 %v1793_v2, %v1781_v0  ;;  %v1899_v2 = vld [vmem:[%s10802_s29 + $0x3000] sm:$0xff] }
 0x13f   : > { %7857 = vmatpush1.bf16.msra.mxu1 %v7856_v14  ;;  %7347 = vmatprep.subr.bf16.mxu0 %v7346_v15  ;;  %v1710_v14 = vld [vmem:[%s10802_s29 + $0x2a18] sm:$0xff]  ;;  %v7366_v19 = vpack.c.bf16 %v1720_v13, %v1708_v12  ;;  %v1805_v12 = vld [vmem:[%s10802_s29 + $0x2d10] sm:$0xff] }
 0x140   : > { %7859 = vmatprep.subr.bf16.mxu1 %v7858_v21  ;;  %v1722_v15 = vld [vmem:[%s10802_s29 + $0x2a78] sm:$0xff]  ;;  %v1707_v21 = vld [vmem:[%s10802_s29 + $0x2a00] sm:$0xff] }
 0x141   : > { %v7878_v24 = vpack.c.bf16 %v1722_v15, %v1710_v14  ;;  %v7368_v32 = vpack.c.bf16 %v1719_v22, %v1707_v21  ;;  %v1817_v14 = vld [vmem:[%s10802_s29 + $0x2d70] sm:$0xff]  ;;  %v1828_v15 = vld [vmem:[%s10802_s29 + $0x2dc8] sm:$0xff] }
 0x142   : > { %7349 = vmatpush1.bf16.msra.mxu0 %v7348_v27  ;;  %v1744_v27 = vld [vmem:[%s10802_s29 + $0x2b28] sm:$0xff]  ;;  %v7896_v22 = vpack.c.bf16 %v1817_v14, %v1805_v12 }
 0x143   : > { %7861 = vmatpush1.bf16.msra.mxu1 %v7860_v29  ;;  %7351 = vmatprep.subr.bf16.mxu0 %v7350_v30  ;;  %v1734_v29 = vld [vmem:[%s10802_s29 + $0x2ad8] sm:$0xff]  ;;  %v7370_v34 = vpack.c.bf16 %v1744_v27, %v1732_v26  ;;  %v1829_v26 = vld [vmem:[%s10802_s29 + $0x2dd0] sm:$0xff]  ;;  %v328_v12 = vld [vmem:[%s10821_s24 + $0x48] sm:$0xff] }
 0x144   : > { %7863 = vmatprep.subr.bf16.mxu1 %v7862_v35  ;;  %v1746_v30 = vld [vmem:[%s10802_s29 + $0x2b38] sm:$0xff]  ;;  %v1731_v35 = vld [vmem:[%s10802_s29 + $0x2ac0] sm:$0xff] }
 0x145   : > { %v7882_v38 = vpack.c.bf16 %v1746_v30, %v1734_v29  ;;  %v7372_v45 = vpack.c.bf16 %v1743_v36, %v1731_v35  ;;  %v1841_v29 = vld [vmem:[%s10802_s29 + $0x2e30] sm:$0xff]  ;;  %v1852_v30 = vld [vmem:[%s10802_s29 + $0x2e88] sm:$0xff] }
 0x146   : > { %7353 = vmatpush1.bf16.msra.mxu0 %v7352_v41  ;;  %v1768_v41 = vld [vmem:[%s10802_s29 + $0x2be8] sm:$0xff]  ;;  %v7900_v36 = vpack.c.bf16 %v1841_v29, %v1829_v26  ;;  %v1950_v26 = vld [vmem:[%s10802_s29 + $0x3198] sm:$0xff] }
 0x147   : > { %7865 = vmatpush1.bf16.msra.mxu1 %v7864_v42  ;;  %7355 = vmatprep.subr.bf16.mxu0 %v7354_v44  ;;  %v1758_v42 = vld [vmem:[%s10802_s29 + $0x2b98] sm:$0xff]  ;;  %v7374_v47 = vpack.c.bf16 %v1768_v41, %v1756_v40  ;;  %v1853_v40 = vld [vmem:[%s10802_s29 + $0x2e90] sm:$0xff] }
 0x148   : > { %7867 = vmatprep.subr.bf16.mxu1 %v7866_v49  ;;  %v1770_v44 = vld [vmem:[%s10802_s29 + $0x2bf8] sm:$0xff]  ;;  %v1755_v49 = vld [vmem:[%s10802_s29 + $0x2b80] sm:$0xff] }
 0x149   : > { %v7886_v52 = vpack.c.bf16 %v1770_v44, %v1758_v42  ;;  %v7376_v58 = vpack.c.bf16 %v1767_v50, %v1755_v49  ;;  %v1865_v42 = vld [vmem:[%s10802_s29 + $0x2ef0] sm:$0xff]  ;;  %v1876_v44 = vld [vmem:[%s10802_s29 + $0x2f48] sm:$0xff] }
 0x14a   : > { %7357 = vmatpush1.bf16.msra.mxu0 %v7356_v55  ;;  %v1792_v55 = vld [vmem:[%s10802_s29 + $0x2ca8] sm:$0xff]  ;;  %v7904_v50 = vpack.c.bf16 %v1865_v42, %v1853_v40  ;;  %v1974_v40 = vld [vmem:[%s10802_s29 + $0x3258] sm:$0xff] }
 0x14b   : > { %7869 = vmatpush1.bf16.msra.mxu1 %v7868_v56  ;;  %7359 = vmatprep.subr.bf16.mxu0 %v7358_v57  ;;  %v1782_v56 = vld [vmem:[%s10802_s29 + $0x2c58] sm:$0xff]  ;;  %v7378_v60 = vpack.c.bf16 %v1792_v55, %v1780_v54  ;;  %v1877_v54 = vld [vmem:[%s10802_s29 + $0x2f50] sm:$0xff] }
 0x14c   : > { %7871 = vmatprep.subr.bf16.mxu1 %v7870_v61  ;;  %v1794_v57 = vld [vmem:[%s10802_s29 + $0x2cb8] sm:$0xff]  ;;  %v1779_v61 = vld [vmem:[%s10802_s29 + $0x2c40] sm:$0xff] }
 0x14d   : > { %v7890_v1 = vpack.c.bf16 %v1794_v57, %v1782_v56  ;;  %v7380_v7 = vpack.c.bf16 %v1791_v63, %v1779_v61  ;;  %v1889_v56 = vld [vmem:[%s10802_s29 + $0x2fb0] sm:$0xff]  ;;  %v1900_v57 = vld [vmem:[%s10802_s29 + $0x3008] sm:$0xff] }
 0x14e   : > { %7361 = vmatpush1.bf16.msra.mxu0 %v7360_v4  ;;  %v1816_v4 = vld [vmem:[%s10802_s29 + $0x2d68] sm:$0xff]  ;;  %v325_v63 = vld [vmem:[%s10821_s24 + $0x30] sm:$0xff]  ;;  %v7908_v0 = vpack.c.bf16 %v1889_v56, %v1877_v54  ;;  %v1998_v54 = vld [vmem:[%s10802_s29 + $0x3318] sm:$0xff] }
 0x14f   : > { %7873 = vmatpush1.bf16.msra.mxu1 %v7872_v5  ;;  %7363 = vmatprep.subr.bf16.mxu0 %v7362_v6  ;;  %v1806_v5 = vld [vmem:[%s10802_s29 + $0x2d18] sm:$0xff]  ;;  %v7382_v9 = vpack.c.bf16 %v1816_v4, %v1804_v3  ;;  %v1911_v3 = vld [vmem:[%s10802_s29 + $0x3060] sm:$0xff]  ;;  %v1901_v4 = vld [vmem:[%s10802_s29 + $0x3010] sm:$0xff] }
 0x150   : > { %7875 = vmatprep.subr.bf16.mxu1 %v7874_v10  ;;  %v1818_v6 = vld [vmem:[%s10802_s29 + $0x2d78] sm:$0xff]  ;;  %v1803_v10 = vld [vmem:[%s10802_s29 + $0x2d00] sm:$0xff] }
 0x151   : > { %v7894_v13 = vpack.c.bf16 %v1818_v6, %v1806_v5  ;;  %v7384_v21 = vpack.c.bf16 %v1815_v11, %v1803_v10  ;;  %v1913_v6 = vld [vmem:[%s10802_s29 + $0x3070] sm:$0xff]  ;;  %v1926_v10 = vld [vmem:[%s10802_s29 + $0x30d8] sm:$0xff] }
 0x152   : > { %7365 = vmatpush1.bf16.msra.mxu0 %v7364_v17  ;;  %v1840_v17 = vld [vmem:[%s10802_s29 + $0x2e28] sm:$0xff]  ;;  %v1938_v11 = vld [vmem:[%s10802_s29 + $0x3138] sm:$0xff]  ;;  %v7912_v14 = vpack.c.bf16 %v1913_v6, %v1901_v4 }
 0x153   : > { %7877 = vmatpush1.bf16.msra.mxu1 %v7876_v18  ;;  %7367 = vmatprep.subr.bf16.mxu0 %v7366_v19  ;;  %v1830_v18 = vld [vmem:[%s10802_s29 + $0x2dd8] sm:$0xff]  ;;  %v7386_v23 = vpack.c.bf16 %v1840_v17, %v1828_v15  ;;  %v1923_v17 = vld [vmem:[%s10802_s29 + $0x30c0] sm:$0xff] }
 0x154   : > { %7879 = vmatprep.subr.bf16.mxu1 %v7878_v24  ;;  %v1842_v19 = vld [vmem:[%s10802_s29 + $0x2e38] sm:$0xff]  ;;  %v1827_v24 = vld [vmem:[%s10802_s29 + $0x2dc0] sm:$0xff] }
 0x155   : > { %v7898_v27 = vpack.c.bf16 %v1842_v19, %v1830_v18  ;;  %v7388_v35 = vpack.c.bf16 %v1839_v25, %v1827_v24  ;;  %v1935_v18 = vld [vmem:[%s10802_s29 + $0x3120] sm:$0xff]  ;;  %v1925_v19 = vld [vmem:[%s10802_s29 + $0x30d0] sm:$0xff]  ;;  %v1960_v24 = vld [vmem:[%s10802_s29 + $0x31e8] sm:$0xff]  ;;  %v11410_v25 = vmax.f32 %v328_v12, 0.0 }
 0x156   : > { %7369 = vmatpush1.bf16.msra.mxu0 %v7368_v32  ;;  %v1864_v32 = vld [vmem:[%s10802_s29 + $0x2ee8] sm:$0xff]  ;;  %v7404_v29 = vpack.c.bf16 %v1935_v18, %v1923_v17  ;;  %v2034_v4 = vld [vmem:[%s10802_s29 + $0x3438] sm:$0xff] }
 0x157   : > { %7881 = vmatpush1.bf16.msra.mxu1 %v7880_v33  ;;  %7371 = vmatprep.subr.bf16.mxu0 %v7370_v34  ;;  %v1854_v33 = vld [vmem:[%s10802_s29 + $0x2e98] sm:$0xff]  ;;  %v7390_v37 = vpack.c.bf16 %v1864_v32, %v1852_v30 }
 0x158   : > { %7883 = vmatprep.subr.bf16.mxu1 %v7882_v38  ;;  %v1866_v34 = vld [vmem:[%s10802_s29 + $0x2ef8] sm:$0xff]  ;;  %v1851_v38 = vld [vmem:[%s10802_s29 + $0x2e80] sm:$0xff] }
 0x159   : > { %v7902_v41 = vpack.c.bf16 %v1866_v34, %v1854_v33  ;;  %v7392_v49 = vpack.c.bf16 %v1863_v39, %v1851_v38  ;;  %v1947_v33 = vld [vmem:[%s10802_s29 + $0x3180] sm:$0xff]  ;;  %v1972_v38 = vld [vmem:[%s10802_s29 + $0x3248] sm:$0xff]  ;;  %v2046_v17 = vld [vmem:[%s10802_s29 + $0x3498] sm:$0xff] }
 0x15a   : > { %7373 = vmatpush1.bf16.msra.mxu0 %v7372_v45  ;;  %v1888_v45 = vld [vmem:[%s10802_s29 + $0x2fa8] sm:$0xff]  ;;  %v1959_v34 = vld [vmem:[%s10802_s29 + $0x31e0] sm:$0xff]  ;;  %v2058_v18 = vld [vmem:[%s10802_s29 + $0x34f8] sm:$0xff] }
 0x15b   : > { %7885 = vmatpush1.bf16.msra.mxu1 %v7884_v46  ;;  %7375 = vmatprep.subr.bf16.mxu0 %v7374_v47  ;;  %v1878_v46 = vld [vmem:[%s10802_s29 + $0x2f58] sm:$0xff]  ;;  %v7394_v51 = vpack.c.bf16 %v1888_v45, %v1876_v44  ;;  %v1984_v39 = vld [vmem:[%s10802_s29 + $0x32a8] sm:$0xff]  ;;  %v7408_v42 = vpack.c.bf16 %v1959_v34, %v1947_v33 }
 0x15c   : > { %7887 = vmatprep.subr.bf16.mxu1 %v7886_v52  ;;  %v1890_v47 = vld [vmem:[%s10802_s29 + $0x2fb8] sm:$0xff]  ;;  %v1875_v52 = vld [vmem:[%s10802_s29 + $0x2f40] sm:$0xff]  ;;  %v7410_v45 = vpack.c.bf16 %v1984_v39, %v1972_v38 }
 0x15d   : > { %v7906_v55 = vpack.c.bf16 %v1890_v47, %v1878_v46  ;;  %v7396_v61 = vpack.c.bf16 %v1887_v53, %v1875_v52  ;;  %v1971_v46 = vld [vmem:[%s10802_s29 + $0x3240] sm:$0xff]  ;;  %v1996_v52 = vld [vmem:[%s10802_s29 + $0x3308] sm:$0xff]  ;;  %v2070_v33 = vld [vmem:[%s10802_s29 + $0x3558] sm:$0xff] }
 0x15e   : > { %7377 = vmatpush1.bf16.msra.mxu0 %v7376_v58  ;;  %v1912_v58 = vld [vmem:[%s10802_s29 + $0x3068] sm:$0xff]  ;;  %v1983_v47 = vld [vmem:[%s10802_s29 + $0x32a0] sm:$0xff]  ;;  %v2082_v34 = vld [vmem:[%s10802_s29 + $0x35b8] sm:$0xff] }
 0x15f   : > { %7889 = vmatpush1.bf16.msra.mxu1 %v7888_v59  ;;  %7379 = vmatprep.subr.bf16.mxu0 %v7378_v60  ;;  %v1902_v59 = vld [vmem:[%s10802_s29 + $0x3018] sm:$0xff]  ;;  %v2008_v53 = vld [vmem:[%s10802_s29 + $0x3368] sm:$0xff]  ;;  %v7412_v56 = vpack.c.bf16 %v1983_v47, %v1971_v46  ;;  %v2067_v38 = vld [vmem:[%s10802_s29 + $0x3540] sm:$0xff] }
 0x160   : > { %7891 = vmatprep.subr.bf16.mxu1 %v7890_v1  ;;  %v1914_v60 = vld [vmem:[%s10802_s29 + $0x3078] sm:$0xff]  ;;  %v7398_v1 = vpack.c.bf16 %v1912_v58, %v1900_v57  ;;  %v7414_v58 = vpack.c.bf16 %v2008_v53, %v1996_v52  ;;  %v2079_v39 = vld [vmem:[%s10802_s29 + $0x35a0] sm:$0xff] }
 0x161   : > { %v7910_v5 = vpack.c.bf16 %v1914_v60, %v1902_v59  ;;  %v1995_v59 = vld [vmem:[%s10802_s29 + $0x3300] sm:$0xff]  ;;  %v2094_v46 = vld [vmem:[%s10802_s29 + $0x3618] sm:$0xff] }
 0x162   : > { %7381 = vmatpush1.bf16.msra.mxu0 %v7380_v7  ;;  %v1924_v7 = vld [vmem:[%s10802_s29 + $0x30c8] sm:$0xff]  ;;  %v2007_v60 = vld [vmem:[%s10802_s29 + $0x3360] sm:$0xff]  ;;  %v2106_v47 = vld [vmem:[%s10802_s29 + $0x3678] sm:$0xff] }
 0x163   : > { %7893 = vmatpush1.bf16.msra.mxu1 %v7892_v8  ;;  %7383 = vmatprep.subr.bf16.mxu0 %v7382_v9  ;;  %v1936_v8 = vld [vmem:[%s10802_s29 + $0x3128] sm:$0xff]  ;;  %v11399_v9 = vmax.f32 %v325_v63, 0.0  ;;  %v2091_v52 = vld [vmem:[%s10802_s29 + $0x3600] sm:$0xff] }
 0x164   : > { %7895 = vmatprep.subr.bf16.mxu1 %v7894_v13  ;;  %v7400_v13 = vpack.c.bf16 %v1911_v3, %v1899_v2  ;;  %v7402_v15 = vpack.c.bf16 %v1936_v8, %v1924_v7  ;;  %v2032_v2 = vld [vmem:[%s10802_s29 + $0x3428] sm:$0xff]  ;;  %v2022_v3 = vld [vmem:[%s10802_s29 + $0x33d8] sm:$0xff]  ;;  %v2019_v8 = vld [vmem:[%s10802_s29 + $0x33c0] sm:$0xff] }
 0x165   : > { %v7930_v12 = vpack.c.bf16 %v2034_v4, %v2022_v3  ;;  %v2103_v53 = vld [vmem:[%s10802_s29 + $0x3660] sm:$0xff]  ;;  %v2117_v3 = vld [vmem:[%s10802_s29 + $0x36d0] sm:$0xff] }
 0x166   : > { %7385 = vmatpush1.bf16.msra.mxu0 %v7384_v21  ;;  %v7914_v21 = vpack.c.bf16 %v1938_v11, %v1926_v10  ;;  %v2031_v10 = vld [vmem:[%s10802_s29 + $0x3420] sm:$0xff]  ;;  %v2021_v11 = vld [vmem:[%s10802_s29 + $0x33d0] sm:$0xff] }
 0x167   : > { %7897 = vmatpush1.bf16.msra.mxu1 %v7896_v22  ;;  %7387 = vmatprep.subr.bf16.mxu0 %v7386_v23  ;;  %v1937_v22 = vld [vmem:[%s10802_s29 + $0x3130] sm:$0xff]  ;;  %v1948_v23 = vld [vmem:[%s10802_s29 + $0x3188] sm:$0xff] }
 0x168   : > { %7899 = vmatprep.subr.bf16.mxu1 %v7898_v27  ;;  %v1962_v27 = vld [vmem:[%s10802_s29 + $0x31f8] sm:$0xff]  ;;  %v7916_v30 = vpack.c.bf16 %v1937_v22, %v1925_v19  ;;  %v7406_v32 = vpack.c.bf16 %v1960_v24, %v1948_v23  ;;  %v7420_v19 = vpack.c.bf16 %v2031_v10, %v2019_v8  ;;  %v2043_v23 = vld [vmem:[%s10802_s29 + $0x3480] sm:$0xff] }
 0x169   : > { %v2055_v24 = vld [vmem:[%s10802_s29 + $0x34e0] sm:$0xff]  ;;  %v2142_v8 = vld [vmem:[%s10802_s29 + $0x3798] sm:$0xff] }
 0x16a   : > { %7389 = vmatpush1.bf16.msra.mxu0 %v7388_v35  ;;  %v1949_v35 = vld [vmem:[%s10802_s29 + $0x3190] sm:$0xff]  ;;  %v2154_v10 = vld [vmem:[%s10802_s29 + $0x37f8] sm:$0xff] }
 0x16b   : > { %7901 = vmatpush1.bf16.msra.mxu1 %v7900_v36  ;;  %7391 = vmatprep.subr.bf16.mxu0 %v7390_v37  ;;  %v7918_v36 = vpack.c.bf16 %v1962_v27, %v1950_v26  ;;  %v1961_v37 = vld [vmem:[%s10802_s29 + $0x31f0] sm:$0xff]  ;;  %v7934_v27 = vpack.c.bf16 %v2058_v18, %v2046_v17  ;;  %v7950_v18 = vpack.c.bf16 %v2154_v10, %v2142_v8 }
 0x16c   : > { %7903 = vmatprep.subr.bf16.mxu1 %v7902_v41  ;;  %v1986_v41 = vld [vmem:[%s10802_s29 + $0x32b8] sm:$0xff]  ;;  %v7920_v44 = vpack.c.bf16 %v1961_v37, %v1949_v35  ;;  %v2045_v26 = vld [vmem:[%s10802_s29 + $0x3490] sm:$0xff]  ;;  %v7424_v35 = vpack.c.bf16 %v2055_v24, %v2043_v23 }
 0x16d   : > { %v2141_v17 = vld [vmem:[%s10802_s29 + $0x3790] sm:$0xff]  ;;  %v2166_v23 = vld [vmem:[%s10802_s29 + $0x3858] sm:$0xff] }
 0x16e   : > { %7393 = vmatpush1.bf16.msra.mxu0 %v7392_v49  ;;  %v1973_v49 = vld [vmem:[%s10802_s29 + $0x3250] sm:$0xff]  ;;  %v2178_v24 = vld [vmem:[%s10802_s29 + $0x38b8] sm:$0xff] }
 0x16f   : > { %7905 = vmatpush1.bf16.msra.mxu1 %v7904_v50  ;;  %7395 = vmatprep.subr.bf16.mxu0 %v7394_v51  ;;  %v7922_v50 = vpack.c.bf16 %v1986_v41, %v1974_v40  ;;  %v1985_v51 = vld [vmem:[%s10802_s29 + $0x32b0] sm:$0xff]  ;;  %v7938_v41 = vpack.c.bf16 %v2082_v34, %v2070_v33  ;;  %v7954_v34 = vpack.c.bf16 %v2178_v24, %v2166_v23 }
 0x170   : > { %7907 = vmatprep.subr.bf16.mxu1 %v7906_v55  ;;  %v2010_v55 = vld [vmem:[%s10802_s29 + $0x3378] sm:$0xff]  ;;  %v7924_v57 = vpack.c.bf16 %v1985_v51, %v1973_v49  ;;  %v2069_v40 = vld [vmem:[%s10802_s29 + $0x3550] sm:$0xff]  ;;  %v7428_v49 = vpack.c.bf16 %v2079_v39, %v2067_v38 }
 0x171   : > { %v7926_v63 = vpack.c.bf16 %v2010_v55, %v1998_v54  ;;  %v2093_v54 = vld [vmem:[%s10802_s29 + $0x3610] sm:$0xff]  ;;  %v7942_v55 = vpack.c.bf16 %v2106_v47, %v2094_v46  ;;  %v2190_v38 = vld [vmem:[%s10802_s29 + $0x3918] sm:$0xff] }
 0x172   : > { %7397 = vmatpush1.bf16.msra.mxu0 %v7396_v61  ;;  %v1997_v61 = vld [vmem:[%s10802_s29 + $0x3310] sm:$0xff]  ;;  %v2202_v39 = vld [vmem:[%s10802_s29 + $0x3978] sm:$0xff] }
 0x173   : > { %7909 = vmatpush1.bf16.msra.mxu1 %v7908_v0  ;;  %7399 = vmatprep.subr.bf16.mxu0 %v7398_v1  ;;  %v2009_v0 = vld [vmem:[%s10802_s29 + $0x3370] sm:$0xff]  ;;  %v2020_v1 = vld [vmem:[%s10802_s29 + $0x33c8] sm:$0xff]  ;;  %v7958_v47 = vpack.c.bf16 %v2202_v39, %v2190_v38  ;;  %v2295_v38 = vld [vmem:[%s10802_s29 + $0x3c60] sm:$0xff] }
 0x174   : > { %7911 = vmatprep.subr.bf16.mxu1 %v7910_v5  ;;  %v7416_v5 = vpack.c.bf16 %v2007_v60, %v1995_v59  ;;  %v7928_v6 = vpack.c.bf16 %v2009_v0, %v1997_v61  ;;  %v7418_v7 = vpack.c.bf16 %v2032_v2, %v2020_v1  ;;  %v2118_v59 = vld [vmem:[%s10802_s29 + $0x36d8] sm:$0xff]  ;;  %v7432_v61 = vpack.c.bf16 %v2103_v53, %v2091_v52  ;;  %v2115_v1 = vld [vmem:[%s10802_s29 + $0x36c0] sm:$0xff]  ;;  %v2165_v33 = vld [vmem:[%s10802_s29 + $0x3850] sm:$0xff] }
 0x175   : > { %3713 = vmatmul.mubr.f32.vlgmr.msra.gmra.mrb[0].mxu0 %v11399_v9  ;;  %v2130_v60 = vld [vmem:[%s10802_s29 + $0x3738] sm:$0xff]  ;;  %v2127_v2 = vld [vmem:[%s10802_s29 + $0x3720] sm:$0xff]  ;;  %v2189_v46 = vld [vmem:[%s10802_s29 + $0x3910] sm:$0xff] }
 0x176   : > { %7401 = vmatpush1.bf16.msra.mxu0 %v7400_v13  ;;  %4281 = vmatmul.mubr.f32.vlgmr.msra.gmra.mrb[0].mxu1 %v11399_v9  ;;  %v2033_v13 = vld [vmem:[%s10802_s29 + $0x3430] sm:$0xff]  ;;  %v7946_v4 = vpack.c.bf16 %v2130_v60, %v2118_v59  ;;  %v2214_v52 = vld [vmem:[%s10802_s29 + $0x39d8] sm:$0xff] }
 0x177   : > { %7913 = vmatpush1.bf16.msra.mxu1 %v7912_v14  ;;  %7403 = vmatprep.subr.bf16.mxu0 %v7402_v15  ;;  %v2044_v14 = vld [vmem:[%s10802_s29 + $0x3488] sm:$0xff]  ;;  %v2226_v53 = vld [vmem:[%s10802_s29 + $0x3a38] sm:$0xff]  ;;  %v2213_v59 = vld [vmem:[%s10802_s29 + $0x39d0] sm:$0xff] }
 0x178   : > { %7915 = vmatprep.subr.bf16.mxu1 %v7914_v21  ;;  %3783 = vmatprep.mubr.f32.mxu0 %v11410_v25  ;;  %v2056_v15 = vld [vmem:[%s10802_s29 + $0x34e8] sm:$0xff]  ;;  %v7932_v21 = vpack.c.bf16 %v2033_v13, %v2021_v11  ;;  %v7436_v11 = vpack.c.bf16 %v2127_v2, %v2115_v1  ;;  %v7962_v60 = vpack.c.bf16 %v2226_v53, %v2214_v52  ;;  %v2238_v1 = vld [vmem:[%s10802_s29 + $0x3a98] sm:$0xff]  ;;  %v2237_v8 = vld [vmem:[%s10802_s29 + $0x3a90] sm:$0xff] }
 0x179   : > { %4351 = vmatprep.mubr.f32.mxu1 %v11410_v25  ;;  %v7422_v22 = vpack.c.bf16 %v2056_v15, %v2044_v14  ;;  %v2139_v14 = vld [vmem:[%s10802_s29 + $0x3780] sm:$0xff]  ;;  %v2250_v2 = vld [vmem:[%s10802_s29 + $0x3af8] sm:$0xff]  ;;  %v2261_v23 = vld [vmem:[%s10802_s29 + $0x3b50] sm:$0xff] }
 0x17a   : > { %7405 = vmatpush1.bf16.msra.mxu0 %v7404_v29  ;;  %v2057_v29 = vld [vmem:[%s10802_s29 + $0x34f0] sm:$0xff]  ;;  %v2151_v15 = vld [vmem:[%s10802_s29 + $0x37e0] sm:$0xff]  ;;  %v7966_v10 = vpack.c.bf16 %v2250_v2, %v2238_v1 }
 0x17b   : > { %7917 = vmatpush1.bf16.msra.mxu1 %v7916_v30  ;;  %7407 = vmatprep.subr.bf16.mxu0 %v7406_v32  ;;  %v2068_v30 = vld [vmem:[%s10802_s29 + $0x3548] sm:$0xff]  ;;  %v2285_v39 = vld [vmem:[%s10802_s29 + $0x3c10] sm:$0xff]  ;;  %v2307_v53 = vld [vmem:[%s10802_s29 + $0x3cc0] sm:$0xff] }
 0x17c   : > { %7919 = vmatprep.subr.bf16.mxu1 %v7918_v36  ;;  %v2080_v32 = vld [vmem:[%s10802_s29 + $0x35a8] sm:$0xff]  ;;  %v7936_v36 = vpack.c.bf16 %v2057_v29, %v2045_v26  ;;  %v7440_v26 = vpack.c.bf16 %v2151_v15, %v2139_v14  ;;  %v2262_v14 = vld [vmem:[%s10802_s29 + $0x3b58] sm:$0xff] }
 0x17d   : > { %v7426_v37 = vpack.c.bf16 %v2080_v32, %v2068_v30  ;;  %v2163_v30 = vld [vmem:[%s10802_s29 + $0x3840] sm:$0xff]  ;;  %v2274_v15 = vld [vmem:[%s10802_s29 + $0x3bb8] sm:$0xff] }
 0x17e   : > { %7409 = vmatpush1.bf16.msra.mxu0 %v7408_v42  ;;  %v2081_v42 = vld [vmem:[%s10802_s29 + $0x35b0] sm:$0xff]  ;;  %v2175_v32 = vld [vmem:[%s10802_s29 + $0x38a0] sm:$0xff]  ;;  %v7970_v24 = vpack.c.bf16 %v2274_v15, %v2262_v14 }
 0x17f   : > { %7921 = vmatpush1.bf16.msra.mxu1 %v7920_v44  ;;  %7411 = vmatprep.subr.bf16.mxu0 %v7410_v45  ;;  %v2092_v44 = vld [vmem:[%s10802_s29 + $0x3608] sm:$0xff] }
 0x180   : > { %7923 = vmatprep.subr.bf16.mxu1 %v7922_v50  ;;  %v2104_v45 = vld [vmem:[%s10802_s29 + $0x3668] sm:$0xff]  ;;  %v7940_v50 = vpack.c.bf16 %v2081_v42, %v2069_v40  ;;  %v7444_v40 = vpack.c.bf16 %v2175_v32, %v2163_v30  ;;  %v2286_v30 = vld [vmem:[%s10802_s29 + $0x3c18] sm:$0xff] }
 0x181   : > { %v7430_v51 = vpack.c.bf16 %v2104_v45, %v2092_v44  ;;  %v2187_v44 = vld [vmem:[%s10802_s29 + $0x3900] sm:$0xff]  ;;  %v2298_v32 = vld [vmem:[%s10802_s29 + $0x3c78] sm:$0xff] }
 0x182   : > { %7413 = vmatpush1.bf16.msra.mxu0 %v7412_v56  ;;  %v2105_v56 = vld [vmem:[%s10802_s29 + $0x3670] sm:$0xff]  ;;  %v2199_v45 = vld [vmem:[%s10802_s29 + $0x3960] sm:$0xff] }
 0x183   : > { %7925 = vmatpush1.bf16.msra.mxu1 %v7924_v57  ;;  %7415 = vmatprep.subr.bf16.mxu0 %v7414_v58  ;;  %v2116_v57 = vld [vmem:[%s10802_s29 + $0x36c8] sm:$0xff] }
 0x184   : > { %7927 = vmatprep.subr.bf16.mxu1 %v7926_v63  ;;  %v2128_v58 = vld [vmem:[%s10802_s29 + $0x3728] sm:$0xff]  ;;  %v7944_v63 = vpack.c.bf16 %v2105_v56, %v2093_v54  ;;  %v7448_v54 = vpack.c.bf16 %v2199_v45, %v2187_v44 }
 0x185   : > { %v7434_v0 = vpack.c.bf16 %v2128_v58, %v2116_v57  ;;  %v2211_v57 = vld [vmem:[%s10802_s29 + $0x39c0] sm:$0xff]  ;;  %v2320_v44 = vld [vmem:[%s10802_s29 + $0x3d28] sm:$0xff] }
 0x186   : > { %7417 = vmatpush1.bf16.msra.mxu0 %v7416_v5  ;;  %v2129_v5 = vld [vmem:[%s10802_s29 + $0x3730] sm:$0xff]  ;;  %v2223_v58 = vld [vmem:[%s10802_s29 + $0x3a20] sm:$0xff] }
 0x187   : > { %7929 = vmatpush1.bf16.msra.mxu1 %v7928_v6  ;;  %7419 = vmatprep.subr.bf16.mxu0 %v7418_v7  ;;  %v2140_v6 = vld [vmem:[%s10802_s29 + $0x3788] sm:$0xff] }
 0x188   : > { %7931 = vmatprep.subr.bf16.mxu1 %v7930_v12  ;;  %v2152_v7 = vld [vmem:[%s10802_s29 + $0x37e8] sm:$0xff]  ;;  %v7948_v12 = vpack.c.bf16 %v2129_v5, %v2117_v3  ;;  %v7452_v3 = vpack.c.bf16 %v2223_v58, %v2211_v57  ;;  %v2321_v57 = vld [vmem:[%s10802_s29 + $0x3d30] sm:$0xff] }
 0x189   : > { %v7438_v13 = vpack.c.bf16 %v2152_v7, %v2140_v6  ;;  %v2235_v6 = vld [vmem:[%s10802_s29 + $0x3a80] sm:$0xff]  ;;  %v2332_v58 = vld [vmem:[%s10802_s29 + $0x3d88] sm:$0xff] }
 0x18a   : > { %7421 = vmatpush1.bf16.msra.mxu0 %v7420_v19  ;;  %v2153_v19 = vld [vmem:[%s10802_s29 + $0x37f0] sm:$0xff]  ;;  %v2247_v7 = vld [vmem:[%s10802_s29 + $0x3ae0] sm:$0xff] }
 0x18b   : > { %7933 = vmatpush1.bf16.msra.mxu1 %v7932_v21  ;;  %7423 = vmatprep.subr.bf16.mxu0 %v7422_v22  ;;  %v2164_v21 = vld [vmem:[%s10802_s29 + $0x3848] sm:$0xff] }
 0x18c   : > { %7935 = vmatprep.subr.bf16.mxu1 %v7934_v27  ;;  %v2176_v22 = vld [vmem:[%s10802_s29 + $0x38a8] sm:$0xff]  ;;  %v7952_v27 = vpack.c.bf16 %v2153_v19, %v2141_v17  ;;  %v7456_v17 = vpack.c.bf16 %v2247_v7, %v2235_v6  ;;  %v2345_v7 = vld [vmem:[%s10802_s29 + $0x3df0] sm:$0xff] }
 0x18d   : > { %v7442_v29 = vpack.c.bf16 %v2176_v22, %v2164_v21  ;;  %v2259_v21 = vld [vmem:[%s10802_s29 + $0x3b40] sm:$0xff] }
 0x18e   : > { %7425 = vmatpush1.bf16.msra.mxu0 %v7424_v35  ;;  %v2177_v35 = vld [vmem:[%s10802_s29 + $0x38b0] sm:$0xff]  ;;  %v2271_v22 = vld [vmem:[%s10802_s29 + $0x3ba0] sm:$0xff] }
 0x18f   : > { %7937 = vmatpush1.bf16.msra.mxu1 %v7936_v36  ;;  %7427 = vmatprep.subr.bf16.mxu0 %v7426_v37  ;;  %v2188_v36 = vld [vmem:[%s10802_s29 + $0x3908] sm:$0xff] }
 0x190   : > { %7939 = vmatprep.subr.bf16.mxu1 %v7938_v41  ;;  %v2200_v37 = vld [vmem:[%s10802_s29 + $0x3968] sm:$0xff]  ;;  %v7956_v41 = vpack.c.bf16 %v2177_v35, %v2165_v33  ;;  %v7460_v33 = vpack.c.bf16 %v2271_v22, %v2259_v21  ;;  %v2369_v22 = vld [vmem:[%s10802_s29 + $0x3eb0] sm:$0xff] }
 0x191   : > { %v7446_v42 = vpack.c.bf16 %v2200_v37, %v2188_v36  ;;  %v2283_v37 = vld [vmem:[%s10802_s29 + $0x3c00] sm:$0xff] }
 0x192   : > { %7429 = vmatpush1.bf16.msra.mxu0 %v7428_v49  ;;  %v2201_v49 = vld [vmem:[%s10802_s29 + $0x3970] sm:$0xff] }
 0x193   : > { %7941 = vmatpush1.bf16.msra.mxu1 %v7940_v50  ;;  %7431 = vmatprep.subr.bf16.mxu0 %v7430_v51  ;;  %v2212_v50 = vld [vmem:[%s10802_s29 + $0x39c8] sm:$0xff] }
 0x194   : > { %7943 = vmatprep.subr.bf16.mxu1 %v7942_v55  ;;  %v2224_v51 = vld [vmem:[%s10802_s29 + $0x3a28] sm:$0xff]  ;;  %v7960_v55 = vpack.c.bf16 %v2201_v49, %v2189_v46  ;;  %v2310_v46 = vld [vmem:[%s10802_s29 + $0x3cd8] sm:$0xff] }
 0x195   : > { %v7450_v56 = vpack.c.bf16 %v2224_v51, %v2212_v50  ;;  %v330_v49 = vld [vmem:[%s10821_s24 + $0x58] sm:$0xff]  ;;  %v7464_v50 = vpack.c.bf16 %v2295_v38, %v2283_v37  ;;  %v2393_v37 = vld [vmem:[%s10802_s29 + $0x3f70] sm:$0xff]  ;;  %v2404_v38 = vld [vmem:[%s10802_s29 + $0x3fc8] sm:$0xff] }
 0x196   : > { %7433 = vmatpush1.bf16.msra.mxu0 %v7432_v61  ;;  %v2225_v61 = vld [vmem:[%s10802_s29 + $0x3a30] sm:$0xff] }
 0x197   : > { %7945 = vmatpush1.bf16.msra.mxu1 %v7944_v63  ;;  %7435 = vmatprep.subr.bf16.mxu0 %v7434_v0  ;;  %v2236_v63 = vld [vmem:[%s10802_s29 + $0x3a88] sm:$0xff] }
 0x198   : > { %7947 = vmatprep.subr.bf16.mxu1 %v7946_v4  ;;  %v2248_v0 = vld [vmem:[%s10802_s29 + $0x3ae8] sm:$0xff]  ;;  %v7964_v4 = vpack.c.bf16 %v2225_v61, %v2213_v59  ;;  %v2334_v61 = vld [vmem:[%s10802_s29 + $0x3d98] sm:$0xff] }
 0x199   : > { %v7454_v5 = vpack.c.bf16 %v2248_v0, %v2236_v63  ;;  %v2344_v59 = vld [vmem:[%s10802_s29 + $0x3de8] sm:$0xff]  ;;  %v2346_v63 = vld [vmem:[%s10802_s29 + $0x3df8] sm:$0xff] }
 0x19a   : > { %7437 = vmatpush1.bf16.msra.mxu0 %v7436_v11  ;;  %v2249_v11 = vld [vmem:[%s10802_s29 + $0x3af0] sm:$0xff]  ;;  %v7470_v2 = vpack.c.bf16 %v2344_v59, %v2332_v58  ;;  %v7982_v6 = vpack.c.bf16 %v2346_v63, %v2334_v61  ;;  %v2427_v61 = vld [vmem:[%s10802_s29 + $0x4080] sm:$0xff] }
 0x19b   : > { %7949 = vmatpush1.bf16.msra.mxu1 %v7948_v12  ;;  %7439 = vmatprep.subr.bf16.mxu0 %v7438_v13  ;;  %v2260_v12 = vld [vmem:[%s10802_s29 + $0x3b48] sm:$0xff]  ;;  %v2439_v63 = vld [vmem:[%s10802_s29 + $0x40e0] sm:$0xff] }
 0x19c   : > { %7951 = vmatprep.subr.bf16.mxu1 %v7950_v18  ;;  %v2272_v13 = vld [vmem:[%s10802_s29 + $0x3ba8] sm:$0xff]  ;;  %v7968_v18 = vpack.c.bf16 %v2249_v11, %v2237_v8  ;;  %v2358_v11 = vld [vmem:[%s10802_s29 + $0x3e58] sm:$0xff] }
 0x19d   : > { %v7458_v19 = vpack.c.bf16 %v2272_v13, %v2260_v12  ;;  %v2356_v8 = vld [vmem:[%s10802_s29 + $0x3e48] sm:$0xff]  ;;  %v2370_v12 = vld [vmem:[%s10802_s29 + $0x3eb8] sm:$0xff] }
 0x19e   : > { %7441 = vmatpush1.bf16.msra.mxu0 %v7440_v26  ;;  %v2273_v26 = vld [vmem:[%s10802_s29 + $0x3bb0] sm:$0xff]  ;;  %v7986_v21 = vpack.c.bf16 %v2370_v12, %v2358_v11  ;;  %v2451_v11 = vld [vmem:[%s10802_s29 + $0x4140] sm:$0xff] }
 0x19f   : > { %7953 = vmatpush1.bf16.msra.mxu1 %v7952_v27  ;;  %7443 = vmatprep.subr.bf16.mxu0 %v7442_v29  ;;  %v2284_v27 = vld [vmem:[%s10802_s29 + $0x3c08] sm:$0xff]  ;;  %v7972_v35 = vpack.c.bf16 %v2273_v26, %v2261_v23  ;;  %v2382_v26 = vld [vmem:[%s10802_s29 + $0x3f18] sm:$0xff]  ;;  %v2463_v12 = vld [vmem:[%s10802_s29 + $0x41a0] sm:$0xff] }
 0x1a0   : > { %7955 = vmatprep.subr.bf16.mxu1 %v7954_v34  ;;  %v2296_v29 = vld [vmem:[%s10802_s29 + $0x3c68] sm:$0xff]  ;;  %v327_v34 = vld [vmem:[%s10821_s24 + $0x40] sm:$0xff] }
 0x1a1   : > { %v7462_v36 = vpack.c.bf16 %v2296_v29, %v2284_v27  ;;  %v11537_v45 = vmax.f32 %v327_v34, 0.0  ;;  %v2380_v23 = vld [vmem:[%s10802_s29 + $0x3f08] sm:$0xff]  ;;  %v2394_v27 = vld [vmem:[%s10802_s29 + $0x3f78] sm:$0xff]  ;;  %v2391_v34 = vld [vmem:[%s10802_s29 + $0x3f60] sm:$0xff] }
 0x1a2   : > { %7445 = vmatpush1.bf16.msra.mxu0 %v7444_v40  ;;  %v7974_v40 = vpack.c.bf16 %v2298_v32, %v2286_v30 }
 0x1a3   : > { %7957 = vmatpush1.bf16.msra.mxu1 %v7956_v41  ;;  %7447 = vmatprep.subr.bf16.mxu0 %v7446_v42  ;;  %v2297_v41 = vld [vmem:[%s10802_s29 + $0x3c70] sm:$0xff]  ;;  %v2308_v42 = vld [vmem:[%s10802_s29 + $0x3cc8] sm:$0xff] }
 0x1a4   : > { %7959 = vmatprep.subr.bf16.mxu1 %v7958_v47  ;;  %v2322_v47 = vld [vmem:[%s10802_s29 + $0x3d38] sm:$0xff]  ;;  %v7976_v51 = vpack.c.bf16 %v2297_v41, %v2285_v39  ;;  %v7466_v52 = vpack.c.bf16 %v2320_v44, %v2308_v42  ;;  %v2416_v39 = vld [vmem:[%s10802_s29 + $0x4028] sm:$0xff] }
 0x1a5   : > { %v2418_v41 = vld [vmem:[%s10802_s29 + $0x4038] sm:$0xff] }
 0x1a6   : > { %7449 = vmatpush1.bf16.msra.mxu0 %v7448_v54  ;;  %v2319_v54 = vld [vmem:[%s10802_s29 + $0x3d20] sm:$0xff] }
 0x1a7   : > { %7961 = vmatpush1.bf16.msra.mxu1 %v7960_v55  ;;  %7451 = vmatprep.subr.bf16.mxu0 %v7450_v56  ;;  %v2309_v55 = vld [vmem:[%s10802_s29 + $0x3cd0] sm:$0xff]  ;;  %v7978_v56 = vpack.c.bf16 %v2322_v47, %v2310_v46  ;;  %v7468_v0 = vpack.c.bf16 %v2319_v54, %v2307_v53  ;;  %v7482_v46 = vpack.c.bf16 %v2416_v39, %v2404_v38  ;;  %v2403_v47 = vld [vmem:[%s10802_s29 + $0x3fc0] sm:$0xff]  ;;  %v2428_v53 = vld [vmem:[%s10802_s29 + $0x4088] sm:$0xff] }
 0x1a8   : > { %7963 = vmatprep.subr.bf16.mxu1 %v7962_v60  ;;  %v11548_v60 = vmax.f32 %v330_v49, 0.0  ;;  %v7980_v1 = vpack.c.bf16 %v2321_v57, %v2309_v55  ;;  %v2415_v49 = vld [vmem:[%s10802_s29 + $0x4020] sm:$0xff]  ;;  %v2440_v54 = vld [vmem:[%s10802_s29 + $0x40e8] sm:$0xff]  ;;  %v2430_v55 = vld [vmem:[%s10802_s29 + $0x4098] sm:$0xff] }
 0x1a9   : > { %v7484_v57 = vpack.c.bf16 %v2415_v49, %v2403_v47  ;;  %v7486_v59 = vpack.c.bf16 %v2440_v54, %v2428_v53  ;;  %v2524_v47 = vld [vmem:[%s10802_s29 + $0x4388] sm:$0xff] }
 0x1aa   : > { %7453 = vmatpush1.bf16.msra.mxu0 %v7452_v3  ;;  %v2331_v3 = vld [vmem:[%s10802_s29 + $0x3d80] sm:$0xff]  ;;  %v2536_v49 = vld [vmem:[%s10802_s29 + $0x43e8] sm:$0xff] }
 0x1ab   : > { %7965 = vmatpush1.bf16.msra.mxu1 %v7964_v4  ;;  %7455 = vmatprep.subr.bf16.mxu0 %v7454_v5  ;;  %v2343_v4 = vld [vmem:[%s10802_s29 + $0x3de0] sm:$0xff]  ;;  %v2333_v5 = vld [vmem:[%s10802_s29 + $0x3d90] sm:$0xff]  ;;  %v7502_v54 = vpack.c.bf16 %v2536_v49, %v2524_v47 }
 0x1ac   : > { %7967 = vmatprep.subr.bf16.mxu1 %v7966_v10  ;;  %v2368_v10 = vld [vmem:[%s10802_s29 + $0x3ea8] sm:$0xff]  ;;  %v7472_v13 = vpack.c.bf16 %v2343_v4, %v2331_v3  ;;  %v7984_v14 = vpack.c.bf16 %v2345_v7, %v2333_v5  ;;  %v2454_v5 = vld [vmem:[%s10802_s29 + $0x4158] sm:$0xff]  ;;  %v7488_v7 = vpack.c.bf16 %v2439_v63, %v2427_v61 }
 0x1ad   : > { %v7474_v15 = vpack.c.bf16 %v2368_v10, %v2356_v8  ;;  %v2452_v3 = vld [vmem:[%s10802_s29 + $0x4148] sm:$0xff] }
 0x1ae   : > { %7457 = vmatpush1.bf16.msra.mxu0 %v7456_v17  ;;  %v2355_v17 = vld [vmem:[%s10802_s29 + $0x3e40] sm:$0xff]  ;;  %v2464_v4 = vld [vmem:[%s10802_s29 + $0x41a8] sm:$0xff] }
 0x1af   : > { %7969 = vmatpush1.bf16.msra.mxu1 %v7968_v18  ;;  %7459 = vmatprep.subr.bf16.mxu0 %v7458_v19  ;;  %v2367_v18 = vld [vmem:[%s10802_s29 + $0x3ea0] sm:$0xff]  ;;  %v2357_v19 = vld [vmem:[%s10802_s29 + $0x3e50] sm:$0xff]  ;;  %v7490_v10 = vpack.c.bf16 %v2464_v4, %v2452_v3  ;;  %v2548_v61 = vld [vmem:[%s10802_s29 + $0x4448] sm:$0xff] }
 0x1b0   : > { %7971 = vmatprep.subr.bf16.mxu1 %v7970_v24  ;;  %v2392_v24 = vld [vmem:[%s10802_s29 + $0x3f68] sm:$0xff]  ;;  %v7476_v29 = vpack.c.bf16 %v2367_v18, %v2355_v17  ;;  %v7988_v30 = vpack.c.bf16 %v2369_v22, %v2357_v19  ;;  %v2478_v19 = vld [vmem:[%s10802_s29 + $0x4218] sm:$0xff]  ;;  %v7492_v22 = vpack.c.bf16 %v2463_v12, %v2451_v11 }
 0x1b1   : > { %v7478_v32 = vpack.c.bf16 %v2392_v24, %v2380_v23  ;;  %v2476_v17 = vld [vmem:[%s10802_s29 + $0x4208] sm:$0xff] }
 0x1b2   : > { %7461 = vmatpush1.bf16.msra.mxu0 %v7460_v33  ;;  %v2379_v33 = vld [vmem:[%s10802_s29 + $0x3f00] sm:$0xff]  ;;  %v2488_v18 = vld [vmem:[%s10802_s29 + $0x4268] sm:$0xff] }
 0x1b3   : > { %7973 = vmatpush1.bf16.msra.mxu1 %v7972_v35  ;;  %7463 = vmatprep.subr.bf16.mxu0 %v7462_v36  ;;  %v2381_v35 = vld [vmem:[%s10802_s29 + $0x3f10] sm:$0xff]  ;;  %v7990_v36 = vpack.c.bf16 %v2394_v27, %v2382_v26  ;;  %v7480_v42 = vpack.c.bf16 %v2391_v34, %v2379_v33  ;;  %v7494_v24 = vpack.c.bf16 %v2488_v18, %v2476_v17  ;;  %v2475_v26 = vld [vmem:[%s10802_s29 + $0x4200] sm:$0xff]  ;;  %v2500_v33 = vld [vmem:[%s10802_s29 + $0x42c8] sm:$0xff] }
 0x1b4   : > { %7975 = vmatprep.subr.bf16.mxu1 %v7974_v40  ;;  %v2406_v40 = vld [vmem:[%s10802_s29 + $0x3fd8] sm:$0xff]  ;;  %v7992_v44 = vpack.c.bf16 %v2393_v37, %v2381_v35  ;;  %v2487_v27 = vld [vmem:[%s10802_s29 + $0x4260] sm:$0xff]  ;;  %v2512_v34 = vld [vmem:[%s10802_s29 + $0x4328] sm:$0xff] }
 0x1b5   : > { %3784 = vmatmul.mubr.f32.vlgmr.msra.gmra.mrb[0].mxu0 %v11537_v45  ;;  %v2502_v35 = vld [vmem:[%s10802_s29 + $0x42d8] sm:$0xff]  ;;  %v7496_v37 = vpack.c.bf16 %v2487_v27, %v2475_v26  ;;  %v7498_v39 = vpack.c.bf16 %v2512_v34, %v2500_v33  ;;  %v2560_v63 = vld [vmem:[%s10802_s29 + $0x44a8] sm:$0xff] }
 0x1b6   : > { %7465 = vmatpush1.bf16.msra.mxu0 %v7464_v50  ;;  %4352 = vmatmul.mubr.f32.vlgmr.msra.gmra.mrb[0].mxu1 %v11537_v45  ;;  %v2405_v50 = vld [vmem:[%s10802_s29 + $0x3fd0] sm:$0xff]  ;;  %v7506_v4 = vpack.c.bf16 %v2560_v63, %v2548_v61  ;;  %v2572_v11 = vld [vmem:[%s10802_s29 + $0x4508] sm:$0xff] }
 0x1b7   : > { %7977 = vmatpush1.bf16.msra.mxu1 %v7976_v51  ;;  %7467 = vmatprep.subr.bf16.mxu0 %v7466_v52  ;;  %v7994_v51 = vpack.c.bf16 %v2418_v41, %v2406_v40  ;;  %v2417_v52 = vld [vmem:[%s10802_s29 + $0x4030] sm:$0xff]  ;;  %v2499_v40 = vld [vmem:[%s10802_s29 + $0x42c0] sm:$0xff]  ;;  %v2584_v12 = vld [vmem:[%s10802_s29 + $0x4568] sm:$0xff] }
 0x1b8   : > { %7979 = vmatprep.subr.bf16.mxu1 %v7978_v56  ;;  %3854 = vmatprep.mubr.f32.mxu0 %v11548_v60  ;;  %v2442_v56 = vld [vmem:[%s10802_s29 + $0x40f8] sm:$0xff]  ;;  %v7996_v58 = vpack.c.bf16 %v2417_v52, %v2405_v50  ;;  %v2511_v41 = vld [vmem:[%s10802_s29 + $0x4320] sm:$0xff]  ;;  %v7510_v18 = vpack.c.bf16 %v2584_v12, %v2572_v11  ;;  %v2596_v26 = vld [vmem:[%s10802_s29 + $0x45c8] sm:$0xff] }
 0x1b9   : > { %4422 = vmatprep.mubr.f32.mxu1 %v11548_v60  ;;  %v2526_v50 = vld [vmem:[%s10802_s29 + $0x4398] sm:$0xff]  ;;  %v7500_v52 = vpack.c.bf16 %v2511_v41, %v2499_v40  ;;  %v2608_v27 = vld [vmem:[%s10802_s29 + $0x4628] sm:$0xff]  ;;  %v329_v11 = vld [vmem:[%s10821_s24 + $0x50] sm:$0xff] }
 0x1ba   : > { %7469 = vmatpush1.bf16.msra.mxu0 %v7468_v0  ;;  %v2429_v0 = vld [vmem:[%s10802_s29 + $0x4090] sm:$0xff]  ;;  %v7514_v34 = vpack.c.bf16 %v2608_v27, %v2596_v26  ;;  %v2620_v40 = vld [vmem:[%s10802_s29 + $0x4688] sm:$0xff]  ;;  %v2706_v26 = vld [vmem:[%s10802_s29 + $0x4938] sm:$0xff] }
 0x1bb   : > { %7981 = vmatpush1.bf16.msra.mxu1 %v7980_v1  ;;  %7471 = vmatprep.subr.bf16.mxu0 %v7470_v2  ;;  %v7998_v1 = vpack.c.bf16 %v2442_v56, %v2430_v55  ;;  %v2441_v2 = vld [vmem:[%s10802_s29 + $0x40f0] sm:$0xff]  ;;  %v2523_v55 = vld [vmem:[%s10802_s29 + $0x4380] sm:$0xff]  ;;  %v2632_v41 = vld [vmem:[%s10802_s29 + $0x46e8] sm:$0xff] }
 0x1bc   : > { %7983 = vmatprep.subr.bf16.mxu1 %v7982_v6  ;;  %v2466_v6 = vld [vmem:[%s10802_s29 + $0x41b8] sm:$0xff]  ;;  %v8000_v8 = vpack.c.bf16 %v2441_v2, %v2429_v0  ;;  %v2535_v56 = vld [vmem:[%s10802_s29 + $0x43e0] sm:$0xff]  ;;  %v7518_v49 = vpack.c.bf16 %v2632_v41, %v2620_v40  ;;  %v332_v27 = vld [vmem:[%s10821_s24 + $0x68] sm:$0xff] }
 0x1bd   : > { %v2550_v0 = vld [vmem:[%s10802_s29 + $0x4458] sm:$0xff]  ;;  %v7504_v2 = vpack.c.bf16 %v2535_v56, %v2523_v55  ;;  %v2644_v55 = vld [vmem:[%s10802_s29 + $0x4748] sm:$0xff]  ;;  %v11686_v40 = vmax.f32 %v332_v27, 0.0 }
 0x1be   : > { %7473 = vmatpush1.bf16.msra.mxu0 %v7472_v13  ;;  %v2453_v13 = vld [vmem:[%s10802_s29 + $0x4150] sm:$0xff]  ;;  %v2656_v56 = vld [vmem:[%s10802_s29 + $0x47a8] sm:$0xff]  ;;  %v2718_v41 = vld [vmem:[%s10802_s29 + $0x4998] sm:$0xff] }
 0x1bf   : > { %7985 = vmatpush1.bf16.msra.mxu1 %v7984_v14  ;;  %7475 = vmatprep.subr.bf16.mxu0 %v7474_v15  ;;  %v8002_v14 = vpack.c.bf16 %v2466_v6, %v2454_v5  ;;  %v2465_v15 = vld [vmem:[%s10802_s29 + $0x41b0] sm:$0xff]  ;;  %v2547_v5 = vld [vmem:[%s10802_s29 + $0x4440] sm:$0xff]  ;;  %v7522_v63 = vpack.c.bf16 %v2656_v56, %v2644_v55  ;;  %v2752_v55 = vld [vmem:[%s10802_s29 + $0x4aa8] sm:$0xff] }
 0x1c0   : > { %7987 = vmatprep.subr.bf16.mxu1 %v7986_v21  ;;  %v2490_v21 = vld [vmem:[%s10802_s29 + $0x4278] sm:$0xff]  ;;  %v8004_v23 = vpack.c.bf16 %v2465_v15, %v2453_v13  ;;  %v2559_v6 = vld [vmem:[%s10802_s29 + $0x44a0] sm:$0xff] }
 0x1c1   : > { %v2574_v13 = vld [vmem:[%s10802_s29 + $0x4518] sm:$0xff]  ;;  %v7508_v15 = vpack.c.bf16 %v2559_v6, %v2547_v5  ;;  %v2668_v5 = vld [vmem:[%s10802_s29 + $0x4808] sm:$0xff] }
 0x1c2   : > { %7477 = vmatpush1.bf16.msra.mxu0 %v7476_v29  ;;  %v2477_v29 = vld [vmem:[%s10802_s29 + $0x4210] sm:$0xff]  ;;  %v2680_v6 = vld [vmem:[%s10802_s29 + $0x4868] sm:$0xff]  ;;  %v2742_v56 = vld [vmem:[%s10802_s29 + $0x4a58] sm:$0xff] }
 0x1c3   : > { %7989 = vmatpush1.bf16.msra.mxu1 %v7988_v30  ;;  %7479 = vmatprep.subr.bf16.mxu0 %v7478_v32  ;;  %v8006_v30 = vpack.c.bf16 %v2490_v21, %v2478_v19  ;;  %v2489_v32 = vld [vmem:[%s10802_s29 + $0x4270] sm:$0xff]  ;;  %v2571_v19 = vld [vmem:[%s10802_s29 + $0x4500] sm:$0xff] }
 0x1c4   : > { %7991 = vmatprep.subr.bf16.mxu1 %v7990_v36  ;;  %v2514_v36 = vld [vmem:[%s10802_s29 + $0x4338] sm:$0xff]  ;;  %v8008_v38 = vpack.c.bf16 %v2489_v32, %v2477_v29  ;;  %v2583_v21 = vld [vmem:[%s10802_s29 + $0x4560] sm:$0xff] }
 0x1c5   : > { %v2598_v29 = vld [vmem:[%s10802_s29 + $0x45d8] sm:$0xff]  ;;  %v7512_v32 = vpack.c.bf16 %v2583_v21, %v2571_v19  ;;  %v2681_v19 = vld [vmem:[%s10802_s29 + $0x4870] sm:$0xff]  ;;  %v2692_v21 = vld [vmem:[%s10802_s29 + $0x48c8] sm:$0xff] }
 0x1c6   : > { %7481 = vmatpush1.bf16.msra.mxu0 %v7480_v42  ;;  %v2501_v42 = vld [vmem:[%s10802_s29 + $0x42d0] sm:$0xff] }
 0x1c7   : > { %7993 = vmatpush1.bf16.msra.mxu1 %v7992_v44  ;;  %7483 = vmatprep.subr.bf16.mxu0 %v7482_v46  ;;  %v8010_v44 = vpack.c.bf16 %v2514_v36, %v2502_v35  ;;  %v2513_v46 = vld [vmem:[%s10802_s29 + $0x4330] sm:$0xff]  ;;  %v2595_v35 = vld [vmem:[%s10802_s29 + $0x45c0] sm:$0xff] }
 0x1c8   : > { %7995 = vmatprep.subr.bf16.mxu1 %v7994_v51  ;;  %v2538_v51 = vld [vmem:[%s10802_s29 + $0x43f8] sm:$0xff]  ;;  %v8012_v53 = vpack.c.bf16 %v2513_v46, %v2501_v42  ;;  %v2607_v36 = vld [vmem:[%s10802_s29 + $0x4620] sm:$0xff] }
 0x1c9   : > { %v2622_v42 = vld [vmem:[%s10802_s29 + $0x4698] sm:$0xff]  ;;  %v7516_v46 = vpack.c.bf16 %v2607_v36, %v2595_v35  ;;  %v2693_v35 = vld [vmem:[%s10802_s29 + $0x48d0] sm:$0xff] }
 0x1ca   : > { %7485 = vmatpush1.bf16.msra.mxu0 %v7484_v57  ;;  %v2525_v57 = vld [vmem:[%s10802_s29 + $0x4390] sm:$0xff] }
 0x1cb   : > { %7997 = vmatpush1.bf16.msra.mxu1 %v7996_v58  ;;  %7487 = vmatprep.subr.bf16.mxu0 %v7486_v59  ;;  %v8014_v58 = vpack.c.bf16 %v2538_v51, %v2526_v50  ;;  %v2537_v59 = vld [vmem:[%s10802_s29 + $0x43f0] sm:$0xff]  ;;  %v2619_v50 = vld [vmem:[%s10802_s29 + $0x4680] sm:$0xff] }
 0x1cc   : > { %7999 = vmatprep.subr.bf16.mxu1 %v7998_v1  ;;  %v2562_v1 = vld [vmem:[%s10802_s29 + $0x44b8] sm:$0xff]  ;;  %v8016_v3 = vpack.c.bf16 %v2537_v59, %v2525_v57  ;;  %v2631_v51 = vld [vmem:[%s10802_s29 + $0x46e0] sm:$0xff] }
 0x1cd   : > { %v2646_v57 = vld [vmem:[%s10802_s29 + $0x4758] sm:$0xff]  ;;  %v7520_v59 = vpack.c.bf16 %v2631_v51, %v2619_v50  ;;  %v2727_v50 = vld [vmem:[%s10802_s29 + $0x49e0] sm:$0xff]  ;;  %v2717_v51 = vld [vmem:[%s10802_s29 + $0x4990] sm:$0xff] }
 0x1ce   : > { %7489 = vmatpush1.bf16.msra.mxu0 %v7488_v7  ;;  %v2549_v7 = vld [vmem:[%s10802_s29 + $0x4450] sm:$0xff] }
 0x1cf   : > { %8001 = vmatpush1.bf16.msra.mxu1 %v8000_v8  ;;  %7491 = vmatprep.subr.bf16.mxu0 %v7490_v10  ;;  %v8018_v8 = vpack.c.bf16 %v2562_v1, %v2550_v0  ;;  %v2561_v10 = vld [vmem:[%s10802_s29 + $0x44b0] sm:$0xff]  ;;  %v2643_v0 = vld [vmem:[%s10802_s29 + $0x4740] sm:$0xff] }
 0x1d0   : > { %8003 = vmatprep.subr.bf16.mxu1 %v8002_v14  ;;  %v2586_v14 = vld [vmem:[%s10802_s29 + $0x4578] sm:$0xff]  ;;  %v8020_v17 = vpack.c.bf16 %v2561_v10, %v2549_v7  ;;  %v2655_v1 = vld [vmem:[%s10802_s29 + $0x47a0] sm:$0xff] }
 0x1d1   : > { %v2670_v7 = vld [vmem:[%s10802_s29 + $0x4818] sm:$0xff]  ;;  %v7524_v10 = vpack.c.bf16 %v2655_v1, %v2643_v0  ;;  %v2751_v0 = vld [vmem:[%s10802_s29 + $0x4aa0] sm:$0xff]  ;;  %v2741_v1 = vld [vmem:[%s10802_s29 + $0x4a50] sm:$0xff] }
 0x1d2   : > { %7493 = vmatpush1.bf16.msra.mxu0 %v7492_v22  ;;  %v2573_v22 = vld [vmem:[%s10802_s29 + $0x4510] sm:$0xff] }
 0x1d3   : > { %8005 = vmatpush1.bf16.msra.mxu1 %v8004_v23  ;;  %7495 = vmatprep.subr.bf16.mxu0 %v7494_v24  ;;  %v8022_v23 = vpack.c.bf16 %v2586_v14, %v2574_v13  ;;  %v2585_v24 = vld [vmem:[%s10802_s29 + $0x4570] sm:$0xff]  ;;  %v7526_v13 = vpack.c.bf16 %v2680_v6, %v2668_v5  ;;  %v2667_v14 = vld [vmem:[%s10802_s29 + $0x4800] sm:$0xff]  ;;  %v2776_v5 = vld [vmem:[%s10802_s29 + $0x4b68] sm:$0xff] }
 0x1d4   : > { %8007 = vmatprep.subr.bf16.mxu1 %v8006_v30  ;;  %v2610_v30 = vld [vmem:[%s10802_s29 + $0x4638] sm:$0xff]  ;;  %v8024_v33 = vpack.c.bf16 %v2585_v24, %v2573_v22  ;;  %v2704_v22 = vld [vmem:[%s10802_s29 + $0x4928] sm:$0xff] }
 0x1d5   : > { %v2694_v24 = vld [vmem:[%s10802_s29 + $0x48d8] sm:$0xff] }
 0x1d6   : > { %7497 = vmatpush1.bf16.msra.mxu0 %v7496_v37  ;;  %v2597_v37 = vld [vmem:[%s10802_s29 + $0x45d0] sm:$0xff]  ;;  %v8042_v36 = vpack.c.bf16 %v2706_v26, %v2694_v24  ;;  %v2766_v6 = vld [vmem:[%s10802_s29 + $0x4b18] sm:$0xff] }
 0x1d7   : > { %8009 = vmatpush1.bf16.msra.mxu1 %v8008_v38  ;;  %7499 = vmatprep.subr.bf16.mxu0 %v7498_v39  ;;  %v8026_v38 = vpack.c.bf16 %v2610_v30, %v2598_v29  ;;  %v2609_v39 = vld [vmem:[%s10802_s29 + $0x4630] sm:$0xff] }
 0x1d8   : > { %8011 = vmatprep.subr.bf16.mxu1 %v8010_v44  ;;  %v2634_v44 = vld [vmem:[%s10802_s29 + $0x46f8] sm:$0xff]  ;;  %v8028_v47 = vpack.c.bf16 %v2609_v39, %v2597_v37  ;;  %v2705_v37 = vld [vmem:[%s10802_s29 + $0x4930] sm:$0xff]  ;;  %v2728_v39 = vld [vmem:[%s10802_s29 + $0x49e8] sm:$0xff] }
 0x1da   : > { %7501 = vmatpush1.bf16.msra.mxu0 %v7500_v52  ;;  %v2621_v52 = vld [vmem:[%s10802_s29 + $0x4690] sm:$0xff] }
 0x1db   : > { %8013 = vmatpush1.bf16.msra.mxu1 %v8012_v53  ;;  %7503 = vmatprep.subr.bf16.mxu0 %v7502_v54  ;;  %v8030_v53 = vpack.c.bf16 %v2634_v44, %v2622_v42  ;;  %v2633_v54 = vld [vmem:[%s10802_s29 + $0x46f0] sm:$0xff]  ;;  %v2730_v42 = vld [vmem:[%s10802_s29 + $0x49f8] sm:$0xff] }
 0x1dc   : > { %8015 = vmatprep.subr.bf16.mxu1 %v8014_v58  ;;  %v2658_v58 = vld [vmem:[%s10802_s29 + $0x47b8] sm:$0xff]  ;;  %v8032_v61 = vpack.c.bf16 %v2633_v54, %v2621_v52  ;;  %v8046_v52 = vpack.c.bf16 %v2730_v42, %v2718_v41  ;;  %v2740_v54 = vld [vmem:[%s10802_s29 + $0x4a48] sm:$0xff] }
 0x1de   : > { %7505 = vmatpush1.bf16.msra.mxu0 %v7504_v2  ;;  %v2645_v2 = vld [vmem:[%s10802_s29 + $0x4750] sm:$0xff] }
 0x1df   : > { %8017 = vmatpush1.bf16.msra.mxu1 %v8016_v3  ;;  %7507 = vmatprep.subr.bf16.mxu0 %v7506_v4  ;;  %v8034_v3 = vpack.c.bf16 %v2658_v58, %v2646_v57  ;;  %v2657_v4 = vld [vmem:[%s10802_s29 + $0x47b0] sm:$0xff]  ;;  %v2754_v57 = vld [vmem:[%s10802_s29 + $0x4ab8] sm:$0xff] }
 0x1e0   : > { %8019 = vmatprep.subr.bf16.mxu1 %v8018_v8  ;;  %v2682_v8 = vld [vmem:[%s10802_s29 + $0x4878] sm:$0xff]  ;;  %v8036_v12 = vpack.c.bf16 %v2657_v4, %v2645_v2  ;;  %v8050_v2 = vpack.c.bf16 %v2754_v57, %v2742_v56  ;;  %v2764_v4 = vld [vmem:[%s10802_s29 + $0x4b08] sm:$0xff] }
 0x1e2   : > { %7509 = vmatpush1.bf16.msra.mxu0 %v7508_v15  ;;  %v2679_v15 = vld [vmem:[%s10802_s29 + $0x4860] sm:$0xff] }
 0x1e3   : > { %8021 = vmatpush1.bf16.msra.mxu1 %v8020_v17  ;;  %7511 = vmatprep.subr.bf16.mxu0 %v7510_v18  ;;  %v2669_v17 = vld [vmem:[%s10802_s29 + $0x4810] sm:$0xff]  ;;  %v8038_v18 = vpack.c.bf16 %v2682_v8, %v2670_v7  ;;  %v7528_v29 = vpack.c.bf16 %v2679_v15, %v2667_v14  ;;  %v2778_v7 = vld [vmem:[%s10802_s29 + $0x4b78] sm:$0xff] }
 0x1e4   : > { %8023 = vmatprep.subr.bf16.mxu1 %v8022_v23  ;;  %v11675_v23 = vmax.f32 %v329_v11, 0.0  ;;  %v8040_v30 = vpack.c.bf16 %v2681_v19, %v2669_v17  ;;  %v7542_v11 = vpack.c.bf16 %v2776_v5, %v2764_v4  ;;  %v2765_v14 = vld [vmem:[%s10802_s29 + $0x4b10] sm:$0xff]  ;;  %v8054_v15 = vpack.c.bf16 %v2778_v7, %v2766_v6  ;;  %v2800_v19 = vld [vmem:[%s10802_s29 + $0x4c28] sm:$0xff]  ;;  %v2874_v4 = vld [vmem:[%s10802_s29 + $0x4e78] sm:$0xff] }
 0x1e5   : > { %v2777_v17 = vld [vmem:[%s10802_s29 + $0x4b70] sm:$0xff] }
 0x1e6   : > { %7513 = vmatpush1.bf16.msra.mxu0 %v7512_v32  ;;  %v7530_v32 = vpack.c.bf16 %v2704_v22, %v2692_v21  ;;  %v2790_v21 = vld [vmem:[%s10802_s29 + $0x4bd8] sm:$0xff]  ;;  %v8056_v26 = vpack.c.bf16 %v2777_v17, %v2765_v14  ;;  %v2884_v14 = vld [vmem:[%s10802_s29 + $0x4ec8] sm:$0xff] }
 0x1e7   : > { %8025 = vmatpush1.bf16.msra.mxu1 %v8024_v33  ;;  %7515 = vmatprep.subr.bf16.mxu0 %v7514_v34  ;;  %v2691_v33 = vld [vmem:[%s10802_s29 + $0x48c0] sm:$0xff]  ;;  %v2802_v22 = vld [vmem:[%s10802_s29 + $0x4c38] sm:$0xff] }
 0x1e8   : > { %8027 = vmatprep.subr.bf16.mxu1 %v8026_v38  ;;  %v2703_v34 = vld [vmem:[%s10802_s29 + $0x4920] sm:$0xff]  ;;  %v2716_v38 = vld [vmem:[%s10802_s29 + $0x4988] sm:$0xff]  ;;  %v2886_v17 = vld [vmem:[%s10802_s29 + $0x4ed8] sm:$0xff] }
 0x1e9   : > { %v7532_v44 = vpack.c.bf16 %v2703_v34, %v2691_v33  ;;  %v8058_v33 = vpack.c.bf16 %v2802_v22, %v2790_v21  ;;  %v2801_v34 = vld [vmem:[%s10802_s29 + $0x4c30] sm:$0xff] }
 0x1ea   : > { %7517 = vmatpush1.bf16.msra.mxu0 %v7516_v46  ;;  %v8044_v46 = vpack.c.bf16 %v2705_v37, %v2693_v35  ;;  %v2812_v35 = vld [vmem:[%s10802_s29 + $0x4c88] sm:$0xff]  ;;  %v2814_v37 = vld [vmem:[%s10802_s29 + $0x4c98] sm:$0xff] }
 0x1eb   : > { %8029 = vmatpush1.bf16.msra.mxu1 %v8028_v47  ;;  %7519 = vmatprep.subr.bf16.mxu0 %v7518_v49  ;;  %v7534_v47 = vpack.c.bf16 %v2728_v39, %v2716_v38  ;;  %v2715_v49 = vld [vmem:[%s10802_s29 + $0x4980] sm:$0xff]  ;;  %v2826_v38 = vld [vmem:[%s10802_s29 + $0x4cf8] sm:$0xff] }
 0x1ec   : > { %8031 = vmatprep.subr.bf16.mxu1 %v8030_v53  ;;  %v2729_v53 = vld [vmem:[%s10802_s29 + $0x49f0] sm:$0xff]  ;;  %v7536_v58 = vpack.c.bf16 %v2727_v50, %v2715_v49  ;;  %v8062_v49 = vpack.c.bf16 %v2826_v38, %v2814_v37 }
 0x1ed   : > { %v2825_v50 = vld [vmem:[%s10802_s29 + $0x4cf0] sm:$0xff] }
 0x1ee   : > { %7521 = vmatpush1.bf16.msra.mxu0 %v7520_v59  ;;  %v8048_v59 = vpack.c.bf16 %v2729_v53, %v2717_v51  ;;  %v2836_v51 = vld [vmem:[%s10802_s29 + $0x4d48] sm:$0xff]  ;;  %v2838_v53 = vld [vmem:[%s10802_s29 + $0x4d58] sm:$0xff] }
 0x1ef   : > { %8033 = vmatpush1.bf16.msra.mxu1 %v8032_v61  ;;  %7523 = vmatprep.subr.bf16.mxu0 %v7522_v63  ;;  %v7538_v61 = vpack.c.bf16 %v2752_v55, %v2740_v54  ;;  %v2739_v63 = vld [vmem:[%s10802_s29 + $0x4a40] sm:$0xff]  ;;  %v2850_v54 = vld [vmem:[%s10802_s29 + $0x4db8] sm:$0xff] }
 0x1f0   : > { %8035 = vmatprep.subr.bf16.mxu1 %v8034_v3  ;;  %v2753_v3 = vld [vmem:[%s10802_s29 + $0x4ab0] sm:$0xff]  ;;  %v7540_v8 = vpack.c.bf16 %v2751_v0, %v2739_v63  ;;  %v8066_v63 = vpack.c.bf16 %v2850_v54, %v2838_v53 }
 0x1f1   : > { %v2849_v0 = vld [vmem:[%s10802_s29 + $0x4db0] sm:$0xff] }
 0x1f2   : > { %7525 = vmatpush1.bf16.msra.mxu0 %v7524_v10  ;;  %v8052_v10 = vpack.c.bf16 %v2753_v3, %v2741_v1  ;;  %v2860_v1 = vld [vmem:[%s10802_s29 + $0x4e08] sm:$0xff]  ;;  %v2862_v3 = vld [vmem:[%s10802_s29 + $0x4e18] sm:$0xff] }
 0x1f3   : > { %8037 = vmatpush1.bf16.msra.mxu1 %v8036_v12  ;;  %7527 = vmatprep.subr.bf16.mxu0 %v7526_v13  ;;  %v2763_v12 = vld [vmem:[%s10802_s29 + $0x4b00] sm:$0xff] }
 0x1f4   : > { %8039 = vmatprep.subr.bf16.mxu1 %v8038_v18  ;;  %v2775_v13 = vld [vmem:[%s10802_s29 + $0x4b60] sm:$0xff]  ;;  %v2788_v18 = vld [vmem:[%s10802_s29 + $0x4bc8] sm:$0xff] }
 0x1f5   : > { %3855 = vmatmul.mubr.f32.vlgmr.msra.gmra.mrb[0].mxu0 %v11675_v23  ;;  %v7544_v24 = vpack.c.bf16 %v2775_v13, %v2763_v12  ;;  %v7546_v27 = vpack.c.bf16 %v2800_v19, %v2788_v18  ;;  %v8070_v12 = vpack.c.bf16 %v2874_v4, %v2862_v3  ;;  %v2873_v13 = vld [vmem:[%s10802_s29 + $0x4e70] sm:$0xff]  ;;  %v2898_v18 = vld [vmem:[%s10802_s29 + $0x4f38] sm:$0xff] }
 0x1f6   : > { %7529 = vmatpush1.bf16.msra.mxu0 %v7528_v29  ;;  %4423 = vmatmul.mubr.f32.vlgmr.msra.gmra.mrb[0].mxu1 %v11675_v23  ;;  %v2787_v29 = vld [vmem:[%s10802_s29 + $0x4bc0] sm:$0xff] }
 0x1f7   : > { %8041 = vmatpush1.bf16.msra.mxu1 %v8040_v30  ;;  %7531 = vmatprep.subr.bf16.mxu0 %v7530_v32  ;;  %v2799_v30 = vld [vmem:[%s10802_s29 + $0x4c20] sm:$0xff]  ;;  %v2789_v32 = vld [vmem:[%s10802_s29 + $0x4bd0] sm:$0xff] }
 0x1f8   : > { %8043 = vmatprep.subr.bf16.mxu1 %v8042_v36  ;;  %3925 = vmatprep.mubr.f32.mxu0 %v11686_v40  ;;  %v2824_v36 = vld [vmem:[%s10802_s29 + $0x4ce8] sm:$0xff]  ;;  %v7548_v39 = vpack.c.bf16 %v2799_v30, %v2787_v29  ;;  %v8060_v41 = vpack.c.bf16 %v2801_v34, %v2789_v32  ;;  %v8074_v29 = vpack.c.bf16 %v2898_v18, %v2886_v17  ;;  %v2897_v30 = vld [vmem:[%s10802_s29 + $0x4f30] sm:$0xff]  ;;  %v2910_v34 = vld [vmem:[%s10802_s29 + $0x4f98] sm:$0xff] }
 0x1f9   : > { %4493 = vmatprep.mubr.f32.mxu1 %v11686_v40  ;;  %v7550_v42 = vpack.c.bf16 %v2824_v36, %v2812_v35  ;;  %v2908_v32 = vld [vmem:[%s10802_s29 + $0x4f88] sm:$0xff]  ;;  %v2922_v35 = vld [vmem:[%s10802_s29 + $0x4ff8] sm:$0xff] }
 0x1fa   : > { %7533 = vmatpush1.bf16.msra.mxu0 %v7532_v44  ;;  %v2811_v44 = vld [vmem:[%s10802_s29 + $0x4c80] sm:$0xff] }
 0x1fb   : > { %8045 = vmatpush1.bf16.msra.mxu1 %v8044_v46  ;;  %7535 = vmatprep.subr.bf16.mxu0 %v7534_v47  ;;  %v2823_v46 = vld [vmem:[%s10802_s29 + $0x4ce0] sm:$0xff]  ;;  %v2813_v47 = vld [vmem:[%s10802_s29 + $0x4c90] sm:$0xff] }
 0x1fc   : > { %8047 = vmatprep.subr.bf16.mxu1 %v8046_v52  ;;  %v2848_v52 = vld [vmem:[%s10802_s29 + $0x4da8] sm:$0xff]  ;;  %v7552_v55 = vpack.c.bf16 %v2823_v46, %v2811_v44  ;;  %v8064_v56 = vpack.c.bf16 %v2825_v50, %v2813_v47  ;;  %v8078_v44 = vpack.c.bf16 %v2922_v35, %v2910_v34  ;;  %v2921_v46 = vld [vmem:[%s10802_s29 + $0x4ff0] sm:$0xff]  ;;  %v2934_v50 = vld [vmem:[%s10802_s29 + $0x5058] sm:$0xff] }
 0x1fd   : > { %v7554_v57 = vpack.c.bf16 %v2848_v52, %v2836_v51  ;;  %v2932_v47 = vld [vmem:[%s10802_s29 + $0x5048] sm:$0xff]  ;;  %v2946_v51 = vld [vmem:[%s10802_s29 + $0x50b8] sm:$0xff] }
 0x1fe   : > { %7537 = vmatpush1.bf16.msra.mxu0 %v7536_v58  ;;  %v2835_v58 = vld [vmem:[%s10802_s29 + $0x4d40] sm:$0xff] }
 0x1ff   : > { %8049 = vmatpush1.bf16.msra.mxu1 %v8048_v59  ;;  %7539 = vmatprep.subr.bf16.mxu0 %v7538_v61  ;;  %v2847_v59 = vld [vmem:[%s10802_s29 + $0x4da0] sm:$0xff]  ;;  %v2837_v61 = vld [vmem:[%s10802_s29 + $0x4d50] sm:$0xff] }
 0x200   : > { %8051 = vmatprep.subr.bf16.mxu1 %v8050_v2  ;;  %v2872_v2 = vld [vmem:[%s10802_s29 + $0x4e68] sm:$0xff]  ;;  %v7556_v5 = vpack.c.bf16 %v2847_v59, %v2835_v58  ;;  %v8068_v6 = vpack.c.bf16 %v2849_v0, %v2837_v61  ;;  %v8082_v58 = vpack.c.bf16 %v2946_v51, %v2934_v50  ;;  %v2945_v59 = vld [vmem:[%s10802_s29 + $0x50b0] sm:$0xff]  ;;  %v2958_v0 = vld [vmem:[%s10802_s29 + $0x5118] sm:$0xff] }
 0x201   : > { %v7558_v7 = vpack.c.bf16 %v2872_v2, %v2860_v1  ;;  %v2956_v61 = vld [vmem:[%s10802_s29 + $0x5108] sm:$0xff]  ;;  %v2970_v1 = vld [vmem:[%s10802_s29 + $0x5178] sm:$0xff] }
 0x202   : > { %7541 = vmatpush1.bf16.msra.mxu0 %v7540_v8  ;;  %v2859_v8 = vld [vmem:[%s10802_s29 + $0x4e00] sm:$0xff] }
 0x203   : > { %8053 = vmatpush1.bf16.msra.mxu1 %v8052_v10  ;;  %7543 = vmatprep.subr.bf16.mxu0 %v7542_v11  ;;  %v2871_v10 = vld [vmem:[%s10802_s29 + $0x4e60] sm:$0xff]  ;;  %v2861_v11 = vld [vmem:[%s10802_s29 + $0x4e10] sm:$0xff] }
 0x204   : > { %8055 = vmatprep.subr.bf16.mxu1 %v8054_v15  ;;  %v2896_v15 = vld [vmem:[%s10802_s29 + $0x4f28] sm:$0xff]  ;;  %v7560_v19 = vpack.c.bf16 %v2871_v10, %v2859_v8  ;;  %v8072_v21 = vpack.c.bf16 %v2873_v13, %v2861_v11  ;;  %v8086_v8 = vpack.c.bf16 %v2970_v1, %v2958_v0  ;;  %v2969_v10 = vld [vmem:[%s10802_s29 + $0x5170] sm:$0xff]  ;;  %v2982_v13 = vld [vmem:[%s10802_s29 + $0x51d8] sm:$0xff] }
 0x205   : > { %v7562_v22 = vpack.c.bf16 %v2896_v15, %v2884_v14  ;;  %v2980_v11 = vld [vmem:[%s10802_s29 + $0x51c8] sm:$0xff]  ;;  %v2994_v14 = vld [vmem:[%s10802_s29 + $0x5238] sm:$0xff]  ;;  %v331_v0 = vld [vmem:[%s10821_s24 + $0x60] sm:$0xff] }
 0x206   : > { %7545 = vmatpush1.bf16.msra.mxu0 %v7544_v24  ;;  %v2883_v24 = vld [vmem:[%s10802_s29 + $0x4ec0] sm:$0xff] }
 0x207   : > { %8057 = vmatpush1.bf16.msra.mxu1 %v8056_v26  ;;  %7547 = vmatprep.subr.bf16.mxu0 %v7546_v27  ;;  %v2895_v26 = vld [vmem:[%s10802_s29 + $0x4f20] sm:$0xff]  ;;  %v2885_v27 = vld [vmem:[%s10802_s29 + $0x4ed0] sm:$0xff] }
 0x208   : > { %8059 = vmatprep.subr.bf16.mxu1 %v8058_v33  ;;  %v2920_v33 = vld [vmem:[%s10802_s29 + $0x4fe8] sm:$0xff]  ;;  %v7564_v36 = vpack.c.bf16 %v2895_v26, %v2883_v24  ;;  %v8076_v37 = vpack.c.bf16 %v2897_v30, %v2885_v27  ;;  %v8090_v24 = vpack.c.bf16 %v2994_v14, %v2982_v13  ;;  %v2993_v26 = vld [vmem:[%s10802_s29 + $0x5230] sm:$0xff]  ;;  %v3006_v30 = vld [vmem:[%s10802_s29 + $0x5298] sm:$0xff] }
 0x209   : > { %v7566_v38 = vpack.c.bf16 %v2920_v33, %v2908_v32  ;;  %v3004_v27 = vld [vmem:[%s10802_s29 + $0x5288] sm:$0xff]  ;;  %v3018_v32 = vld [vmem:[%s10802_s29 + $0x52f8] sm:$0xff] }
 0x20a   : > { %7549 = vmatpush1.bf16.msra.mxu0 %v7548_v39  ;;  %v2907_v39 = vld [vmem:[%s10802_s29 + $0x4f80] sm:$0xff]  ;;  %v3090_v13 = vld [vmem:[%s10802_s29 + $0x5538] sm:$0xff] }
 0x20b   : > { %8061 = vmatpush1.bf16.msra.mxu1 %v8060_v41  ;;  %7551 = vmatprep.subr.bf16.mxu0 %v7550_v42  ;;  %v2919_v41 = vld [vmem:[%s10802_s29 + $0x4fe0] sm:$0xff]  ;;  %v2909_v42 = vld [vmem:[%s10802_s29 + $0x4f90] sm:$0xff]  ;;  %v334_v14 = vld [vmem:[%s10821_s24 + $0x78] sm:$0xff] }
 0x20c   : > { %8063 = vmatprep.subr.bf16.mxu1 %v8062_v49  ;;  %v2944_v49 = vld [vmem:[%s10802_s29 + $0x50a8] sm:$0xff]  ;;  %v7568_v52 = vpack.c.bf16 %v2919_v41, %v2907_v39  ;;  %v8080_v53 = vpack.c.bf16 %v2921_v46, %v2909_v42  ;;  %v8094_v39 = vpack.c.bf16 %v3018_v32, %v3006_v30  ;;  %v3017_v41 = vld [vmem:[%s10802_s29 + $0x52f0] sm:$0xff]  ;;  %v3030_v46 = vld [vmem:[%s10802_s29 + $0x5358] sm:$0xff]  ;;  %v11824_v30 = vmax.f32 %v334_v14, 0.0 }
 0x20d   : > { %v7570_v54 = vpack.c.bf16 %v2944_v49, %v2932_v47  ;;  %v3028_v42 = vld [vmem:[%s10802_s29 + $0x5348] sm:$0xff]  ;;  %v3042_v47 = vld [vmem:[%s10802_s29 + $0x53b8] sm:$0xff] }
 0x20e   : > { %7553 = vmatpush1.bf16.msra.mxu0 %v7552_v55  ;;  %v2931_v55 = vld [vmem:[%s10802_s29 + $0x5040] sm:$0xff]  ;;  %v3102_v32 = vld [vmem:[%s10802_s29 + $0x5598] sm:$0xff] }
 0x20f   : > { %8065 = vmatpush1.bf16.msra.mxu1 %v8064_v56  ;;  %7555 = vmatprep.subr.bf16.mxu0 %v7554_v57  ;;  %v2943_v56 = vld [vmem:[%s10802_s29 + $0x50a0] sm:$0xff]  ;;  %v2933_v57 = vld [vmem:[%s10802_s29 + $0x5050] sm:$0xff] }
 0x210   : > { %8067 = vmatprep.subr.bf16.mxu1 %v8066_v63  ;;  %v2968_v63 = vld [vmem:[%s10802_s29 + $0x5168] sm:$0xff]  ;;  %v7572_v2 = vpack.c.bf16 %v2943_v56, %v2931_v55  ;;  %v8084_v3 = vpack.c.bf16 %v2945_v59, %v2933_v57  ;;  %v8098_v55 = vpack.c.bf16 %v3042_v47, %v3030_v46  ;;  %v3041_v56 = vld [vmem:[%s10802_s29 + $0x53b0] sm:$0xff]  ;;  %v3054_v59 = vld [vmem:[%s10802_s29 + $0x5418] sm:$0xff] }
 0x211   : > { %v7574_v4 = vpack.c.bf16 %v2968_v63, %v2956_v61  ;;  %v3052_v57 = vld [vmem:[%s10802_s29 + $0x5408] sm:$0xff]  ;;  %v3066_v61 = vld [vmem:[%s10802_s29 + $0x5478] sm:$0xff] }
 0x212   : > { %7557 = vmatpush1.bf16.msra.mxu0 %v7556_v5  ;;  %v2955_v5 = vld [vmem:[%s10802_s29 + $0x5100] sm:$0xff]  ;;  %v3136_v46 = vld [vmem:[%s10802_s29 + $0x56a8] sm:$0xff]  ;;  %v3126_v47 = vld [vmem:[%s10802_s29 + $0x5658] sm:$0xff] }
 0x213   : > { %8069 = vmatpush1.bf16.msra.mxu1 %v8068_v6  ;;  %7559 = vmatprep.subr.bf16.mxu0 %v7558_v7  ;;  %v2967_v6 = vld [vmem:[%s10802_s29 + $0x5160] sm:$0xff]  ;;  %v2957_v7 = vld [vmem:[%s10802_s29 + $0x5110] sm:$0xff] }
 0x214   : > { %8071 = vmatprep.subr.bf16.mxu1 %v8070_v12  ;;  %v2992_v12 = vld [vmem:[%s10802_s29 + $0x5228] sm:$0xff]  ;;  %v7576_v15 = vpack.c.bf16 %v2967_v6, %v2955_v5  ;;  %v8088_v17 = vpack.c.bf16 %v2969_v10, %v2957_v7  ;;  %v3053_v5 = vld [vmem:[%s10802_s29 + $0x5410] sm:$0xff]  ;;  %v8102_v6 = vpack.c.bf16 %v3066_v61, %v3054_v59  ;;  %v3150_v61 = vld [vmem:[%s10802_s29 + $0x5718] sm:$0xff] }
 0x215   : > { %v7578_v18 = vpack.c.bf16 %v2992_v12, %v2980_v11  ;;  %v3065_v7 = vld [vmem:[%s10802_s29 + $0x5470] sm:$0xff]  ;;  %v3088_v10 = vld [vmem:[%s10802_s29 + $0x5528] sm:$0xff]  ;;  %v11813_v11 = vmax.f32 %v331_v0, 0.0  ;;  %v3078_v12 = vld [vmem:[%s10802_s29 + $0x54d8] sm:$0xff] }
 0x216   : > { %7561 = vmatpush1.bf16.msra.mxu0 %v7560_v19  ;;  %v2979_v19 = vld [vmem:[%s10802_s29 + $0x51c0] sm:$0xff]  ;;  %v3160_v59 = vld [vmem:[%s10802_s29 + $0x5768] sm:$0xff] }
 0x217   : > { %8073 = vmatpush1.bf16.msra.mxu1 %v8072_v21  ;;  %7563 = vmatprep.subr.bf16.mxu0 %v7562_v22  ;;  %v2991_v21 = vld [vmem:[%s10802_s29 + $0x5220] sm:$0xff]  ;;  %v2981_v22 = vld [vmem:[%s10802_s29 + $0x51d0] sm:$0xff] }
 0x218   : > { %8075 = vmatprep.subr.bf16.mxu1 %v8074_v29  ;;  %v3016_v29 = vld [vmem:[%s10802_s29 + $0x52e8] sm:$0xff]  ;;  %v7580_v33 = vpack.c.bf16 %v2991_v21, %v2979_v19  ;;  %v8092_v34 = vpack.c.bf16 %v2993_v26, %v2981_v22  ;;  %v3075_v19 = vld [vmem:[%s10802_s29 + $0x54c0] sm:$0xff]  ;;  %v3077_v22 = vld [vmem:[%s10802_s29 + $0x54d0] sm:$0xff] }
 0x219   : > { %v7582_v35 = vpack.c.bf16 %v3016_v29, %v3004_v27  ;;  %v3087_v21 = vld [vmem:[%s10802_s29 + $0x5520] sm:$0xff]  ;;  %v3089_v26 = vld [vmem:[%s10802_s29 + $0x5530] sm:$0xff]  ;;  %v3100_v27 = vld [vmem:[%s10802_s29 + $0x5588] sm:$0xff] }
 0x21a   : > { %7565 = vmatpush1.bf16.msra.mxu0 %v7564_v36  ;;  %v3003_v36 = vld [vmem:[%s10802_s29 + $0x5280] sm:$0xff]  ;;  %v3112_v29 = vld [vmem:[%s10802_s29 + $0x55e8] sm:$0xff] }
 0x21b   : > { %8077 = vmatpush1.bf16.msra.mxu1 %v8076_v37  ;;  %7567 = vmatprep.subr.bf16.mxu0 %v7566_v38  ;;  %v3015_v37 = vld [vmem:[%s10802_s29 + $0x52e0] sm:$0xff]  ;;  %v3005_v38 = vld [vmem:[%s10802_s29 + $0x5290] sm:$0xff] }
 0x21c   : > { %8079 = vmatprep.subr.bf16.mxu1 %v8078_v44  ;;  %v3040_v44 = vld [vmem:[%s10802_s29 + $0x53a8] sm:$0xff]  ;;  %v7584_v49 = vpack.c.bf16 %v3015_v37, %v3003_v36  ;;  %v8096_v50 = vpack.c.bf16 %v3017_v41, %v3005_v38  ;;  %v7598_v36 = vpack.c.bf16 %v3112_v29, %v3100_v27  ;;  %v3099_v37 = vld [vmem:[%s10802_s29 + $0x5580] sm:$0xff]  ;;  %v3198_v29 = vld [vmem:[%s10802_s29 + $0x5898] sm:$0xff] }
 0x21d   : > { %v7586_v51 = vpack.c.bf16 %v3040_v44, %v3028_v42  ;;  %v3111_v38 = vld [vmem:[%s10802_s29 + $0x55e0] sm:$0xff]  ;;  %v3113_v42 = vld [vmem:[%s10802_s29 + $0x55f0] sm:$0xff]  ;;  %v3124_v44 = vld [vmem:[%s10802_s29 + $0x5648] sm:$0xff] }
 0x21e   : > { %7569 = vmatpush1.bf16.msra.mxu0 %v7568_v52  ;;  %v3027_v52 = vld [vmem:[%s10802_s29 + $0x5340] sm:$0xff]  ;;  %v3208_v27 = vld [vmem:[%s10802_s29 + $0x58e8] sm:$0xff] }
 0x21f   : > { %8081 = vmatpush1.bf16.msra.mxu1 %v8080_v53  ;;  %7571 = vmatprep.subr.bf16.mxu0 %v7570_v54  ;;  %v3039_v53 = vld [vmem:[%s10802_s29 + $0x53a0] sm:$0xff]  ;;  %v3029_v54 = vld [vmem:[%s10802_s29 + $0x5350] sm:$0xff] }
 0x220   : > { %8083 = vmatprep.subr.bf16.mxu1 %v8082_v58  ;;  %v3064_v58 = vld [vmem:[%s10802_s29 + $0x5468] sm:$0xff]  ;;  %v7588_v63 = vpack.c.bf16 %v3039_v53, %v3027_v52  ;;  %v8100_v1 = vpack.c.bf16 %v3041_v56, %v3029_v54  ;;  %v7602_v52 = vpack.c.bf16 %v3136_v46, %v3124_v44  ;;  %v3123_v53 = vld [vmem:[%s10802_s29 + $0x5640] sm:$0xff]  ;;  %v3222_v46 = vld [vmem:[%s10802_s29 + $0x5958] sm:$0xff] }
 0x221   : > { %v3135_v54 = vld [vmem:[%s10802_s29 + $0x56a0] sm:$0xff]  ;;  %v3232_v44 = vld [vmem:[%s10802_s29 + $0x59a8] sm:$0xff] }
 0x222   : > { %7573 = vmatpush1.bf16.msra.mxu0 %v7572_v2  ;;  %v7590_v2 = vpack.c.bf16 %v3064_v58, %v3052_v57  ;;  %v3137_v57 = vld [vmem:[%s10802_s29 + $0x56b0] sm:$0xff]  ;;  %v3148_v58 = vld [vmem:[%s10802_s29 + $0x5708] sm:$0xff]  ;;  %v7604_v0 = vpack.c.bf16 %v3135_v54, %v3123_v53  ;;  %v3231_v53 = vld [vmem:[%s10802_s29 + $0x59a0] sm:$0xff] }
 0x223   : > { %8085 = vmatpush1.bf16.msra.mxu1 %v8084_v3  ;;  %7575 = vmatprep.subr.bf16.mxu0 %v7574_v4  ;;  %v3051_v3 = vld [vmem:[%s10802_s29 + $0x5400] sm:$0xff]  ;;  %v3221_v54 = vld [vmem:[%s10802_s29 + $0x5950] sm:$0xff] }
 0x224   : > { %8087 = vmatprep.subr.bf16.mxu1 %v8086_v8  ;;  %v3063_v4 = vld [vmem:[%s10802_s29 + $0x5460] sm:$0xff]  ;;  %v3076_v8 = vld [vmem:[%s10802_s29 + $0x54c8] sm:$0xff] }
 0x226   : > { %7577 = vmatpush1.bf16.msra.mxu0 %v7576_v15  ;;  %v7592_v15 = vpack.c.bf16 %v3063_v4, %v3051_v3  ;;  %v3147_v3 = vld [vmem:[%s10802_s29 + $0x5700] sm:$0xff] }
 0x227   : > { %8089 = vmatpush1.bf16.msra.mxu1 %v8088_v17  ;;  %7579 = vmatprep.subr.bf16.mxu0 %v7578_v18  ;;  %v8104_v17 = vpack.c.bf16 %v3065_v7, %v3053_v5  ;;  %v7594_v18 = vpack.c.bf16 %v3088_v10, %v3076_v8  ;;  %v3159_v4 = vld [vmem:[%s10802_s29 + $0x5760] sm:$0xff]  ;;  %v3149_v5 = vld [vmem:[%s10802_s29 + $0x5710] sm:$0xff]  ;;  %v3172_v8 = vld [vmem:[%s10802_s29 + $0x57c8] sm:$0xff] }
 0x228   : > { %8091 = vmatprep.subr.bf16.mxu1 %v8090_v24  ;;  %v8106_v24 = vpack.c.bf16 %v3090_v13, %v3078_v12  ;;  %v3161_v7 = vld [vmem:[%s10802_s29 + $0x5770] sm:$0xff]  ;;  %v3184_v10 = vld [vmem:[%s10802_s29 + $0x5828] sm:$0xff]  ;;  %v3174_v12 = vld [vmem:[%s10802_s29 + $0x57d8] sm:$0xff]  ;;  %v7608_v14 = vpack.c.bf16 %v3159_v4, %v3147_v3 }
 0x229   : > { %v3186_v13 = vld [vmem:[%s10802_s29 + $0x5838] sm:$0xff]  ;;  %v3255_v3 = vld [vmem:[%s10802_s29 + $0x5a60] sm:$0xff]  ;;  %v3245_v4 = vld [vmem:[%s10802_s29 + $0x5a10] sm:$0xff] }
 0x22a   : > { %7581 = vmatpush1.bf16.msra.mxu0 %v7580_v33  ;;  %v3114_v33 = vld [vmem:[%s10802_s29 + $0x55f8] sm:$0xff] }
 0x22b   : > { %8093 = vmatpush1.bf16.msra.mxu1 %v8092_v34  ;;  %7583 = vmatprep.subr.bf16.mxu0 %v7582_v35  ;;  %v7596_v34 = vpack.c.bf16 %v3087_v21, %v3075_v19  ;;  %v8108_v35 = vpack.c.bf16 %v3089_v26, %v3077_v22  ;;  %v8110_v41 = vpack.c.bf16 %v3114_v33, %v3102_v32  ;;  %v3183_v19 = vld [vmem:[%s10802_s29 + $0x5820] sm:$0xff]  ;;  %v3173_v21 = vld [vmem:[%s10802_s29 + $0x57d0] sm:$0xff]  ;;  %v3196_v26 = vld [vmem:[%s10802_s29 + $0x5888] sm:$0xff] }
 0x22c   : > { %8095 = vmatprep.subr.bf16.mxu1 %v8094_v39  ;;  %v3101_v39 = vld [vmem:[%s10802_s29 + $0x5590] sm:$0xff]  ;;  %v8122_v22 = vpack.c.bf16 %v3186_v13, %v3174_v12  ;;  %v3210_v32 = vld [vmem:[%s10802_s29 + $0x58f8] sm:$0xff] }
 0x22d   : > { %v3282_v12 = vld [vmem:[%s10802_s29 + $0x5b38] sm:$0xff] }
 0x22e   : > { %7585 = vmatpush1.bf16.msra.mxu0 %v7584_v49  ;;  %v3138_v49 = vld [vmem:[%s10802_s29 + $0x56b8] sm:$0xff] }
 0x22f   : > { %8097 = vmatpush1.bf16.msra.mxu1 %v8096_v50  ;;  %7587 = vmatprep.subr.bf16.mxu0 %v7586_v51  ;;  %v7600_v50 = vpack.c.bf16 %v3111_v38, %v3099_v37  ;;  %v8112_v51 = vpack.c.bf16 %v3113_v42, %v3101_v39  ;;  %v8114_v56 = vpack.c.bf16 %v3138_v49, %v3126_v47  ;;  %v3207_v37 = vld [vmem:[%s10802_s29 + $0x58e0] sm:$0xff]  ;;  %v3197_v38 = vld [vmem:[%s10802_s29 + $0x5890] sm:$0xff]  ;;  %v3220_v42 = vld [vmem:[%s10802_s29 + $0x5948] sm:$0xff] }
 0x230   : > { %8099 = vmatprep.subr.bf16.mxu1 %v8098_v55  ;;  %v3125_v55 = vld [vmem:[%s10802_s29 + $0x5650] sm:$0xff]  ;;  %v8126_v39 = vpack.c.bf16 %v3210_v32, %v3198_v29  ;;  %v3234_v47 = vld [vmem:[%s10802_s29 + $0x59b8] sm:$0xff] }
 0x231   : > { %v3306_v29 = vld [vmem:[%s10802_s29 + $0x5bf8] sm:$0xff] }
 0x232   : > { %7589 = vmatpush1.bf16.msra.mxu0 %v7588_v63  ;;  %v3162_v63 = vld [vmem:[%s10802_s29 + $0x5778] sm:$0xff] }
 0x233   : > { %8101 = vmatpush1.bf16.msra.mxu1 %v8100_v1  ;;  %7591 = vmatprep.subr.bf16.mxu0 %v7590_v2  ;;  %v8116_v1 = vpack.c.bf16 %v3137_v57, %v3125_v55  ;;  %v7606_v2 = vpack.c.bf16 %v3160_v59, %v3148_v58  ;;  %v8130_v55 = vpack.c.bf16 %v3234_v47, %v3222_v46  ;;  %v3244_v57 = vld [vmem:[%s10802_s29 + $0x5a08] sm:$0xff]  ;;  %v3246_v59 = vld [vmem:[%s10802_s29 + $0x5a18] sm:$0xff] }
 0x234   : > { %8103 = vmatprep.subr.bf16.mxu1 %v8102_v6  ;;  %v8118_v6 = vpack.c.bf16 %v3162_v63, %v3150_v61  ;;  %v3256_v58 = vld [vmem:[%s10802_s29 + $0x5a68] sm:$0xff]  ;;  %v3258_v61 = vld [vmem:[%s10802_s29 + $0x5a78] sm:$0xff] }
 0x235   : > { %3926 = vmatmul.mubr.f32.vlgmr.msra.gmra.mrb[0].mxu0 %v11813_v11  ;;  %v3330_v46 = vld [vmem:[%s10802_s29 + $0x5cb8] sm:$0xff] }
 0x236   : > { %7593 = vmatpush1.bf16.msra.mxu0 %v7592_v15  ;;  %4494 = vmatmul.mubr.f32.vlgmr.msra.gmra.mrb[0].mxu1 %v11813_v11  ;;  %v8120_v15 = vpack.c.bf16 %v3161_v7, %v3149_v5  ;;  %v8134_v5 = vpack.c.bf16 %v3258_v61, %v3246_v59  ;;  %v3268_v7 = vld [vmem:[%s10802_s29 + $0x5ac8] sm:$0xff]  ;;  %v3354_v59 = vld [vmem:[%s10802_s29 + $0x5d78] sm:$0xff] }
 0x237   : > { %8105 = vmatpush1.bf16.msra.mxu1 %v8104_v17  ;;  %7595 = vmatprep.subr.bf16.mxu0 %v7594_v18  ;;  %v7610_v17 = vpack.c.bf16 %v3184_v10, %v3172_v8  ;;  %v3171_v18 = vld [vmem:[%s10802_s29 + $0x57c0] sm:$0xff]  ;;  %v3280_v8 = vld [vmem:[%s10802_s29 + $0x5b28] sm:$0xff]  ;;  %v3270_v10 = vld [vmem:[%s10802_s29 + $0x5ad8] sm:$0xff] }
 0x238   : > { %8107 = vmatprep.subr.bf16.mxu1 %v8106_v24  ;;  %3996 = vmatprep.mubr.f32.mxu0 %v11824_v30  ;;  %v3185_v24 = vld [vmem:[%s10802_s29 + $0x5830] sm:$0xff]  ;;  %v7612_v33 = vpack.c.bf16 %v3183_v19, %v3171_v18  ;;  %v3279_v18 = vld [vmem:[%s10802_s29 + $0x5b20] sm:$0xff] }
 0x239   : > { %4564 = vmatprep.mubr.f32.mxu1 %v11824_v30  ;;  %v3269_v19 = vld [vmem:[%s10802_s29 + $0x5ad0] sm:$0xff] }
 0x23a   : > { %7597 = vmatpush1.bf16.msra.mxu0 %v7596_v34  ;;  %v8124_v34 = vpack.c.bf16 %v3185_v24, %v3173_v21  ;;  %v8138_v21 = vpack.c.bf16 %v3282_v12, %v3270_v10  ;;  %v3292_v24 = vld [vmem:[%s10802_s29 + $0x5b88] sm:$0xff]  ;;  %v3378_v10 = vld [vmem:[%s10802_s29 + $0x5e38] sm:$0xff] }
 0x23b   : > { %8109 = vmatpush1.bf16.msra.mxu1 %v8108_v35  ;;  %7599 = vmatprep.subr.bf16.mxu0 %v7598_v36  ;;  %v7614_v35 = vpack.c.bf16 %v3208_v27, %v3196_v26  ;;  %v3195_v36 = vld [vmem:[%s10802_s29 + $0x5880] sm:$0xff]  ;;  %v3304_v26 = vld [vmem:[%s10802_s29 + $0x5be8] sm:$0xff]  ;;  %v3294_v27 = vld [vmem:[%s10802_s29 + $0x5b98] sm:$0xff] }
 0x23c   : > { %8111 = vmatprep.subr.bf16.mxu1 %v8110_v41  ;;  %v3209_v41 = vld [vmem:[%s10802_s29 + $0x58f0] sm:$0xff]  ;;  %v7616_v49 = vpack.c.bf16 %v3207_v37, %v3195_v36  ;;  %v3303_v36 = vld [vmem:[%s10802_s29 + $0x5be0] sm:$0xff] }
 0x23d   : > { %v3293_v37 = vld [vmem:[%s10802_s29 + $0x5b90] sm:$0xff] }
 0x23e   : > { %7601 = vmatpush1.bf16.msra.mxu0 %v7600_v50  ;;  %v8128_v50 = vpack.c.bf16 %v3209_v41, %v3197_v38  ;;  %v8142_v38 = vpack.c.bf16 %v3306_v29, %v3294_v27  ;;  %v3316_v41 = vld [vmem:[%s10802_s29 + $0x5c48] sm:$0xff]  ;;  %v3402_v27 = vld [vmem:[%s10802_s29 + $0x5ef8] sm:$0xff] }
 0x23f   : > { %8113 = vmatpush1.bf16.msra.mxu1 %v8112_v51  ;;  %7603 = vmatprep.subr.bf16.mxu0 %v7602_v52  ;;  %v7618_v51 = vpack.c.bf16 %v3232_v44, %v3220_v42  ;;  %v3219_v52 = vld [vmem:[%s10802_s29 + $0x5940] sm:$0xff]  ;;  %v3328_v42 = vld [vmem:[%s10802_s29 + $0x5ca8] sm:$0xff]  ;;  %v3318_v44 = vld [vmem:[%s10802_s29 + $0x5c58] sm:$0xff] }
 0x240   : > { %8115 = vmatprep.subr.bf16.mxu1 %v8114_v56  ;;  %v3233_v56 = vld [vmem:[%s10802_s29 + $0x59b0] sm:$0xff]  ;;  %v7620_v63 = vpack.c.bf16 %v3231_v53, %v3219_v52  ;;  %v3327_v52 = vld [vmem:[%s10802_s29 + $0x5ca0] sm:$0xff] }
 0x241   : > { %v3317_v53 = vld [vmem:[%s10802_s29 + $0x5c50] sm:$0xff] }
 0x242   : > { %7605 = vmatpush1.bf16.msra.mxu0 %v7604_v0  ;;  %v8132_v0 = vpack.c.bf16 %v3233_v56, %v3221_v54  ;;  %v8146_v54 = vpack.c.bf16 %v3330_v46, %v3318_v44  ;;  %v3340_v56 = vld [vmem:[%s10802_s29 + $0x5d08] sm:$0xff]  ;;  %v3426_v44 = vld [vmem:[%s10802_s29 + $0x5fb8] sm:$0xff] }
 0x243   : > { %8117 = vmatpush1.bf16.msra.mxu1 %v8116_v1  ;;  %7607 = vmatprep.subr.bf16.mxu0 %v7606_v2  ;;  %v7622_v1 = vpack.c.bf16 %v3256_v58, %v3244_v57  ;;  %v3243_v2 = vld [vmem:[%s10802_s29 + $0x5a00] sm:$0xff]  ;;  %v3352_v57 = vld [vmem:[%s10802_s29 + $0x5d68] sm:$0xff]  ;;  %v3342_v58 = vld [vmem:[%s10802_s29 + $0x5d18] sm:$0xff] }
 0x244   : > { %8119 = vmatprep.subr.bf16.mxu1 %v8118_v6  ;;  %v3257_v6 = vld [vmem:[%s10802_s29 + $0x5a70] sm:$0xff]  ;;  %v7624_v13 = vpack.c.bf16 %v3255_v3, %v3243_v2  ;;  %v3351_v2 = vld [vmem:[%s10802_s29 + $0x5d60] sm:$0xff] }
 0x245   : > { %v3341_v3 = vld [vmem:[%s10802_s29 + $0x5d10] sm:$0xff] }
 0x246   : > { %7609 = vmatpush1.bf16.msra.mxu0 %v7608_v14  ;;  %v8136_v14 = vpack.c.bf16 %v3257_v6, %v3245_v4  ;;  %v8150_v4 = vpack.c.bf16 %v3354_v59, %v3342_v58  ;;  %v3364_v6 = vld [vmem:[%s10802_s29 + $0x5dc8] sm:$0xff]  ;;  %v382_v58 = vld [vmem:[%s10802_s29 + $0x98] sm:$0xff] }
 0x247   : > { %8121 = vmatpush1.bf16.msra.mxu1 %v8120_v15  ;;  %7611 = vmatprep.subr.bf16.mxu0 %v7610_v17  ;;  %v7626_v15 = vpack.c.bf16 %v3280_v8, %v3268_v7  ;;  %v3267_v17 = vld [vmem:[%s10802_s29 + $0x5ac0] sm:$0xff]  ;;  %v3376_v7 = vld [vmem:[%s10802_s29 + $0x5e28] sm:$0xff]  ;;  %v3366_v8 = vld [vmem:[%s10802_s29 + $0x5dd8] sm:$0xff] }
 0x248   : > { %8123 = vmatprep.subr.bf16.mxu1 %v8122_v22  ;;  %v3281_v22 = vld [vmem:[%s10802_s29 + $0x5b30] sm:$0xff]  ;;  %v7628_v32 = vpack.c.bf16 %v3279_v18, %v3267_v17  ;;  %v3375_v17 = vld [vmem:[%s10802_s29 + $0x5e20] sm:$0xff] }
 0x249   : > { %v3365_v18 = vld [vmem:[%s10802_s29 + $0x5dd0] sm:$0xff] }
 0x24a   : > { %7613 = vmatpush1.bf16.msra.mxu0 %v7612_v33  ;;  %v8140_v33 = vpack.c.bf16 %v3281_v22, %v3269_v19  ;;  %v8154_v19 = vpack.c.bf16 %v3378_v10, %v3366_v8  ;;  %v3388_v22 = vld [vmem:[%s10802_s29 + $0x5e88] sm:$0xff]  ;;  %v394_v10 = vld [vmem:[%s10802_s29 + $0xf8] sm:$0xff] }
 0x24b   : > { %8125 = vmatpush1.bf16.msra.mxu1 %v8124_v34  ;;  %7615 = vmatprep.subr.bf16.mxu0 %v7614_v35  ;;  %v7630_v34 = vpack.c.bf16 %v3304_v26, %v3292_v24  ;;  %v3291_v35 = vld [vmem:[%s10802_s29 + $0x5b80] sm:$0xff]  ;;  %v3400_v24 = vld [vmem:[%s10802_s29 + $0x5ee8] sm:$0xff]  ;;  %v3390_v26 = vld [vmem:[%s10802_s29 + $0x5e98] sm:$0xff] }
 0x24c   : > { %8127 = vmatprep.subr.bf16.mxu1 %v8126_v39  ;;  %v3305_v39 = vld [vmem:[%s10802_s29 + $0x5bf0] sm:$0xff]  ;;  %v7632_v47 = vpack.c.bf16 %v3303_v36, %v3291_v35  ;;  %v3399_v35 = vld [vmem:[%s10802_s29 + $0x5ee0] sm:$0xff] }
 0x24d   : > { %v3389_v36 = vld [vmem:[%s10802_s29 + $0x5e90] sm:$0xff] }
 0x24e   : > { %7617 = vmatpush1.bf16.msra.mxu0 %v7616_v49  ;;  %v8144_v49 = vpack.c.bf16 %v3305_v39, %v3293_v37  ;;  %v8158_v37 = vpack.c.bf16 %v3402_v27, %v3390_v26  ;;  %v3412_v39 = vld [vmem:[%s10802_s29 + $0x5f48] sm:$0xff]  ;;  %v418_v27 = vld [vmem:[%s10802_s29 + $0x1b8] sm:$0xff] }
 0x24f   : > { %8129 = vmatpush1.bf16.msra.mxu1 %v8128_v50  ;;  %7619 = vmatprep.subr.bf16.mxu0 %v7618_v51  ;;  %v7634_v50 = vpack.c.bf16 %v3328_v42, %v3316_v41  ;;  %v3315_v51 = vld [vmem:[%s10802_s29 + $0x5c40] sm:$0xff]  ;;  %v3424_v41 = vld [vmem:[%s10802_s29 + $0x5fa8] sm:$0xff]  ;;  %v3414_v42 = vld [vmem:[%s10802_s29 + $0x5f58] sm:$0xff] }
 0x250   : > { %8131 = vmatprep.subr.bf16.mxu1 %v8130_v55  ;;  %v3329_v55 = vld [vmem:[%s10802_s29 + $0x5cb0] sm:$0xff]  ;;  %v7636_v61 = vpack.c.bf16 %v3327_v52, %v3315_v51  ;;  %v3423_v51 = vld [vmem:[%s10802_s29 + $0x5fa0] sm:$0xff]  ;;  %v428_v26 = vld [vmem:[%s10802_s29 + $0x208] sm:$0xff] }
 0x251   : > { %v3413_v52 = vld [vmem:[%s10802_s29 + $0x5f50] sm:$0xff] }
 0x252   : > { %7621 = vmatpush1.bf16.msra.mxu0 %v7620_v63  ;;  %v8148_v63 = vpack.c.bf16 %v3329_v55, %v3317_v53  ;;  %v8162_v53 = vpack.c.bf16 %v3426_v44, %v3414_v42  ;;  %v368_v55 = vld [vmem:[%s10802_s29 + $0x28] sm:$0xff]  ;;  %v442_v44 = vld [vmem:[%s10802_s29 + $0x278] sm:$0xff] }
 0x253   : > { %8133 = vmatpush1.bf16.msra.mxu1 %v8132_v0  ;;  %7623 = vmatprep.subr.bf16.mxu0 %v7622_v1  ;;  %v7638_v0 = vpack.c.bf16 %v3352_v57, %v3340_v56  ;;  %v3339_v1 = vld [vmem:[%s10802_s29 + $0x5d00] sm:$0xff]  ;;  %v380_v56 = vld [vmem:[%s10802_s29 + $0x88] sm:$0xff]  ;;  %v370_v57 = vld [vmem:[%s10802_s29 + $0x38] sm:$0xff] }
 0x254   : > { %8135 = vmatprep.subr.bf16.mxu1 %v8134_v5  ;;  %v3353_v5 = vld [vmem:[%s10802_s29 + $0x5d70] sm:$0xff]  ;;  %v7640_v12 = vpack.c.bf16 %v3351_v2, %v3339_v1  ;;  %v367_v1 = vld [vmem:[%s10802_s29 + $0x20] sm:$0xff]  ;;  %v452_v42 = vld [vmem:[%s10802_s29 + $0x2c8] sm:$0xff] }
 0x255   : > { %v379_v2 = vld [vmem:[%s10802_s29 + $0x80] sm:$0xff] }
 0x256   : > { %7625 = vmatpush1.bf16.msra.mxu0 %v7624_v13  ;;  %v8152_v13 = vpack.c.bf16 %v3353_v5, %v3341_v3  ;;  %v369_v3 = vld [vmem:[%s10802_s29 + $0x30] sm:$0xff] }
 0x257   : > { %8137 = vmatpush1.bf16.msra.mxu1 %v8136_v14  ;;  %7627 = vmatprep.subr.bf16.mxu0 %v7626_v15  ;;  %v7642_v14 = vpack.c.bf16 %v3376_v7, %v3364_v6  ;;  %v3363_v15 = vld [vmem:[%s10802_s29 + $0x5dc0] sm:$0xff]  ;;  %v381_v5 = vld [vmem:[%s10802_s29 + $0x90] sm:$0xff]  ;;  %v392_v6 = vld [vmem:[%s10802_s29 + $0xe8] sm:$0xff] }
 0x258   : > { %8139 = vmatprep.subr.bf16.mxu1 %v8138_v21  ;;  %v3377_v21 = vld [vmem:[%s10802_s29 + $0x5e30] sm:$0xff]  ;;  %v7644_v29 = vpack.c.bf16 %v3375_v17, %v3363_v15  ;;  %v404_v7 = vld [vmem:[%s10802_s29 + $0x148] sm:$0xff]  ;;  %v391_v17 = vld [vmem:[%s10802_s29 + $0xe0] sm:$0xff] }
 0x259   : > { %v8170_v15 = vpack.c.bf16 %v404_v7, %v392_v6  ;;  %v488_v6 = vld [vmem:[%s10802_s29 + $0x3e8] sm:$0xff] }
 0x25a   : > { %7629 = vmatpush1.bf16.msra.mxu0 %v7628_v32  ;;  %v8156_v32 = vpack.c.bf16 %v3377_v21, %v3365_v18  ;;  %v403_v18 = vld [vmem:[%s10802_s29 + $0x140] sm:$0xff]  ;;  %v500_v7 = vld [vmem:[%s10802_s29 + $0x448] sm:$0xff] }
 0x25b   : > { %8141 = vmatpush1.bf16.msra.mxu1 %v8140_v33  ;;  %7631 = vmatprep.subr.bf16.mxu0 %v7630_v34  ;;  %v7646_v33 = vpack.c.bf16 %v3400_v24, %v3388_v22  ;;  %v3387_v34 = vld [vmem:[%s10802_s29 + $0x5e80] sm:$0xff]  ;;  %v405_v22 = vld [vmem:[%s10802_s29 + $0x150] sm:$0xff]  ;;  %v416_v24 = vld [vmem:[%s10802_s29 + $0x1a8] sm:$0xff] }
 0x25c   : > { %8143 = vmatprep.subr.bf16.mxu1 %v8142_v38  ;;  %v3401_v38 = vld [vmem:[%s10802_s29 + $0x5ef0] sm:$0xff]  ;;  %v7648_v46 = vpack.c.bf16 %v3399_v35, %v3387_v34  ;;  %v8174_v34 = vpack.c.bf16 %v428_v26, %v416_v24  ;;  %v415_v35 = vld [vmem:[%s10802_s29 + $0x1a0] sm:$0xff]  ;;  %v512_v24 = vld [vmem:[%s10802_s29 + $0x4a8] sm:$0xff] }
 0x25d   : > { %v524_v26 = vld [vmem:[%s10802_s29 + $0x508] sm:$0xff] }
 0x25e   : > { %7633 = vmatpush1.bf16.msra.mxu0 %v7632_v47  ;;  %v8160_v47 = vpack.c.bf16 %v3401_v38, %v3389_v36  ;;  %v427_v36 = vld [vmem:[%s10802_s29 + $0x200] sm:$0xff] }
 0x25f   : > { %8145 = vmatpush1.bf16.msra.mxu1 %v8144_v49  ;;  %7635 = vmatprep.subr.bf16.mxu0 %v7634_v50  ;;  %v7650_v49 = vpack.c.bf16 %v3424_v41, %v3412_v39  ;;  %v3411_v50 = vld [vmem:[%s10802_s29 + $0x5f40] sm:$0xff]  ;;  %v429_v39 = vld [vmem:[%s10802_s29 + $0x210] sm:$0xff]  ;;  %v440_v41 = vld [vmem:[%s10802_s29 + $0x268] sm:$0xff] }
 0x260   : > { %8147 = vmatprep.subr.bf16.mxu1 %v8146_v54  ;;  %v3425_v54 = vld [vmem:[%s10802_s29 + $0x5fb0] sm:$0xff]  ;;  %v7652_v59 = vpack.c.bf16 %v3423_v51, %v3411_v50  ;;  %v8178_v50 = vpack.c.bf16 %v452_v42, %v440_v41  ;;  %v439_v51 = vld [vmem:[%s10802_s29 + $0x260] sm:$0xff]  ;;  %v536_v41 = vld [vmem:[%s10802_s29 + $0x568] sm:$0xff] }
 0x261   : > { %v548_v42 = vld [vmem:[%s10802_s29 + $0x5c8] sm:$0xff] }
 0x262   : > { %7637 = vmatpush1.bf16.msra.mxu0 %v7636_v61  ;;  %v333_v61 = vld [vmem:[%s10821_s24 + $0x70] sm:$0xff] }
 0x263   : > { %8149 = vmatpush1.bf16.msra.mxu1 %v8148_v63  ;;  %7639 = vmatprep.subr.bf16.mxu0 %v7638_v0  ;;  %v8164_v63 = vpack.c.bf16 %v3425_v54, %v3413_v52  ;;  %v8166_v0 = vpack.c.bf16 %v380_v56, %v368_v55  ;;  %v11951_v8 = vmax.f32 %v333_v61, 0.0  ;;  %v451_v52 = vld [vmem:[%s10802_s29 + $0x2c0] sm:$0xff]  ;;  %v453_v55 = vld [vmem:[%s10802_s29 + $0x2d0] sm:$0xff]  ;;  %v464_v56 = vld [vmem:[%s10802_s29 + $0x328] sm:$0xff] }
 0x264   : > { %8151 = vmatprep.subr.bf16.mxu1 %v8150_v4  ;;  %v8678_v4 = vpack.c.bf16 %v382_v58, %v370_v57  ;;  %v476_v57 = vld [vmem:[%s10802_s29 + $0x388] sm:$0xff]  ;;  %v466_v58 = vld [vmem:[%s10802_s29 + $0x338] sm:$0xff]  ;;  %v8180_v61 = vpack.c.bf16 %v451_v52, %v439_v51  ;;  %v535_v51 = vld [vmem:[%s10802_s29 + $0x560] sm:$0xff] }
 0x265   : > { %v547_v52 = vld [vmem:[%s10802_s29 + $0x5c0] sm:$0xff] }
 0x266   : > { %7641 = vmatpush1.bf16.msra.mxu0 %v7640_v12  ;;  %v406_v12 = vld [vmem:[%s10802_s29 + $0x158] sm:$0xff] }
 0x267   : > { %8153 = vmatpush1.bf16.msra.mxu1 %v8152_v13  ;;  %7643 = vmatprep.subr.bf16.mxu0 %v7642_v14  ;;  %v8168_v13 = vpack.c.bf16 %v379_v2, %v367_v1  ;;  %v8680_v14 = vpack.c.bf16 %v381_v5, %v369_v3  ;;  %v8682_v21 = vpack.c.bf16 %v406_v12, %v394_v10  ;;  %v463_v1 = vld [vmem:[%s10802_s29 + $0x320] sm:$0xff]  ;;  %v465_v3 = vld [vmem:[%s10802_s29 + $0x330] sm:$0xff]  ;;  %v490_v10 = vld [vmem:[%s10802_s29 + $0x3f8] sm:$0xff] }
 0x268   : > { %8155 = vmatprep.subr.bf16.mxu1 %v8154_v19  ;;  %v393_v19 = vld [vmem:[%s10802_s29 + $0xf0] sm:$0xff]  ;;  %v475_v2 = vld [vmem:[%s10802_s29 + $0x380] sm:$0xff]  ;;  %v502_v12 = vld [vmem:[%s10802_s29 + $0x458] sm:$0xff] }
 0x269   : > { %v477_v5 = vld [vmem:[%s10802_s29 + $0x390] sm:$0xff] }
 0x26a   : > { %7645 = vmatpush1.bf16.msra.mxu0 %v7644_v29  ;;  %v430_v29 = vld [vmem:[%s10802_s29 + $0x218] sm:$0xff] }
 0x26b   : > { %8157 = vmatpush1.bf16.msra.mxu1 %v8156_v32  ;;  %7647 = vmatprep.subr.bf16.mxu0 %v7646_v33  ;;  %v8172_v32 = vpack.c.bf16 %v403_v18, %v391_v17  ;;  %v8684_v33 = vpack.c.bf16 %v405_v22, %v393_v19  ;;  %v8686_v38 = vpack.c.bf16 %v430_v29, %v418_v27  ;;  %v487_v17 = vld [vmem:[%s10802_s29 + $0x3e0] sm:$0xff]  ;;  %v489_v19 = vld [vmem:[%s10802_s29 + $0x3f0] sm:$0xff]  ;;  %v514_v27 = vld [vmem:[%s10802_s29 + $0x4b8] sm:$0xff] }
 0x26c   : > { %8159 = vmatprep.subr.bf16.mxu1 %v8158_v37  ;;  %v417_v37 = vld [vmem:[%s10802_s29 + $0x1b0] sm:$0xff]  ;;  %v499_v18 = vld [vmem:[%s10802_s29 + $0x440] sm:$0xff]  ;;  %v526_v29 = vld [vmem:[%s10802_s29 + $0x518] sm:$0xff] }
 0x26d   : > { %v501_v22 = vld [vmem:[%s10802_s29 + $0x450] sm:$0xff] }
 0x26e   : > { %7649 = vmatpush1.bf16.msra.mxu0 %v7648_v46  ;;  %v454_v46 = vld [vmem:[%s10802_s29 + $0x2d8] sm:$0xff] }
 0x26f   : > { %8161 = vmatpush1.bf16.msra.mxu1 %v8160_v47  ;;  %7651 = vmatprep.subr.bf16.mxu0 %v7650_v49  ;;  %v8176_v47 = vpack.c.bf16 %v427_v36, %v415_v35  ;;  %v8688_v49 = vpack.c.bf16 %v429_v39, %v417_v37  ;;  %v8690_v54 = vpack.c.bf16 %v454_v46, %v442_v44  ;;  %v511_v35 = vld [vmem:[%s10802_s29 + $0x4a0] sm:$0xff]  ;;  %v513_v37 = vld [vmem:[%s10802_s29 + $0x4b0] sm:$0xff]  ;;  %v538_v44 = vld [vmem:[%s10802_s29 + $0x578] sm:$0xff] }
 0x270   : > { %8163 = vmatprep.subr.bf16.mxu1 %v8162_v53  ;;  %v441_v53 = vld [vmem:[%s10802_s29 + $0x270] sm:$0xff]  ;;  %v523_v36 = vld [vmem:[%s10802_s29 + $0x500] sm:$0xff]  ;;  %v550_v46 = vld [vmem:[%s10802_s29 + $0x5d8] sm:$0xff] }
 0x271   : > { %v525_v39 = vld [vmem:[%s10802_s29 + $0x510] sm:$0xff] }
 0x272   : > { %7653 = vmatpush1.bf16.msra.mxu0 %v7652_v59  ;;  %v478_v59 = vld [vmem:[%s10802_s29 + $0x398] sm:$0xff] }
 0x273   : > { %8165 = vmatpush1.bf16.msra.mxu1 %v8164_v63  ;;  %8167 = vmatprep.subr.bf16.mxu0 %v8166_v0  ;;  %v8692_v63 = vpack.c.bf16 %v453_v55, %v441_v53  ;;  %v8182_v0 = vpack.c.bf16 %v476_v57, %v464_v56  ;;  %v537_v53 = vld [vmem:[%s10802_s29 + $0x570] sm:$0xff]  ;;  %v560_v56 = vld [vmem:[%s10802_s29 + $0x628] sm:$0xff] }
 0x274   : > { %8679 = vmatprep.subr.bf16.mxu1 %v8678_v4  ;;  %v8694_v4 = vpack.c.bf16 %v478_v59, %v466_v58  ;;  %v549_v55 = vld [vmem:[%s10802_s29 + $0x5d0] sm:$0xff]  ;;  %v572_v57 = vld [vmem:[%s10802_s29 + $0x688] sm:$0xff]  ;;  %v562_v58 = vld [vmem:[%s10802_s29 + $0x638] sm:$0xff] }
 0x275   : > { %3997 = vmatmul.mubr.f32.vlgmr.msra.gmra.mrb[0].mxu0 %v11951_v8  ;;  %v574_v59 = vld [vmem:[%s10802_s29 + $0x698] sm:$0xff] }
 0x276   : > { %4565 = vmatmul.mubr.f32.vlgmr.msra.gmra.mrb[0].mxu1 %v11951_v8  ;;  %8169 = vmatpush1.bf16.msra.mxu0 %v8168_v13  ;;  %v8184_v13 = vpack.c.bf16 %v475_v2, %v463_v1  ;;  %v559_v1 = vld [vmem:[%s10802_s29 + $0x620] sm:$0xff] }
 0x277   : > { %8681 = vmatpush1.bf16.msra.mxu1 %v8680_v14  ;;  %8171 = vmatprep.subr.bf16.mxu0 %v8170_v15  ;;  %v8696_v14 = vpack.c.bf16 %v477_v5, %v465_v3  ;;  %v8186_v15 = vpack.c.bf16 %v500_v7, %v488_v6  ;;  %v571_v2 = vld [vmem:[%s10802_s29 + $0x680] sm:$0xff]  ;;  %v561_v3 = vld [vmem:[%s10802_s29 + $0x630] sm:$0xff]  ;;  %v584_v6 = vld [vmem:[%s10802_s29 + $0x6e8] sm:$0xff] }
 0x278   : > { %8683 = vmatprep.subr.bf16.mxu1 %v8682_v21  ;;  %4635 = vmatprep.mubr.f32.mxu0 %v10942_v20  ;;  %v8698_v21 = vpack.c.bf16 %v502_v12, %v490_v10  ;;  %v573_v5 = vld [vmem:[%s10802_s29 + $0x690] sm:$0xff]  ;;  %v596_v7 = vld [vmem:[%s10802_s29 + $0x748] sm:$0xff]  ;;  %v586_v10 = vld [vmem:[%s10802_s29 + $0x6f8] sm:$0xff] }
 0x279   : > { %5203 = vmatprep.mubr.f32.mxu1 %v10942_v20  ;;  %v598_v12 = vld [vmem:[%s10802_s29 + $0x758] sm:$0xff] }
 0x27a   : > { %8173 = vmatpush1.bf16.msra.mxu0 %v8172_v32  ;;  %v8188_v32 = vpack.c.bf16 %v499_v18, %v487_v17  ;;  %v583_v17 = vld [vmem:[%s10802_s29 + $0x6e0] sm:$0xff] }
 0x27b   : > { %8685 = vmatpush1.bf16.msra.mxu1 %v8684_v33  ;;  %8175 = vmatprep.subr.bf16.mxu0 %v8174_v34  ;;  %v8700_v33 = vpack.c.bf16 %v501_v22, %v489_v19  ;;  %v8190_v34 = vpack.c.bf16 %v524_v26, %v512_v24  ;;  %v595_v18 = vld [vmem:[%s10802_s29 + $0x740] sm:$0xff]  ;;  %v585_v19 = vld [vmem:[%s10802_s29 + $0x6f0] sm:$0xff]  ;;  %v608_v24 = vld [vmem:[%s10802_s29 + $0x7a8] sm:$0xff] }
 0x27c   : > { %8687 = vmatprep.subr.bf16.mxu1 %v8686_v38  ;;  %v8702_v38 = vpack.c.bf16 %v526_v29, %v514_v27  ;;  %v597_v22 = vld [vmem:[%s10802_s29 + $0x750] sm:$0xff]  ;;  %v620_v26 = vld [vmem:[%s10802_s29 + $0x808] sm:$0xff]  ;;  %v610_v27 = vld [vmem:[%s10802_s29 + $0x7b8] sm:$0xff] }
 0x27d   : > { %v622_v29 = vld [vmem:[%s10802_s29 + $0x818] sm:$0xff] }
 0x27e   : > { %8177 = vmatpush1.bf16.msra.mxu0 %v8176_v47  ;;  %v8192_v47 = vpack.c.bf16 %v523_v36, %v511_v35  ;;  %v607_v35 = vld [vmem:[%s10802_s29 + $0x7a0] sm:$0xff] }
 0x27f   : > { %8689 = vmatpush1.bf16.msra.mxu1 %v8688_v49  ;;  %8179 = vmatprep.subr.bf16.mxu0 %v8178_v50  ;;  %v8704_v49 = vpack.c.bf16 %v525_v39, %v513_v37  ;;  %v8194_v50 = vpack.c.bf16 %v548_v42, %v536_v41  ;;  %v619_v36 = vld [vmem:[%s10802_s29 + $0x800] sm:$0xff]  ;;  %v609_v37 = vld [vmem:[%s10802_s29 + $0x7b0] sm:$0xff]  ;;  %v632_v41 = vld [vmem:[%s10802_s29 + $0x868] sm:$0xff] }
 0x280   : > { %8691 = vmatprep.subr.bf16.mxu1 %v8690_v54  ;;  %v8706_v54 = vpack.c.bf16 %v550_v46, %v538_v44  ;;  %v621_v39 = vld [vmem:[%s10802_s29 + $0x810] sm:$0xff]  ;;  %v644_v42 = vld [vmem:[%s10802_s29 + $0x8c8] sm:$0xff]  ;;  %v634_v44 = vld [vmem:[%s10802_s29 + $0x878] sm:$0xff] }
 0x281   : > { %v646_v46 = vld [vmem:[%s10802_s29 + $0x8d8] sm:$0xff] }
 0x282   : > { %8181 = vmatpush1.bf16.msra.mxu0 %v8180_v61  ;;  %v8196_v61 = vpack.c.bf16 %v547_v52, %v535_v51  ;;  %v631_v51 = vld [vmem:[%s10802_s29 + $0x860] sm:$0xff] }
 0x283   : > { %8693 = vmatpush1.bf16.msra.mxu1 %v8692_v63  ;;  %8183 = vmatprep.subr.bf16.mxu0 %v8182_v0  ;;  %v8708_v63 = vpack.c.bf16 %v549_v55, %v537_v53  ;;  %v8198_v0 = vpack.c.bf16 %v572_v57, %v560_v56  ;;  %v643_v52 = vld [vmem:[%s10802_s29 + $0x8c0] sm:$0xff]  ;;  %v633_v53 = vld [vmem:[%s10802_s29 + $0x870] sm:$0xff]  ;;  %v656_v56 = vld [vmem:[%s10802_s29 + $0x928] sm:$0xff] }
 0x284   : > { %8695 = vmatprep.subr.bf16.mxu1 %v8694_v4  ;;  %v8710_v4 = vpack.c.bf16 %v574_v59, %v562_v58  ;;  %v645_v55 = vld [vmem:[%s10802_s29 + $0x8d0] sm:$0xff]  ;;  %v668_v57 = vld [vmem:[%s10802_s29 + $0x988] sm:$0xff]  ;;  %v658_v58 = vld [vmem:[%s10802_s29 + $0x938] sm:$0xff] }
 0x285   : > { %v670_v59 = vld [vmem:[%s10802_s29 + $0x998] sm:$0xff] }
 0x286   : > { %8185 = vmatpush1.bf16.msra.mxu0 %v8184_v13  ;;  %v8200_v13 = vpack.c.bf16 %v571_v2, %v559_v1  ;;  %v655_v1 = vld [vmem:[%s10802_s29 + $0x920] sm:$0xff] }
 0x287   : > { %8697 = vmatpush1.bf16.msra.mxu1 %v8696_v14  ;;  %8187 = vmatprep.subr.bf16.mxu0 %v8186_v15  ;;  %v8712_v14 = vpack.c.bf16 %v573_v5, %v561_v3  ;;  %v8202_v15 = vpack.c.bf16 %v596_v7, %v584_v6  ;;  %v667_v2 = vld [vmem:[%s10802_s29 + $0x980] sm:$0xff]  ;;  %v657_v3 = vld [vmem:[%s10802_s29 + $0x930] sm:$0xff]  ;;  %v680_v6 = vld [vmem:[%s10802_s29 + $0x9e8] sm:$0xff] }
 0x288   : > { %8699 = vmatprep.subr.bf16.mxu1 %v8698_v21  ;;  %v8714_v21 = vpack.c.bf16 %v598_v12, %v586_v10  ;;  %v669_v5 = vld [vmem:[%s10802_s29 + $0x990] sm:$0xff]  ;;  %v692_v7 = vld [vmem:[%s10802_s29 + $0xa48] sm:$0xff]  ;;  %v682_v10 = vld [vmem:[%s10802_s29 + $0x9f8] sm:$0xff] }
 0x289   : > { %v694_v12 = vld [vmem:[%s10802_s29 + $0xa58] sm:$0xff] }
 0x28a   : > { %8189 = vmatpush1.bf16.msra.mxu0 %v8188_v32  ;;  %v8204_v32 = vpack.c.bf16 %v595_v18, %v583_v17  ;;  %v679_v17 = vld [vmem:[%s10802_s29 + $0x9e0] sm:$0xff] }
 0x28b   : > { %8701 = vmatpush1.bf16.msra.mxu1 %v8700_v33  ;;  %8191 = vmatprep.subr.bf16.mxu0 %v8190_v34  ;;  %v8716_v33 = vpack.c.bf16 %v597_v22, %v585_v19  ;;  %v8206_v34 = vpack.c.bf16 %v620_v26, %v608_v24  ;;  %v691_v18 = vld [vmem:[%s10802_s29 + $0xa40] sm:$0xff]  ;;  %v681_v19 = vld [vmem:[%s10802_s29 + $0x9f0] sm:$0xff]  ;;  %v704_v24 = vld [vmem:[%s10802_s29 + $0xaa8] sm:$0xff] }
 0x28c   : > { %8703 = vmatprep.subr.bf16.mxu1 %v8702_v38  ;;  %v8718_v38 = vpack.c.bf16 %v622_v29, %v610_v27  ;;  %v693_v22 = vld [vmem:[%s10802_s29 + $0xa50] sm:$0xff]  ;;  %v716_v26 = vld [vmem:[%s10802_s29 + $0xb08] sm:$0xff]  ;;  %v706_v27 = vld [vmem:[%s10802_s29 + $0xab8] sm:$0xff] }
 0x28d   : > { %v718_v29 = vld [vmem:[%s10802_s29 + $0xb18] sm:$0xff] }
 0x28e   : > { %8193 = vmatpush1.bf16.msra.mxu0 %v8192_v47  ;;  %v8208_v47 = vpack.c.bf16 %v619_v36, %v607_v35  ;;  %v703_v35 = vld [vmem:[%s10802_s29 + $0xaa0] sm:$0xff] }
 0x28f   : > { %8705 = vmatpush1.bf16.msra.mxu1 %v8704_v49  ;;  %8195 = vmatprep.subr.bf16.mxu0 %v8194_v50  ;;  %v8720_v49 = vpack.c.bf16 %v621_v39, %v609_v37  ;;  %v8210_v50 = vpack.c.bf16 %v644_v42, %v632_v41  ;;  %v715_v36 = vld [vmem:[%s10802_s29 + $0xb00] sm:$0xff]  ;;  %v705_v37 = vld [vmem:[%s10802_s29 + $0xab0] sm:$0xff]  ;;  %v728_v41 = vld [vmem:[%s10802_s29 + $0xb68] sm:$0xff] }
 0x290   : > { %8707 = vmatprep.subr.bf16.mxu1 %v8706_v54  ;;  %v8722_v54 = vpack.c.bf16 %v646_v46, %v634_v44  ;;  %v717_v39 = vld [vmem:[%s10802_s29 + $0xb10] sm:$0xff]  ;;  %v740_v42 = vld [vmem:[%s10802_s29 + $0xbc8] sm:$0xff]  ;;  %v730_v44 = vld [vmem:[%s10802_s29 + $0xb78] sm:$0xff] }
 0x291   : > { %v742_v46 = vld [vmem:[%s10802_s29 + $0xbd8] sm:$0xff] }
 0x292   : > { %8197 = vmatpush1.bf16.msra.mxu0 %v8196_v61  ;;  %v8212_v61 = vpack.c.bf16 %v643_v52, %v631_v51  ;;  %v727_v51 = vld [vmem:[%s10802_s29 + $0xb60] sm:$0xff] }
 0x293   : > { %8709 = vmatpush1.bf16.msra.mxu1 %v8708_v63  ;;  %8199 = vmatprep.subr.bf16.mxu0 %v8198_v0  ;;  %v8724_v63 = vpack.c.bf16 %v645_v55, %v633_v53  ;;  %v8214_v0 = vpack.c.bf16 %v668_v57, %v656_v56  ;;  %v739_v52 = vld [vmem:[%s10802_s29 + $0xbc0] sm:$0xff]  ;;  %v729_v53 = vld [vmem:[%s10802_s29 + $0xb70] sm:$0xff]  ;;  %v752_v56 = vld [vmem:[%s10802_s29 + $0xc28] sm:$0xff] }
 0x294   : > { %8711 = vmatprep.subr.bf16.mxu1 %v8710_v4  ;;  %v8726_v4 = vpack.c.bf16 %v670_v59, %v658_v58  ;;  %v741_v55 = vld [vmem:[%s10802_s29 + $0xbd0] sm:$0xff]  ;;  %v764_v57 = vld [vmem:[%s10802_s29 + $0xc88] sm:$0xff]  ;;  %v754_v58 = vld [vmem:[%s10802_s29 + $0xc38] sm:$0xff] }
 0x295   : > { %v766_v59 = vld [vmem:[%s10802_s29 + $0xc98] sm:$0xff] }
 0x296   : > { %8201 = vmatpush1.bf16.msra.mxu0 %v8200_v13  ;;  %v8216_v13 = vpack.c.bf16 %v667_v2, %v655_v1  ;;  %v751_v1 = vld [vmem:[%s10802_s29 + $0xc20] sm:$0xff] }
 0x297   : > { %8713 = vmatpush1.bf16.msra.mxu1 %v8712_v14  ;;  %8203 = vmatprep.subr.bf16.mxu0 %v8202_v15  ;;  %v8728_v14 = vpack.c.bf16 %v669_v5, %v657_v3  ;;  %v8218_v15 = vpack.c.bf16 %v692_v7, %v680_v6  ;;  %v763_v2 = vld [vmem:[%s10802_s29 + $0xc80] sm:$0xff]  ;;  %v753_v3 = vld [vmem:[%s10802_s29 + $0xc30] sm:$0xff]  ;;  %v776_v6 = vld [vmem:[%s10802_s29 + $0xce8] sm:$0xff] }
 0x298   : > { %8715 = vmatprep.subr.bf16.mxu1 %v8714_v21  ;;  %v8730_v21 = vpack.c.bf16 %v694_v12, %v682_v10  ;;  %v765_v5 = vld [vmem:[%s10802_s29 + $0xc90] sm:$0xff]  ;;  %v788_v7 = vld [vmem:[%s10802_s29 + $0xd48] sm:$0xff]  ;;  %v778_v10 = vld [vmem:[%s10802_s29 + $0xcf8] sm:$0xff] }
 0x299   : > { %v790_v12 = vld [vmem:[%s10802_s29 + $0xd58] sm:$0xff] }
 0x29a   : > { %8205 = vmatpush1.bf16.msra.mxu0 %v8204_v32  ;;  %v8220_v32 = vpack.c.bf16 %v691_v18, %v679_v17  ;;  %v775_v17 = vld [vmem:[%s10802_s29 + $0xce0] sm:$0xff] }
 0x29b   : > { %8717 = vmatpush1.bf16.msra.mxu1 %v8716_v33  ;;  %8207 = vmatprep.subr.bf16.mxu0 %v8206_v34  ;;  %v8732_v33 = vpack.c.bf16 %v693_v22, %v681_v19  ;;  %v8222_v34 = vpack.c.bf16 %v716_v26, %v704_v24  ;;  %v787_v18 = vld [vmem:[%s10802_s29 + $0xd40] sm:$0xff]  ;;  %v777_v19 = vld [vmem:[%s10802_s29 + $0xcf0] sm:$0xff]  ;;  %v800_v24 = vld [vmem:[%s10802_s29 + $0xda8] sm:$0xff] }
 0x29c   : > { %8719 = vmatprep.subr.bf16.mxu1 %v8718_v38  ;;  %v8734_v38 = vpack.c.bf16 %v718_v29, %v706_v27  ;;  %v789_v22 = vld [vmem:[%s10802_s29 + $0xd50] sm:$0xff]  ;;  %v812_v26 = vld [vmem:[%s10802_s29 + $0xe08] sm:$0xff]  ;;  %v802_v27 = vld [vmem:[%s10802_s29 + $0xdb8] sm:$0xff] }
 0x29d   : > { %v814_v29 = vld [vmem:[%s10802_s29 + $0xe18] sm:$0xff] }
 0x29e   : > { %8209 = vmatpush1.bf16.msra.mxu0 %v8208_v47  ;;  %v8224_v47 = vpack.c.bf16 %v715_v36, %v703_v35  ;;  %v799_v35 = vld [vmem:[%s10802_s29 + $0xda0] sm:$0xff] }
 0x29f   : > { %8721 = vmatpush1.bf16.msra.mxu1 %v8720_v49  ;;  %8211 = vmatprep.subr.bf16.mxu0 %v8210_v50  ;;  %v8736_v49 = vpack.c.bf16 %v717_v39, %v705_v37  ;;  %v8226_v50 = vpack.c.bf16 %v740_v42, %v728_v41  ;;  %v811_v36 = vld [vmem:[%s10802_s29 + $0xe00] sm:$0xff]  ;;  %v801_v37 = vld [vmem:[%s10802_s29 + $0xdb0] sm:$0xff]  ;;  %v824_v41 = vld [vmem:[%s10802_s29 + $0xe68] sm:$0xff] }
 0x2a0   : > { %8723 = vmatprep.subr.bf16.mxu1 %v8722_v54  ;;  %v8738_v54 = vpack.c.bf16 %v742_v46, %v730_v44  ;;  %v813_v39 = vld [vmem:[%s10802_s29 + $0xe10] sm:$0xff]  ;;  %v836_v42 = vld [vmem:[%s10802_s29 + $0xec8] sm:$0xff]  ;;  %v826_v44 = vld [vmem:[%s10802_s29 + $0xe78] sm:$0xff] }
 0x2a1   : > { %v838_v46 = vld [vmem:[%s10802_s29 + $0xed8] sm:$0xff] }
 0x2a2   : > { %8213 = vmatpush1.bf16.msra.mxu0 %v8212_v61  ;;  %v8228_v61 = vpack.c.bf16 %v739_v52, %v727_v51  ;;  %v823_v51 = vld [vmem:[%s10802_s29 + $0xe60] sm:$0xff] }
 0x2a3   : > { %8725 = vmatpush1.bf16.msra.mxu1 %v8724_v63  ;;  %8215 = vmatprep.subr.bf16.mxu0 %v8214_v0  ;;  %v8740_v63 = vpack.c.bf16 %v741_v55, %v729_v53  ;;  %v8230_v0 = vpack.c.bf16 %v764_v57, %v752_v56  ;;  %v835_v52 = vld [vmem:[%s10802_s29 + $0xec0] sm:$0xff]  ;;  %v825_v53 = vld [vmem:[%s10802_s29 + $0xe70] sm:$0xff]  ;;  %v848_v56 = vld [vmem:[%s10802_s29 + $0xf28] sm:$0xff] }
 0x2a4   : > { %8727 = vmatprep.subr.bf16.mxu1 %v8726_v4  ;;  %v8742_v4 = vpack.c.bf16 %v766_v59, %v754_v58  ;;  %v837_v55 = vld [vmem:[%s10802_s29 + $0xed0] sm:$0xff]  ;;  %v860_v57 = vld [vmem:[%s10802_s29 + $0xf88] sm:$0xff]  ;;  %v850_v58 = vld [vmem:[%s10802_s29 + $0xf38] sm:$0xff] }
 0x2a5   : > { %v862_v59 = vld [vmem:[%s10802_s29 + $0xf98] sm:$0xff] }
 0x2a6   : > { %8217 = vmatpush1.bf16.msra.mxu0 %v8216_v13  ;;  %v8232_v13 = vpack.c.bf16 %v763_v2, %v751_v1  ;;  %v847_v1 = vld [vmem:[%s10802_s29 + $0xf20] sm:$0xff] }
 0x2a7   : > { %8729 = vmatpush1.bf16.msra.mxu1 %v8728_v14  ;;  %8219 = vmatprep.subr.bf16.mxu0 %v8218_v15  ;;  %v8744_v14 = vpack.c.bf16 %v765_v5, %v753_v3  ;;  %v8234_v15 = vpack.c.bf16 %v788_v7, %v776_v6  ;;  %v859_v2 = vld [vmem:[%s10802_s29 + $0xf80] sm:$0xff]  ;;  %v849_v3 = vld [vmem:[%s10802_s29 + $0xf30] sm:$0xff]  ;;  %v872_v6 = vld [vmem:[%s10802_s29 + $0xfe8] sm:$0xff] }
 0x2a8   : > { %8731 = vmatprep.subr.bf16.mxu1 %v8730_v21  ;;  %v8746_v21 = vpack.c.bf16 %v790_v12, %v778_v10  ;;  %v861_v5 = vld [vmem:[%s10802_s29 + $0xf90] sm:$0xff]  ;;  %v884_v7 = vld [vmem:[%s10802_s29 + $0x1048] sm:$0xff]  ;;  %v874_v10 = vld [vmem:[%s10802_s29 + $0xff8] sm:$0xff] }
 0x2a9   : > { %v886_v12 = vld [vmem:[%s10802_s29 + $0x1058] sm:$0xff] }
 0x2aa   : > { %8221 = vmatpush1.bf16.msra.mxu0 %v8220_v32  ;;  %v8236_v32 = vpack.c.bf16 %v787_v18, %v775_v17  ;;  %v871_v17 = vld [vmem:[%s10802_s29 + $0xfe0] sm:$0xff] }
 0x2ab   : > { %8733 = vmatpush1.bf16.msra.mxu1 %v8732_v33  ;;  %8223 = vmatprep.subr.bf16.mxu0 %v8222_v34  ;;  %v8748_v33 = vpack.c.bf16 %v789_v22, %v777_v19  ;;  %v8238_v34 = vpack.c.bf16 %v812_v26, %v800_v24  ;;  %v883_v18 = vld [vmem:[%s10802_s29 + $0x1040] sm:$0xff]  ;;  %v873_v19 = vld [vmem:[%s10802_s29 + $0xff0] sm:$0xff]  ;;  %v896_v24 = vld [vmem:[%s10802_s29 + $0x10a8] sm:$0xff] }
 0x2ac   : > { %8735 = vmatprep.subr.bf16.mxu1 %v8734_v38  ;;  %v8750_v38 = vpack.c.bf16 %v814_v29, %v802_v27  ;;  %v885_v22 = vld [vmem:[%s10802_s29 + $0x1050] sm:$0xff]  ;;  %v908_v26 = vld [vmem:[%s10802_s29 + $0x1108] sm:$0xff]  ;;  %v898_v27 = vld [vmem:[%s10802_s29 + $0x10b8] sm:$0xff] }
 0x2ad   : > { %v910_v29 = vld [vmem:[%s10802_s29 + $0x1118] sm:$0xff] }
 0x2ae   : > { %8225 = vmatpush1.bf16.msra.mxu0 %v8224_v47  ;;  %v8240_v47 = vpack.c.bf16 %v811_v36, %v799_v35  ;;  %v895_v35 = vld [vmem:[%s10802_s29 + $0x10a0] sm:$0xff] }
 0x2af   : > { %8737 = vmatpush1.bf16.msra.mxu1 %v8736_v49  ;;  %8227 = vmatprep.subr.bf16.mxu0 %v8226_v50  ;;  %v8752_v49 = vpack.c.bf16 %v813_v39, %v801_v37  ;;  %v8242_v50 = vpack.c.bf16 %v836_v42, %v824_v41  ;;  %v907_v36 = vld [vmem:[%s10802_s29 + $0x1100] sm:$0xff]  ;;  %v897_v37 = vld [vmem:[%s10802_s29 + $0x10b0] sm:$0xff]  ;;  %v920_v41 = vld [vmem:[%s10802_s29 + $0x1168] sm:$0xff] }
 0x2b0   : > { %8739 = vmatprep.subr.bf16.mxu1 %v8738_v54  ;;  %v8754_v54 = vpack.c.bf16 %v838_v46, %v826_v44  ;;  %v909_v39 = vld [vmem:[%s10802_s29 + $0x1110] sm:$0xff]  ;;  %v932_v42 = vld [vmem:[%s10802_s29 + $0x11c8] sm:$0xff]  ;;  %v922_v44 = vld [vmem:[%s10802_s29 + $0x1178] sm:$0xff] }
 0x2b1   : > { %v934_v46 = vld [vmem:[%s10802_s29 + $0x11d8] sm:$0xff] }
 0x2b2   : > { %8229 = vmatpush1.bf16.msra.mxu0 %v8228_v61  ;;  %v8244_v61 = vpack.c.bf16 %v835_v52, %v823_v51  ;;  %v919_v51 = vld [vmem:[%s10802_s29 + $0x1160] sm:$0xff] }
 0x2b3   : > { %8741 = vmatpush1.bf16.msra.mxu1 %v8740_v63  ;;  %8231 = vmatprep.subr.bf16.mxu0 %v8230_v0  ;;  %v8756_v63 = vpack.c.bf16 %v837_v55, %v825_v53  ;;  %v8246_v0 = vpack.c.bf16 %v860_v57, %v848_v56  ;;  %v931_v52 = vld [vmem:[%s10802_s29 + $0x11c0] sm:$0xff]  ;;  %v921_v53 = vld [vmem:[%s10802_s29 + $0x1170] sm:$0xff]  ;;  %v944_v56 = vld [vmem:[%s10802_s29 + $0x1228] sm:$0xff] }
 0x2b4   : > { %8743 = vmatprep.subr.bf16.mxu1 %v8742_v4  ;;  %v8758_v4 = vpack.c.bf16 %v862_v59, %v850_v58  ;;  %v933_v55 = vld [vmem:[%s10802_s29 + $0x11d0] sm:$0xff]  ;;  %v956_v57 = vld [vmem:[%s10802_s29 + $0x1288] sm:$0xff]  ;;  %v946_v58 = vld [vmem:[%s10802_s29 + $0x1238] sm:$0xff] }
 0x2b5   : > { %4636 = vmatmul.mubr.f32.vlgmr.msra.gmra.mrb[2].mxu0 %v10985_v16  ;;  %v958_v59 = vld [vmem:[%s10802_s29 + $0x1298] sm:$0xff] }
 0x2b6   : > { %8233 = vmatpush1.bf16.msra.mxu0 %v8232_v13  ;;  %5204 = vmatmul.mubr.f32.vlgmr.msra.gmra.mrb[2].mxu1 %v10985_v16  ;;  %v8248_v13 = vpack.c.bf16 %v859_v2, %v847_v1  ;;  %v943_v1 = vld [vmem:[%s10802_s29 + $0x1220] sm:$0xff] }
 0x2b7   : > { %8745 = vmatpush1.bf16.msra.mxu1 %v8744_v14  ;;  %8235 = vmatprep.subr.bf16.mxu0 %v8234_v15  ;;  %v8760_v14 = vpack.c.bf16 %v861_v5, %v849_v3  ;;  %v8250_v15 = vpack.c.bf16 %v884_v7, %v872_v6  ;;  %v955_v2 = vld [vmem:[%s10802_s29 + $0x1280] sm:$0xff]  ;;  %v945_v3 = vld [vmem:[%s10802_s29 + $0x1230] sm:$0xff]  ;;  %v968_v6 = vld [vmem:[%s10802_s29 + $0x12e8] sm:$0xff] }
 0x2b8   : > { %8747 = vmatprep.subr.bf16.mxu1 %v8746_v21  ;;  %4706 = vmatprep.mubr.f32.mxu0 %v11040_v31  ;;  %v8762_v21 = vpack.c.bf16 %v886_v12, %v874_v10  ;;  %v957_v5 = vld [vmem:[%s10802_s29 + $0x1290] sm:$0xff]  ;;  %v980_v7 = vld [vmem:[%s10802_s29 + $0x1348] sm:$0xff]  ;;  %v970_v10 = vld [vmem:[%s10802_s29 + $0x12f8] sm:$0xff] }
 0x2b9   : > { %5274 = vmatprep.mubr.f32.mxu1 %v11040_v31  ;;  %v982_v12 = vld [vmem:[%s10802_s29 + $0x1358] sm:$0xff] }
 0x2ba   : > { %8237 = vmatpush1.bf16.msra.mxu0 %v8236_v32  ;;  %v8252_v32 = vpack.c.bf16 %v883_v18, %v871_v17  ;;  %v967_v17 = vld [vmem:[%s10802_s29 + $0x12e0] sm:$0xff] }
 0x2bb   : > { %8749 = vmatpush1.bf16.msra.mxu1 %v8748_v33  ;;  %8239 = vmatprep.subr.bf16.mxu0 %v8238_v34  ;;  %v8764_v33 = vpack.c.bf16 %v885_v22, %v873_v19  ;;  %v8254_v34 = vpack.c.bf16 %v908_v26, %v896_v24  ;;  %v979_v18 = vld [vmem:[%s10802_s29 + $0x1340] sm:$0xff]  ;;  %v969_v19 = vld [vmem:[%s10802_s29 + $0x12f0] sm:$0xff]  ;;  %v992_v24 = vld [vmem:[%s10802_s29 + $0x13a8] sm:$0xff] }
 0x2bc   : > { %8751 = vmatprep.subr.bf16.mxu1 %v8750_v38  ;;  %v8766_v38 = vpack.c.bf16 %v910_v29, %v898_v27  ;;  %v981_v22 = vld [vmem:[%s10802_s29 + $0x1350] sm:$0xff]  ;;  %v1004_v26 = vld [vmem:[%s10802_s29 + $0x1408] sm:$0xff]  ;;  %v994_v27 = vld [vmem:[%s10802_s29 + $0x13b8] sm:$0xff] }
 0x2bd   : > { %v1006_v29 = vld [vmem:[%s10802_s29 + $0x1418] sm:$0xff] }
 0x2be   : > { %8241 = vmatpush1.bf16.msra.mxu0 %v8240_v47  ;;  %v8256_v47 = vpack.c.bf16 %v907_v36, %v895_v35  ;;  %v991_v35 = vld [vmem:[%s10802_s29 + $0x13a0] sm:$0xff] }
 0x2bf   : > { %8753 = vmatpush1.bf16.msra.mxu1 %v8752_v49  ;;  %8243 = vmatprep.subr.bf16.mxu0 %v8242_v50  ;;  %v8768_v49 = vpack.c.bf16 %v909_v39, %v897_v37  ;;  %v8258_v50 = vpack.c.bf16 %v932_v42, %v920_v41  ;;  %v1003_v36 = vld [vmem:[%s10802_s29 + $0x1400] sm:$0xff]  ;;  %v993_v37 = vld [vmem:[%s10802_s29 + $0x13b0] sm:$0xff]  ;;  %v1016_v41 = vld [vmem:[%s10802_s29 + $0x1468] sm:$0xff] }
 0x2c0   : > { %8755 = vmatprep.subr.bf16.mxu1 %v8754_v54  ;;  %v8770_v54 = vpack.c.bf16 %v934_v46, %v922_v44  ;;  %v1005_v39 = vld [vmem:[%s10802_s29 + $0x1410] sm:$0xff]  ;;  %v1028_v42 = vld [vmem:[%s10802_s29 + $0x14c8] sm:$0xff]  ;;  %v1018_v44 = vld [vmem:[%s10802_s29 + $0x1478] sm:$0xff] }
 0x2c1   : > { %v1030_v46 = vld [vmem:[%s10802_s29 + $0x14d8] sm:$0xff] }
 0x2c2   : > { %8245 = vmatpush1.bf16.msra.mxu0 %v8244_v61  ;;  %v8260_v61 = vpack.c.bf16 %v931_v52, %v919_v51  ;;  %v1015_v51 = vld [vmem:[%s10802_s29 + $0x1460] sm:$0xff] }
 0x2c3   : > { %8757 = vmatpush1.bf16.msra.mxu1 %v8756_v63  ;;  %8247 = vmatprep.subr.bf16.mxu0 %v8246_v0  ;;  %v8772_v63 = vpack.c.bf16 %v933_v55, %v921_v53  ;;  %v8262_v0 = vpack.c.bf16 %v956_v57, %v944_v56  ;;  %v1027_v52 = vld [vmem:[%s10802_s29 + $0x14c0] sm:$0xff]  ;;  %v1017_v53 = vld [vmem:[%s10802_s29 + $0x1470] sm:$0xff]  ;;  %v1040_v56 = vld [vmem:[%s10802_s29 + $0x1528] sm:$0xff] }
 0x2c4   : > { %8759 = vmatprep.subr.bf16.mxu1 %v8758_v4  ;;  %v8774_v4 = vpack.c.bf16 %v958_v59, %v946_v58  ;;  %v1029_v55 = vld [vmem:[%s10802_s29 + $0x14d0] sm:$0xff]  ;;  %v1052_v57 = vld [vmem:[%s10802_s29 + $0x1588] sm:$0xff]  ;;  %v1042_v58 = vld [vmem:[%s10802_s29 + $0x1538] sm:$0xff] }
 0x2c5   : > { %v1054_v59 = vld [vmem:[%s10802_s29 + $0x1598] sm:$0xff] }
 0x2c6   : > { %8249 = vmatpush1.bf16.msra.mxu0 %v8248_v13  ;;  %v8264_v13 = vpack.c.bf16 %v955_v2, %v943_v1  ;;  %v1039_v1 = vld [vmem:[%s10802_s29 + $0x1520] sm:$0xff] }
 0x2c7   : > { %8761 = vmatpush1.bf16.msra.mxu1 %v8760_v14  ;;  %8251 = vmatprep.subr.bf16.mxu0 %v8250_v15  ;;  %v8776_v14 = vpack.c.bf16 %v957_v5, %v945_v3  ;;  %v8266_v15 = vpack.c.bf16 %v980_v7, %v968_v6  ;;  %v1051_v2 = vld [vmem:[%s10802_s29 + $0x1580] sm:$0xff]  ;;  %v1041_v3 = vld [vmem:[%s10802_s29 + $0x1530] sm:$0xff]  ;;  %v1064_v6 = vld [vmem:[%s10802_s29 + $0x15e8] sm:$0xff] }
 0x2c8   : > { %8763 = vmatprep.subr.bf16.mxu1 %v8762_v21  ;;  %v8778_v21 = vpack.c.bf16 %v982_v12, %v970_v10  ;;  %v1053_v5 = vld [vmem:[%s10802_s29 + $0x1590] sm:$0xff]  ;;  %v1076_v7 = vld [vmem:[%s10802_s29 + $0x1648] sm:$0xff]  ;;  %v1066_v10 = vld [vmem:[%s10802_s29 + $0x15f8] sm:$0xff] }
 0x2c9   : > { %v1078_v12 = vld [vmem:[%s10802_s29 + $0x1658] sm:$0xff] }
 0x2ca   : > { %8253 = vmatpush1.bf16.msra.mxu0 %v8252_v32  ;;  %v8268_v32 = vpack.c.bf16 %v979_v18, %v967_v17  ;;  %v1063_v17 = vld [vmem:[%s10802_s29 + $0x15e0] sm:$0xff] }
 0x2cb   : > { %8765 = vmatpush1.bf16.msra.mxu1 %v8764_v33  ;;  %8255 = vmatprep.subr.bf16.mxu0 %v8254_v34  ;;  %v8780_v33 = vpack.c.bf16 %v981_v22, %v969_v19  ;;  %v8270_v34 = vpack.c.bf16 %v1004_v26, %v992_v24  ;;  %v1075_v18 = vld [vmem:[%s10802_s29 + $0x1640] sm:$0xff]  ;;  %v1065_v19 = vld [vmem:[%s10802_s29 + $0x15f0] sm:$0xff]  ;;  %v1088_v24 = vld [vmem:[%s10802_s29 + $0x16a8] sm:$0xff] }
 0x2cc   : > { %8767 = vmatprep.subr.bf16.mxu1 %v8766_v38  ;;  %v8782_v38 = vpack.c.bf16 %v1006_v29, %v994_v27  ;;  %v1077_v22 = vld [vmem:[%s10802_s29 + $0x1650] sm:$0xff]  ;;  %v1100_v26 = vld [vmem:[%s10802_s29 + $0x1708] sm:$0xff]  ;;  %v1090_v27 = vld [vmem:[%s10802_s29 + $0x16b8] sm:$0xff] }
 0x2cd   : > { %v1102_v29 = vld [vmem:[%s10802_s29 + $0x1718] sm:$0xff] }
 0x2ce   : > { %8257 = vmatpush1.bf16.msra.mxu0 %v8256_v47  ;;  %v8272_v47 = vpack.c.bf16 %v1003_v36, %v991_v35  ;;  %v1087_v35 = vld [vmem:[%s10802_s29 + $0x16a0] sm:$0xff] }
 0x2cf   : > { %8769 = vmatpush1.bf16.msra.mxu1 %v8768_v49  ;;  %8259 = vmatprep.subr.bf16.mxu0 %v8258_v50  ;;  %v8784_v49 = vpack.c.bf16 %v1005_v39, %v993_v37  ;;  %v8274_v50 = vpack.c.bf16 %v1028_v42, %v1016_v41  ;;  %v1099_v36 = vld [vmem:[%s10802_s29 + $0x1700] sm:$0xff]  ;;  %v1089_v37 = vld [vmem:[%s10802_s29 + $0x16b0] sm:$0xff]  ;;  %v1112_v41 = vld [vmem:[%s10802_s29 + $0x1768] sm:$0xff] }
 0x2d0   : > { %8771 = vmatprep.subr.bf16.mxu1 %v8770_v54  ;;  %v8786_v54 = vpack.c.bf16 %v1030_v46, %v1018_v44  ;;  %v1101_v39 = vld [vmem:[%s10802_s29 + $0x1710] sm:$0xff]  ;;  %v1124_v42 = vld [vmem:[%s10802_s29 + $0x17c8] sm:$0xff]  ;;  %v1114_v44 = vld [vmem:[%s10802_s29 + $0x1778] sm:$0xff] }
 0x2d1   : > { %v1126_v46 = vld [vmem:[%s10802_s29 + $0x17d8] sm:$0xff] }
 0x2d2   : > { %8261 = vmatpush1.bf16.msra.mxu0 %v8260_v61  ;;  %v8276_v61 = vpack.c.bf16 %v1027_v52, %v1015_v51  ;;  %v1111_v51 = vld [vmem:[%s10802_s29 + $0x1760] sm:$0xff] }
 0x2d3   : > { %8773 = vmatpush1.bf16.msra.mxu1 %v8772_v63  ;;  %8263 = vmatprep.subr.bf16.mxu0 %v8262_v0  ;;  %v8788_v63 = vpack.c.bf16 %v1029_v55, %v1017_v53  ;;  %v8278_v0 = vpack.c.bf16 %v1052_v57, %v1040_v56  ;;  %v1123_v52 = vld [vmem:[%s10802_s29 + $0x17c0] sm:$0xff]  ;;  %v1113_v53 = vld [vmem:[%s10802_s29 + $0x1770] sm:$0xff]  ;;  %v1136_v56 = vld [vmem:[%s10802_s29 + $0x1828] sm:$0xff] }
 0x2d4   : > { %8775 = vmatprep.subr.bf16.mxu1 %v8774_v4  ;;  %v8790_v4 = vpack.c.bf16 %v1054_v59, %v1042_v58  ;;  %v1125_v55 = vld [vmem:[%s10802_s29 + $0x17d0] sm:$0xff]  ;;  %v1148_v57 = vld [vmem:[%s10802_s29 + $0x1888] sm:$0xff]  ;;  %v1138_v58 = vld [vmem:[%s10802_s29 + $0x1838] sm:$0xff] }
 0x2d5   : > { %v1150_v59 = vld [vmem:[%s10802_s29 + $0x1898] sm:$0xff] }
 0x2d6   : > { %8265 = vmatpush1.bf16.msra.mxu0 %v8264_v13  ;;  %v8280_v13 = vpack.c.bf16 %v1051_v2, %v1039_v1  ;;  %v1135_v1 = vld [vmem:[%s10802_s29 + $0x1820] sm:$0xff] }
 0x2d7   : > { %8777 = vmatpush1.bf16.msra.mxu1 %v8776_v14  ;;  %8267 = vmatprep.subr.bf16.mxu0 %v8266_v15  ;;  %v8792_v14 = vpack.c.bf16 %v1053_v5, %v1041_v3  ;;  %v8282_v15 = vpack.c.bf16 %v1076_v7, %v1064_v6  ;;  %v1147_v2 = vld [vmem:[%s10802_s29 + $0x1880] sm:$0xff]  ;;  %v1137_v3 = vld [vmem:[%s10802_s29 + $0x1830] sm:$0xff]  ;;  %v1160_v6 = vld [vmem:[%s10802_s29 + $0x18e8] sm:$0xff] }
 0x2d8   : > { %8779 = vmatprep.subr.bf16.mxu1 %v8778_v21  ;;  %v8794_v21 = vpack.c.bf16 %v1078_v12, %v1066_v10  ;;  %v1149_v5 = vld [vmem:[%s10802_s29 + $0x1890] sm:$0xff]  ;;  %v1172_v7 = vld [vmem:[%s10802_s29 + $0x1948] sm:$0xff]  ;;  %v1162_v10 = vld [vmem:[%s10802_s29 + $0x18f8] sm:$0xff] }
 0x2d9   : > { %v1174_v12 = vld [vmem:[%s10802_s29 + $0x1958] sm:$0xff] }
 0x2da   : > { %8269 = vmatpush1.bf16.msra.mxu0 %v8268_v32  ;;  %v8284_v32 = vpack.c.bf16 %v1075_v18, %v1063_v17  ;;  %v1159_v17 = vld [vmem:[%s10802_s29 + $0x18e0] sm:$0xff] }
 0x2db   : > { %8781 = vmatpush1.bf16.msra.mxu1 %v8780_v33  ;;  %8271 = vmatprep.subr.bf16.mxu0 %v8270_v34  ;;  %v8796_v33 = vpack.c.bf16 %v1077_v22, %v1065_v19  ;;  %v8286_v34 = vpack.c.bf16 %v1100_v26, %v1088_v24  ;;  %v1171_v18 = vld [vmem:[%s10802_s29 + $0x1940] sm:$0xff]  ;;  %v1161_v19 = vld [vmem:[%s10802_s29 + $0x18f0] sm:$0xff]  ;;  %v1184_v24 = vld [vmem:[%s10802_s29 + $0x19a8] sm:$0xff] }
 0x2dc   : > { %8783 = vmatprep.subr.bf16.mxu1 %v8782_v38  ;;  %v8798_v38 = vpack.c.bf16 %v1102_v29, %v1090_v27  ;;  %v1173_v22 = vld [vmem:[%s10802_s29 + $0x1950] sm:$0xff]  ;;  %v1196_v26 = vld [vmem:[%s10802_s29 + $0x1a08] sm:$0xff]  ;;  %v1186_v27 = vld [vmem:[%s10802_s29 + $0x19b8] sm:$0xff] }
 0x2dd   : > { %v1198_v29 = vld [vmem:[%s10802_s29 + $0x1a18] sm:$0xff] }
 0x2de   : > { %8273 = vmatpush1.bf16.msra.mxu0 %v8272_v47  ;;  %v8288_v47 = vpack.c.bf16 %v1099_v36, %v1087_v35  ;;  %v1183_v35 = vld [vmem:[%s10802_s29 + $0x19a0] sm:$0xff] }
 0x2df   : > { %8785 = vmatpush1.bf16.msra.mxu1 %v8784_v49  ;;  %8275 = vmatprep.subr.bf16.mxu0 %v8274_v50  ;;  %v8800_v49 = vpack.c.bf16 %v1101_v39, %v1089_v37  ;;  %v8290_v50 = vpack.c.bf16 %v1124_v42, %v1112_v41  ;;  %v1195_v36 = vld [vmem:[%s10802_s29 + $0x1a00] sm:$0xff]  ;;  %v1185_v37 = vld [vmem:[%s10802_s29 + $0x19b0] sm:$0xff]  ;;  %v1208_v41 = vld [vmem:[%s10802_s29 + $0x1a68] sm:$0xff] }
 0x2e0   : > { %8787 = vmatprep.subr.bf16.mxu1 %v8786_v54  ;;  %v8802_v54 = vpack.c.bf16 %v1126_v46, %v1114_v44  ;;  %v1197_v39 = vld [vmem:[%s10802_s29 + $0x1a10] sm:$0xff]  ;;  %v1220_v42 = vld [vmem:[%s10802_s29 + $0x1ac8] sm:$0xff]  ;;  %v1210_v44 = vld [vmem:[%s10802_s29 + $0x1a78] sm:$0xff] }
 0x2e1   : > { %v1222_v46 = vld [vmem:[%s10802_s29 + $0x1ad8] sm:$0xff] }
 0x2e2   : > { %8277 = vmatpush1.bf16.msra.mxu0 %v8276_v61  ;;  %v8292_v61 = vpack.c.bf16 %v1123_v52, %v1111_v51  ;;  %v1207_v51 = vld [vmem:[%s10802_s29 + $0x1a60] sm:$0xff] }
 0x2e3   : > { %8789 = vmatpush1.bf16.msra.mxu1 %v8788_v63  ;;  %8279 = vmatprep.subr.bf16.mxu0 %v8278_v0  ;;  %v8804_v63 = vpack.c.bf16 %v1125_v55, %v1113_v53  ;;  %v8294_v0 = vpack.c.bf16 %v1148_v57, %v1136_v56  ;;  %v1219_v52 = vld [vmem:[%s10802_s29 + $0x1ac0] sm:$0xff]  ;;  %v1209_v53 = vld [vmem:[%s10802_s29 + $0x1a70] sm:$0xff]  ;;  %v1232_v56 = vld [vmem:[%s10802_s29 + $0x1b28] sm:$0xff] }
 0x2e4   : > { %8791 = vmatprep.subr.bf16.mxu1 %v8790_v4  ;;  %v8806_v4 = vpack.c.bf16 %v1150_v59, %v1138_v58  ;;  %v1221_v55 = vld [vmem:[%s10802_s29 + $0x1ad0] sm:$0xff]  ;;  %v1244_v57 = vld [vmem:[%s10802_s29 + $0x1b88] sm:$0xff]  ;;  %v1234_v58 = vld [vmem:[%s10802_s29 + $0x1b38] sm:$0xff] }
 0x2e5   : > { %v1246_v59 = vld [vmem:[%s10802_s29 + $0x1b98] sm:$0xff] }
 0x2e6   : > { %8281 = vmatpush1.bf16.msra.mxu0 %v8280_v13  ;;  %v8296_v13 = vpack.c.bf16 %v1147_v2, %v1135_v1  ;;  %v1231_v1 = vld [vmem:[%s10802_s29 + $0x1b20] sm:$0xff] }
 0x2e7   : > { %8793 = vmatpush1.bf16.msra.mxu1 %v8792_v14  ;;  %8283 = vmatprep.subr.bf16.mxu0 %v8282_v15  ;;  %v8808_v14 = vpack.c.bf16 %v1149_v5, %v1137_v3  ;;  %v8298_v15 = vpack.c.bf16 %v1172_v7, %v1160_v6  ;;  %v1243_v2 = vld [vmem:[%s10802_s29 + $0x1b80] sm:$0xff]  ;;  %v1233_v3 = vld [vmem:[%s10802_s29 + $0x1b30] sm:$0xff]  ;;  %v1256_v6 = vld [vmem:[%s10802_s29 + $0x1be8] sm:$0xff] }
 0x2e8   : > { %8795 = vmatprep.subr.bf16.mxu1 %v8794_v21  ;;  %v8810_v21 = vpack.c.bf16 %v1174_v12, %v1162_v10  ;;  %v1245_v5 = vld [vmem:[%s10802_s29 + $0x1b90] sm:$0xff]  ;;  %v1268_v7 = vld [vmem:[%s10802_s29 + $0x1c48] sm:$0xff]  ;;  %v1258_v10 = vld [vmem:[%s10802_s29 + $0x1bf8] sm:$0xff] }
 0x2e9   : > { %v1270_v12 = vld [vmem:[%s10802_s29 + $0x1c58] sm:$0xff] }
 0x2ea   : > { %8285 = vmatpush1.bf16.msra.mxu0 %v8284_v32  ;;  %v8300_v32 = vpack.c.bf16 %v1171_v18, %v1159_v17  ;;  %v1255_v17 = vld [vmem:[%s10802_s29 + $0x1be0] sm:$0xff] }
 0x2eb   : > { %8797 = vmatpush1.bf16.msra.mxu1 %v8796_v33  ;;  %8287 = vmatprep.subr.bf16.mxu0 %v8286_v34  ;;  %v8812_v33 = vpack.c.bf16 %v1173_v22, %v1161_v19  ;;  %v8302_v34 = vpack.c.bf16 %v1196_v26, %v1184_v24  ;;  %v1267_v18 = vld [vmem:[%s10802_s29 + $0x1c40] sm:$0xff]  ;;  %v1257_v19 = vld [vmem:[%s10802_s29 + $0x1bf0] sm:$0xff]  ;;  %v1280_v24 = vld [vmem:[%s10802_s29 + $0x1ca8] sm:$0xff] }
 0x2ec   : > { %8799 = vmatprep.subr.bf16.mxu1 %v8798_v38  ;;  %v8814_v38 = vpack.c.bf16 %v1198_v29, %v1186_v27  ;;  %v1269_v22 = vld [vmem:[%s10802_s29 + $0x1c50] sm:$0xff]  ;;  %v1292_v26 = vld [vmem:[%s10802_s29 + $0x1d08] sm:$0xff]  ;;  %v1282_v27 = vld [vmem:[%s10802_s29 + $0x1cb8] sm:$0xff] }
 0x2ed   : > { %v1294_v29 = vld [vmem:[%s10802_s29 + $0x1d18] sm:$0xff] }
 0x2ee   : > { %8289 = vmatpush1.bf16.msra.mxu0 %v8288_v47  ;;  %v8304_v47 = vpack.c.bf16 %v1195_v36, %v1183_v35  ;;  %v1279_v35 = vld [vmem:[%s10802_s29 + $0x1ca0] sm:$0xff] }
 0x2ef   : > { %8801 = vmatpush1.bf16.msra.mxu1 %v8800_v49  ;;  %8291 = vmatprep.subr.bf16.mxu0 %v8290_v50  ;;  %v8816_v49 = vpack.c.bf16 %v1197_v39, %v1185_v37  ;;  %v8306_v50 = vpack.c.bf16 %v1220_v42, %v1208_v41  ;;  %v1291_v36 = vld [vmem:[%s10802_s29 + $0x1d00] sm:$0xff]  ;;  %v1281_v37 = vld [vmem:[%s10802_s29 + $0x1cb0] sm:$0xff]  ;;  %v1304_v41 = vld [vmem:[%s10802_s29 + $0x1d68] sm:$0xff] }
 0x2f0   : > { %8803 = vmatprep.subr.bf16.mxu1 %v8802_v54  ;;  %v8818_v54 = vpack.c.bf16 %v1222_v46, %v1210_v44  ;;  %v1293_v39 = vld [vmem:[%s10802_s29 + $0x1d10] sm:$0xff]  ;;  %v1316_v42 = vld [vmem:[%s10802_s29 + $0x1dc8] sm:$0xff]  ;;  %v1306_v44 = vld [vmem:[%s10802_s29 + $0x1d78] sm:$0xff] }
 0x2f1   : > { %v1318_v46 = vld [vmem:[%s10802_s29 + $0x1dd8] sm:$0xff] }
 0x2f2   : > { %8293 = vmatpush1.bf16.msra.mxu0 %v8292_v61  ;;  %v8308_v61 = vpack.c.bf16 %v1219_v52, %v1207_v51  ;;  %v1303_v51 = vld [vmem:[%s10802_s29 + $0x1d60] sm:$0xff] }
 0x2f3   : > { %8805 = vmatpush1.bf16.msra.mxu1 %v8804_v63  ;;  %8295 = vmatprep.subr.bf16.mxu0 %v8294_v0  ;;  %v8820_v63 = vpack.c.bf16 %v1221_v55, %v1209_v53  ;;  %v8310_v0 = vpack.c.bf16 %v1244_v57, %v1232_v56  ;;  %v1315_v52 = vld [vmem:[%s10802_s29 + $0x1dc0] sm:$0xff]  ;;  %v1305_v53 = vld [vmem:[%s10802_s29 + $0x1d70] sm:$0xff]  ;;  %v1328_v56 = vld [vmem:[%s10802_s29 + $0x1e28] sm:$0xff] }
 0x2f4   : > { %8807 = vmatprep.subr.bf16.mxu1 %v8806_v4  ;;  %v8822_v4 = vpack.c.bf16 %v1246_v59, %v1234_v58  ;;  %v1317_v55 = vld [vmem:[%s10802_s29 + $0x1dd0] sm:$0xff]  ;;  %v1340_v57 = vld [vmem:[%s10802_s29 + $0x1e88] sm:$0xff]  ;;  %v1330_v58 = vld [vmem:[%s10802_s29 + $0x1e38] sm:$0xff] }
 0x2f5   : > { %4707 = vmatmul.mubr.f32.vlgmr.msra.gmra.mrb[2].mxu0 %v11123_v28  ;;  %v1342_v59 = vld [vmem:[%s10802_s29 + $0x1e98] sm:$0xff] }
 0x2f6   : > { %8297 = vmatpush1.bf16.msra.mxu0 %v8296_v13  ;;  %5275 = vmatmul.mubr.f32.vlgmr.msra.gmra.mrb[2].mxu1 %v11123_v28  ;;  %v8312_v13 = vpack.c.bf16 %v1243_v2, %v1231_v1  ;;  %v1327_v1 = vld [vmem:[%s10802_s29 + $0x1e20] sm:$0xff] }
 0x2f7   : > { %8809 = vmatpush1.bf16.msra.mxu1 %v8808_v14  ;;  %8299 = vmatprep.subr.bf16.mxu0 %v8298_v15  ;;  %v8824_v14 = vpack.c.bf16 %v1245_v5, %v1233_v3  ;;  %v8314_v15 = vpack.c.bf16 %v1268_v7, %v1256_v6  ;;  %v1339_v2 = vld [vmem:[%s10802_s29 + $0x1e80] sm:$0xff]  ;;  %v1329_v3 = vld [vmem:[%s10802_s29 + $0x1e30] sm:$0xff]  ;;  %v1352_v6 = vld [vmem:[%s10802_s29 + $0x1ee8] sm:$0xff] }
 0x2f8   : > { %8811 = vmatprep.subr.bf16.mxu1 %v8810_v21  ;;  %4777 = vmatprep.mubr.f32.mxu0 %v11134_v43  ;;  %v8826_v21 = vpack.c.bf16 %v1270_v12, %v1258_v10  ;;  %v1341_v5 = vld [vmem:[%s10802_s29 + $0x1e90] sm:$0xff]  ;;  %v1364_v7 = vld [vmem:[%s10802_s29 + $0x1f48] sm:$0xff]  ;;  %v1354_v10 = vld [vmem:[%s10802_s29 + $0x1ef8] sm:$0xff] }
 0x2f9   : > { %5345 = vmatprep.mubr.f32.mxu1 %v11134_v43  ;;  %v1366_v12 = vld [vmem:[%s10802_s29 + $0x1f58] sm:$0xff] }
 0x2fa   : > { %8301 = vmatpush1.bf16.msra.mxu0 %v8300_v32  ;;  %v8316_v32 = vpack.c.bf16 %v1267_v18, %v1255_v17  ;;  %v1351_v17 = vld [vmem:[%s10802_s29 + $0x1ee0] sm:$0xff] }
 0x2fb   : > { %8813 = vmatpush1.bf16.msra.mxu1 %v8812_v33  ;;  %8303 = vmatprep.subr.bf16.mxu0 %v8302_v34  ;;  %v8828_v33 = vpack.c.bf16 %v1269_v22, %v1257_v19  ;;  %v8318_v34 = vpack.c.bf16 %v1292_v26, %v1280_v24  ;;  %v1363_v18 = vld [vmem:[%s10802_s29 + $0x1f40] sm:$0xff]  ;;  %v1353_v19 = vld [vmem:[%s10802_s29 + $0x1ef0] sm:$0xff]  ;;  %v1376_v24 = vld [vmem:[%s10802_s29 + $0x1fa8] sm:$0xff] }
 0x2fc   : > { %8815 = vmatprep.subr.bf16.mxu1 %v8814_v38  ;;  %v8830_v38 = vpack.c.bf16 %v1294_v29, %v1282_v27  ;;  %v1365_v22 = vld [vmem:[%s10802_s29 + $0x1f50] sm:$0xff]  ;;  %v1388_v26 = vld [vmem:[%s10802_s29 + $0x2008] sm:$0xff]  ;;  %v1378_v27 = vld [vmem:[%s10802_s29 + $0x1fb8] sm:$0xff] }
 0x2fd   : > { %v1390_v29 = vld [vmem:[%s10802_s29 + $0x2018] sm:$0xff] }
 0x2fe   : > { %8305 = vmatpush1.bf16.msra.mxu0 %v8304_v47  ;;  %v8320_v47 = vpack.c.bf16 %v1291_v36, %v1279_v35  ;;  %v1375_v35 = vld [vmem:[%s10802_s29 + $0x1fa0] sm:$0xff] }
 0x2ff   : > { %8817 = vmatpush1.bf16.msra.mxu1 %v8816_v49  ;;  %8307 = vmatprep.subr.bf16.mxu0 %v8306_v50  ;;  %v8832_v49 = vpack.c.bf16 %v1293_v39, %v1281_v37  ;;  %v8322_v50 = vpack.c.bf16 %v1316_v42, %v1304_v41  ;;  %v1387_v36 = vld [vmem:[%s10802_s29 + $0x2000] sm:$0xff]  ;;  %v1377_v37 = vld [vmem:[%s10802_s29 + $0x1fb0] sm:$0xff]  ;;  %v1400_v41 = vld [vmem:[%s10802_s29 + $0x2068] sm:$0xff] }
 0x300   : > { %8819 = vmatprep.subr.bf16.mxu1 %v8818_v54  ;;  %v8834_v54 = vpack.c.bf16 %v1318_v46, %v1306_v44  ;;  %v1389_v39 = vld [vmem:[%s10802_s29 + $0x2010] sm:$0xff]  ;;  %v1412_v42 = vld [vmem:[%s10802_s29 + $0x20c8] sm:$0xff]  ;;  %v1402_v44 = vld [vmem:[%s10802_s29 + $0x2078] sm:$0xff] }
 0x301   : > { %v1414_v46 = vld [vmem:[%s10802_s29 + $0x20d8] sm:$0xff] }
 0x302   : > { %8309 = vmatpush1.bf16.msra.mxu0 %v8308_v61  ;;  %v8324_v61 = vpack.c.bf16 %v1315_v52, %v1303_v51  ;;  %v1399_v51 = vld [vmem:[%s10802_s29 + $0x2060] sm:$0xff] }
 0x303   : > { %8821 = vmatpush1.bf16.msra.mxu1 %v8820_v63  ;;  %8311 = vmatprep.subr.bf16.mxu0 %v8310_v0  ;;  %v8836_v63 = vpack.c.bf16 %v1317_v55, %v1305_v53  ;;  %v8326_v0 = vpack.c.bf16 %v1340_v57, %v1328_v56  ;;  %v1411_v52 = vld [vmem:[%s10802_s29 + $0x20c0] sm:$0xff]  ;;  %v1401_v53 = vld [vmem:[%s10802_s29 + $0x2070] sm:$0xff]  ;;  %v1424_v56 = vld [vmem:[%s10802_s29 + $0x2128] sm:$0xff] }
 0x304   : > { %8823 = vmatprep.subr.bf16.mxu1 %v8822_v4  ;;  %v8838_v4 = vpack.c.bf16 %v1342_v59, %v1330_v58  ;;  %v1413_v55 = vld [vmem:[%s10802_s29 + $0x20d0] sm:$0xff]  ;;  %v1436_v57 = vld [vmem:[%s10802_s29 + $0x2188] sm:$0xff]  ;;  %v1426_v58 = vld [vmem:[%s10802_s29 + $0x2138] sm:$0xff] }
 0x305   : > { %v1438_v59 = vld [vmem:[%s10802_s29 + $0x2198] sm:$0xff] }
 0x306   : > { %8313 = vmatpush1.bf16.msra.mxu0 %v8312_v13  ;;  %v8328_v13 = vpack.c.bf16 %v1339_v2, %v1327_v1  ;;  %v1423_v1 = vld [vmem:[%s10802_s29 + $0x2120] sm:$0xff] }
 0x307   : > { %8825 = vmatpush1.bf16.msra.mxu1 %v8824_v14  ;;  %8315 = vmatprep.subr.bf16.mxu0 %v8314_v15  ;;  %v8840_v14 = vpack.c.bf16 %v1341_v5, %v1329_v3  ;;  %v8330_v15 = vpack.c.bf16 %v1364_v7, %v1352_v6  ;;  %v1435_v2 = vld [vmem:[%s10802_s29 + $0x2180] sm:$0xff]  ;;  %v1425_v3 = vld [vmem:[%s10802_s29 + $0x2130] sm:$0xff]  ;;  %v1448_v6 = vld [vmem:[%s10802_s29 + $0x21e8] sm:$0xff] }
 0x308   : > { %8827 = vmatprep.subr.bf16.mxu1 %v8826_v21  ;;  %v8842_v21 = vpack.c.bf16 %v1366_v12, %v1354_v10  ;;  %v1437_v5 = vld [vmem:[%s10802_s29 + $0x2190] sm:$0xff]  ;;  %v1460_v7 = vld [vmem:[%s10802_s29 + $0x2248] sm:$0xff]  ;;  %v1450_v10 = vld [vmem:[%s10802_s29 + $0x21f8] sm:$0xff] }
 0x309   : > { %v1462_v12 = vld [vmem:[%s10802_s29 + $0x2258] sm:$0xff] }
 0x30a   : > { %8317 = vmatpush1.bf16.msra.mxu0 %v8316_v32  ;;  %v8332_v32 = vpack.c.bf16 %v1363_v18, %v1351_v17  ;;  %v1447_v17 = vld [vmem:[%s10802_s29 + $0x21e0] sm:$0xff] }
 0x30b   : > { %8829 = vmatpush1.bf16.msra.mxu1 %v8828_v33  ;;  %8319 = vmatprep.subr.bf16.mxu0 %v8318_v34  ;;  %v8844_v33 = vpack.c.bf16 %v1365_v22, %v1353_v19  ;;  %v8334_v34 = vpack.c.bf16 %v1388_v26, %v1376_v24  ;;  %v1459_v18 = vld [vmem:[%s10802_s29 + $0x2240] sm:$0xff]  ;;  %v1449_v19 = vld [vmem:[%s10802_s29 + $0x21f0] sm:$0xff]  ;;  %v1472_v24 = vld [vmem:[%s10802_s29 + $0x22a8] sm:$0xff] }
 0x30c   : > { %8831 = vmatprep.subr.bf16.mxu1 %v8830_v38  ;;  %v8846_v38 = vpack.c.bf16 %v1390_v29, %v1378_v27  ;;  %v1461_v22 = vld [vmem:[%s10802_s29 + $0x2250] sm:$0xff]  ;;  %v1484_v26 = vld [vmem:[%s10802_s29 + $0x2308] sm:$0xff]  ;;  %v1474_v27 = vld [vmem:[%s10802_s29 + $0x22b8] sm:$0xff] }
 0x30d   : > { %v1486_v29 = vld [vmem:[%s10802_s29 + $0x2318] sm:$0xff] }
 0x30e   : > { %8321 = vmatpush1.bf16.msra.mxu0 %v8320_v47  ;;  %v8336_v47 = vpack.c.bf16 %v1387_v36, %v1375_v35  ;;  %v1471_v35 = vld [vmem:[%s10802_s29 + $0x22a0] sm:$0xff] }
 0x30f   : > { %8833 = vmatpush1.bf16.msra.mxu1 %v8832_v49  ;;  %8323 = vmatprep.subr.bf16.mxu0 %v8322_v50  ;;  %v8848_v49 = vpack.c.bf16 %v1389_v39, %v1377_v37  ;;  %v8338_v50 = vpack.c.bf16 %v1412_v42, %v1400_v41  ;;  %v1483_v36 = vld [vmem:[%s10802_s29 + $0x2300] sm:$0xff]  ;;  %v1473_v37 = vld [vmem:[%s10802_s29 + $0x22b0] sm:$0xff]  ;;  %v1496_v41 = vld [vmem:[%s10802_s29 + $0x2368] sm:$0xff] }
 0x310   : > { %8835 = vmatprep.subr.bf16.mxu1 %v8834_v54  ;;  %v8850_v54 = vpack.c.bf16 %v1414_v46, %v1402_v44  ;;  %v1485_v39 = vld [vmem:[%s10802_s29 + $0x2310] sm:$0xff]  ;;  %v1508_v42 = vld [vmem:[%s10802_s29 + $0x23c8] sm:$0xff]  ;;  %v1498_v44 = vld [vmem:[%s10802_s29 + $0x2378] sm:$0xff] }
 0x311   : > { %v1510_v46 = vld [vmem:[%s10802_s29 + $0x23d8] sm:$0xff] }
 0x312   : > { %8325 = vmatpush1.bf16.msra.mxu0 %v8324_v61  ;;  %v8340_v61 = vpack.c.bf16 %v1411_v52, %v1399_v51  ;;  %v1495_v51 = vld [vmem:[%s10802_s29 + $0x2360] sm:$0xff] }
 0x313   : > { %8837 = vmatpush1.bf16.msra.mxu1 %v8836_v63  ;;  %8327 = vmatprep.subr.bf16.mxu0 %v8326_v0  ;;  %v8852_v63 = vpack.c.bf16 %v1413_v55, %v1401_v53  ;;  %v8342_v0 = vpack.c.bf16 %v1436_v57, %v1424_v56  ;;  %v1507_v52 = vld [vmem:[%s10802_s29 + $0x23c0] sm:$0xff]  ;;  %v1497_v53 = vld [vmem:[%s10802_s29 + $0x2370] sm:$0xff]  ;;  %v1520_v56 = vld [vmem:[%s10802_s29 + $0x2428] sm:$0xff] }
 0x314   : > { %8839 = vmatprep.subr.bf16.mxu1 %v8838_v4  ;;  %v8854_v4 = vpack.c.bf16 %v1438_v59, %v1426_v58  ;;  %v1509_v55 = vld [vmem:[%s10802_s29 + $0x23d0] sm:$0xff]  ;;  %v1532_v57 = vld [vmem:[%s10802_s29 + $0x2488] sm:$0xff]  ;;  %v1522_v58 = vld [vmem:[%s10802_s29 + $0x2438] sm:$0xff] }
 0x315   : > { %v1534_v59 = vld [vmem:[%s10802_s29 + $0x2498] sm:$0xff] }
 0x316   : > { %8329 = vmatpush1.bf16.msra.mxu0 %v8328_v13  ;;  %v8344_v13 = vpack.c.bf16 %v1435_v2, %v1423_v1  ;;  %v1519_v1 = vld [vmem:[%s10802_s29 + $0x2420] sm:$0xff] }
 0x317   : > { %8841 = vmatpush1.bf16.msra.mxu1 %v8840_v14  ;;  %8331 = vmatprep.subr.bf16.mxu0 %v8330_v15  ;;  %v8856_v14 = vpack.c.bf16 %v1437_v5, %v1425_v3  ;;  %v8346_v15 = vpack.c.bf16 %v1460_v7, %v1448_v6  ;;  %v1531_v2 = vld [vmem:[%s10802_s29 + $0x2480] sm:$0xff]  ;;  %v1521_v3 = vld [vmem:[%s10802_s29 + $0x2430] sm:$0xff]  ;;  %v1544_v6 = vld [vmem:[%s10802_s29 + $0x24e8] sm:$0xff] }
 0x318   : > { %8843 = vmatprep.subr.bf16.mxu1 %v8842_v21  ;;  %v8858_v21 = vpack.c.bf16 %v1462_v12, %v1450_v10  ;;  %v1533_v5 = vld [vmem:[%s10802_s29 + $0x2490] sm:$0xff]  ;;  %v1556_v7 = vld [vmem:[%s10802_s29 + $0x2548] sm:$0xff]  ;;  %v1546_v10 = vld [vmem:[%s10802_s29 + $0x24f8] sm:$0xff] }
 0x319   : > { %v1558_v12 = vld [vmem:[%s10802_s29 + $0x2558] sm:$0xff] }
 0x31a   : > { %8333 = vmatpush1.bf16.msra.mxu0 %v8332_v32  ;;  %v8348_v32 = vpack.c.bf16 %v1459_v18, %v1447_v17  ;;  %v1543_v17 = vld [vmem:[%s10802_s29 + $0x24e0] sm:$0xff] }
 0x31b   : > { %8845 = vmatpush1.bf16.msra.mxu1 %v8844_v33  ;;  %8335 = vmatprep.subr.bf16.mxu0 %v8334_v34  ;;  %v8860_v33 = vpack.c.bf16 %v1461_v22, %v1449_v19  ;;  %v8350_v34 = vpack.c.bf16 %v1484_v26, %v1472_v24  ;;  %v1555_v18 = vld [vmem:[%s10802_s29 + $0x2540] sm:$0xff]  ;;  %v1545_v19 = vld [vmem:[%s10802_s29 + $0x24f0] sm:$0xff]  ;;  %v1568_v24 = vld [vmem:[%s10802_s29 + $0x25a8] sm:$0xff] }
 0x31c   : > { %8847 = vmatprep.subr.bf16.mxu1 %v8846_v38  ;;  %v8862_v38 = vpack.c.bf16 %v1486_v29, %v1474_v27  ;;  %v1557_v22 = vld [vmem:[%s10802_s29 + $0x2550] sm:$0xff]  ;;  %v1580_v26 = vld [vmem:[%s10802_s29 + $0x2608] sm:$0xff]  ;;  %v1570_v27 = vld [vmem:[%s10802_s29 + $0x25b8] sm:$0xff] }
 0x31d   : > { %v1582_v29 = vld [vmem:[%s10802_s29 + $0x2618] sm:$0xff] }
 0x31e   : > { %8337 = vmatpush1.bf16.msra.mxu0 %v8336_v47  ;;  %v8352_v47 = vpack.c.bf16 %v1483_v36, %v1471_v35  ;;  %v1567_v35 = vld [vmem:[%s10802_s29 + $0x25a0] sm:$0xff] }
 0x31f   : > { %8849 = vmatpush1.bf16.msra.mxu1 %v8848_v49  ;;  %8339 = vmatprep.subr.bf16.mxu0 %v8338_v50  ;;  %v8864_v49 = vpack.c.bf16 %v1485_v39, %v1473_v37  ;;  %v8354_v50 = vpack.c.bf16 %v1508_v42, %v1496_v41  ;;  %v1579_v36 = vld [vmem:[%s10802_s29 + $0x2600] sm:$0xff]  ;;  %v1569_v37 = vld [vmem:[%s10802_s29 + $0x25b0] sm:$0xff]  ;;  %v1592_v41 = vld [vmem:[%s10802_s29 + $0x2668] sm:$0xff] }
 0x320   : > { %8851 = vmatprep.subr.bf16.mxu1 %v8850_v54  ;;  %v8866_v54 = vpack.c.bf16 %v1510_v46, %v1498_v44  ;;  %v1581_v39 = vld [vmem:[%s10802_s29 + $0x2610] sm:$0xff]  ;;  %v1604_v42 = vld [vmem:[%s10802_s29 + $0x26c8] sm:$0xff]  ;;  %v1594_v44 = vld [vmem:[%s10802_s29 + $0x2678] sm:$0xff] }
 0x321   : > { %v1606_v46 = vld [vmem:[%s10802_s29 + $0x26d8] sm:$0xff] }
 0x322   : > { %8341 = vmatpush1.bf16.msra.mxu0 %v8340_v61  ;;  %v8356_v61 = vpack.c.bf16 %v1507_v52, %v1495_v51  ;;  %v1591_v51 = vld [vmem:[%s10802_s29 + $0x2660] sm:$0xff] }
 0x323   : > { %8853 = vmatpush1.bf16.msra.mxu1 %v8852_v63  ;;  %8343 = vmatprep.subr.bf16.mxu0 %v8342_v0  ;;  %v8868_v63 = vpack.c.bf16 %v1509_v55, %v1497_v53  ;;  %v8358_v0 = vpack.c.bf16 %v1532_v57, %v1520_v56  ;;  %v1603_v52 = vld [vmem:[%s10802_s29 + $0x26c0] sm:$0xff]  ;;  %v1593_v53 = vld [vmem:[%s10802_s29 + $0x2670] sm:$0xff]  ;;  %v1616_v56 = vld [vmem:[%s10802_s29 + $0x2728] sm:$0xff] }
 0x324   : > { %8855 = vmatprep.subr.bf16.mxu1 %v8854_v4  ;;  %v8870_v4 = vpack.c.bf16 %v1534_v59, %v1522_v58  ;;  %v1605_v55 = vld [vmem:[%s10802_s29 + $0x26d0] sm:$0xff]  ;;  %v1628_v57 = vld [vmem:[%s10802_s29 + $0x2788] sm:$0xff]  ;;  %v1618_v58 = vld [vmem:[%s10802_s29 + $0x2738] sm:$0xff] }
 0x325   : > { %v1630_v59 = vld [vmem:[%s10802_s29 + $0x2798] sm:$0xff] }
 0x326   : > { %8345 = vmatpush1.bf16.msra.mxu0 %v8344_v13  ;;  %v8360_v13 = vpack.c.bf16 %v1531_v2, %v1519_v1  ;;  %v1615_v1 = vld [vmem:[%s10802_s29 + $0x2720] sm:$0xff] }
 0x327   : > { %8857 = vmatpush1.bf16.msra.mxu1 %v8856_v14  ;;  %8347 = vmatprep.subr.bf16.mxu0 %v8346_v15  ;;  %v8872_v14 = vpack.c.bf16 %v1533_v5, %v1521_v3  ;;  %v8362_v15 = vpack.c.bf16 %v1556_v7, %v1544_v6  ;;  %v1627_v2 = vld [vmem:[%s10802_s29 + $0x2780] sm:$0xff]  ;;  %v1617_v3 = vld [vmem:[%s10802_s29 + $0x2730] sm:$0xff]  ;;  %v1640_v6 = vld [vmem:[%s10802_s29 + $0x27e8] sm:$0xff] }
 0x328   : > { %8859 = vmatprep.subr.bf16.mxu1 %v8858_v21  ;;  %v8874_v21 = vpack.c.bf16 %v1558_v12, %v1546_v10  ;;  %v1629_v5 = vld [vmem:[%s10802_s29 + $0x2790] sm:$0xff]  ;;  %v1652_v7 = vld [vmem:[%s10802_s29 + $0x2848] sm:$0xff]  ;;  %v1642_v10 = vld [vmem:[%s10802_s29 + $0x27f8] sm:$0xff] }
 0x329   : > { %v1654_v12 = vld [vmem:[%s10802_s29 + $0x2858] sm:$0xff] }
 0x32a   : > { %8349 = vmatpush1.bf16.msra.mxu0 %v8348_v32  ;;  %v8364_v32 = vpack.c.bf16 %v1555_v18, %v1543_v17  ;;  %v1639_v17 = vld [vmem:[%s10802_s29 + $0x27e0] sm:$0xff] }
 0x32b   : > { %8861 = vmatpush1.bf16.msra.mxu1 %v8860_v33  ;;  %8351 = vmatprep.subr.bf16.mxu0 %v8350_v34  ;;  %v8876_v33 = vpack.c.bf16 %v1557_v22, %v1545_v19  ;;  %v8366_v34 = vpack.c.bf16 %v1580_v26, %v1568_v24  ;;  %v1651_v18 = vld [vmem:[%s10802_s29 + $0x2840] sm:$0xff]  ;;  %v1641_v19 = vld [vmem:[%s10802_s29 + $0x27f0] sm:$0xff]  ;;  %v1664_v24 = vld [vmem:[%s10802_s29 + $0x28a8] sm:$0xff] }
 0x32c   : > { %8863 = vmatprep.subr.bf16.mxu1 %v8862_v38  ;;  %v8878_v38 = vpack.c.bf16 %v1582_v29, %v1570_v27  ;;  %v1653_v22 = vld [vmem:[%s10802_s29 + $0x2850] sm:$0xff]  ;;  %v1676_v26 = vld [vmem:[%s10802_s29 + $0x2908] sm:$0xff]  ;;  %v351_v27 = vld [vmem:[%s10826_s8] sm:$0xff] }
 0x32d   : > { %v1666_v29 = vld [vmem:[%s10802_s29 + $0x28b8] sm:$0xff] }
 0x32e   : > { %8353 = vmatpush1.bf16.msra.mxu0 %v8352_v47  ;;  %v8368_v47 = vpack.c.bf16 %v1579_v36, %v1567_v35  ;;  %v354_v35 = vld [vmem:[%s10826_s8 + $0x18] sm:$0xff]  ;;  %v8380_v36 = vpack.c.bf16 %v1651_v18, %v1639_v17  ;;  %v1711_v17 = vld [vmem:[%s10802_s29 + $0x2a20] sm:$0xff] }
 0x32f   : > { %8865 = vmatpush1.bf16.msra.mxu1 %v8864_v49  ;;  %8355 = vmatprep.subr.bf16.mxu0 %v8354_v50  ;;  %v8880_v49 = vpack.c.bf16 %v1581_v39, %v1569_v37  ;;  %v8370_v50 = vpack.c.bf16 %v1604_v42, %v1592_v41  ;;  %v8892_v37 = vpack.c.bf16 %v1653_v22, %v1641_v19  ;;  %v1663_v39 = vld [vmem:[%s10802_s29 + $0x28a0] sm:$0xff]  ;;  %v1665_v42 = vld [vmem:[%s10802_s29 + $0x28b0] sm:$0xff] }
 0x330   : > { %8867 = vmatprep.subr.bf16.mxu1 %v8866_v54  ;;  %v8882_v54 = vpack.c.bf16 %v1606_v46, %v1594_v44  ;;  %v1675_v41 = vld [vmem:[%s10802_s29 + $0x2900] sm:$0xff]  ;;  %v1713_v19 = vld [vmem:[%s10802_s29 + $0x2a30] sm:$0xff] }
 0x331   : > { %v1723_v18 = vld [vmem:[%s10802_s29 + $0x2a80] sm:$0xff]  ;;  %v1725_v22 = vld [vmem:[%s10802_s29 + $0x2a90] sm:$0xff] }
 0x332   : > { %8357 = vmatpush1.bf16.msra.mxu0 %v8356_v61  ;;  %v8372_v61 = vpack.c.bf16 %v1603_v52, %v1591_v51 }
 0x333   : > { %8869 = vmatpush1.bf16.msra.mxu1 %v8868_v63  ;;  %8359 = vmatprep.subr.bf16.mxu0 %v8358_v0  ;;  %v8884_v63 = vpack.c.bf16 %v1605_v55, %v1593_v53  ;;  %v8374_v0 = vpack.c.bf16 %v1628_v57, %v1616_v56  ;;  %v1702_v55 = vld [vmem:[%s10802_s29 + $0x29d8] sm:$0xff] }
 0x334   : > { %8871 = vmatprep.subr.bf16.mxu1 %v8870_v4  ;;  %v8886_v4 = vpack.c.bf16 %v1630_v59, %v1618_v58  ;;  %v8384_v59 = vpack.c.bf16 %v1675_v41, %v1663_v39  ;;  %v1749_v39 = vld [vmem:[%s10802_s29 + $0x2b50] sm:$0xff]  ;;  %v1760_v41 = vld [vmem:[%s10802_s29 + $0x2ba8] sm:$0xff] }
 0x335   : > { %4778 = vmatmul.mubr.f32.vlgmr.msra.gmra.mrb[2].mxu0 %v11261_v48 }
 0x336   : > { %8361 = vmatpush1.bf16.msra.mxu0 %v8360_v13  ;;  %5346 = vmatmul.mubr.f32.vlgmr.msra.gmra.mrb[2].mxu1 %v11261_v48  ;;  %v8376_v13 = vpack.c.bf16 %v1627_v2, %v1615_v1  ;;  %v1687_v1 = vld [vmem:[%s10802_s29 + $0x2960] sm:$0xff] }
 0x337   : > { %8873 = vmatpush1.bf16.msra.mxu1 %v8872_v14  ;;  %8363 = vmatprep.subr.bf16.mxu0 %v8362_v15  ;;  %v8888_v14 = vpack.c.bf16 %v1629_v5, %v1617_v3  ;;  %v8378_v15 = vpack.c.bf16 %v1652_v7, %v1640_v6  ;;  %v1699_v2 = vld [vmem:[%s10802_s29 + $0x29c0] sm:$0xff]  ;;  %v1689_v3 = vld [vmem:[%s10802_s29 + $0x2970] sm:$0xff]  ;;  %v1712_v6 = vld [vmem:[%s10802_s29 + $0x2a28] sm:$0xff] }
 0x338   : > { %8875 = vmatprep.subr.bf16.mxu1 %v8874_v21  ;;  %4848 = vmatprep.mubr.f32.mxu0 %v11272_v62  ;;  %v8890_v21 = vpack.c.bf16 %v1654_v12, %v1642_v10  ;;  %v1701_v5 = vld [vmem:[%s10802_s29 + $0x29d0] sm:$0xff]  ;;  %v1724_v7 = vld [vmem:[%s10802_s29 + $0x2a88] sm:$0xff]  ;;  %v1714_v10 = vld [vmem:[%s10802_s29 + $0x2a38] sm:$0xff] }
 0x339   : > { %5416 = vmatprep.mubr.f32.mxu1 %v11272_v62  ;;  %v1726_v12 = vld [vmem:[%s10802_s29 + $0x2a98] sm:$0xff] }
 0x33a   : > { %8365 = vmatpush1.bf16.msra.mxu0 %v8364_v32  ;;  %v1678_v32 = vld [vmem:[%s10802_s29 + $0x2918] sm:$0xff] }
 0x33b   : > { %8877 = vmatpush1.bf16.msra.mxu1 %v8876_v33  ;;  %8367 = vmatprep.subr.bf16.mxu0 %v8366_v34  ;;  %v353_v33 = vld [vmem:[%s10826_s8 + $0x10] sm:$0xff]  ;;  %v352_v34 = vld [vmem:[%s10826_s8 + $0x8] sm:$0xff]  ;;  %v8894_v46 = vpack.c.bf16 %v1678_v32, %v1666_v29  ;;  %v1750_v29 = vld [vmem:[%s10802_s29 + $0x2b58] sm:$0xff]  ;;  %v8392_v32 = vpack.c.bf16 %v1723_v18, %v1711_v17 }
 0x33c   : > { %8879 = vmatprep.subr.bf16.mxu1 %v8878_v38  ;;  %v8382_v38 = vpack.c.bf16 %v1676_v26, %v1664_v24  ;;  %v1736_v24 = vld [vmem:[%s10802_s29 + $0x2ae8] sm:$0xff]  ;;  %v1807_v17 = vld [vmem:[%s10802_s29 + $0x2d20] sm:$0xff] }
 0x33d   : > { %v1748_v26 = vld [vmem:[%s10802_s29 + $0x2b48] sm:$0xff]  ;;  %v1819_v18 = vld [vmem:[%s10802_s29 + $0x2d80] sm:$0xff] }
 0x33e   : > { %8369 = vmatpush1.bf16.msra.mxu0 %v8368_v47  ;;  %v1677_v47 = vld [vmem:[%s10802_s29 + $0x2910] sm:$0xff] }
 0x33f   : > { %8881 = vmatpush1.bf16.msra.mxu1 %v8880_v49  ;;  %8371 = vmatprep.subr.bf16.mxu0 %v8370_v50  ;;  %v1688_v49 = vld [vmem:[%s10802_s29 + $0x2968] sm:$0xff] }
 0x340   : > { %8883 = vmatprep.subr.bf16.mxu1 %v8882_v54  ;;  %v1700_v50 = vld [vmem:[%s10802_s29 + $0x29c8] sm:$0xff]  ;;  %v1690_v54 = vld [vmem:[%s10802_s29 + $0x2978] sm:$0xff] }
 0x342   : > { %8373 = vmatpush1.bf16.msra.mxu0 %v8372_v61 }
 0x343   : > { %8885 = vmatpush1.bf16.msra.mxu1 %v8884_v63  ;;  %8375 = vmatprep.subr.bf16.mxu0 %v8374_v0  ;;  %v8896_v63 = vpack.c.bf16 %v1677_v47, %v1665_v42  ;;  %v8386_v0 = vpack.c.bf16 %v1700_v50, %v1688_v49  ;;  %v1772_v42 = vld [vmem:[%s10802_s29 + $0x2c08] sm:$0xff] }
 0x344   : > { %8887 = vmatprep.subr.bf16.mxu1 %v8886_v4  ;;  %v8898_v4 = vpack.c.bf16 %v1702_v55, %v1690_v54  ;;  %v8398_v50 = vpack.c.bf16 %v1772_v42, %v1760_v41  ;;  %v1773_v55 = vld [vmem:[%s10802_s29 + $0x2c10] sm:$0xff]  ;;  %v1856_v41 = vld [vmem:[%s10802_s29 + $0x2ea8] sm:$0xff] }
 0x345   : > { %v1868_v42 = vld [vmem:[%s10802_s29 + $0x2f08] sm:$0xff] }
 0x346   : > { %8377 = vmatpush1.bf16.msra.mxu0 %v8376_v13  ;;  %v8388_v13 = vpack.c.bf16 %v1699_v2, %v1687_v1  ;;  %v1783_v1 = vld [vmem:[%s10802_s29 + $0x2c60] sm:$0xff] }
 0x347   : > { %8889 = vmatpush1.bf16.msra.mxu1 %v8888_v14  ;;  %8379 = vmatprep.subr.bf16.mxu0 %v8378_v15  ;;  %v8900_v14 = vpack.c.bf16 %v1701_v5, %v1689_v3  ;;  %v8390_v15 = vpack.c.bf16 %v1724_v7, %v1712_v6  ;;  %v1795_v2 = vld [vmem:[%s10802_s29 + $0x2cc0] sm:$0xff]  ;;  %v1785_v3 = vld [vmem:[%s10802_s29 + $0x2c70] sm:$0xff]  ;;  %v1808_v6 = vld [vmem:[%s10802_s29 + $0x2d28] sm:$0xff] }
 0x348   : > { %v3998_v44 = vpop.f32.mrb[0].mxu0  ;;  %8891 = vmatprep.subr.bf16.mxu1 %v8890_v21  ;;  %v8902_v21 = vpack.c.bf16 %v1726_v12, %v1714_v10  ;;  %v1797_v5 = vld [vmem:[%s10802_s29 + $0x2cd0] sm:$0xff]  ;;  %v1820_v7 = vld [vmem:[%s10802_s29 + $0x2d88] sm:$0xff]  ;;  %v1810_v10 = vld [vmem:[%s10802_s29 + $0x2d38] sm:$0xff] }
 0x349   : > { %v6843_v51 = vadd.f32 %v3998_v44, %v351_v27  ;;  %v4566_v52 = vpop.f32.mrb[0].mxu1  ;;  %v4000_v53 = vpop.f32.mrb[1].mxu0  ;;  %v1738_v27 = vld [vmem:[%s10802_s29 + $0x2af8] sm:$0xff] }
 0x34a   : > { %v6845_v56 = vadd.f32 %v4566_v52, %v353_v33  ;;  %v6844_v57 = vadd.f32 %v4000_v53, %v352_v34  ;;  %v4568_v58 = vpop.f32.mrb[1].mxu1  ;;  %8381 = vmatpush1.bf16.msra.mxu0 %v8380_v36  ;;  %v8904_v33 = vpack.c.bf16 %v1725_v22, %v1713_v19  ;;  %v8394_v34 = vpack.c.bf16 %v1748_v26, %v1736_v24  ;;  %v1747_v36 = vld [vmem:[%s10802_s29 + $0x2b40] sm:$0xff]  ;;  %v1762_v44 = vld [vmem:[%s10802_s29 + $0x2bb8] sm:$0xff]  ;;  %v1761_v53 = vld [vmem:[%s10802_s29 + $0x2bb0] sm:$0xff] }
 0x34b   : > { %6855 = vst [vmem:[%s10826_s8] sm:$0xff] %v6843_v51  ;;  %v6846_v61 = vadd.f32 %v4568_v58, %v354_v35  ;;  %8893 = vmatpush1.bf16.msra.mxu1 %v8892_v37  ;;  %8383 = vmatprep.subr.bf16.mxu0 %v8382_v38  ;;  %v1735_v35 = vld [vmem:[%s10802_s29 + $0x2ae0] sm:$0xff]  ;;  %v1737_v37 = vld [vmem:[%s10802_s29 + $0x2af0] sm:$0xff]  ;;  %v8906_v38 = vpack.c.bf16 %v1750_v29, %v1738_v27  ;;  %v1786_v58 = vld [vmem:[%s10802_s29 + $0x2c78] sm:$0xff] }
 0x34c   : > { %6857 = vst [vmem:[%s10826_s8 + $0x10] sm:$0xff] %v6845_v56  ;;  %6856 = vst [vmem:[%s10826_s8 + $0x8] sm:$0xff] %v6844_v57  ;;  %8895 = vmatprep.subr.bf16.mxu1 %v8894_v46  ;;  %v1774_v46 = vld [vmem:[%s10802_s29 + $0x2c18] sm:$0xff]  ;;  %v8396_v47 = vpack.c.bf16 %v1747_v36, %v1735_v35  ;;  %v8908_v49 = vpack.c.bf16 %v1749_v39, %v1737_v37  ;;  %v1759_v51 = vld [vmem:[%s10802_s29 + $0x2ba0] sm:$0xff] }
 0x34d   : > { %6858 = vst [vmem:[%s10826_s8 + $0x18] sm:$0xff] %v6846_v61  ;;  %v1771_v52 = vld [vmem:[%s10802_s29 + $0x2c00] sm:$0xff]  ;;  %v8910_v54 = vpack.c.bf16 %v1774_v46, %v1762_v44  ;;  %v1784_v56 = vld [vmem:[%s10802_s29 + $0x2c68] sm:$0xff]  ;;  %v1822_v12 = vld [vmem:[%s10802_s29 + $0x2d98] sm:$0xff] }
 0x34e   : > { %8385 = vmatpush1.bf16.msra.mxu0 %v8384_v59  ;;  %v1796_v57 = vld [vmem:[%s10802_s29 + $0x2cc8] sm:$0xff]  ;;  %v1798_v59 = vld [vmem:[%s10802_s29 + $0x2cd8] sm:$0xff]  ;;  %v8400_v61 = vpack.c.bf16 %v1771_v52, %v1759_v51  ;;  %v1809_v19 = vld [vmem:[%s10802_s29 + $0x2d30] sm:$0xff] }
 0x34f   : > { %8897 = vmatpush1.bf16.msra.mxu1 %v8896_v63  ;;  %8387 = vmatprep.subr.bf16.mxu0 %v8386_v0  ;;  %v8912_v63 = vpack.c.bf16 %v1773_v55, %v1761_v53  ;;  %v8402_v0 = vpack.c.bf16 %v1796_v57, %v1784_v56  ;;  %v1821_v22 = vld [vmem:[%s10802_s29 + $0x2d90] sm:$0xff]  ;;  %v1832_v24 = vld [vmem:[%s10802_s29 + $0x2de8] sm:$0xff]  ;;  %v1834_v27 = vld [vmem:[%s10802_s29 + $0x2df8] sm:$0xff] }
 0x350   : > { %8899 = vmatprep.subr.bf16.mxu1 %v8898_v4  ;;  %v8914_v4 = vpack.c.bf16 %v1798_v59, %v1786_v58  ;;  %v1844_v26 = vld [vmem:[%s10802_s29 + $0x2e48] sm:$0xff]  ;;  %v1846_v29 = vld [vmem:[%s10802_s29 + $0x2e58] sm:$0xff]  ;;  %v1831_v35 = vld [vmem:[%s10802_s29 + $0x2de0] sm:$0xff] }
 0x351   : > { %v1843_v36 = vld [vmem:[%s10802_s29 + $0x2e40] sm:$0xff]  ;;  %v1833_v37 = vld [vmem:[%s10802_s29 + $0x2df0] sm:$0xff]  ;;  %v1858_v44 = vld [vmem:[%s10802_s29 + $0x2eb8] sm:$0xff] }
 0x352   : > { %8389 = vmatpush1.bf16.msra.mxu0 %v8388_v13  ;;  %v8404_v13 = vpack.c.bf16 %v1795_v2, %v1783_v1  ;;  %v1845_v39 = vld [vmem:[%s10802_s29 + $0x2e50] sm:$0xff]  ;;  %v1870_v46 = vld [vmem:[%s10802_s29 + $0x2f18] sm:$0xff]  ;;  %v1855_v51 = vld [vmem:[%s10802_s29 + $0x2ea0] sm:$0xff] }
 0x353   : > { %8901 = vmatpush1.bf16.msra.mxu1 %v8900_v14  ;;  %8391 = vmatprep.subr.bf16.mxu0 %v8390_v15  ;;  %v8916_v14 = vpack.c.bf16 %v1797_v5, %v1785_v3  ;;  %v8406_v15 = vpack.c.bf16 %v1820_v7, %v1808_v6  ;;  %v1867_v52 = vld [vmem:[%s10802_s29 + $0x2f00] sm:$0xff]  ;;  %v1857_v53 = vld [vmem:[%s10802_s29 + $0x2eb0] sm:$0xff]  ;;  %v1880_v56 = vld [vmem:[%s10802_s29 + $0x2f68] sm:$0xff] }
 0x354   : > { %8903 = vmatprep.subr.bf16.mxu1 %v8902_v21  ;;  %v8918_v21 = vpack.c.bf16 %v1822_v12, %v1810_v10  ;;  %v1869_v55 = vld [vmem:[%s10802_s29 + $0x2f10] sm:$0xff]  ;;  %v1892_v57 = vld [vmem:[%s10802_s29 + $0x2fc8] sm:$0xff]  ;;  %v1882_v58 = vld [vmem:[%s10802_s29 + $0x2f78] sm:$0xff] }
 0x355   : > { %v1894_v59 = vld [vmem:[%s10802_s29 + $0x2fd8] sm:$0xff]  ;;  %v1879_v1 = vld [vmem:[%s10802_s29 + $0x2f60] sm:$0xff]  ;;  %v1881_v3 = vld [vmem:[%s10802_s29 + $0x2f70] sm:$0xff] }
 0x356   : > { %8393 = vmatpush1.bf16.msra.mxu0 %v8392_v32  ;;  %v8408_v32 = vpack.c.bf16 %v1819_v18, %v1807_v17  ;;  %v1891_v2 = vld [vmem:[%s10802_s29 + $0x2fc0] sm:$0xff]  ;;  %v1893_v5 = vld [vmem:[%s10802_s29 + $0x2fd0] sm:$0xff]  ;;  %v1904_v6 = vld [vmem:[%s10802_s29 + $0x3028] sm:$0xff] }
 0x357   : > { %8905 = vmatpush1.bf16.msra.mxu1 %v8904_v33  ;;  %8395 = vmatprep.subr.bf16.mxu0 %v8394_v34  ;;  %v8920_v33 = vpack.c.bf16 %v1821_v22, %v1809_v19  ;;  %v8410_v34 = vpack.c.bf16 %v1844_v26, %v1832_v24  ;;  %v1916_v7 = vld [vmem:[%s10802_s29 + $0x3088] sm:$0xff]  ;;  %v1906_v10 = vld [vmem:[%s10802_s29 + $0x3038] sm:$0xff]  ;;  %v1903_v17 = vld [vmem:[%s10802_s29 + $0x3020] sm:$0xff] }
 0x358   : > { %8907 = vmatprep.subr.bf16.mxu1 %v8906_v38  ;;  %v8922_v38 = vpack.c.bf16 %v1846_v29, %v1834_v27  ;;  %v1918_v12 = vld [vmem:[%s10802_s29 + $0x3098] sm:$0xff]  ;;  %v1915_v18 = vld [vmem:[%s10802_s29 + $0x3080] sm:$0xff]  ;;  %v1905_v19 = vld [vmem:[%s10802_s29 + $0x3030] sm:$0xff] }
 0x359   : > { %v1917_v22 = vld [vmem:[%s10802_s29 + $0x3090] sm:$0xff]  ;;  %v1928_v24 = vld [vmem:[%s10802_s29 + $0x30e8] sm:$0xff]  ;;  %v1930_v27 = vld [vmem:[%s10802_s29 + $0x30f8] sm:$0xff] }
 0x35a   : > { %8397 = vmatpush1.bf16.msra.mxu0 %v8396_v47  ;;  %v8412_v47 = vpack.c.bf16 %v1843_v36, %v1831_v35  ;;  %v1940_v26 = vld [vmem:[%s10802_s29 + $0x3148] sm:$0xff]  ;;  %v1942_v29 = vld [vmem:[%s10802_s29 + $0x3158] sm:$0xff]  ;;  %v1927_v35 = vld [vmem:[%s10802_s29 + $0x30e0] sm:$0xff] }
 0x35b   : > { %8909 = vmatpush1.bf16.msra.mxu1 %v8908_v49  ;;  %8399 = vmatprep.subr.bf16.mxu0 %v8398_v50  ;;  %v8924_v49 = vpack.c.bf16 %v1845_v39, %v1833_v37  ;;  %v8414_v50 = vpack.c.bf16 %v1868_v42, %v1856_v41  ;;  %v1939_v36 = vld [vmem:[%s10802_s29 + $0x3140] sm:$0xff]  ;;  %v1929_v37 = vld [vmem:[%s10802_s29 + $0x30f0] sm:$0xff]  ;;  %v1952_v41 = vld [vmem:[%s10802_s29 + $0x31a8] sm:$0xff] }
 0x35c   : > { %8911 = vmatprep.subr.bf16.mxu1 %v8910_v54  ;;  %v8926_v54 = vpack.c.bf16 %v1870_v46, %v1858_v44  ;;  %v1941_v39 = vld [vmem:[%s10802_s29 + $0x3150] sm:$0xff]  ;;  %v1964_v42 = vld [vmem:[%s10802_s29 + $0x3208] sm:$0xff]  ;;  %v1954_v44 = vld [vmem:[%s10802_s29 + $0x31b8] sm:$0xff] }
 0x35d   : > { %v1966_v46 = vld [vmem:[%s10802_s29 + $0x3218] sm:$0xff] }
 0x35e   : > { %8401 = vmatpush1.bf16.msra.mxu0 %v8400_v61  ;;  %v8416_v61 = vpack.c.bf16 %v1867_v52, %v1855_v51  ;;  %v1951_v51 = vld [vmem:[%s10802_s29 + $0x31a0] sm:$0xff] }
 0x35f   : > { %8913 = vmatpush1.bf16.msra.mxu1 %v8912_v63  ;;  %8403 = vmatprep.subr.bf16.mxu0 %v8402_v0  ;;  %v8928_v63 = vpack.c.bf16 %v1869_v55, %v1857_v53  ;;  %v8418_v0 = vpack.c.bf16 %v1892_v57, %v1880_v56  ;;  %v1963_v52 = vld [vmem:[%s10802_s29 + $0x3200] sm:$0xff]  ;;  %v1953_v53 = vld [vmem:[%s10802_s29 + $0x31b0] sm:$0xff]  ;;  %v1976_v56 = vld [vmem:[%s10802_s29 + $0x3268] sm:$0xff] }
 0x360   : > { %8915 = vmatprep.subr.bf16.mxu1 %v8914_v4  ;;  %v8930_v4 = vpack.c.bf16 %v1894_v59, %v1882_v58  ;;  %v1965_v55 = vld [vmem:[%s10802_s29 + $0x3210] sm:$0xff]  ;;  %v1988_v57 = vld [vmem:[%s10802_s29 + $0x32c8] sm:$0xff]  ;;  %v1978_v58 = vld [vmem:[%s10802_s29 + $0x3278] sm:$0xff] }
 0x361   : > { %v1990_v59 = vld [vmem:[%s10802_s29 + $0x32d8] sm:$0xff] }
 0x362   : > { %8405 = vmatpush1.bf16.msra.mxu0 %v8404_v13  ;;  %v8420_v13 = vpack.c.bf16 %v1891_v2, %v1879_v1  ;;  %v1975_v1 = vld [vmem:[%s10802_s29 + $0x3260] sm:$0xff] }
 0x363   : > { %8917 = vmatpush1.bf16.msra.mxu1 %v8916_v14  ;;  %8407 = vmatprep.subr.bf16.mxu0 %v8406_v15  ;;  %v8932_v14 = vpack.c.bf16 %v1893_v5, %v1881_v3  ;;  %v8422_v15 = vpack.c.bf16 %v1916_v7, %v1904_v6  ;;  %v1987_v2 = vld [vmem:[%s10802_s29 + $0x32c0] sm:$0xff]  ;;  %v1977_v3 = vld [vmem:[%s10802_s29 + $0x3270] sm:$0xff]  ;;  %v2000_v6 = vld [vmem:[%s10802_s29 + $0x3328] sm:$0xff] }
 0x364   : > { %8919 = vmatprep.subr.bf16.mxu1 %v8918_v21  ;;  %v8934_v21 = vpack.c.bf16 %v1918_v12, %v1906_v10  ;;  %v1989_v5 = vld [vmem:[%s10802_s29 + $0x32d0] sm:$0xff]  ;;  %v2012_v7 = vld [vmem:[%s10802_s29 + $0x3388] sm:$0xff]  ;;  %v2002_v10 = vld [vmem:[%s10802_s29 + $0x3338] sm:$0xff] }
 0x365   : > { %v2014_v12 = vld [vmem:[%s10802_s29 + $0x3398] sm:$0xff] }
 0x366   : > { %8409 = vmatpush1.bf16.msra.mxu0 %v8408_v32  ;;  %v8424_v32 = vpack.c.bf16 %v1915_v18, %v1903_v17  ;;  %v1999_v17 = vld [vmem:[%s10802_s29 + $0x3320] sm:$0xff] }
 0x367   : > { %8921 = vmatpush1.bf16.msra.mxu1 %v8920_v33  ;;  %8411 = vmatprep.subr.bf16.mxu0 %v8410_v34  ;;  %v8936_v33 = vpack.c.bf16 %v1917_v22, %v1905_v19  ;;  %v8426_v34 = vpack.c.bf16 %v1940_v26, %v1928_v24  ;;  %v2011_v18 = vld [vmem:[%s10802_s29 + $0x3380] sm:$0xff]  ;;  %v2001_v19 = vld [vmem:[%s10802_s29 + $0x3330] sm:$0xff]  ;;  %v2024_v24 = vld [vmem:[%s10802_s29 + $0x33e8] sm:$0xff] }
 0x368   : > { %8923 = vmatprep.subr.bf16.mxu1 %v8922_v38  ;;  %v8938_v38 = vpack.c.bf16 %v1942_v29, %v1930_v27  ;;  %v2013_v22 = vld [vmem:[%s10802_s29 + $0x3390] sm:$0xff]  ;;  %v2036_v26 = vld [vmem:[%s10802_s29 + $0x3448] sm:$0xff]  ;;  %v2026_v27 = vld [vmem:[%s10802_s29 + $0x33f8] sm:$0xff] }
 0x369   : > { %v2038_v29 = vld [vmem:[%s10802_s29 + $0x3458] sm:$0xff] }
 0x36a   : > { %8413 = vmatpush1.bf16.msra.mxu0 %v8412_v47  ;;  %v8428_v47 = vpack.c.bf16 %v1939_v36, %v1927_v35  ;;  %v2023_v35 = vld [vmem:[%s10802_s29 + $0x33e0] sm:$0xff] }
 0x36b   : > { %8925 = vmatpush1.bf16.msra.mxu1 %v8924_v49  ;;  %8415 = vmatprep.subr.bf16.mxu0 %v8414_v50  ;;  %v8940_v49 = vpack.c.bf16 %v1941_v39, %v1929_v37  ;;  %v8430_v50 = vpack.c.bf16 %v1964_v42, %v1952_v41  ;;  %v2035_v36 = vld [vmem:[%s10802_s29 + $0x3440] sm:$0xff]  ;;  %v2025_v37 = vld [vmem:[%s10802_s29 + $0x33f0] sm:$0xff]  ;;  %v2048_v41 = vld [vmem:[%s10802_s29 + $0x34a8] sm:$0xff] }
 0x36c   : > { %8927 = vmatprep.subr.bf16.mxu1 %v8926_v54  ;;  %v8942_v54 = vpack.c.bf16 %v1966_v46, %v1954_v44  ;;  %v2037_v39 = vld [vmem:[%s10802_s29 + $0x3450] sm:$0xff]  ;;  %v2060_v42 = vld [vmem:[%s10802_s29 + $0x3508] sm:$0xff]  ;;  %v2050_v44 = vld [vmem:[%s10802_s29 + $0x34b8] sm:$0xff] }
 0x36d   : > { %v2062_v46 = vld [vmem:[%s10802_s29 + $0x3518] sm:$0xff] }
 0x36e   : > { %8417 = vmatpush1.bf16.msra.mxu0 %v8416_v61  ;;  %v8432_v61 = vpack.c.bf16 %v1963_v52, %v1951_v51  ;;  %v2047_v51 = vld [vmem:[%s10802_s29 + $0x34a0] sm:$0xff] }
 0x36f   : > { %8929 = vmatpush1.bf16.msra.mxu1 %v8928_v63  ;;  %8419 = vmatprep.subr.bf16.mxu0 %v8418_v0  ;;  %v8944_v63 = vpack.c.bf16 %v1965_v55, %v1953_v53  ;;  %v8434_v0 = vpack.c.bf16 %v1988_v57, %v1976_v56  ;;  %v2059_v52 = vld [vmem:[%s10802_s29 + $0x3500] sm:$0xff]  ;;  %v2049_v53 = vld [vmem:[%s10802_s29 + $0x34b0] sm:$0xff]  ;;  %v2072_v56 = vld [vmem:[%s10802_s29 + $0x3568] sm:$0xff] }
 0x370   : > { %8931 = vmatprep.subr.bf16.mxu1 %v8930_v4  ;;  %v8946_v4 = vpack.c.bf16 %v1990_v59, %v1978_v58  ;;  %v2061_v55 = vld [vmem:[%s10802_s29 + $0x3510] sm:$0xff]  ;;  %v2084_v57 = vld [vmem:[%s10802_s29 + $0x35c8] sm:$0xff]  ;;  %v2074_v58 = vld [vmem:[%s10802_s29 + $0x3578] sm:$0xff] }
 0x371   : > { %v2086_v59 = vld [vmem:[%s10802_s29 + $0x35d8] sm:$0xff] }
 0x372   : > { %8421 = vmatpush1.bf16.msra.mxu0 %v8420_v13  ;;  %v8436_v13 = vpack.c.bf16 %v1987_v2, %v1975_v1  ;;  %v2071_v1 = vld [vmem:[%s10802_s29 + $0x3560] sm:$0xff] }
 0x373   : > { %8933 = vmatpush1.bf16.msra.mxu1 %v8932_v14  ;;  %8423 = vmatprep.subr.bf16.mxu0 %v8422_v15  ;;  %v8948_v14 = vpack.c.bf16 %v1989_v5, %v1977_v3  ;;  %v8438_v15 = vpack.c.bf16 %v2012_v7, %v2000_v6  ;;  %v2083_v2 = vld [vmem:[%s10802_s29 + $0x35c0] sm:$0xff]  ;;  %v2073_v3 = vld [vmem:[%s10802_s29 + $0x3570] sm:$0xff]  ;;  %v2096_v6 = vld [vmem:[%s10802_s29 + $0x3628] sm:$0xff] }
 0x374   : > { %8935 = vmatprep.subr.bf16.mxu1 %v8934_v21  ;;  %v8950_v21 = vpack.c.bf16 %v2014_v12, %v2002_v10  ;;  %v2085_v5 = vld [vmem:[%s10802_s29 + $0x35d0] sm:$0xff]  ;;  %v2108_v7 = vld [vmem:[%s10802_s29 + $0x3688] sm:$0xff]  ;;  %v2098_v10 = vld [vmem:[%s10802_s29 + $0x3638] sm:$0xff] }
 0x375   : > { %4849 = vmatmul.mubr.f32.vlgmr.msra.gmra.mrb[2].mxu0 %v11399_v9  ;;  %v2110_v12 = vld [vmem:[%s10802_s29 + $0x3698] sm:$0xff] }
 0x376   : > { %8425 = vmatpush1.bf16.msra.mxu0 %v8424_v32  ;;  %5417 = vmatmul.mubr.f32.vlgmr.msra.gmra.mrb[2].mxu1 %v11399_v9  ;;  %v8440_v32 = vpack.c.bf16 %v2011_v18, %v1999_v17  ;;  %v2095_v17 = vld [vmem:[%s10802_s29 + $0x3620] sm:$0xff] }
 0x377   : > { %8937 = vmatpush1.bf16.msra.mxu1 %v8936_v33  ;;  %8427 = vmatprep.subr.bf16.mxu0 %v8426_v34  ;;  %v8952_v33 = vpack.c.bf16 %v2013_v22, %v2001_v19  ;;  %v8442_v34 = vpack.c.bf16 %v2036_v26, %v2024_v24  ;;  %v2107_v18 = vld [vmem:[%s10802_s29 + $0x3680] sm:$0xff]  ;;  %v2097_v19 = vld [vmem:[%s10802_s29 + $0x3630] sm:$0xff]  ;;  %v2120_v24 = vld [vmem:[%s10802_s29 + $0x36e8] sm:$0xff] }
 0x378   : > { %8939 = vmatprep.subr.bf16.mxu1 %v8938_v38  ;;  %4919 = vmatprep.mubr.f32.mxu0 %v11410_v25  ;;  %v8954_v38 = vpack.c.bf16 %v2038_v29, %v2026_v27  ;;  %v2109_v22 = vld [vmem:[%s10802_s29 + $0x3690] sm:$0xff]  ;;  %v2132_v26 = vld [vmem:[%s10802_s29 + $0x3748] sm:$0xff]  ;;  %v2122_v27 = vld [vmem:[%s10802_s29 + $0x36f8] sm:$0xff] }
 0x379   : > { %5487 = vmatprep.mubr.f32.mxu1 %v11410_v25  ;;  %v2134_v29 = vld [vmem:[%s10802_s29 + $0x3758] sm:$0xff] }
 0x37a   : > { %8429 = vmatpush1.bf16.msra.mxu0 %v8428_v47  ;;  %v8444_v47 = vpack.c.bf16 %v2035_v36, %v2023_v35  ;;  %v2119_v35 = vld [vmem:[%s10802_s29 + $0x36e0] sm:$0xff] }
 0x37b   : > { %8941 = vmatpush1.bf16.msra.mxu1 %v8940_v49  ;;  %8431 = vmatprep.subr.bf16.mxu0 %v8430_v50  ;;  %v8956_v49 = vpack.c.bf16 %v2037_v39, %v2025_v37  ;;  %v8446_v50 = vpack.c.bf16 %v2060_v42, %v2048_v41  ;;  %v2131_v36 = vld [vmem:[%s10802_s29 + $0x3740] sm:$0xff]  ;;  %v2121_v37 = vld [vmem:[%s10802_s29 + $0x36f0] sm:$0xff]  ;;  %v2144_v41 = vld [vmem:[%s10802_s29 + $0x37a8] sm:$0xff] }
 0x37c   : > { %8943 = vmatprep.subr.bf16.mxu1 %v8942_v54  ;;  %v8958_v54 = vpack.c.bf16 %v2062_v46, %v2050_v44  ;;  %v2133_v39 = vld [vmem:[%s10802_s29 + $0x3750] sm:$0xff]  ;;  %v2156_v42 = vld [vmem:[%s10802_s29 + $0x3808] sm:$0xff]  ;;  %v2146_v44 = vld [vmem:[%s10802_s29 + $0x37b8] sm:$0xff] }
 0x37d   : > { %v2158_v46 = vld [vmem:[%s10802_s29 + $0x3818] sm:$0xff] }
 0x37e   : > { %8433 = vmatpush1.bf16.msra.mxu0 %v8432_v61  ;;  %v8448_v61 = vpack.c.bf16 %v2059_v52, %v2047_v51  ;;  %v2143_v51 = vld [vmem:[%s10802_s29 + $0x37a0] sm:$0xff] }
 0x37f   : > { %8945 = vmatpush1.bf16.msra.mxu1 %v8944_v63  ;;  %8435 = vmatprep.subr.bf16.mxu0 %v8434_v0  ;;  %v8960_v63 = vpack.c.bf16 %v2061_v55, %v2049_v53  ;;  %v8450_v0 = vpack.c.bf16 %v2084_v57, %v2072_v56  ;;  %v2155_v52 = vld [vmem:[%s10802_s29 + $0x3800] sm:$0xff]  ;;  %v2145_v53 = vld [vmem:[%s10802_s29 + $0x37b0] sm:$0xff]  ;;  %v2168_v56 = vld [vmem:[%s10802_s29 + $0x3868] sm:$0xff] }
 0x380   : > { %8947 = vmatprep.subr.bf16.mxu1 %v8946_v4  ;;  %v8962_v4 = vpack.c.bf16 %v2086_v59, %v2074_v58  ;;  %v2157_v55 = vld [vmem:[%s10802_s29 + $0x3810] sm:$0xff]  ;;  %v2180_v57 = vld [vmem:[%s10802_s29 + $0x38c8] sm:$0xff]  ;;  %v2170_v58 = vld [vmem:[%s10802_s29 + $0x3878] sm:$0xff] }
 0x381   : > { %v2182_v59 = vld [vmem:[%s10802_s29 + $0x38d8] sm:$0xff] }
 0x382   : > { %8437 = vmatpush1.bf16.msra.mxu0 %v8436_v13  ;;  %v8452_v13 = vpack.c.bf16 %v2083_v2, %v2071_v1  ;;  %v2167_v1 = vld [vmem:[%s10802_s29 + $0x3860] sm:$0xff] }
 0x383   : > { %8949 = vmatpush1.bf16.msra.mxu1 %v8948_v14  ;;  %8439 = vmatprep.subr.bf16.mxu0 %v8438_v15  ;;  %v8964_v14 = vpack.c.bf16 %v2085_v5, %v2073_v3  ;;  %v8454_v15 = vpack.c.bf16 %v2108_v7, %v2096_v6  ;;  %v2179_v2 = vld [vmem:[%s10802_s29 + $0x38c0] sm:$0xff]  ;;  %v2169_v3 = vld [vmem:[%s10802_s29 + $0x3870] sm:$0xff]  ;;  %v2192_v6 = vld [vmem:[%s10802_s29 + $0x3928] sm:$0xff] }
 0x384   : > { %8951 = vmatprep.subr.bf16.mxu1 %v8950_v21  ;;  %v8966_v21 = vpack.c.bf16 %v2110_v12, %v2098_v10  ;;  %v2181_v5 = vld [vmem:[%s10802_s29 + $0x38d0] sm:$0xff]  ;;  %v2204_v7 = vld [vmem:[%s10802_s29 + $0x3988] sm:$0xff]  ;;  %v2194_v10 = vld [vmem:[%s10802_s29 + $0x3938] sm:$0xff] }
 0x385   : > { %v2206_v12 = vld [vmem:[%s10802_s29 + $0x3998] sm:$0xff] }
 0x386   : > { %8441 = vmatpush1.bf16.msra.mxu0 %v8440_v32  ;;  %v8456_v32 = vpack.c.bf16 %v2107_v18, %v2095_v17  ;;  %v2191_v17 = vld [vmem:[%s10802_s29 + $0x3920] sm:$0xff] }
 0x387   : > { %8953 = vmatpush1.bf16.msra.mxu1 %v8952_v33  ;;  %8443 = vmatprep.subr.bf16.mxu0 %v8442_v34  ;;  %v8968_v33 = vpack.c.bf16 %v2109_v22, %v2097_v19  ;;  %v8458_v34 = vpack.c.bf16 %v2132_v26, %v2120_v24  ;;  %v2203_v18 = vld [vmem:[%s10802_s29 + $0x3980] sm:$0xff]  ;;  %v2193_v19 = vld [vmem:[%s10802_s29 + $0x3930] sm:$0xff]  ;;  %v2216_v24 = vld [vmem:[%s10802_s29 + $0x39e8] sm:$0xff] }
 0x388   : > { %8955 = vmatprep.subr.bf16.mxu1 %v8954_v38  ;;  %v8970_v38 = vpack.c.bf16 %v2134_v29, %v2122_v27  ;;  %v2205_v22 = vld [vmem:[%s10802_s29 + $0x3990] sm:$0xff]  ;;  %v2228_v26 = vld [vmem:[%s10802_s29 + $0x3a48] sm:$0xff]  ;;  %v2218_v27 = vld [vmem:[%s10802_s29 + $0x39f8] sm:$0xff] }
 0x389   : > { %v2230_v29 = vld [vmem:[%s10802_s29 + $0x3a58] sm:$0xff] }
 0x38a   : > { %8445 = vmatpush1.bf16.msra.mxu0 %v8444_v47  ;;  %v8460_v47 = vpack.c.bf16 %v2131_v36, %v2119_v35  ;;  %v2215_v35 = vld [vmem:[%s10802_s29 + $0x39e0] sm:$0xff] }
 0x38b   : > { %8957 = vmatpush1.bf16.msra.mxu1 %v8956_v49  ;;  %8447 = vmatprep.subr.bf16.mxu0 %v8446_v50  ;;  %v8972_v49 = vpack.c.bf16 %v2133_v39, %v2121_v37  ;;  %v8462_v50 = vpack.c.bf16 %v2156_v42, %v2144_v41  ;;  %v2227_v36 = vld [vmem:[%s10802_s29 + $0x3a40] sm:$0xff]  ;;  %v2217_v37 = vld [vmem:[%s10802_s29 + $0x39f0] sm:$0xff]  ;;  %v2240_v41 = vld [vmem:[%s10802_s29 + $0x3aa8] sm:$0xff] }
 0x38c   : > { %8959 = vmatprep.subr.bf16.mxu1 %v8958_v54  ;;  %v8974_v54 = vpack.c.bf16 %v2158_v46, %v2146_v44  ;;  %v2229_v39 = vld [vmem:[%s10802_s29 + $0x3a50] sm:$0xff]  ;;  %v2252_v42 = vld [vmem:[%s10802_s29 + $0x3b08] sm:$0xff]  ;;  %v2242_v44 = vld [vmem:[%s10802_s29 + $0x3ab8] sm:$0xff] }
 0x38d   : > { %v2254_v46 = vld [vmem:[%s10802_s29 + $0x3b18] sm:$0xff] }
 0x38e   : > { %8449 = vmatpush1.bf16.msra.mxu0 %v8448_v61  ;;  %v8464_v61 = vpack.c.bf16 %v2155_v52, %v2143_v51  ;;  %v2239_v51 = vld [vmem:[%s10802_s29 + $0x3aa0] sm:$0xff] }
 0x38f   : > { %8961 = vmatpush1.bf16.msra.mxu1 %v8960_v63  ;;  %8451 = vmatprep.subr.bf16.mxu0 %v8450_v0  ;;  %v8976_v63 = vpack.c.bf16 %v2157_v55, %v2145_v53  ;;  %v8466_v0 = vpack.c.bf16 %v2180_v57, %v2168_v56  ;;  %v2251_v52 = vld [vmem:[%s10802_s29 + $0x3b00] sm:$0xff]  ;;  %v2241_v53 = vld [vmem:[%s10802_s29 + $0x3ab0] sm:$0xff]  ;;  %v2264_v56 = vld [vmem:[%s10802_s29 + $0x3b68] sm:$0xff] }
 0x390   : > { %8963 = vmatprep.subr.bf16.mxu1 %v8962_v4  ;;  %v8978_v4 = vpack.c.bf16 %v2182_v59, %v2170_v58  ;;  %v2253_v55 = vld [vmem:[%s10802_s29 + $0x3b10] sm:$0xff]  ;;  %v2276_v57 = vld [vmem:[%s10802_s29 + $0x3bc8] sm:$0xff]  ;;  %v2266_v58 = vld [vmem:[%s10802_s29 + $0x3b78] sm:$0xff] }
 0x391   : > { %v2278_v59 = vld [vmem:[%s10802_s29 + $0x3bd8] sm:$0xff] }
 0x392   : > { %8453 = vmatpush1.bf16.msra.mxu0 %v8452_v13  ;;  %v8468_v13 = vpack.c.bf16 %v2179_v2, %v2167_v1  ;;  %v2263_v1 = vld [vmem:[%s10802_s29 + $0x3b60] sm:$0xff] }
 0x393   : > { %8965 = vmatpush1.bf16.msra.mxu1 %v8964_v14  ;;  %8455 = vmatprep.subr.bf16.mxu0 %v8454_v15  ;;  %v8980_v14 = vpack.c.bf16 %v2181_v5, %v2169_v3  ;;  %v8470_v15 = vpack.c.bf16 %v2204_v7, %v2192_v6  ;;  %v2275_v2 = vld [vmem:[%s10802_s29 + $0x3bc0] sm:$0xff]  ;;  %v2265_v3 = vld [vmem:[%s10802_s29 + $0x3b70] sm:$0xff]  ;;  %v2288_v6 = vld [vmem:[%s10802_s29 + $0x3c28] sm:$0xff] }
 0x394   : > { %8967 = vmatprep.subr.bf16.mxu1 %v8966_v21  ;;  %v8982_v21 = vpack.c.bf16 %v2206_v12, %v2194_v10  ;;  %v2277_v5 = vld [vmem:[%s10802_s29 + $0x3bd0] sm:$0xff]  ;;  %v2300_v7 = vld [vmem:[%s10802_s29 + $0x3c88] sm:$0xff]  ;;  %v2290_v10 = vld [vmem:[%s10802_s29 + $0x3c38] sm:$0xff] }
 0x395   : > { %v2302_v12 = vld [vmem:[%s10802_s29 + $0x3c98] sm:$0xff] }
 0x396   : > { %8457 = vmatpush1.bf16.msra.mxu0 %v8456_v32  ;;  %v8472_v32 = vpack.c.bf16 %v2203_v18, %v2191_v17  ;;  %v2287_v17 = vld [vmem:[%s10802_s29 + $0x3c20] sm:$0xff] }
 0x397   : > { %8969 = vmatpush1.bf16.msra.mxu1 %v8968_v33  ;;  %8459 = vmatprep.subr.bf16.mxu0 %v8458_v34  ;;  %v8984_v33 = vpack.c.bf16 %v2205_v22, %v2193_v19  ;;  %v8474_v34 = vpack.c.bf16 %v2228_v26, %v2216_v24  ;;  %v2299_v18 = vld [vmem:[%s10802_s29 + $0x3c80] sm:$0xff]  ;;  %v2289_v19 = vld [vmem:[%s10802_s29 + $0x3c30] sm:$0xff]  ;;  %v2312_v24 = vld [vmem:[%s10802_s29 + $0x3ce8] sm:$0xff] }
 0x398   : > { %8971 = vmatprep.subr.bf16.mxu1 %v8970_v38  ;;  %v8986_v38 = vpack.c.bf16 %v2230_v29, %v2218_v27  ;;  %v2301_v22 = vld [vmem:[%s10802_s29 + $0x3c90] sm:$0xff]  ;;  %v2324_v26 = vld [vmem:[%s10802_s29 + $0x3d48] sm:$0xff]  ;;  %v2314_v27 = vld [vmem:[%s10802_s29 + $0x3cf8] sm:$0xff] }
 0x399   : > { %v2326_v29 = vld [vmem:[%s10802_s29 + $0x3d58] sm:$0xff] }
 0x39a   : > { %8461 = vmatpush1.bf16.msra.mxu0 %v8460_v47  ;;  %v8476_v47 = vpack.c.bf16 %v2227_v36, %v2215_v35  ;;  %v2311_v35 = vld [vmem:[%s10802_s29 + $0x3ce0] sm:$0xff] }
 0x39b   : > { %8973 = vmatpush1.bf16.msra.mxu1 %v8972_v49  ;;  %8463 = vmatprep.subr.bf16.mxu0 %v8462_v50  ;;  %v8988_v49 = vpack.c.bf16 %v2229_v39, %v2217_v37  ;;  %v8478_v50 = vpack.c.bf16 %v2252_v42, %v2240_v41  ;;  %v2323_v36 = vld [vmem:[%s10802_s29 + $0x3d40] sm:$0xff]  ;;  %v2313_v37 = vld [vmem:[%s10802_s29 + $0x3cf0] sm:$0xff]  ;;  %v2336_v41 = vld [vmem:[%s10802_s29 + $0x3da8] sm:$0xff] }
 0x39c   : > { %8975 = vmatprep.subr.bf16.mxu1 %v8974_v54  ;;  %v8990_v54 = vpack.c.bf16 %v2254_v46, %v2242_v44  ;;  %v2325_v39 = vld [vmem:[%s10802_s29 + $0x3d50] sm:$0xff]  ;;  %v2348_v42 = vld [vmem:[%s10802_s29 + $0x3e08] sm:$0xff]  ;;  %v2338_v44 = vld [vmem:[%s10802_s29 + $0x3db8] sm:$0xff] }
 0x39d   : > { %v2350_v46 = vld [vmem:[%s10802_s29 + $0x3e18] sm:$0xff] }
 0x39e   : > { %8465 = vmatpush1.bf16.msra.mxu0 %v8464_v61  ;;  %v8480_v61 = vpack.c.bf16 %v2251_v52, %v2239_v51  ;;  %v2335_v51 = vld [vmem:[%s10802_s29 + $0x3da0] sm:$0xff] }
 0x39f   : > { %8977 = vmatpush1.bf16.msra.mxu1 %v8976_v63  ;;  %8467 = vmatprep.subr.bf16.mxu0 %v8466_v0  ;;  %v8992_v63 = vpack.c.bf16 %v2253_v55, %v2241_v53  ;;  %v8482_v0 = vpack.c.bf16 %v2276_v57, %v2264_v56  ;;  %v2347_v52 = vld [vmem:[%s10802_s29 + $0x3e00] sm:$0xff]  ;;  %v2337_v53 = vld [vmem:[%s10802_s29 + $0x3db0] sm:$0xff]  ;;  %v2360_v56 = vld [vmem:[%s10802_s29 + $0x3e68] sm:$0xff] }
 0x3a0   : > { %8979 = vmatprep.subr.bf16.mxu1 %v8978_v4  ;;  %v8994_v4 = vpack.c.bf16 %v2278_v59, %v2266_v58  ;;  %v2349_v55 = vld [vmem:[%s10802_s29 + $0x3e10] sm:$0xff]  ;;  %v2372_v57 = vld [vmem:[%s10802_s29 + $0x3ec8] sm:$0xff]  ;;  %v2362_v58 = vld [vmem:[%s10802_s29 + $0x3e78] sm:$0xff] }
 0x3a1   : > { %v2374_v59 = vld [vmem:[%s10802_s29 + $0x3ed8] sm:$0xff] }
 0x3a2   : > { %8469 = vmatpush1.bf16.msra.mxu0 %v8468_v13  ;;  %v8484_v13 = vpack.c.bf16 %v2275_v2, %v2263_v1  ;;  %v2359_v1 = vld [vmem:[%s10802_s29 + $0x3e60] sm:$0xff] }
 0x3a3   : > { %8981 = vmatpush1.bf16.msra.mxu1 %v8980_v14  ;;  %8471 = vmatprep.subr.bf16.mxu0 %v8470_v15  ;;  %v8996_v14 = vpack.c.bf16 %v2277_v5, %v2265_v3  ;;  %v8486_v15 = vpack.c.bf16 %v2300_v7, %v2288_v6  ;;  %v2371_v2 = vld [vmem:[%s10802_s29 + $0x3ec0] sm:$0xff]  ;;  %v2361_v3 = vld [vmem:[%s10802_s29 + $0x3e70] sm:$0xff]  ;;  %v2384_v6 = vld [vmem:[%s10802_s29 + $0x3f28] sm:$0xff] }
 0x3a4   : > { %8983 = vmatprep.subr.bf16.mxu1 %v8982_v21  ;;  %v8998_v21 = vpack.c.bf16 %v2302_v12, %v2290_v10  ;;  %v2373_v5 = vld [vmem:[%s10802_s29 + $0x3ed0] sm:$0xff]  ;;  %v2396_v7 = vld [vmem:[%s10802_s29 + $0x3f88] sm:$0xff]  ;;  %v2386_v10 = vld [vmem:[%s10802_s29 + $0x3f38] sm:$0xff] }
 0x3a5   : > { %v2398_v12 = vld [vmem:[%s10802_s29 + $0x3f98] sm:$0xff] }
 0x3a6   : > { %8473 = vmatpush1.bf16.msra.mxu0 %v8472_v32  ;;  %v8488_v32 = vpack.c.bf16 %v2299_v18, %v2287_v17  ;;  %v2383_v17 = vld [vmem:[%s10802_s29 + $0x3f20] sm:$0xff] }
 0x3a7   : > { %8985 = vmatpush1.bf16.msra.mxu1 %v8984_v33  ;;  %8475 = vmatprep.subr.bf16.mxu0 %v8474_v34  ;;  %v9000_v33 = vpack.c.bf16 %v2301_v22, %v2289_v19  ;;  %v8490_v34 = vpack.c.bf16 %v2324_v26, %v2312_v24  ;;  %v2395_v18 = vld [vmem:[%s10802_s29 + $0x3f80] sm:$0xff]  ;;  %v2385_v19 = vld [vmem:[%s10802_s29 + $0x3f30] sm:$0xff]  ;;  %v2408_v24 = vld [vmem:[%s10802_s29 + $0x3fe8] sm:$0xff] }
 0x3a8   : > { %8987 = vmatprep.subr.bf16.mxu1 %v8986_v38  ;;  %v9002_v38 = vpack.c.bf16 %v2326_v29, %v2314_v27  ;;  %v2397_v22 = vld [vmem:[%s10802_s29 + $0x3f90] sm:$0xff]  ;;  %v2420_v26 = vld [vmem:[%s10802_s29 + $0x4048] sm:$0xff]  ;;  %v2410_v27 = vld [vmem:[%s10802_s29 + $0x3ff8] sm:$0xff] }
 0x3a9   : > { %v2422_v29 = vld [vmem:[%s10802_s29 + $0x4058] sm:$0xff] }
 0x3aa   : > { %8477 = vmatpush1.bf16.msra.mxu0 %v8476_v47  ;;  %v8492_v47 = vpack.c.bf16 %v2323_v36, %v2311_v35  ;;  %v2407_v35 = vld [vmem:[%s10802_s29 + $0x3fe0] sm:$0xff] }
 0x3ab   : > { %8989 = vmatpush1.bf16.msra.mxu1 %v8988_v49  ;;  %8479 = vmatprep.subr.bf16.mxu0 %v8478_v50  ;;  %v9004_v49 = vpack.c.bf16 %v2325_v39, %v2313_v37  ;;  %v8494_v50 = vpack.c.bf16 %v2348_v42, %v2336_v41  ;;  %v2419_v36 = vld [vmem:[%s10802_s29 + $0x4040] sm:$0xff]  ;;  %v2409_v37 = vld [vmem:[%s10802_s29 + $0x3ff0] sm:$0xff]  ;;  %v2432_v41 = vld [vmem:[%s10802_s29 + $0x40a8] sm:$0xff] }
 0x3ac   : > { %8991 = vmatprep.subr.bf16.mxu1 %v8990_v54  ;;  %v9006_v54 = vpack.c.bf16 %v2350_v46, %v2338_v44  ;;  %v2421_v39 = vld [vmem:[%s10802_s29 + $0x4050] sm:$0xff]  ;;  %v2444_v42 = vld [vmem:[%s10802_s29 + $0x4108] sm:$0xff]  ;;  %v2434_v44 = vld [vmem:[%s10802_s29 + $0x40b8] sm:$0xff] }
 0x3ad   : > { %v2446_v46 = vld [vmem:[%s10802_s29 + $0x4118] sm:$0xff] }
 0x3ae   : > { %8481 = vmatpush1.bf16.msra.mxu0 %v8480_v61  ;;  %v8496_v61 = vpack.c.bf16 %v2347_v52, %v2335_v51  ;;  %v2431_v51 = vld [vmem:[%s10802_s29 + $0x40a0] sm:$0xff] }
 0x3af   : > { %8993 = vmatpush1.bf16.msra.mxu1 %v8992_v63  ;;  %8483 = vmatprep.subr.bf16.mxu0 %v8482_v0  ;;  %v9008_v63 = vpack.c.bf16 %v2349_v55, %v2337_v53  ;;  %v8498_v0 = vpack.c.bf16 %v2372_v57, %v2360_v56  ;;  %v2443_v52 = vld [vmem:[%s10802_s29 + $0x4100] sm:$0xff]  ;;  %v2433_v53 = vld [vmem:[%s10802_s29 + $0x40b0] sm:$0xff]  ;;  %v2456_v56 = vld [vmem:[%s10802_s29 + $0x4168] sm:$0xff] }
 0x3b0   : > { %8995 = vmatprep.subr.bf16.mxu1 %v8994_v4  ;;  %v9010_v4 = vpack.c.bf16 %v2374_v59, %v2362_v58  ;;  %v2445_v55 = vld [vmem:[%s10802_s29 + $0x4110] sm:$0xff]  ;;  %v2468_v57 = vld [vmem:[%s10802_s29 + $0x41c8] sm:$0xff]  ;;  %v2458_v58 = vld [vmem:[%s10802_s29 + $0x4178] sm:$0xff] }
 0x3b1   : > { %v2470_v59 = vld [vmem:[%s10802_s29 + $0x41d8] sm:$0xff] }
 0x3b2   : > { %8485 = vmatpush1.bf16.msra.mxu0 %v8484_v13  ;;  %v8500_v13 = vpack.c.bf16 %v2371_v2, %v2359_v1  ;;  %v2455_v1 = vld [vmem:[%s10802_s29 + $0x4160] sm:$0xff] }
 0x3b3   : > { %8997 = vmatpush1.bf16.msra.mxu1 %v8996_v14  ;;  %8487 = vmatprep.subr.bf16.mxu0 %v8486_v15  ;;  %v9012_v14 = vpack.c.bf16 %v2373_v5, %v2361_v3  ;;  %v8502_v15 = vpack.c.bf16 %v2396_v7, %v2384_v6  ;;  %v2467_v2 = vld [vmem:[%s10802_s29 + $0x41c0] sm:$0xff]  ;;  %v2457_v3 = vld [vmem:[%s10802_s29 + $0x4170] sm:$0xff]  ;;  %v2480_v6 = vld [vmem:[%s10802_s29 + $0x4228] sm:$0xff] }
 0x3b4   : > { %8999 = vmatprep.subr.bf16.mxu1 %v8998_v21  ;;  %v9014_v21 = vpack.c.bf16 %v2398_v12, %v2386_v10  ;;  %v2469_v5 = vld [vmem:[%s10802_s29 + $0x41d0] sm:$0xff]  ;;  %v2492_v7 = vld [vmem:[%s10802_s29 + $0x4288] sm:$0xff]  ;;  %v2482_v10 = vld [vmem:[%s10802_s29 + $0x4238] sm:$0xff] }
 0x3b5   : > { %4920 = vmatmul.mubr.f32.vlgmr.msra.gmra.mrb[2].mxu0 %v11537_v45  ;;  %v2494_v12 = vld [vmem:[%s10802_s29 + $0x4298] sm:$0xff] }
 0x3b6   : > { %8489 = vmatpush1.bf16.msra.mxu0 %v8488_v32  ;;  %5488 = vmatmul.mubr.f32.vlgmr.msra.gmra.mrb[2].mxu1 %v11537_v45  ;;  %v8504_v32 = vpack.c.bf16 %v2395_v18, %v2383_v17  ;;  %v2479_v17 = vld [vmem:[%s10802_s29 + $0x4220] sm:$0xff] }
 0x3b7   : > { %9001 = vmatpush1.bf16.msra.mxu1 %v9000_v33  ;;  %8491 = vmatprep.subr.bf16.mxu0 %v8490_v34  ;;  %v9016_v33 = vpack.c.bf16 %v2397_v22, %v2385_v19  ;;  %v8506_v34 = vpack.c.bf16 %v2420_v26, %v2408_v24  ;;  %v2491_v18 = vld [vmem:[%s10802_s29 + $0x4280] sm:$0xff]  ;;  %v2481_v19 = vld [vmem:[%s10802_s29 + $0x4230] sm:$0xff]  ;;  %v2504_v24 = vld [vmem:[%s10802_s29 + $0x42e8] sm:$0xff] }
 0x3b8   : > { %9003 = vmatprep.subr.bf16.mxu1 %v9002_v38  ;;  %4990 = vmatprep.mubr.f32.mxu0 %v11548_v60  ;;  %v9018_v38 = vpack.c.bf16 %v2422_v29, %v2410_v27  ;;  %v2493_v22 = vld [vmem:[%s10802_s29 + $0x4290] sm:$0xff]  ;;  %v2516_v26 = vld [vmem:[%s10802_s29 + $0x4348] sm:$0xff]  ;;  %v2506_v27 = vld [vmem:[%s10802_s29 + $0x42f8] sm:$0xff] }
 0x3b9   : > { %5558 = vmatprep.mubr.f32.mxu1 %v11548_v60  ;;  %v2518_v29 = vld [vmem:[%s10802_s29 + $0x4358] sm:$0xff] }
 0x3ba   : > { %8493 = vmatpush1.bf16.msra.mxu0 %v8492_v47  ;;  %v8508_v47 = vpack.c.bf16 %v2419_v36, %v2407_v35  ;;  %v2503_v35 = vld [vmem:[%s10802_s29 + $0x42e0] sm:$0xff] }
 0x3bb   : > { %9005 = vmatpush1.bf16.msra.mxu1 %v9004_v49  ;;  %8495 = vmatprep.subr.bf16.mxu0 %v8494_v50  ;;  %v9020_v49 = vpack.c.bf16 %v2421_v39, %v2409_v37  ;;  %v8510_v50 = vpack.c.bf16 %v2444_v42, %v2432_v41  ;;  %v2515_v36 = vld [vmem:[%s10802_s29 + $0x4340] sm:$0xff]  ;;  %v2505_v37 = vld [vmem:[%s10802_s29 + $0x42f0] sm:$0xff]  ;;  %v2528_v41 = vld [vmem:[%s10802_s29 + $0x43a8] sm:$0xff] }
 0x3bc   : > { %9007 = vmatprep.subr.bf16.mxu1 %v9006_v54  ;;  %v9022_v54 = vpack.c.bf16 %v2446_v46, %v2434_v44  ;;  %v2517_v39 = vld [vmem:[%s10802_s29 + $0x4350] sm:$0xff]  ;;  %v2540_v42 = vld [vmem:[%s10802_s29 + $0x4408] sm:$0xff]  ;;  %v2530_v44 = vld [vmem:[%s10802_s29 + $0x43b8] sm:$0xff] }
 0x3bd   : > { %v2542_v46 = vld [vmem:[%s10802_s29 + $0x4418] sm:$0xff] }
 0x3be   : > { %8497 = vmatpush1.bf16.msra.mxu0 %v8496_v61  ;;  %v8512_v61 = vpack.c.bf16 %v2443_v52, %v2431_v51  ;;  %v2527_v51 = vld [vmem:[%s10802_s29 + $0x43a0] sm:$0xff] }
 0x3bf   : > { %9009 = vmatpush1.bf16.msra.mxu1 %v9008_v63  ;;  %8499 = vmatprep.subr.bf16.mxu0 %v8498_v0  ;;  %v9024_v63 = vpack.c.bf16 %v2445_v55, %v2433_v53  ;;  %v8514_v0 = vpack.c.bf16 %v2468_v57, %v2456_v56  ;;  %v2539_v52 = vld [vmem:[%s10802_s29 + $0x4400] sm:$0xff]  ;;  %v2529_v53 = vld [vmem:[%s10802_s29 + $0x43b0] sm:$0xff]  ;;  %v2552_v56 = vld [vmem:[%s10802_s29 + $0x4468] sm:$0xff] }
 0x3c0   : > { %9011 = vmatprep.subr.bf16.mxu1 %v9010_v4  ;;  %v9026_v4 = vpack.c.bf16 %v2470_v59, %v2458_v58  ;;  %v2541_v55 = vld [vmem:[%s10802_s29 + $0x4410] sm:$0xff]  ;;  %v2564_v57 = vld [vmem:[%s10802_s29 + $0x44c8] sm:$0xff]  ;;  %v2554_v58 = vld [vmem:[%s10802_s29 + $0x4478] sm:$0xff] }
 0x3c1   : > { %v2566_v59 = vld [vmem:[%s10802_s29 + $0x44d8] sm:$0xff] }
 0x3c2   : > { %8501 = vmatpush1.bf16.msra.mxu0 %v8500_v13  ;;  %v8516_v13 = vpack.c.bf16 %v2467_v2, %v2455_v1  ;;  %v2551_v1 = vld [vmem:[%s10802_s29 + $0x4460] sm:$0xff] }
 0x3c3   : > { %9013 = vmatpush1.bf16.msra.mxu1 %v9012_v14  ;;  %8503 = vmatprep.subr.bf16.mxu0 %v8502_v15  ;;  %v9028_v14 = vpack.c.bf16 %v2469_v5, %v2457_v3  ;;  %v8518_v15 = vpack.c.bf16 %v2492_v7, %v2480_v6  ;;  %v2563_v2 = vld [vmem:[%s10802_s29 + $0x44c0] sm:$0xff]  ;;  %v2553_v3 = vld [vmem:[%s10802_s29 + $0x4470] sm:$0xff]  ;;  %v2576_v6 = vld [vmem:[%s10802_s29 + $0x4528] sm:$0xff] }
 0x3c4   : > { %9015 = vmatprep.subr.bf16.mxu1 %v9014_v21  ;;  %v9030_v21 = vpack.c.bf16 %v2494_v12, %v2482_v10  ;;  %v2565_v5 = vld [vmem:[%s10802_s29 + $0x44d0] sm:$0xff]  ;;  %v2588_v7 = vld [vmem:[%s10802_s29 + $0x4588] sm:$0xff]  ;;  %v2578_v10 = vld [vmem:[%s10802_s29 + $0x4538] sm:$0xff] }
 0x3c5   : > { %v2590_v12 = vld [vmem:[%s10802_s29 + $0x4598] sm:$0xff] }
 0x3c6   : > { %8505 = vmatpush1.bf16.msra.mxu0 %v8504_v32  ;;  %v8520_v32 = vpack.c.bf16 %v2491_v18, %v2479_v17  ;;  %v2575_v17 = vld [vmem:[%s10802_s29 + $0x4520] sm:$0xff] }
 0x3c7   : > { %9017 = vmatpush1.bf16.msra.mxu1 %v9016_v33  ;;  %8507 = vmatprep.subr.bf16.mxu0 %v8506_v34  ;;  %v9032_v33 = vpack.c.bf16 %v2493_v22, %v2481_v19  ;;  %v8522_v34 = vpack.c.bf16 %v2516_v26, %v2504_v24  ;;  %v2587_v18 = vld [vmem:[%s10802_s29 + $0x4580] sm:$0xff]  ;;  %v2577_v19 = vld [vmem:[%s10802_s29 + $0x4530] sm:$0xff]  ;;  %v2600_v24 = vld [vmem:[%s10802_s29 + $0x45e8] sm:$0xff] }
 0x3c8   : > { %9019 = vmatprep.subr.bf16.mxu1 %v9018_v38  ;;  %v9034_v38 = vpack.c.bf16 %v2518_v29, %v2506_v27  ;;  %v2589_v22 = vld [vmem:[%s10802_s29 + $0x4590] sm:$0xff]  ;;  %v2612_v26 = vld [vmem:[%s10802_s29 + $0x4648] sm:$0xff]  ;;  %v2602_v27 = vld [vmem:[%s10802_s29 + $0x45f8] sm:$0xff] }
 0x3c9   : > { %v2614_v29 = vld [vmem:[%s10802_s29 + $0x4658] sm:$0xff] }
 0x3ca   : > { %8509 = vmatpush1.bf16.msra.mxu0 %v8508_v47  ;;  %v8524_v47 = vpack.c.bf16 %v2515_v36, %v2503_v35  ;;  %v2599_v35 = vld [vmem:[%s10802_s29 + $0x45e0] sm:$0xff] }
 0x3cb   : > { %9021 = vmatpush1.bf16.msra.mxu1 %v9020_v49  ;;  %8511 = vmatprep.subr.bf16.mxu0 %v8510_v50  ;;  %v9036_v49 = vpack.c.bf16 %v2517_v39, %v2505_v37  ;;  %v8526_v50 = vpack.c.bf16 %v2540_v42, %v2528_v41  ;;  %v2611_v36 = vld [vmem:[%s10802_s29 + $0x4640] sm:$0xff]  ;;  %v2601_v37 = vld [vmem:[%s10802_s29 + $0x45f0] sm:$0xff]  ;;  %v2624_v41 = vld [vmem:[%s10802_s29 + $0x46a8] sm:$0xff] }
 0x3cc   : > { %9023 = vmatprep.subr.bf16.mxu1 %v9022_v54  ;;  %v9038_v54 = vpack.c.bf16 %v2542_v46, %v2530_v44  ;;  %v2613_v39 = vld [vmem:[%s10802_s29 + $0x4650] sm:$0xff]  ;;  %v2636_v42 = vld [vmem:[%s10802_s29 + $0x4708] sm:$0xff]  ;;  %v2626_v44 = vld [vmem:[%s10802_s29 + $0x46b8] sm:$0xff] }
 0x3cd   : > { %v2638_v46 = vld [vmem:[%s10802_s29 + $0x4718] sm:$0xff] }
 0x3ce   : > { %8513 = vmatpush1.bf16.msra.mxu0 %v8512_v61  ;;  %v8528_v61 = vpack.c.bf16 %v2539_v52, %v2527_v51  ;;  %v2623_v51 = vld [vmem:[%s10802_s29 + $0x46a0] sm:$0xff] }
 0x3cf   : > { %9025 = vmatpush1.bf16.msra.mxu1 %v9024_v63  ;;  %8515 = vmatprep.subr.bf16.mxu0 %v8514_v0  ;;  %v9040_v63 = vpack.c.bf16 %v2541_v55, %v2529_v53  ;;  %v8530_v0 = vpack.c.bf16 %v2564_v57, %v2552_v56  ;;  %v2635_v52 = vld [vmem:[%s10802_s29 + $0x4700] sm:$0xff]  ;;  %v2625_v53 = vld [vmem:[%s10802_s29 + $0x46b0] sm:$0xff]  ;;  %v2648_v56 = vld [vmem:[%s10802_s29 + $0x4768] sm:$0xff] }
 0x3d0   : > { %9027 = vmatprep.subr.bf16.mxu1 %v9026_v4  ;;  %v9042_v4 = vpack.c.bf16 %v2566_v59, %v2554_v58  ;;  %v2637_v55 = vld [vmem:[%s10802_s29 + $0x4710] sm:$0xff]  ;;  %v2660_v57 = vld [vmem:[%s10802_s29 + $0x47c8] sm:$0xff]  ;;  %v2650_v58 = vld [vmem:[%s10802_s29 + $0x4778] sm:$0xff] }
 0x3d1   : > { %v2662_v59 = vld [vmem:[%s10802_s29 + $0x47d8] sm:$0xff] }
 0x3d2   : > { %8517 = vmatpush1.bf16.msra.mxu0 %v8516_v13  ;;  %v8532_v13 = vpack.c.bf16 %v2563_v2, %v2551_v1  ;;  %v2647_v1 = vld [vmem:[%s10802_s29 + $0x4760] sm:$0xff] }
 0x3d3   : > { %9029 = vmatpush1.bf16.msra.mxu1 %v9028_v14  ;;  %8519 = vmatprep.subr.bf16.mxu0 %v8518_v15  ;;  %v9044_v14 = vpack.c.bf16 %v2565_v5, %v2553_v3  ;;  %v8534_v15 = vpack.c.bf16 %v2588_v7, %v2576_v6  ;;  %v2659_v2 = vld [vmem:[%s10802_s29 + $0x47c0] sm:$0xff]  ;;  %v2649_v3 = vld [vmem:[%s10802_s29 + $0x4770] sm:$0xff]  ;;  %v2672_v6 = vld [vmem:[%s10802_s29 + $0x4828] sm:$0xff] }
 0x3d4   : > { %9031 = vmatprep.subr.bf16.mxu1 %v9030_v21  ;;  %v9046_v21 = vpack.c.bf16 %v2590_v12, %v2578_v10  ;;  %v2661_v5 = vld [vmem:[%s10802_s29 + $0x47d0] sm:$0xff]  ;;  %v2684_v7 = vld [vmem:[%s10802_s29 + $0x4888] sm:$0xff]  ;;  %v2674_v10 = vld [vmem:[%s10802_s29 + $0x4838] sm:$0xff] }
 0x3d5   : > { %v2686_v12 = vld [vmem:[%s10802_s29 + $0x4898] sm:$0xff] }
 0x3d6   : > { %8521 = vmatpush1.bf16.msra.mxu0 %v8520_v32  ;;  %v8536_v32 = vpack.c.bf16 %v2587_v18, %v2575_v17  ;;  %v2671_v17 = vld [vmem:[%s10802_s29 + $0x4820] sm:$0xff] }
 0x3d7   : > { %9033 = vmatpush1.bf16.msra.mxu1 %v9032_v33  ;;  %8523 = vmatprep.subr.bf16.mxu0 %v8522_v34  ;;  %v9048_v33 = vpack.c.bf16 %v2589_v22, %v2577_v19  ;;  %v8538_v34 = vpack.c.bf16 %v2612_v26, %v2600_v24  ;;  %v2683_v18 = vld [vmem:[%s10802_s29 + $0x4880] sm:$0xff]  ;;  %v2673_v19 = vld [vmem:[%s10802_s29 + $0x4830] sm:$0xff]  ;;  %v2696_v24 = vld [vmem:[%s10802_s29 + $0x48e8] sm:$0xff] }
 0x3d8   : > { %9035 = vmatprep.subr.bf16.mxu1 %v9034_v38  ;;  %v9050_v38 = vpack.c.bf16 %v2614_v29, %v2602_v27  ;;  %v2685_v22 = vld [vmem:[%s10802_s29 + $0x4890] sm:$0xff]  ;;  %v2708_v26 = vld [vmem:[%s10802_s29 + $0x4948] sm:$0xff]  ;;  %v2698_v27 = vld [vmem:[%s10802_s29 + $0x48f8] sm:$0xff] }
 0x3d9   : > { %v2710_v29 = vld [vmem:[%s10802_s29 + $0x4958] sm:$0xff] }
 0x3da   : > { %8525 = vmatpush1.bf16.msra.mxu0 %v8524_v47  ;;  %v8540_v47 = vpack.c.bf16 %v2611_v36, %v2599_v35  ;;  %v2695_v35 = vld [vmem:[%s10802_s29 + $0x48e0] sm:$0xff] }
 0x3db   : > { %9037 = vmatpush1.bf16.msra.mxu1 %v9036_v49  ;;  %8527 = vmatprep.subr.bf16.mxu0 %v8526_v50  ;;  %v9052_v49 = vpack.c.bf16 %v2613_v39, %v2601_v37  ;;  %v8542_v50 = vpack.c.bf16 %v2636_v42, %v2624_v41  ;;  %v2707_v36 = vld [vmem:[%s10802_s29 + $0x4940] sm:$0xff]  ;;  %v2697_v37 = vld [vmem:[%s10802_s29 + $0x48f0] sm:$0xff]  ;;  %v2720_v41 = vld [vmem:[%s10802_s29 + $0x49a8] sm:$0xff] }
 0x3dc   : > { %9039 = vmatprep.subr.bf16.mxu1 %v9038_v54  ;;  %v9054_v54 = vpack.c.bf16 %v2638_v46, %v2626_v44  ;;  %v2709_v39 = vld [vmem:[%s10802_s29 + $0x4950] sm:$0xff]  ;;  %v2732_v42 = vld [vmem:[%s10802_s29 + $0x4a08] sm:$0xff]  ;;  %v2722_v44 = vld [vmem:[%s10802_s29 + $0x49b8] sm:$0xff] }
 0x3dd   : > { %v2734_v46 = vld [vmem:[%s10802_s29 + $0x4a18] sm:$0xff] }
 0x3de   : > { %8529 = vmatpush1.bf16.msra.mxu0 %v8528_v61  ;;  %v8544_v61 = vpack.c.bf16 %v2635_v52, %v2623_v51  ;;  %v2719_v51 = vld [vmem:[%s10802_s29 + $0x49a0] sm:$0xff] }
 0x3df   : > { %9041 = vmatpush1.bf16.msra.mxu1 %v9040_v63  ;;  %8531 = vmatprep.subr.bf16.mxu0 %v8530_v0  ;;  %v9056_v63 = vpack.c.bf16 %v2637_v55, %v2625_v53  ;;  %v8546_v0 = vpack.c.bf16 %v2660_v57, %v2648_v56  ;;  %v2731_v52 = vld [vmem:[%s10802_s29 + $0x4a00] sm:$0xff]  ;;  %v2721_v53 = vld [vmem:[%s10802_s29 + $0x49b0] sm:$0xff]  ;;  %v2744_v56 = vld [vmem:[%s10802_s29 + $0x4a68] sm:$0xff] }
 0x3e0   : > { %9043 = vmatprep.subr.bf16.mxu1 %v9042_v4  ;;  %v9058_v4 = vpack.c.bf16 %v2662_v59, %v2650_v58  ;;  %v2733_v55 = vld [vmem:[%s10802_s29 + $0x4a10] sm:$0xff]  ;;  %v2756_v57 = vld [vmem:[%s10802_s29 + $0x4ac8] sm:$0xff]  ;;  %v2746_v58 = vld [vmem:[%s10802_s29 + $0x4a78] sm:$0xff] }
 0x3e1   : > { %v2758_v59 = vld [vmem:[%s10802_s29 + $0x4ad8] sm:$0xff] }
 0x3e2   : > { %8533 = vmatpush1.bf16.msra.mxu0 %v8532_v13  ;;  %v8548_v13 = vpack.c.bf16 %v2659_v2, %v2647_v1  ;;  %v2743_v1 = vld [vmem:[%s10802_s29 + $0x4a60] sm:$0xff] }
 0x3e3   : > { %9045 = vmatpush1.bf16.msra.mxu1 %v9044_v14  ;;  %8535 = vmatprep.subr.bf16.mxu0 %v8534_v15  ;;  %v9060_v14 = vpack.c.bf16 %v2661_v5, %v2649_v3  ;;  %v8550_v15 = vpack.c.bf16 %v2684_v7, %v2672_v6  ;;  %v2755_v2 = vld [vmem:[%s10802_s29 + $0x4ac0] sm:$0xff]  ;;  %v2745_v3 = vld [vmem:[%s10802_s29 + $0x4a70] sm:$0xff]  ;;  %v2768_v6 = vld [vmem:[%s10802_s29 + $0x4b28] sm:$0xff] }
 0x3e4   : > { %9047 = vmatprep.subr.bf16.mxu1 %v9046_v21  ;;  %v9062_v21 = vpack.c.bf16 %v2686_v12, %v2674_v10  ;;  %v2757_v5 = vld [vmem:[%s10802_s29 + $0x4ad0] sm:$0xff]  ;;  %v2780_v7 = vld [vmem:[%s10802_s29 + $0x4b88] sm:$0xff]  ;;  %v2770_v10 = vld [vmem:[%s10802_s29 + $0x4b38] sm:$0xff] }
 0x3e5   : > { %v2782_v12 = vld [vmem:[%s10802_s29 + $0x4b98] sm:$0xff] }
 0x3e6   : > { %8537 = vmatpush1.bf16.msra.mxu0 %v8536_v32  ;;  %v8552_v32 = vpack.c.bf16 %v2683_v18, %v2671_v17  ;;  %v2767_v17 = vld [vmem:[%s10802_s29 + $0x4b20] sm:$0xff] }
 0x3e7   : > { %9049 = vmatpush1.bf16.msra.mxu1 %v9048_v33  ;;  %8539 = vmatprep.subr.bf16.mxu0 %v8538_v34  ;;  %v9064_v33 = vpack.c.bf16 %v2685_v22, %v2673_v19  ;;  %v8554_v34 = vpack.c.bf16 %v2708_v26, %v2696_v24  ;;  %v2779_v18 = vld [vmem:[%s10802_s29 + $0x4b80] sm:$0xff]  ;;  %v2769_v19 = vld [vmem:[%s10802_s29 + $0x4b30] sm:$0xff]  ;;  %v2792_v24 = vld [vmem:[%s10802_s29 + $0x4be8] sm:$0xff] }
 0x3e8   : > { %9051 = vmatprep.subr.bf16.mxu1 %v9050_v38  ;;  %v9066_v38 = vpack.c.bf16 %v2710_v29, %v2698_v27  ;;  %v2781_v22 = vld [vmem:[%s10802_s29 + $0x4b90] sm:$0xff]  ;;  %v2804_v26 = vld [vmem:[%s10802_s29 + $0x4c48] sm:$0xff]  ;;  %v2794_v27 = vld [vmem:[%s10802_s29 + $0x4bf8] sm:$0xff] }
 0x3e9   : > { %v2806_v29 = vld [vmem:[%s10802_s29 + $0x4c58] sm:$0xff] }
 0x3ea   : > { %8541 = vmatpush1.bf16.msra.mxu0 %v8540_v47  ;;  %v8556_v47 = vpack.c.bf16 %v2707_v36, %v2695_v35  ;;  %v2791_v35 = vld [vmem:[%s10802_s29 + $0x4be0] sm:$0xff] }
 0x3eb   : > { %9053 = vmatpush1.bf16.msra.mxu1 %v9052_v49  ;;  %8543 = vmatprep.subr.bf16.mxu0 %v8542_v50  ;;  %v9068_v49 = vpack.c.bf16 %v2709_v39, %v2697_v37  ;;  %v8558_v50 = vpack.c.bf16 %v2732_v42, %v2720_v41  ;;  %v2803_v36 = vld [vmem:[%s10802_s29 + $0x4c40] sm:$0xff]  ;;  %v2793_v37 = vld [vmem:[%s10802_s29 + $0x4bf0] sm:$0xff]  ;;  %v2816_v41 = vld [vmem:[%s10802_s29 + $0x4ca8] sm:$0xff] }
 0x3ec   : > { %9055 = vmatprep.subr.bf16.mxu1 %v9054_v54  ;;  %v9070_v54 = vpack.c.bf16 %v2734_v46, %v2722_v44  ;;  %v2805_v39 = vld [vmem:[%s10802_s29 + $0x4c50] sm:$0xff]  ;;  %v2828_v42 = vld [vmem:[%s10802_s29 + $0x4d08] sm:$0xff]  ;;  %v2818_v44 = vld [vmem:[%s10802_s29 + $0x4cb8] sm:$0xff] }
 0x3ed   : > { %v2830_v46 = vld [vmem:[%s10802_s29 + $0x4d18] sm:$0xff] }
 0x3ee   : > { %8545 = vmatpush1.bf16.msra.mxu0 %v8544_v61  ;;  %v8560_v61 = vpack.c.bf16 %v2731_v52, %v2719_v51  ;;  %v2815_v51 = vld [vmem:[%s10802_s29 + $0x4ca0] sm:$0xff] }
 0x3ef   : > { %9057 = vmatpush1.bf16.msra.mxu1 %v9056_v63  ;;  %8547 = vmatprep.subr.bf16.mxu0 %v8546_v0  ;;  %v9072_v63 = vpack.c.bf16 %v2733_v55, %v2721_v53  ;;  %v8562_v0 = vpack.c.bf16 %v2756_v57, %v2744_v56  ;;  %v2827_v52 = vld [vmem:[%s10802_s29 + $0x4d00] sm:$0xff]  ;;  %v2817_v53 = vld [vmem:[%s10802_s29 + $0x4cb0] sm:$0xff]  ;;  %v2840_v56 = vld [vmem:[%s10802_s29 + $0x4d68] sm:$0xff] }
 0x3f0   : > { %9059 = vmatprep.subr.bf16.mxu1 %v9058_v4  ;;  %v9074_v4 = vpack.c.bf16 %v2758_v59, %v2746_v58  ;;  %v2829_v55 = vld [vmem:[%s10802_s29 + $0x4d10] sm:$0xff]  ;;  %v2852_v57 = vld [vmem:[%s10802_s29 + $0x4dc8] sm:$0xff]  ;;  %v2842_v58 = vld [vmem:[%s10802_s29 + $0x4d78] sm:$0xff] }
 0x3f1   : > { %v2854_v59 = vld [vmem:[%s10802_s29 + $0x4dd8] sm:$0xff] }
 0x3f2   : > { %8549 = vmatpush1.bf16.msra.mxu0 %v8548_v13  ;;  %v8564_v13 = vpack.c.bf16 %v2755_v2, %v2743_v1  ;;  %v2839_v1 = vld [vmem:[%s10802_s29 + $0x4d60] sm:$0xff] }
 0x3f3   : > { %9061 = vmatpush1.bf16.msra.mxu1 %v9060_v14  ;;  %8551 = vmatprep.subr.bf16.mxu0 %v8550_v15  ;;  %v9076_v14 = vpack.c.bf16 %v2757_v5, %v2745_v3  ;;  %v8566_v15 = vpack.c.bf16 %v2780_v7, %v2768_v6  ;;  %v2851_v2 = vld [vmem:[%s10802_s29 + $0x4dc0] sm:$0xff]  ;;  %v2841_v3 = vld [vmem:[%s10802_s29 + $0x4d70] sm:$0xff]  ;;  %v2864_v6 = vld [vmem:[%s10802_s29 + $0x4e28] sm:$0xff] }
 0x3f4   : > { %9063 = vmatprep.subr.bf16.mxu1 %v9062_v21  ;;  %v9078_v21 = vpack.c.bf16 %v2782_v12, %v2770_v10  ;;  %v2853_v5 = vld [vmem:[%s10802_s29 + $0x4dd0] sm:$0xff]  ;;  %v2876_v7 = vld [vmem:[%s10802_s29 + $0x4e88] sm:$0xff]  ;;  %v2866_v10 = vld [vmem:[%s10802_s29 + $0x4e38] sm:$0xff] }
 0x3f5   : > { %4991 = vmatmul.mubr.f32.vlgmr.msra.gmra.mrb[2].mxu0 %v11675_v23  ;;  %v2878_v12 = vld [vmem:[%s10802_s29 + $0x4e98] sm:$0xff] }
 0x3f6   : > { %8553 = vmatpush1.bf16.msra.mxu0 %v8552_v32  ;;  %5559 = vmatmul.mubr.f32.vlgmr.msra.gmra.mrb[2].mxu1 %v11675_v23  ;;  %v8568_v32 = vpack.c.bf16 %v2779_v18, %v2767_v17  ;;  %v2863_v17 = vld [vmem:[%s10802_s29 + $0x4e20] sm:$0xff] }
 0x3f7   : > { %9065 = vmatpush1.bf16.msra.mxu1 %v9064_v33  ;;  %8555 = vmatprep.subr.bf16.mxu0 %v8554_v34  ;;  %v9080_v33 = vpack.c.bf16 %v2781_v22, %v2769_v19  ;;  %v8570_v34 = vpack.c.bf16 %v2804_v26, %v2792_v24  ;;  %v2875_v18 = vld [vmem:[%s10802_s29 + $0x4e80] sm:$0xff]  ;;  %v2865_v19 = vld [vmem:[%s10802_s29 + $0x4e30] sm:$0xff]  ;;  %v2888_v24 = vld [vmem:[%s10802_s29 + $0x4ee8] sm:$0xff] }
 0x3f8   : > { %9067 = vmatprep.subr.bf16.mxu1 %v9066_v38  ;;  %5061 = vmatprep.mubr.f32.mxu0 %v11686_v40  ;;  %v9082_v38 = vpack.c.bf16 %v2806_v29, %v2794_v27  ;;  %v2877_v22 = vld [vmem:[%s10802_s29 + $0x4e90] sm:$0xff]  ;;  %v2900_v26 = vld [vmem:[%s10802_s29 + $0x4f48] sm:$0xff]  ;;  %v2890_v27 = vld [vmem:[%s10802_s29 + $0x4ef8] sm:$0xff] }
 0x3f9   : > { %5629 = vmatprep.mubr.f32.mxu1 %v11686_v40  ;;  %v2902_v29 = vld [vmem:[%s10802_s29 + $0x4f58] sm:$0xff] }
 0x3fa   : > { %8557 = vmatpush1.bf16.msra.mxu0 %v8556_v47  ;;  %v8572_v47 = vpack.c.bf16 %v2803_v36, %v2791_v35  ;;  %v2887_v35 = vld [vmem:[%s10802_s29 + $0x4ee0] sm:$0xff] }
 0x3fb   : > { %9069 = vmatpush1.bf16.msra.mxu1 %v9068_v49  ;;  %8559 = vmatprep.subr.bf16.mxu0 %v8558_v50  ;;  %v9084_v49 = vpack.c.bf16 %v2805_v39, %v2793_v37  ;;  %v8574_v50 = vpack.c.bf16 %v2828_v42, %v2816_v41  ;;  %v2899_v36 = vld [vmem:[%s10802_s29 + $0x4f40] sm:$0xff]  ;;  %v2889_v37 = vld [vmem:[%s10802_s29 + $0x4ef0] sm:$0xff]  ;;  %v2912_v41 = vld [vmem:[%s10802_s29 + $0x4fa8] sm:$0xff] }
 0x3fc   : > { %9071 = vmatprep.subr.bf16.mxu1 %v9070_v54  ;;  %v9086_v54 = vpack.c.bf16 %v2830_v46, %v2818_v44  ;;  %v2901_v39 = vld [vmem:[%s10802_s29 + $0x4f50] sm:$0xff]  ;;  %v2924_v42 = vld [vmem:[%s10802_s29 + $0x5008] sm:$0xff]  ;;  %v2914_v44 = vld [vmem:[%s10802_s29 + $0x4fb8] sm:$0xff] }
 0x3fd   : > { %v2926_v46 = vld [vmem:[%s10802_s29 + $0x5018] sm:$0xff] }
 0x3fe   : > { %8561 = vmatpush1.bf16.msra.mxu0 %v8560_v61  ;;  %v8576_v61 = vpack.c.bf16 %v2827_v52, %v2815_v51  ;;  %v2911_v51 = vld [vmem:[%s10802_s29 + $0x4fa0] sm:$0xff] }
 0x3ff   : > { %9073 = vmatpush1.bf16.msra.mxu1 %v9072_v63  ;;  %8563 = vmatprep.subr.bf16.mxu0 %v8562_v0  ;;  %v9088_v63 = vpack.c.bf16 %v2829_v55, %v2817_v53  ;;  %v8578_v0 = vpack.c.bf16 %v2852_v57, %v2840_v56  ;;  %v2923_v52 = vld [vmem:[%s10802_s29 + $0x5000] sm:$0xff]  ;;  %v2913_v53 = vld [vmem:[%s10802_s29 + $0x4fb0] sm:$0xff]  ;;  %v2936_v56 = vld [vmem:[%s10802_s29 + $0x5068] sm:$0xff] }
 0x400   : > { %9075 = vmatprep.subr.bf16.mxu1 %v9074_v4  ;;  %v9090_v4 = vpack.c.bf16 %v2854_v59, %v2842_v58  ;;  %v2925_v55 = vld [vmem:[%s10802_s29 + $0x5010] sm:$0xff]  ;;  %v2948_v57 = vld [vmem:[%s10802_s29 + $0x50c8] sm:$0xff]  ;;  %v2938_v58 = vld [vmem:[%s10802_s29 + $0x5078] sm:$0xff] }
 0x401   : > { %v2950_v59 = vld [vmem:[%s10802_s29 + $0x50d8] sm:$0xff] }
 0x402   : > { %8565 = vmatpush1.bf16.msra.mxu0 %v8564_v13  ;;  %v8580_v13 = vpack.c.bf16 %v2851_v2, %v2839_v1  ;;  %v2935_v1 = vld [vmem:[%s10802_s29 + $0x5060] sm:$0xff] }
 0x403   : > { %9077 = vmatpush1.bf16.msra.mxu1 %v9076_v14  ;;  %8567 = vmatprep.subr.bf16.mxu0 %v8566_v15  ;;  %v9092_v14 = vpack.c.bf16 %v2853_v5, %v2841_v3  ;;  %v8582_v15 = vpack.c.bf16 %v2876_v7, %v2864_v6  ;;  %v2947_v2 = vld [vmem:[%s10802_s29 + $0x50c0] sm:$0xff]  ;;  %v2937_v3 = vld [vmem:[%s10802_s29 + $0x5070] sm:$0xff]  ;;  %v2960_v6 = vld [vmem:[%s10802_s29 + $0x5128] sm:$0xff] }
 0x404   : > { %9079 = vmatprep.subr.bf16.mxu1 %v9078_v21  ;;  %v9094_v21 = vpack.c.bf16 %v2878_v12, %v2866_v10  ;;  %v2949_v5 = vld [vmem:[%s10802_s29 + $0x50d0] sm:$0xff]  ;;  %v2972_v7 = vld [vmem:[%s10802_s29 + $0x5188] sm:$0xff]  ;;  %v2962_v10 = vld [vmem:[%s10802_s29 + $0x5138] sm:$0xff] }
 0x405   : > { %v2974_v12 = vld [vmem:[%s10802_s29 + $0x5198] sm:$0xff] }
 0x406   : > { %8569 = vmatpush1.bf16.msra.mxu0 %v8568_v32  ;;  %v8584_v32 = vpack.c.bf16 %v2875_v18, %v2863_v17  ;;  %v2959_v17 = vld [vmem:[%s10802_s29 + $0x5120] sm:$0xff] }
 0x407   : > { %9081 = vmatpush1.bf16.msra.mxu1 %v9080_v33  ;;  %8571 = vmatprep.subr.bf16.mxu0 %v8570_v34  ;;  %v9096_v33 = vpack.c.bf16 %v2877_v22, %v2865_v19  ;;  %v8586_v34 = vpack.c.bf16 %v2900_v26, %v2888_v24  ;;  %v2971_v18 = vld [vmem:[%s10802_s29 + $0x5180] sm:$0xff]  ;;  %v2961_v19 = vld [vmem:[%s10802_s29 + $0x5130] sm:$0xff]  ;;  %v2984_v24 = vld [vmem:[%s10802_s29 + $0x51e8] sm:$0xff] }
 0x408   : > { %9083 = vmatprep.subr.bf16.mxu1 %v9082_v38  ;;  %v9098_v38 = vpack.c.bf16 %v2902_v29, %v2890_v27  ;;  %v2973_v22 = vld [vmem:[%s10802_s29 + $0x5190] sm:$0xff]  ;;  %v2996_v26 = vld [vmem:[%s10802_s29 + $0x5248] sm:$0xff]  ;;  %v2986_v27 = vld [vmem:[%s10802_s29 + $0x51f8] sm:$0xff] }
 0x409   : > { %v2998_v29 = vld [vmem:[%s10802_s29 + $0x5258] sm:$0xff] }
 0x40a   : > { %8573 = vmatpush1.bf16.msra.mxu0 %v8572_v47  ;;  %v8588_v47 = vpack.c.bf16 %v2899_v36, %v2887_v35  ;;  %v2983_v35 = vld [vmem:[%s10802_s29 + $0x51e0] sm:$0xff] }
 0x40b   : > { %9085 = vmatpush1.bf16.msra.mxu1 %v9084_v49  ;;  %8575 = vmatprep.subr.bf16.mxu0 %v8574_v50  ;;  %v9100_v49 = vpack.c.bf16 %v2901_v39, %v2889_v37  ;;  %v8590_v50 = vpack.c.bf16 %v2924_v42, %v2912_v41  ;;  %v2995_v36 = vld [vmem:[%s10802_s29 + $0x5240] sm:$0xff]  ;;  %v2985_v37 = vld [vmem:[%s10802_s29 + $0x51f0] sm:$0xff]  ;;  %v3008_v41 = vld [vmem:[%s10802_s29 + $0x52a8] sm:$0xff] }
 0x40c   : > { %9087 = vmatprep.subr.bf16.mxu1 %v9086_v54  ;;  %v9102_v54 = vpack.c.bf16 %v2926_v46, %v2914_v44  ;;  %v2997_v39 = vld [vmem:[%s10802_s29 + $0x5250] sm:$0xff]  ;;  %v3020_v42 = vld [vmem:[%s10802_s29 + $0x5308] sm:$0xff]  ;;  %v3010_v44 = vld [vmem:[%s10802_s29 + $0x52b8] sm:$0xff] }
 0x40d   : > { %v3022_v46 = vld [vmem:[%s10802_s29 + $0x5318] sm:$0xff] }
 0x40e   : > { %8577 = vmatpush1.bf16.msra.mxu0 %v8576_v61  ;;  %v8592_v61 = vpack.c.bf16 %v2923_v52, %v2911_v51  ;;  %v3007_v51 = vld [vmem:[%s10802_s29 + $0x52a0] sm:$0xff] }
 0x40f   : > { %9089 = vmatpush1.bf16.msra.mxu1 %v9088_v63  ;;  %8579 = vmatprep.subr.bf16.mxu0 %v8578_v0  ;;  %v9104_v63 = vpack.c.bf16 %v2925_v55, %v2913_v53  ;;  %v8594_v0 = vpack.c.bf16 %v2948_v57, %v2936_v56  ;;  %v3019_v52 = vld [vmem:[%s10802_s29 + $0x5300] sm:$0xff]  ;;  %v3009_v53 = vld [vmem:[%s10802_s29 + $0x52b0] sm:$0xff]  ;;  %v3032_v56 = vld [vmem:[%s10802_s29 + $0x5368] sm:$0xff] }
 0x410   : > { %9091 = vmatprep.subr.bf16.mxu1 %v9090_v4  ;;  %v9106_v4 = vpack.c.bf16 %v2950_v59, %v2938_v58  ;;  %v3021_v55 = vld [vmem:[%s10802_s29 + $0x5310] sm:$0xff]  ;;  %v3044_v57 = vld [vmem:[%s10802_s29 + $0x53c8] sm:$0xff]  ;;  %v3034_v58 = vld [vmem:[%s10802_s29 + $0x5378] sm:$0xff] }
 0x411   : > { %v3046_v59 = vld [vmem:[%s10802_s29 + $0x53d8] sm:$0xff] }
 0x412   : > { %8581 = vmatpush1.bf16.msra.mxu0 %v8580_v13  ;;  %v8596_v13 = vpack.c.bf16 %v2947_v2, %v2935_v1  ;;  %v3031_v1 = vld [vmem:[%s10802_s29 + $0x5360] sm:$0xff] }
 0x413   : > { %9093 = vmatpush1.bf16.msra.mxu1 %v9092_v14  ;;  %8583 = vmatprep.subr.bf16.mxu0 %v8582_v15  ;;  %v9108_v14 = vpack.c.bf16 %v2949_v5, %v2937_v3  ;;  %v8598_v15 = vpack.c.bf16 %v2972_v7, %v2960_v6  ;;  %v3043_v2 = vld [vmem:[%s10802_s29 + $0x53c0] sm:$0xff]  ;;  %v3033_v3 = vld [vmem:[%s10802_s29 + $0x5370] sm:$0xff]  ;;  %v3056_v6 = vld [vmem:[%s10802_s29 + $0x5428] sm:$0xff] }
 0x414   : > { %9095 = vmatprep.subr.bf16.mxu1 %v9094_v21  ;;  %v9110_v21 = vpack.c.bf16 %v2974_v12, %v2962_v10  ;;  %v3045_v5 = vld [vmem:[%s10802_s29 + $0x53d0] sm:$0xff]  ;;  %v3068_v7 = vld [vmem:[%s10802_s29 + $0x5488] sm:$0xff]  ;;  %v3058_v10 = vld [vmem:[%s10802_s29 + $0x5438] sm:$0xff] }
 0x415   : > { %v3070_v12 = vld [vmem:[%s10802_s29 + $0x5498] sm:$0xff] }
 0x416   : > { %8585 = vmatpush1.bf16.msra.mxu0 %v8584_v32  ;;  %v8600_v32 = vpack.c.bf16 %v2971_v18, %v2959_v17  ;;  %v3055_v17 = vld [vmem:[%s10802_s29 + $0x5420] sm:$0xff] }
 0x417   : > { %9097 = vmatpush1.bf16.msra.mxu1 %v9096_v33  ;;  %8587 = vmatprep.subr.bf16.mxu0 %v8586_v34  ;;  %v9112_v33 = vpack.c.bf16 %v2973_v22, %v2961_v19  ;;  %v8602_v34 = vpack.c.bf16 %v2996_v26, %v2984_v24  ;;  %v3067_v18 = vld [vmem:[%s10802_s29 + $0x5480] sm:$0xff]  ;;  %v3057_v19 = vld [vmem:[%s10802_s29 + $0x5430] sm:$0xff]  ;;  %v3080_v24 = vld [vmem:[%s10802_s29 + $0x54e8] sm:$0xff] }
 0x418   : > { %9099 = vmatprep.subr.bf16.mxu1 %v9098_v38  ;;  %v9114_v38 = vpack.c.bf16 %v2998_v29, %v2986_v27  ;;  %v3069_v22 = vld [vmem:[%s10802_s29 + $0x5490] sm:$0xff]  ;;  %v3092_v26 = vld [vmem:[%s10802_s29 + $0x5548] sm:$0xff]  ;;  %v3082_v27 = vld [vmem:[%s10802_s29 + $0x54f8] sm:$0xff] }
 0x419   : > { %v3094_v29 = vld [vmem:[%s10802_s29 + $0x5558] sm:$0xff] }
 0x41a   : > { %8589 = vmatpush1.bf16.msra.mxu0 %v8588_v47  ;;  %v8604_v47 = vpack.c.bf16 %v2995_v36, %v2983_v35  ;;  %v3079_v35 = vld [vmem:[%s10802_s29 + $0x54e0] sm:$0xff] }
 0x41b   : > { %9101 = vmatpush1.bf16.msra.mxu1 %v9100_v49  ;;  %8591 = vmatprep.subr.bf16.mxu0 %v8590_v50  ;;  %v9116_v49 = vpack.c.bf16 %v2997_v39, %v2985_v37  ;;  %v8606_v50 = vpack.c.bf16 %v3020_v42, %v3008_v41  ;;  %v3091_v36 = vld [vmem:[%s10802_s29 + $0x5540] sm:$0xff]  ;;  %v3081_v37 = vld [vmem:[%s10802_s29 + $0x54f0] sm:$0xff]  ;;  %v3104_v41 = vld [vmem:[%s10802_s29 + $0x55a8] sm:$0xff] }
 0x41c   : > { %9103 = vmatprep.subr.bf16.mxu1 %v9102_v54  ;;  %v9118_v54 = vpack.c.bf16 %v3022_v46, %v3010_v44  ;;  %v3093_v39 = vld [vmem:[%s10802_s29 + $0x5550] sm:$0xff]  ;;  %v3116_v42 = vld [vmem:[%s10802_s29 + $0x5608] sm:$0xff]  ;;  %v3106_v44 = vld [vmem:[%s10802_s29 + $0x55b8] sm:$0xff] }
 0x41d   : > { %v3118_v46 = vld [vmem:[%s10802_s29 + $0x5618] sm:$0xff] }
 0x41e   : > { %8593 = vmatpush1.bf16.msra.mxu0 %v8592_v61  ;;  %v8608_v61 = vpack.c.bf16 %v3019_v52, %v3007_v51  ;;  %v3103_v51 = vld [vmem:[%s10802_s29 + $0x55a0] sm:$0xff] }
 0x41f   : > { %9105 = vmatpush1.bf16.msra.mxu1 %v9104_v63  ;;  %8595 = vmatprep.subr.bf16.mxu0 %v8594_v0  ;;  %v9120_v63 = vpack.c.bf16 %v3021_v55, %v3009_v53  ;;  %v8610_v0 = vpack.c.bf16 %v3044_v57, %v3032_v56  ;;  %v3115_v52 = vld [vmem:[%s10802_s29 + $0x5600] sm:$0xff]  ;;  %v3105_v53 = vld [vmem:[%s10802_s29 + $0x55b0] sm:$0xff]  ;;  %v3128_v56 = vld [vmem:[%s10802_s29 + $0x5668] sm:$0xff] }
 0x420   : > { %9107 = vmatprep.subr.bf16.mxu1 %v9106_v4  ;;  %v9122_v4 = vpack.c.bf16 %v3046_v59, %v3034_v58  ;;  %v3117_v55 = vld [vmem:[%s10802_s29 + $0x5610] sm:$0xff]  ;;  %v3140_v57 = vld [vmem:[%s10802_s29 + $0x56c8] sm:$0xff]  ;;  %v3130_v58 = vld [vmem:[%s10802_s29 + $0x5678] sm:$0xff] }
 0x421   : > { %v3142_v59 = vld [vmem:[%s10802_s29 + $0x56d8] sm:$0xff] }
 0x422   : > { %8597 = vmatpush1.bf16.msra.mxu0 %v8596_v13  ;;  %v8612_v13 = vpack.c.bf16 %v3043_v2, %v3031_v1  ;;  %v3127_v1 = vld [vmem:[%s10802_s29 + $0x5660] sm:$0xff] }
 0x423   : > { %9109 = vmatpush1.bf16.msra.mxu1 %v9108_v14  ;;  %8599 = vmatprep.subr.bf16.mxu0 %v8598_v15  ;;  %v9124_v14 = vpack.c.bf16 %v3045_v5, %v3033_v3  ;;  %v8614_v15 = vpack.c.bf16 %v3068_v7, %v3056_v6  ;;  %v3139_v2 = vld [vmem:[%s10802_s29 + $0x56c0] sm:$0xff]  ;;  %v3129_v3 = vld [vmem:[%s10802_s29 + $0x5670] sm:$0xff]  ;;  %v3152_v6 = vld [vmem:[%s10802_s29 + $0x5728] sm:$0xff] }
 0x424   : > { %9111 = vmatprep.subr.bf16.mxu1 %v9110_v21  ;;  %v9126_v21 = vpack.c.bf16 %v3070_v12, %v3058_v10  ;;  %v3141_v5 = vld [vmem:[%s10802_s29 + $0x56d0] sm:$0xff]  ;;  %v3164_v7 = vld [vmem:[%s10802_s29 + $0x5788] sm:$0xff]  ;;  %v3154_v10 = vld [vmem:[%s10802_s29 + $0x5738] sm:$0xff] }
 0x425   : > { %v3166_v12 = vld [vmem:[%s10802_s29 + $0x5798] sm:$0xff] }
 0x426   : > { %8601 = vmatpush1.bf16.msra.mxu0 %v8600_v32  ;;  %v8616_v32 = vpack.c.bf16 %v3067_v18, %v3055_v17  ;;  %v3151_v17 = vld [vmem:[%s10802_s29 + $0x5720] sm:$0xff] }
 0x427   : > { %9113 = vmatpush1.bf16.msra.mxu1 %v9112_v33  ;;  %8603 = vmatprep.subr.bf16.mxu0 %v8602_v34  ;;  %v9128_v33 = vpack.c.bf16 %v3069_v22, %v3057_v19  ;;  %v8618_v34 = vpack.c.bf16 %v3092_v26, %v3080_v24  ;;  %v3163_v18 = vld [vmem:[%s10802_s29 + $0x5780] sm:$0xff]  ;;  %v3153_v19 = vld [vmem:[%s10802_s29 + $0x5730] sm:$0xff]  ;;  %v3176_v24 = vld [vmem:[%s10802_s29 + $0x57e8] sm:$0xff] }
 0x428   : > { %9115 = vmatprep.subr.bf16.mxu1 %v9114_v38  ;;  %v9130_v38 = vpack.c.bf16 %v3094_v29, %v3082_v27  ;;  %v3165_v22 = vld [vmem:[%s10802_s29 + $0x5790] sm:$0xff]  ;;  %v3188_v26 = vld [vmem:[%s10802_s29 + $0x5848] sm:$0xff]  ;;  %v3178_v27 = vld [vmem:[%s10802_s29 + $0x57f8] sm:$0xff] }
 0x429   : > { %v3190_v29 = vld [vmem:[%s10802_s29 + $0x5858] sm:$0xff] }
 0x42a   : > { %8605 = vmatpush1.bf16.msra.mxu0 %v8604_v47  ;;  %v8620_v47 = vpack.c.bf16 %v3091_v36, %v3079_v35  ;;  %v3175_v35 = vld [vmem:[%s10802_s29 + $0x57e0] sm:$0xff] }
 0x42b   : > { %9117 = vmatpush1.bf16.msra.mxu1 %v9116_v49  ;;  %8607 = vmatprep.subr.bf16.mxu0 %v8606_v50  ;;  %v9132_v49 = vpack.c.bf16 %v3093_v39, %v3081_v37  ;;  %v8622_v50 = vpack.c.bf16 %v3116_v42, %v3104_v41  ;;  %v3187_v36 = vld [vmem:[%s10802_s29 + $0x5840] sm:$0xff]  ;;  %v3177_v37 = vld [vmem:[%s10802_s29 + $0x57f0] sm:$0xff]  ;;  %v3200_v41 = vld [vmem:[%s10802_s29 + $0x58a8] sm:$0xff] }
 0x42c   : > { %9119 = vmatprep.subr.bf16.mxu1 %v9118_v54  ;;  %v9134_v54 = vpack.c.bf16 %v3118_v46, %v3106_v44  ;;  %v3189_v39 = vld [vmem:[%s10802_s29 + $0x5850] sm:$0xff]  ;;  %v3212_v42 = vld [vmem:[%s10802_s29 + $0x5908] sm:$0xff]  ;;  %v3202_v44 = vld [vmem:[%s10802_s29 + $0x58b8] sm:$0xff] }
 0x42d   : > { %v3214_v46 = vld [vmem:[%s10802_s29 + $0x5918] sm:$0xff] }
 0x42e   : > { %8609 = vmatpush1.bf16.msra.mxu0 %v8608_v61  ;;  %v8624_v61 = vpack.c.bf16 %v3115_v52, %v3103_v51  ;;  %v3199_v51 = vld [vmem:[%s10802_s29 + $0x58a0] sm:$0xff] }
 0x42f   : > { %9121 = vmatpush1.bf16.msra.mxu1 %v9120_v63  ;;  %8611 = vmatprep.subr.bf16.mxu0 %v8610_v0  ;;  %v9136_v63 = vpack.c.bf16 %v3117_v55, %v3105_v53  ;;  %v8626_v0 = vpack.c.bf16 %v3140_v57, %v3128_v56  ;;  %v3211_v52 = vld [vmem:[%s10802_s29 + $0x5900] sm:$0xff]  ;;  %v3201_v53 = vld [vmem:[%s10802_s29 + $0x58b0] sm:$0xff]  ;;  %v3224_v56 = vld [vmem:[%s10802_s29 + $0x5968] sm:$0xff] }
 0x430   : > { %9123 = vmatprep.subr.bf16.mxu1 %v9122_v4  ;;  %v9138_v4 = vpack.c.bf16 %v3142_v59, %v3130_v58  ;;  %v3213_v55 = vld [vmem:[%s10802_s29 + $0x5910] sm:$0xff]  ;;  %v3236_v57 = vld [vmem:[%s10802_s29 + $0x59c8] sm:$0xff]  ;;  %v3226_v58 = vld [vmem:[%s10802_s29 + $0x5978] sm:$0xff] }
 0x431   : > { %v3238_v59 = vld [vmem:[%s10802_s29 + $0x59d8] sm:$0xff] }
 0x432   : > { %8613 = vmatpush1.bf16.msra.mxu0 %v8612_v13  ;;  %v8628_v13 = vpack.c.bf16 %v3139_v2, %v3127_v1  ;;  %v3223_v1 = vld [vmem:[%s10802_s29 + $0x5960] sm:$0xff] }
 0x433   : > { %9125 = vmatpush1.bf16.msra.mxu1 %v9124_v14  ;;  %8615 = vmatprep.subr.bf16.mxu0 %v8614_v15  ;;  %v9140_v14 = vpack.c.bf16 %v3141_v5, %v3129_v3  ;;  %v8630_v15 = vpack.c.bf16 %v3164_v7, %v3152_v6  ;;  %v3235_v2 = vld [vmem:[%s10802_s29 + $0x59c0] sm:$0xff]  ;;  %v3225_v3 = vld [vmem:[%s10802_s29 + $0x5970] sm:$0xff]  ;;  %v3248_v6 = vld [vmem:[%s10802_s29 + $0x5a28] sm:$0xff] }
 0x434   : > { %9127 = vmatprep.subr.bf16.mxu1 %v9126_v21  ;;  %v9142_v21 = vpack.c.bf16 %v3166_v12, %v3154_v10  ;;  %v3237_v5 = vld [vmem:[%s10802_s29 + $0x59d0] sm:$0xff]  ;;  %v3260_v7 = vld [vmem:[%s10802_s29 + $0x5a88] sm:$0xff]  ;;  %v3250_v10 = vld [vmem:[%s10802_s29 + $0x5a38] sm:$0xff] }
 0x435   : > { %5062 = vmatmul.mubr.f32.vlgmr.msra.gmra.mrb[2].mxu0 %v11813_v11  ;;  %v3262_v12 = vld [vmem:[%s10802_s29 + $0x5a98] sm:$0xff] }
 0x436   : > { %8617 = vmatpush1.bf16.msra.mxu0 %v8616_v32  ;;  %5630 = vmatmul.mubr.f32.vlgmr.msra.gmra.mrb[2].mxu1 %v11813_v11  ;;  %v8632_v32 = vpack.c.bf16 %v3163_v18, %v3151_v17  ;;  %v3247_v17 = vld [vmem:[%s10802_s29 + $0x5a20] sm:$0xff] }
 0x437   : > { %9129 = vmatpush1.bf16.msra.mxu1 %v9128_v33  ;;  %8619 = vmatprep.subr.bf16.mxu0 %v8618_v34  ;;  %v9144_v33 = vpack.c.bf16 %v3165_v22, %v3153_v19  ;;  %v8634_v34 = vpack.c.bf16 %v3188_v26, %v3176_v24  ;;  %v3259_v18 = vld [vmem:[%s10802_s29 + $0x5a80] sm:$0xff]  ;;  %v3249_v19 = vld [vmem:[%s10802_s29 + $0x5a30] sm:$0xff]  ;;  %v3272_v24 = vld [vmem:[%s10802_s29 + $0x5ae8] sm:$0xff] }
 0x438   : > { %9131 = vmatprep.subr.bf16.mxu1 %v9130_v38  ;;  %5132 = vmatprep.mubr.f32.mxu0 %v11824_v30  ;;  %v9146_v38 = vpack.c.bf16 %v3190_v29, %v3178_v27  ;;  %v3261_v22 = vld [vmem:[%s10802_s29 + $0x5a90] sm:$0xff]  ;;  %v3284_v26 = vld [vmem:[%s10802_s29 + $0x5b48] sm:$0xff]  ;;  %v3274_v27 = vld [vmem:[%s10802_s29 + $0x5af8] sm:$0xff] }
 0x439   : > { %5700 = vmatprep.mubr.f32.mxu1 %v11824_v30  ;;  %v3286_v29 = vld [vmem:[%s10802_s29 + $0x5b58] sm:$0xff] }
 0x43a   : > { %8621 = vmatpush1.bf16.msra.mxu0 %v8620_v47  ;;  %v8636_v47 = vpack.c.bf16 %v3187_v36, %v3175_v35  ;;  %v3271_v35 = vld [vmem:[%s10802_s29 + $0x5ae0] sm:$0xff] }
 0x43b   : > { %9133 = vmatpush1.bf16.msra.mxu1 %v9132_v49  ;;  %8623 = vmatprep.subr.bf16.mxu0 %v8622_v50  ;;  %v9148_v49 = vpack.c.bf16 %v3189_v39, %v3177_v37  ;;  %v8638_v50 = vpack.c.bf16 %v3212_v42, %v3200_v41  ;;  %v3283_v36 = vld [vmem:[%s10802_s29 + $0x5b40] sm:$0xff]  ;;  %v3273_v37 = vld [vmem:[%s10802_s29 + $0x5af0] sm:$0xff]  ;;  %v3296_v41 = vld [vmem:[%s10802_s29 + $0x5ba8] sm:$0xff] }
 0x43c   : > { %9135 = vmatprep.subr.bf16.mxu1 %v9134_v54  ;;  %v9150_v54 = vpack.c.bf16 %v3214_v46, %v3202_v44  ;;  %v3285_v39 = vld [vmem:[%s10802_s29 + $0x5b50] sm:$0xff]  ;;  %v3308_v42 = vld [vmem:[%s10802_s29 + $0x5c08] sm:$0xff]  ;;  %v3298_v44 = vld [vmem:[%s10802_s29 + $0x5bb8] sm:$0xff] }
 0x43d   : > { %v3310_v46 = vld [vmem:[%s10802_s29 + $0x5c18] sm:$0xff] }
 0x43e   : > { %8625 = vmatpush1.bf16.msra.mxu0 %v8624_v61  ;;  %v8640_v61 = vpack.c.bf16 %v3211_v52, %v3199_v51  ;;  %v3295_v51 = vld [vmem:[%s10802_s29 + $0x5ba0] sm:$0xff] }
 0x43f   : > { %9137 = vmatpush1.bf16.msra.mxu1 %v9136_v63  ;;  %8627 = vmatprep.subr.bf16.mxu0 %v8626_v0  ;;  %v9152_v63 = vpack.c.bf16 %v3213_v55, %v3201_v53  ;;  %v8642_v0 = vpack.c.bf16 %v3236_v57, %v3224_v56  ;;  %v3307_v52 = vld [vmem:[%s10802_s29 + $0x5c00] sm:$0xff]  ;;  %v3297_v53 = vld [vmem:[%s10802_s29 + $0x5bb0] sm:$0xff]  ;;  %v3320_v56 = vld [vmem:[%s10802_s29 + $0x5c68] sm:$0xff] }
 0x440   : > { %9139 = vmatprep.subr.bf16.mxu1 %v9138_v4  ;;  %v9154_v4 = vpack.c.bf16 %v3238_v59, %v3226_v58  ;;  %v3309_v55 = vld [vmem:[%s10802_s29 + $0x5c10] sm:$0xff]  ;;  %v3332_v57 = vld [vmem:[%s10802_s29 + $0x5cc8] sm:$0xff]  ;;  %v3322_v58 = vld [vmem:[%s10802_s29 + $0x5c78] sm:$0xff] }
 0x441   : > { %v3334_v59 = vld [vmem:[%s10802_s29 + $0x5cd8] sm:$0xff] }
 0x442   : > { %8629 = vmatpush1.bf16.msra.mxu0 %v8628_v13  ;;  %v8644_v13 = vpack.c.bf16 %v3235_v2, %v3223_v1  ;;  %v3319_v1 = vld [vmem:[%s10802_s29 + $0x5c60] sm:$0xff] }
 0x443   : > { %9141 = vmatpush1.bf16.msra.mxu1 %v9140_v14  ;;  %8631 = vmatprep.subr.bf16.mxu0 %v8630_v15  ;;  %v9156_v14 = vpack.c.bf16 %v3237_v5, %v3225_v3  ;;  %v8646_v15 = vpack.c.bf16 %v3260_v7, %v3248_v6  ;;  %v3331_v2 = vld [vmem:[%s10802_s29 + $0x5cc0] sm:$0xff]  ;;  %v3321_v3 = vld [vmem:[%s10802_s29 + $0x5c70] sm:$0xff]  ;;  %v3344_v6 = vld [vmem:[%s10802_s29 + $0x5d28] sm:$0xff] }
 0x444   : > { %9143 = vmatprep.subr.bf16.mxu1 %v9142_v21  ;;  %v9158_v21 = vpack.c.bf16 %v3262_v12, %v3250_v10  ;;  %v3333_v5 = vld [vmem:[%s10802_s29 + $0x5cd0] sm:$0xff]  ;;  %v3356_v7 = vld [vmem:[%s10802_s29 + $0x5d88] sm:$0xff]  ;;  %v3346_v10 = vld [vmem:[%s10802_s29 + $0x5d38] sm:$0xff] }
 0x445   : > { %v3358_v12 = vld [vmem:[%s10802_s29 + $0x5d98] sm:$0xff] }
 0x446   : > { %8633 = vmatpush1.bf16.msra.mxu0 %v8632_v32  ;;  %v8648_v32 = vpack.c.bf16 %v3259_v18, %v3247_v17  ;;  %v3343_v17 = vld [vmem:[%s10802_s29 + $0x5d20] sm:$0xff] }
 0x447   : > { %9145 = vmatpush1.bf16.msra.mxu1 %v9144_v33  ;;  %8635 = vmatprep.subr.bf16.mxu0 %v8634_v34  ;;  %v9160_v33 = vpack.c.bf16 %v3261_v22, %v3249_v19  ;;  %v8650_v34 = vpack.c.bf16 %v3284_v26, %v3272_v24  ;;  %v3355_v18 = vld [vmem:[%s10802_s29 + $0x5d80] sm:$0xff]  ;;  %v3345_v19 = vld [vmem:[%s10802_s29 + $0x5d30] sm:$0xff]  ;;  %v3368_v24 = vld [vmem:[%s10802_s29 + $0x5de8] sm:$0xff] }
 0x448   : > { %9147 = vmatprep.subr.bf16.mxu1 %v9146_v38  ;;  %v9162_v38 = vpack.c.bf16 %v3286_v29, %v3274_v27  ;;  %v3357_v22 = vld [vmem:[%s10802_s29 + $0x5d90] sm:$0xff]  ;;  %v3380_v26 = vld [vmem:[%s10802_s29 + $0x5e48] sm:$0xff]  ;;  %v3370_v27 = vld [vmem:[%s10802_s29 + $0x5df8] sm:$0xff] }
 0x449   : > { %v3382_v29 = vld [vmem:[%s10802_s29 + $0x5e58] sm:$0xff] }
 0x44a   : > { %8637 = vmatpush1.bf16.msra.mxu0 %v8636_v47  ;;  %v8652_v47 = vpack.c.bf16 %v3283_v36, %v3271_v35  ;;  %v3367_v35 = vld [vmem:[%s10802_s29 + $0x5de0] sm:$0xff] }
 0x44b   : > { %9149 = vmatpush1.bf16.msra.mxu1 %v9148_v49  ;;  %8639 = vmatprep.subr.bf16.mxu0 %v8638_v50  ;;  %v9164_v49 = vpack.c.bf16 %v3285_v39, %v3273_v37  ;;  %v8654_v50 = vpack.c.bf16 %v3308_v42, %v3296_v41  ;;  %v3379_v36 = vld [vmem:[%s10802_s29 + $0x5e40] sm:$0xff]  ;;  %v3369_v37 = vld [vmem:[%s10802_s29 + $0x5df0] sm:$0xff]  ;;  %v3392_v41 = vld [vmem:[%s10802_s29 + $0x5ea8] sm:$0xff] }
 0x44c   : > { %9151 = vmatprep.subr.bf16.mxu1 %v9150_v54  ;;  %v9166_v54 = vpack.c.bf16 %v3310_v46, %v3298_v44  ;;  %v3381_v39 = vld [vmem:[%s10802_s29 + $0x5e50] sm:$0xff]  ;;  %v3404_v42 = vld [vmem:[%s10802_s29 + $0x5f08] sm:$0xff]  ;;  %v3394_v44 = vld [vmem:[%s10802_s29 + $0x5eb8] sm:$0xff] }
 0x44d   : > { %v3406_v46 = vld [vmem:[%s10802_s29 + $0x5f18] sm:$0xff] }
 0x44e   : > { %8641 = vmatpush1.bf16.msra.mxu0 %v8640_v61  ;;  %v8656_v61 = vpack.c.bf16 %v3307_v52, %v3295_v51  ;;  %v3391_v51 = vld [vmem:[%s10802_s29 + $0x5ea0] sm:$0xff] }
 0x44f   : > { %9153 = vmatpush1.bf16.msra.mxu1 %v9152_v63  ;;  %8643 = vmatprep.subr.bf16.mxu0 %v8642_v0  ;;  %v9168_v63 = vpack.c.bf16 %v3309_v55, %v3297_v53  ;;  %v8658_v0 = vpack.c.bf16 %v3332_v57, %v3320_v56  ;;  %v3403_v52 = vld [vmem:[%s10802_s29 + $0x5f00] sm:$0xff]  ;;  %v3393_v53 = vld [vmem:[%s10802_s29 + $0x5eb0] sm:$0xff]  ;;  %v3416_v56 = vld [vmem:[%s10802_s29 + $0x5f68] sm:$0xff] }
 0x450   : > { %9155 = vmatprep.subr.bf16.mxu1 %v9154_v4  ;;  %v9170_v4 = vpack.c.bf16 %v3334_v59, %v3322_v58  ;;  %v3405_v55 = vld [vmem:[%s10802_s29 + $0x5f10] sm:$0xff]  ;;  %v3428_v57 = vld [vmem:[%s10802_s29 + $0x5fc8] sm:$0xff]  ;;  %v3418_v58 = vld [vmem:[%s10802_s29 + $0x5f78] sm:$0xff] }
 0x451   : > { %v3430_v59 = vld [vmem:[%s10802_s29 + $0x5fd8] sm:$0xff] }
 0x452   : > { %8645 = vmatpush1.bf16.msra.mxu0 %v8644_v13  ;;  %v8660_v13 = vpack.c.bf16 %v3331_v2, %v3319_v1  ;;  %v3415_v1 = vld [vmem:[%s10802_s29 + $0x5f60] sm:$0xff] }
 0x453   : > { %9157 = vmatpush1.bf16.msra.mxu1 %v9156_v14  ;;  %8647 = vmatprep.subr.bf16.mxu0 %v8646_v15  ;;  %v9172_v14 = vpack.c.bf16 %v3333_v5, %v3321_v3  ;;  %v8662_v15 = vpack.c.bf16 %v3356_v7, %v3344_v6  ;;  %v3427_v2 = vld [vmem:[%s10802_s29 + $0x5fc0] sm:$0xff]  ;;  %v3417_v3 = vld [vmem:[%s10802_s29 + $0x5f70] sm:$0xff]  ;;  %v372_v6 = vld [vmem:[%s10802_s29 + $0x48] sm:$0xff] }
 0x454   : > { %9159 = vmatprep.subr.bf16.mxu1 %v9158_v21  ;;  %v9174_v21 = vpack.c.bf16 %v3358_v12, %v3346_v10  ;;  %v3429_v5 = vld [vmem:[%s10802_s29 + $0x5fd0] sm:$0xff]  ;;  %v384_v7 = vld [vmem:[%s10802_s29 + $0xa8] sm:$0xff]  ;;  %v374_v10 = vld [vmem:[%s10802_s29 + $0x58] sm:$0xff] }
 0x455   : > { %v386_v12 = vld [vmem:[%s10802_s29 + $0xb8] sm:$0xff] }
 0x456   : > { %8649 = vmatpush1.bf16.msra.mxu0 %v8648_v32  ;;  %v8664_v32 = vpack.c.bf16 %v3355_v18, %v3343_v17  ;;  %v371_v17 = vld [vmem:[%s10802_s29 + $0x40] sm:$0xff] }
 0x457   : > { %9161 = vmatpush1.bf16.msra.mxu1 %v9160_v33  ;;  %8651 = vmatprep.subr.bf16.mxu0 %v8650_v34  ;;  %v9176_v33 = vpack.c.bf16 %v3357_v22, %v3345_v19  ;;  %v8666_v34 = vpack.c.bf16 %v3380_v26, %v3368_v24  ;;  %v383_v18 = vld [vmem:[%s10802_s29 + $0xa0] sm:$0xff]  ;;  %v373_v19 = vld [vmem:[%s10802_s29 + $0x50] sm:$0xff]  ;;  %v396_v24 = vld [vmem:[%s10802_s29 + $0x108] sm:$0xff] }
 0x458   : > { %9163 = vmatprep.subr.bf16.mxu1 %v9162_v38  ;;  %v9178_v38 = vpack.c.bf16 %v3382_v29, %v3370_v27  ;;  %v385_v22 = vld [vmem:[%s10802_s29 + $0xb0] sm:$0xff]  ;;  %v408_v26 = vld [vmem:[%s10802_s29 + $0x168] sm:$0xff]  ;;  %v398_v27 = vld [vmem:[%s10802_s29 + $0x118] sm:$0xff] }
 0x459   : > { %v410_v29 = vld [vmem:[%s10802_s29 + $0x178] sm:$0xff] }
 0x45a   : > { %8653 = vmatpush1.bf16.msra.mxu0 %v8652_v47  ;;  %v8668_v47 = vpack.c.bf16 %v3379_v36, %v3367_v35  ;;  %v395_v35 = vld [vmem:[%s10802_s29 + $0x100] sm:$0xff] }
 0x45b   : > { %9165 = vmatpush1.bf16.msra.mxu1 %v9164_v49  ;;  %8655 = vmatprep.subr.bf16.mxu0 %v8654_v50  ;;  %v9180_v49 = vpack.c.bf16 %v3381_v39, %v3369_v37  ;;  %v8670_v50 = vpack.c.bf16 %v3404_v42, %v3392_v41  ;;  %v407_v36 = vld [vmem:[%s10802_s29 + $0x160] sm:$0xff]  ;;  %v397_v37 = vld [vmem:[%s10802_s29 + $0x110] sm:$0xff]  ;;  %v420_v41 = vld [vmem:[%s10802_s29 + $0x1c8] sm:$0xff] }
 0x45c   : > { %9167 = vmatprep.subr.bf16.mxu1 %v9166_v54  ;;  %v9182_v54 = vpack.c.bf16 %v3406_v46, %v3394_v44  ;;  %v409_v39 = vld [vmem:[%s10802_s29 + $0x170] sm:$0xff]  ;;  %v432_v42 = vld [vmem:[%s10802_s29 + $0x228] sm:$0xff]  ;;  %v422_v44 = vld [vmem:[%s10802_s29 + $0x1d8] sm:$0xff] }
 0x45d   : > { %v434_v46 = vld [vmem:[%s10802_s29 + $0x238] sm:$0xff] }
 0x45e   : > { %8657 = vmatpush1.bf16.msra.mxu0 %v8656_v61  ;;  %v8672_v61 = vpack.c.bf16 %v3403_v52, %v3391_v51  ;;  %v419_v51 = vld [vmem:[%s10802_s29 + $0x1c0] sm:$0xff] }
 0x45f   : > { %9169 = vmatpush1.bf16.msra.mxu1 %v9168_v63  ;;  %8659 = vmatprep.subr.bf16.mxu0 %v8658_v0  ;;  %v9184_v63 = vpack.c.bf16 %v3405_v55, %v3393_v53  ;;  %v8674_v0 = vpack.c.bf16 %v3428_v57, %v3416_v56  ;;  %v431_v52 = vld [vmem:[%s10802_s29 + $0x220] sm:$0xff]  ;;  %v421_v53 = vld [vmem:[%s10802_s29 + $0x1d0] sm:$0xff]  ;;  %v444_v56 = vld [vmem:[%s10802_s29 + $0x288] sm:$0xff] }
 0x460   : > { %9171 = vmatprep.subr.bf16.mxu1 %v9170_v4  ;;  %v9186_v4 = vpack.c.bf16 %v3430_v59, %v3418_v58  ;;  %v433_v55 = vld [vmem:[%s10802_s29 + $0x230] sm:$0xff]  ;;  %v456_v57 = vld [vmem:[%s10802_s29 + $0x2e8] sm:$0xff]  ;;  %v446_v58 = vld [vmem:[%s10802_s29 + $0x298] sm:$0xff] }
 0x461   : > { %v458_v59 = vld [vmem:[%s10802_s29 + $0x2f8] sm:$0xff] }
 0x462   : > { %8661 = vmatpush1.bf16.msra.mxu0 %v8660_v13  ;;  %v8676_v13 = vpack.c.bf16 %v3427_v2, %v3415_v1  ;;  %v443_v1 = vld [vmem:[%s10802_s29 + $0x280] sm:$0xff] }
 0x463   : > { %9173 = vmatpush1.bf16.msra.mxu1 %v9172_v14  ;;  %8663 = vmatprep.subr.bf16.mxu0 %v8662_v15  ;;  %v9188_v14 = vpack.c.bf16 %v3429_v5, %v3417_v3  ;;  %v9190_v15 = vpack.c.bf16 %v384_v7, %v372_v6  ;;  %v455_v2 = vld [vmem:[%s10802_s29 + $0x2e0] sm:$0xff]  ;;  %v445_v3 = vld [vmem:[%s10802_s29 + $0x290] sm:$0xff]  ;;  %v468_v6 = vld [vmem:[%s10802_s29 + $0x348] sm:$0xff] }
 0x464   : > { %9175 = vmatprep.subr.bf16.mxu1 %v9174_v21  ;;  %v9702_v21 = vpack.c.bf16 %v386_v12, %v374_v10  ;;  %v457_v5 = vld [vmem:[%s10802_s29 + $0x2f0] sm:$0xff]  ;;  %v470_v7 = vld [vmem:[%s10802_s29 + $0x358] sm:$0xff]  ;;  %v9204_v12 = vpack.c.bf16 %v455_v2, %v443_v1  ;;  %v551_v1 = vld [vmem:[%s10802_s29 + $0x5e0] sm:$0xff] }
 0x465   : > { %v482_v10 = vld [vmem:[%s10802_s29 + $0x3b8] sm:$0xff]  ;;  %v541_v2 = vld [vmem:[%s10802_s29 + $0x590] sm:$0xff] }
 0x466   : > { %8665 = vmatpush1.bf16.msra.mxu0 %v8664_v32  ;;  %v9192_v32 = vpack.c.bf16 %v383_v18, %v371_v17  ;;  %v479_v17 = vld [vmem:[%s10802_s29 + $0x3a0] sm:$0xff]  ;;  %v469_v18 = vld [vmem:[%s10802_s29 + $0x350] sm:$0xff] }
 0x467   : > { %9177 = vmatpush1.bf16.msra.mxu1 %v9176_v33  ;;  %8667 = vmatprep.subr.bf16.mxu0 %v8666_v34  ;;  %v9704_v33 = vpack.c.bf16 %v385_v22, %v373_v19  ;;  %v9194_v34 = vpack.c.bf16 %v408_v26, %v396_v24  ;;  %v9718_v19 = vpack.c.bf16 %v482_v10, %v470_v7  ;;  %v492_v22 = vld [vmem:[%s10802_s29 + $0x408] sm:$0xff]  ;;  %v494_v26 = vld [vmem:[%s10802_s29 + $0x418] sm:$0xff] }
 0x468   : > { %9179 = vmatprep.subr.bf16.mxu1 %v9178_v38  ;;  %v9706_v38 = vpack.c.bf16 %v410_v29, %v398_v27  ;;  %v504_v24 = vld [vmem:[%s10802_s29 + $0x468] sm:$0xff]  ;;  %v506_v27 = vld [vmem:[%s10802_s29 + $0x478] sm:$0xff] }
 0x469   : > { %v578_v7 = vld [vmem:[%s10802_s29 + $0x6b8] sm:$0xff] }
 0x46a   : > { %8669 = vmatpush1.bf16.msra.mxu0 %v8668_v47  ;;  %v9196_v47 = vpack.c.bf16 %v407_v36, %v395_v35  ;;  %v503_v35 = vld [vmem:[%s10802_s29 + $0x460] sm:$0xff]  ;;  %v493_v36 = vld [vmem:[%s10802_s29 + $0x410] sm:$0xff] }
 0x46b   : > { %9181 = vmatpush1.bf16.msra.mxu1 %v9180_v49  ;;  %8671 = vmatprep.subr.bf16.mxu0 %v8670_v50  ;;  %v9708_v49 = vpack.c.bf16 %v409_v39, %v397_v37  ;;  %v9198_v50 = vpack.c.bf16 %v432_v42, %v420_v41  ;;  %v9722_v37 = vpack.c.bf16 %v506_v27, %v494_v26  ;;  %v516_v39 = vld [vmem:[%s10802_s29 + $0x4c8] sm:$0xff]  ;;  %v518_v42 = vld [vmem:[%s10802_s29 + $0x4d8] sm:$0xff] }
 0x46c   : > { %9183 = vmatprep.subr.bf16.mxu1 %v9182_v54  ;;  %v9710_v54 = vpack.c.bf16 %v434_v46, %v422_v44  ;;  %v528_v41 = vld [vmem:[%s10802_s29 + $0x528] sm:$0xff]  ;;  %v530_v44 = vld [vmem:[%s10802_s29 + $0x538] sm:$0xff] }
 0x46d   : > { %v602_v26 = vld [vmem:[%s10802_s29 + $0x778] sm:$0xff] }
 0x46e   : > { %8673 = vmatpush1.bf16.msra.mxu0 %v8672_v61  ;;  %v9200_v61 = vpack.c.bf16 %v431_v52, %v419_v51  ;;  %v527_v51 = vld [vmem:[%s10802_s29 + $0x520] sm:$0xff]  ;;  %v517_v52 = vld [vmem:[%s10802_s29 + $0x4d0] sm:$0xff] }
 0x46f   : > { %9185 = vmatpush1.bf16.msra.mxu1 %v9184_v63  ;;  %8675 = vmatprep.subr.bf16.mxu0 %v8674_v0  ;;  %v9712_v63 = vpack.c.bf16 %v433_v55, %v421_v53  ;;  %v9202_v0 = vpack.c.bf16 %v456_v57, %v444_v56  ;;  %v9726_v53 = vpack.c.bf16 %v530_v44, %v518_v42  ;;  %v540_v55 = vld [vmem:[%s10802_s29 + $0x588] sm:$0xff]  ;;  %v542_v57 = vld [vmem:[%s10802_s29 + $0x598] sm:$0xff] }
 0x470   : > { %9187 = vmatprep.subr.bf16.mxu1 %v9186_v4  ;;  %v9714_v4 = vpack.c.bf16 %v458_v59, %v446_v58  ;;  %v552_v56 = vld [vmem:[%s10802_s29 + $0x5e8] sm:$0xff]  ;;  %v554_v58 = vld [vmem:[%s10802_s29 + $0x5f8] sm:$0xff] }
 0x471   : > { %v626_v42 = vld [vmem:[%s10802_s29 + $0x838] sm:$0xff] }
 0x472   : > { %8677 = vmatpush1.bf16.msra.mxu0 %v8676_v13  ;;  %v9716_v13 = vpack.c.bf16 %v457_v5, %v445_v3  ;;  %v9730_v3 = vpack.c.bf16 %v554_v58, %v542_v57  ;;  %v564_v5 = vld [vmem:[%s10802_s29 + $0x648] sm:$0xff]  ;;  %v650_v57 = vld [vmem:[%s10802_s29 + $0x8f8] sm:$0xff] }
 0x473   : > { %9189 = vmatpush1.bf16.msra.mxu1 %v9188_v14  ;;  %9191 = vmatprep.subr.bf16.mxu0 %v9190_v15  ;;  %v467_v15 = vld [vmem:[%s10802_s29 + $0x340] sm:$0xff] }
 0x474   : > { %9703 = vmatprep.subr.bf16.mxu1 %v9702_v21  ;;  %v481_v21 = vld [vmem:[%s10802_s29 + $0x3b0] sm:$0xff]  ;;  %v9208_v29 = vpack.c.bf16 %v479_v17, %v467_v15  ;;  %v575_v15 = vld [vmem:[%s10802_s29 + $0x6a0] sm:$0xff] }
 0x475   : > { %5133 = vmatmul.mubr.f32.vlgmr.msra.gmra.mrb[2].mxu0 %v11951_v8  ;;  %v565_v17 = vld [vmem:[%s10802_s29 + $0x650] sm:$0xff] }
 0x476   : > { %5701 = vmatmul.mubr.f32.vlgmr.msra.gmra.mrb[2].mxu1 %v11951_v8  ;;  %9193 = vmatpush1.bf16.msra.mxu0 %v9192_v32  ;;  %v9720_v32 = vpack.c.bf16 %v481_v21, %v469_v18  ;;  %v588_v21 = vld [vmem:[%s10802_s29 + $0x708] sm:$0xff] }
 0x477   : > { %9705 = vmatpush1.bf16.msra.mxu1 %v9704_v33  ;;  %9195 = vmatprep.subr.bf16.mxu0 %v9194_v34  ;;  %v9210_v33 = vpack.c.bf16 %v504_v24, %v492_v22  ;;  %v491_v34 = vld [vmem:[%s10802_s29 + $0x400] sm:$0xff]  ;;  %v600_v22 = vld [vmem:[%s10802_s29 + $0x768] sm:$0xff]  ;;  %v590_v24 = vld [vmem:[%s10802_s29 + $0x718] sm:$0xff] }
 0x478   : > { %9707 = vmatprep.subr.bf16.mxu1 %v9706_v38  ;;  %5771 = vmatprep.mubr.f32.mxu0 %v10942_v20  ;;  %v505_v38 = vld [vmem:[%s10802_s29 + $0x470] sm:$0xff]  ;;  %v9212_v46 = vpack.c.bf16 %v503_v35, %v491_v34  ;;  %v599_v34 = vld [vmem:[%s10802_s29 + $0x760] sm:$0xff] }
 0x479   : > { %6339 = vmatprep.mubr.f32.mxu1 %v10942_v20  ;;  %v480_v20 = vld [vmem:[%s10802_s29 + $0x3a8] sm:$0xff]  ;;  %v589_v35 = vld [vmem:[%s10802_s29 + $0x710] sm:$0xff] }
 0x47a   : > { %9197 = vmatpush1.bf16.msra.mxu0 %v9196_v47  ;;  %v9206_v14 = vpack.c.bf16 %v480_v20, %v468_v6  ;;  %v9724_v47 = vpack.c.bf16 %v505_v38, %v493_v36  ;;  %v576_v6 = vld [vmem:[%s10802_s29 + $0x6a8] sm:$0xff]  ;;  %v566_v20 = vld [vmem:[%s10802_s29 + $0x658] sm:$0xff]  ;;  %v9738_v36 = vpack.c.bf16 %v602_v26, %v590_v24 }
 0x47b   : > { %9709 = vmatpush1.bf16.msra.mxu1 %v9708_v49  ;;  %9199 = vmatprep.subr.bf16.mxu0 %v9198_v50  ;;  %v9214_v49 = vpack.c.bf16 %v528_v41, %v516_v39  ;;  %v515_v50 = vld [vmem:[%s10802_s29 + $0x4c0] sm:$0xff]  ;;  %v9734_v18 = vpack.c.bf16 %v578_v7, %v566_v20  ;;  %v612_v38 = vld [vmem:[%s10802_s29 + $0x7c8] sm:$0xff]  ;;  %v614_v41 = vld [vmem:[%s10802_s29 + $0x7d8] sm:$0xff] }
 0x47c   : > { %9711 = vmatprep.subr.bf16.mxu1 %v9710_v54  ;;  %v529_v54 = vld [vmem:[%s10802_s29 + $0x530] sm:$0xff]  ;;  %v9216_v59 = vpack.c.bf16 %v527_v51, %v515_v50  ;;  %v624_v39 = vld [vmem:[%s10802_s29 + $0x828] sm:$0xff]  ;;  %v623_v50 = vld [vmem:[%s10802_s29 + $0x820] sm:$0xff] }
 0x47d   : > { %v613_v51 = vld [vmem:[%s10802_s29 + $0x7d0] sm:$0xff]  ;;  %v674_v20 = vld [vmem:[%s10802_s29 + $0x9b8] sm:$0xff] }
 0x47e   : > { %9201 = vmatpush1.bf16.msra.mxu0 %v9200_v61  ;;  %v9728_v61 = vpack.c.bf16 %v529_v54, %v517_v52  ;;  %v9742_v52 = vpack.c.bf16 %v626_v42, %v614_v41  ;;  %v636_v54 = vld [vmem:[%s10802_s29 + $0x888] sm:$0xff]  ;;  %v698_v24 = vld [vmem:[%s10802_s29 + $0xa78] sm:$0xff] }
 0x47f   : > { %9713 = vmatpush1.bf16.msra.mxu1 %v9712_v63  ;;  %9203 = vmatprep.subr.bf16.mxu0 %v9202_v0  ;;  %v9218_v63 = vpack.c.bf16 %v552_v56, %v540_v55  ;;  %v539_v0 = vld [vmem:[%s10802_s29 + $0x580] sm:$0xff]  ;;  %v648_v55 = vld [vmem:[%s10802_s29 + $0x8e8] sm:$0xff]  ;;  %v638_v56 = vld [vmem:[%s10802_s29 + $0x898] sm:$0xff] }
 0x480   : > { %9715 = vmatprep.subr.bf16.mxu1 %v9714_v4  ;;  %v553_v4 = vld [vmem:[%s10802_s29 + $0x5f0] sm:$0xff]  ;;  %v9220_v10 = vpack.c.bf16 %v551_v1, %v539_v0  ;;  %v647_v0 = vld [vmem:[%s10802_s29 + $0x8e0] sm:$0xff]  ;;  %v722_v41 = vld [vmem:[%s10802_s29 + $0xb38] sm:$0xff] }
 0x481   : > { %v637_v1 = vld [vmem:[%s10802_s29 + $0x890] sm:$0xff] }
 0x482   : > { %9205 = vmatpush1.bf16.msra.mxu0 %v9204_v12  ;;  %v9732_v12 = vpack.c.bf16 %v553_v4, %v541_v2  ;;  %v9746_v2 = vpack.c.bf16 %v650_v57, %v638_v56  ;;  %v660_v4 = vld [vmem:[%s10802_s29 + $0x948] sm:$0xff]  ;;  %v746_v56 = vld [vmem:[%s10802_s29 + $0xbf8] sm:$0xff] }
 0x483   : > { %9717 = vmatpush1.bf16.msra.mxu1 %v9716_v13  ;;  %9207 = vmatprep.subr.bf16.mxu0 %v9206_v14  ;;  %v9222_v13 = vpack.c.bf16 %v576_v6, %v564_v5  ;;  %v563_v14 = vld [vmem:[%s10802_s29 + $0x640] sm:$0xff]  ;;  %v672_v5 = vld [vmem:[%s10802_s29 + $0x9a8] sm:$0xff]  ;;  %v662_v6 = vld [vmem:[%s10802_s29 + $0x958] sm:$0xff] }
 0x484   : > { %9719 = vmatprep.subr.bf16.mxu1 %v9718_v19  ;;  %v577_v19 = vld [vmem:[%s10802_s29 + $0x6b0] sm:$0xff]  ;;  %v9224_v27 = vpack.c.bf16 %v575_v15, %v563_v14  ;;  %v671_v14 = vld [vmem:[%s10802_s29 + $0x9a0] sm:$0xff] }
 0x485   : > { %v661_v15 = vld [vmem:[%s10802_s29 + $0x950] sm:$0xff] }
 0x486   : > { %9209 = vmatpush1.bf16.msra.mxu0 %v9208_v29  ;;  %v9736_v29 = vpack.c.bf16 %v577_v19, %v565_v17  ;;  %v9750_v17 = vpack.c.bf16 %v674_v20, %v662_v6  ;;  %v684_v19 = vld [vmem:[%s10802_s29 + $0xa08] sm:$0xff]  ;;  %v770_v6 = vld [vmem:[%s10802_s29 + $0xcb8] sm:$0xff] }
 0x487   : > { %9721 = vmatpush1.bf16.msra.mxu1 %v9720_v32  ;;  %9211 = vmatprep.subr.bf16.mxu0 %v9210_v33  ;;  %v9226_v32 = vpack.c.bf16 %v600_v22, %v588_v21  ;;  %v587_v33 = vld [vmem:[%s10802_s29 + $0x700] sm:$0xff]  ;;  %v696_v21 = vld [vmem:[%s10802_s29 + $0xa68] sm:$0xff]  ;;  %v686_v22 = vld [vmem:[%s10802_s29 + $0xa18] sm:$0xff] }
 0x488   : > { %9723 = vmatprep.subr.bf16.mxu1 %v9722_v37  ;;  %v601_v37 = vld [vmem:[%s10802_s29 + $0x770] sm:$0xff]  ;;  %v9228_v44 = vpack.c.bf16 %v599_v34, %v587_v33  ;;  %v695_v33 = vld [vmem:[%s10802_s29 + $0xa60] sm:$0xff] }
 0x489   : > { %v685_v34 = vld [vmem:[%s10802_s29 + $0xa10] sm:$0xff] }
 0x48a   : > { %9213 = vmatpush1.bf16.msra.mxu0 %v9212_v46  ;;  %v9740_v46 = vpack.c.bf16 %v601_v37, %v589_v35  ;;  %v9754_v35 = vpack.c.bf16 %v698_v24, %v686_v22  ;;  %v708_v37 = vld [vmem:[%s10802_s29 + $0xac8] sm:$0xff]  ;;  %v794_v22 = vld [vmem:[%s10802_s29 + $0xd78] sm:$0xff] }
 0x48b   : > { %9725 = vmatpush1.bf16.msra.mxu1 %v9724_v47  ;;  %9215 = vmatprep.subr.bf16.mxu0 %v9214_v49  ;;  %v9230_v47 = vpack.c.bf16 %v624_v39, %v612_v38  ;;  %v611_v49 = vld [vmem:[%s10802_s29 + $0x7c0] sm:$0xff]  ;;  %v720_v38 = vld [vmem:[%s10802_s29 + $0xb28] sm:$0xff]  ;;  %v710_v39 = vld [vmem:[%s10802_s29 + $0xad8] sm:$0xff] }
 0x48c   : > { %9727 = vmatprep.subr.bf16.mxu1 %v9726_v53  ;;  %v625_v53 = vld [vmem:[%s10802_s29 + $0x830] sm:$0xff]  ;;  %v9232_v58 = vpack.c.bf16 %v623_v50, %v611_v49  ;;  %v719_v49 = vld [vmem:[%s10802_s29 + $0xb20] sm:$0xff] }
 0x48d   : > { %v709_v50 = vld [vmem:[%s10802_s29 + $0xad0] sm:$0xff] }
 0x48e   : > { %9217 = vmatpush1.bf16.msra.mxu0 %v9216_v59  ;;  %v9744_v59 = vpack.c.bf16 %v625_v53, %v613_v51  ;;  %v9758_v51 = vpack.c.bf16 %v722_v41, %v710_v39  ;;  %v732_v53 = vld [vmem:[%s10802_s29 + $0xb88] sm:$0xff]  ;;  %v818_v39 = vld [vmem:[%s10802_s29 + $0xe38] sm:$0xff] }
 0x48f   : > { %9729 = vmatpush1.bf16.msra.mxu1 %v9728_v61  ;;  %9219 = vmatprep.subr.bf16.mxu0 %v9218_v63  ;;  %v9234_v61 = vpack.c.bf16 %v648_v55, %v636_v54  ;;  %v635_v63 = vld [vmem:[%s10802_s29 + $0x880] sm:$0xff]  ;;  %v744_v54 = vld [vmem:[%s10802_s29 + $0xbe8] sm:$0xff]  ;;  %v734_v55 = vld [vmem:[%s10802_s29 + $0xb98] sm:$0xff] }
 0x490   : > { %9731 = vmatprep.subr.bf16.mxu1 %v9730_v3  ;;  %v649_v3 = vld [vmem:[%s10802_s29 + $0x8f0] sm:$0xff]  ;;  %v9236_v7 = vpack.c.bf16 %v647_v0, %v635_v63  ;;  %v743_v63 = vld [vmem:[%s10802_s29 + $0xbe0] sm:$0xff] }
 0x491   : > { %v733_v0 = vld [vmem:[%s10802_s29 + $0xb90] sm:$0xff] }
 0x492   : > { %9221 = vmatpush1.bf16.msra.mxu0 %v9220_v10  ;;  %v9748_v10 = vpack.c.bf16 %v649_v3, %v637_v1  ;;  %v9762_v1 = vpack.c.bf16 %v746_v56, %v734_v55  ;;  %v756_v3 = vld [vmem:[%s10802_s29 + $0xc48] sm:$0xff] }
 0x493   : > { %9733 = vmatpush1.bf16.msra.mxu1 %v9732_v12  ;;  %9223 = vmatprep.subr.bf16.mxu0 %v9222_v13  ;;  %v9238_v12 = vpack.c.bf16 %v672_v5, %v660_v4  ;;  %v659_v13 = vld [vmem:[%s10802_s29 + $0x940] sm:$0xff]  ;;  %v768_v4 = vld [vmem:[%s10802_s29 + $0xca8] sm:$0xff]  ;;  %v758_v5 = vld [vmem:[%s10802_s29 + $0xc58] sm:$0xff] }
 0x494   : > { %9735 = vmatprep.subr.bf16.mxu1 %v9734_v18  ;;  %v673_v18 = vld [vmem:[%s10802_s29 + $0x9b0] sm:$0xff]  ;;  %v9240_v26 = vpack.c.bf16 %v671_v14, %v659_v13  ;;  %v767_v13 = vld [vmem:[%s10802_s29 + $0xca0] sm:$0xff] }
 0x495   : > { %v757_v14 = vld [vmem:[%s10802_s29 + $0xc50] sm:$0xff] }
 0x496   : > { %9225 = vmatpush1.bf16.msra.mxu0 %v9224_v27  ;;  %v9752_v27 = vpack.c.bf16 %v673_v18, %v661_v15  ;;  %v9766_v15 = vpack.c.bf16 %v770_v6, %v758_v5  ;;  %v780_v18 = vld [vmem:[%s10802_s29 + $0xd08] sm:$0xff] }
 0x497   : > { %9737 = vmatpush1.bf16.msra.mxu1 %v9736_v29  ;;  %9227 = vmatprep.subr.bf16.mxu0 %v9226_v32  ;;  %v9242_v29 = vpack.c.bf16 %v696_v21, %v684_v19  ;;  %v683_v32 = vld [vmem:[%s10802_s29 + $0xa00] sm:$0xff]  ;;  %v792_v19 = vld [vmem:[%s10802_s29 + $0xd68] sm:$0xff]  ;;  %v782_v21 = vld [vmem:[%s10802_s29 + $0xd18] sm:$0xff] }
 0x498   : > { %9739 = vmatprep.subr.bf16.mxu1 %v9738_v36  ;;  %v697_v36 = vld [vmem:[%s10802_s29 + $0xa70] sm:$0xff]  ;;  %v9244_v42 = vpack.c.bf16 %v695_v33, %v683_v32  ;;  %v791_v32 = vld [vmem:[%s10802_s29 + $0xd60] sm:$0xff] }
 0x499   : > { %v781_v33 = vld [vmem:[%s10802_s29 + $0xd10] sm:$0xff] }
 0x49a   : > { %9229 = vmatpush1.bf16.msra.mxu0 %v9228_v44  ;;  %v9756_v44 = vpack.c.bf16 %v697_v36, %v685_v34  ;;  %v9770_v34 = vpack.c.bf16 %v794_v22, %v782_v21  ;;  %v804_v36 = vld [vmem:[%s10802_s29 + $0xdc8] sm:$0xff] }
 0x49b   : > { %9741 = vmatpush1.bf16.msra.mxu1 %v9740_v46  ;;  %9231 = vmatprep.subr.bf16.mxu0 %v9230_v47  ;;  %v9246_v46 = vpack.c.bf16 %v720_v38, %v708_v37  ;;  %v707_v47 = vld [vmem:[%s10802_s29 + $0xac0] sm:$0xff]  ;;  %v816_v37 = vld [vmem:[%s10802_s29 + $0xe28] sm:$0xff]  ;;  %v806_v38 = vld [vmem:[%s10802_s29 + $0xdd8] sm:$0xff] }
 0x49c   : > { %9743 = vmatprep.subr.bf16.mxu1 %v9742_v52  ;;  %v721_v52 = vld [vmem:[%s10802_s29 + $0xb30] sm:$0xff]  ;;  %v9248_v57 = vpack.c.bf16 %v719_v49, %v707_v47  ;;  %v815_v47 = vld [vmem:[%s10802_s29 + $0xe20] sm:$0xff] }
 0x49d   : > { %v805_v49 = vld [vmem:[%s10802_s29 + $0xdd0] sm:$0xff] }
 0x49e   : > { %9233 = vmatpush1.bf16.msra.mxu0 %v9232_v58  ;;  %v9760_v58 = vpack.c.bf16 %v721_v52, %v709_v50  ;;  %v9774_v50 = vpack.c.bf16 %v818_v39, %v806_v38  ;;  %v828_v52 = vld [vmem:[%s10802_s29 + $0xe88] sm:$0xff] }
 0x49f   : > { %9745 = vmatpush1.bf16.msra.mxu1 %v9744_v59  ;;  %9235 = vmatprep.subr.bf16.mxu0 %v9234_v61  ;;  %v9250_v59 = vpack.c.bf16 %v744_v54, %v732_v53  ;;  %v731_v61 = vld [vmem:[%s10802_s29 + $0xb80] sm:$0xff]  ;;  %v840_v53 = vld [vmem:[%s10802_s29 + $0xee8] sm:$0xff]  ;;  %v842_v54 = vld [vmem:[%s10802_s29 + $0xef8] sm:$0xff] }
 0x4a0   : > { %9747 = vmatprep.subr.bf16.mxu1 %v9746_v2  ;;  %v745_v2 = vld [vmem:[%s10802_s29 + $0xbf0] sm:$0xff]  ;;  %v9252_v20 = vpack.c.bf16 %v743_v63, %v731_v61 }
 0x4a1   : > { %v829_v61 = vld [vmem:[%s10802_s29 + $0xe90] sm:$0xff] }
 0x4a2   : > { %9237 = vmatpush1.bf16.msra.mxu0 %v9236_v7  ;;  %v9764_v7 = vpack.c.bf16 %v745_v2, %v733_v0  ;;  %v841_v0 = vld [vmem:[%s10802_s29 + $0xef0] sm:$0xff]  ;;  %v854_v2 = vld [vmem:[%s10802_s29 + $0xf58] sm:$0xff] }
 0x4a3   : > { %9749 = vmatpush1.bf16.msra.mxu1 %v9748_v10  ;;  %9239 = vmatprep.subr.bf16.mxu0 %v9238_v12  ;;  %v9254_v10 = vpack.c.bf16 %v768_v4, %v756_v3  ;;  %v755_v12 = vld [vmem:[%s10802_s29 + $0xc40] sm:$0xff]  ;;  %v866_v3 = vld [vmem:[%s10802_s29 + $0xfb8] sm:$0xff]  ;;  %v9780_v5 = vpack.c.bf16 %v841_v0, %v829_v61  ;;  %v948_v61 = vld [vmem:[%s10802_s29 + $0x1248] sm:$0xff] }
 0x4a4   : > { %9751 = vmatprep.subr.bf16.mxu1 %v9750_v17  ;;  %v769_v17 = vld [vmem:[%s10802_s29 + $0xcb0] sm:$0xff]  ;;  %v9256_v24 = vpack.c.bf16 %v767_v13, %v755_v12  ;;  %v9782_v12 = vpack.c.bf16 %v866_v3, %v854_v2  ;;  %v950_v0 = vld [vmem:[%s10802_s29 + $0x1258] sm:$0xff] }
 0x4a5   : > { %v865_v13 = vld [vmem:[%s10802_s29 + $0xfb0] sm:$0xff] }
 0x4a6   : > { %9241 = vmatpush1.bf16.msra.mxu0 %v9240_v26  ;;  %v9768_v26 = vpack.c.bf16 %v769_v17, %v757_v14  ;;  %v876_v14 = vld [vmem:[%s10802_s29 + $0x1008] sm:$0xff]  ;;  %v878_v17 = vld [vmem:[%s10802_s29 + $0x1018] sm:$0xff] }
 0x4a7   : > { %9753 = vmatpush1.bf16.msra.mxu1 %v9752_v27  ;;  %9243 = vmatprep.subr.bf16.mxu0 %v9242_v29  ;;  %v9258_v27 = vpack.c.bf16 %v792_v19, %v780_v18  ;;  %v779_v29 = vld [vmem:[%s10802_s29 + $0xd00] sm:$0xff]  ;;  %v890_v18 = vld [vmem:[%s10802_s29 + $0x1078] sm:$0xff] }
 0x4a8   : > { %9755 = vmatprep.subr.bf16.mxu1 %v9754_v35  ;;  %v793_v35 = vld [vmem:[%s10802_s29 + $0xd70] sm:$0xff]  ;;  %v9260_v41 = vpack.c.bf16 %v791_v32, %v779_v29  ;;  %v9786_v29 = vpack.c.bf16 %v890_v18, %v878_v17 }
 0x4a9   : > { %v889_v32 = vld [vmem:[%s10802_s29 + $0x1070] sm:$0xff] }
 0x4aa   : > { %9245 = vmatpush1.bf16.msra.mxu0 %v9244_v42  ;;  %v9772_v42 = vpack.c.bf16 %v793_v35, %v781_v33  ;;  %v900_v33 = vld [vmem:[%s10802_s29 + $0x10c8] sm:$0xff]  ;;  %v902_v35 = vld [vmem:[%s10802_s29 + $0x10d8] sm:$0xff] }
 0x4ab   : > { %9757 = vmatpush1.bf16.msra.mxu1 %v9756_v44  ;;  %9247 = vmatprep.subr.bf16.mxu0 %v9246_v46  ;;  %v9262_v44 = vpack.c.bf16 %v816_v37, %v804_v36  ;;  %v803_v46 = vld [vmem:[%s10802_s29 + $0xdc0] sm:$0xff]  ;;  %v914_v36 = vld [vmem:[%s10802_s29 + $0x1138] sm:$0xff] }
 0x4ac   : > { %9759 = vmatprep.subr.bf16.mxu1 %v9758_v51  ;;  %v817_v51 = vld [vmem:[%s10802_s29 + $0xe30] sm:$0xff]  ;;  %v9264_v55 = vpack.c.bf16 %v815_v47, %v803_v46  ;;  %v9790_v46 = vpack.c.bf16 %v914_v36, %v902_v35 }
 0x4ad   : > { %v9776_v56 = vpack.c.bf16 %v817_v51, %v805_v49  ;;  %v913_v47 = vld [vmem:[%s10802_s29 + $0x1130] sm:$0xff]  ;;  %v924_v49 = vld [vmem:[%s10802_s29 + $0x1188] sm:$0xff]  ;;  %v926_v51 = vld [vmem:[%s10802_s29 + $0x1198] sm:$0xff] }
 0x4ae   : > { %9249 = vmatpush1.bf16.msra.mxu0 %v9248_v57  ;;  %v9266_v57 = vpack.c.bf16 %v840_v53, %v828_v52  ;;  %v938_v52 = vld [vmem:[%s10802_s29 + $0x11f8] sm:$0xff] }
 0x4af   : > { %9761 = vmatpush1.bf16.msra.mxu1 %v9760_v58  ;;  %9251 = vmatprep.subr.bf16.mxu0 %v9250_v59  ;;  %v827_v58 = vld [vmem:[%s10802_s29 + $0xe80] sm:$0xff] }
 0x4b0   : > { %9763 = vmatprep.subr.bf16.mxu1 %v9762_v1  ;;  %v839_v59 = vld [vmem:[%s10802_s29 + $0xee0] sm:$0xff]  ;;  %v852_v1 = vld [vmem:[%s10802_s29 + $0xf48] sm:$0xff] }
 0x4b1   : > { %v9268_v4 = vpack.c.bf16 %v839_v59, %v827_v58  ;;  %v9794_v58 = vpack.c.bf16 %v938_v52, %v926_v51  ;;  %v937_v59 = vld [vmem:[%s10802_s29 + $0x11f0] sm:$0xff] }
 0x4b2   : > { %9253 = vmatpush1.bf16.msra.mxu0 %v9252_v20  ;;  %v851_v20 = vld [vmem:[%s10802_s29 + $0xf40] sm:$0xff] }
 0x4b3   : > { %9765 = vmatpush1.bf16.msra.mxu1 %v9764_v7  ;;  %9255 = vmatprep.subr.bf16.mxu0 %v9254_v10  ;;  %v863_v7 = vld [vmem:[%s10802_s29 + $0xfa0] sm:$0xff]  ;;  %v853_v10 = vld [vmem:[%s10802_s29 + $0xf50] sm:$0xff] }
 0x4b4   : > { %9767 = vmatprep.subr.bf16.mxu1 %v9766_v15  ;;  %v888_v15 = vld [vmem:[%s10802_s29 + $0x1068] sm:$0xff]  ;;  %v9272_v19 = vpack.c.bf16 %v863_v7, %v851_v20  ;;  %v9784_v21 = vpack.c.bf16 %v865_v13, %v853_v10  ;;  %v961_v7 = vld [vmem:[%s10802_s29 + $0x12b0] sm:$0xff]  ;;  %v974_v13 = vld [vmem:[%s10802_s29 + $0x1318] sm:$0xff] }
 0x4b5   : > { %5772 = vmatmul.mubr.f32.vlgmr.msra.gmra.mrb[4].mxu0 %v10985_v16  ;;  %v9274_v22 = vpack.c.bf16 %v888_v15, %v876_v14  ;;  %v972_v10 = vld [vmem:[%s10802_s29 + $0x1308] sm:$0xff]  ;;  %v986_v14 = vld [vmem:[%s10802_s29 + $0x1378] sm:$0xff] }
 0x4b6   : > { %9257 = vmatpush1.bf16.msra.mxu0 %v9256_v24  ;;  %6340 = vmatmul.mubr.f32.vlgmr.msra.gmra.mrb[4].mxu1 %v10985_v16  ;;  %v830_v16 = vld [vmem:[%s10802_s29 + $0xe98] sm:$0xff]  ;;  %v875_v24 = vld [vmem:[%s10802_s29 + $0x1000] sm:$0xff] }
 0x4b7   : > { %9769 = vmatpush1.bf16.msra.mxu1 %v9768_v26  ;;  %9259 = vmatprep.subr.bf16.mxu0 %v9258_v27  ;;  %v9778_v63 = vpack.c.bf16 %v842_v54, %v830_v16  ;;  %v887_v26 = vld [vmem:[%s10802_s29 + $0x1060] sm:$0xff]  ;;  %v877_v27 = vld [vmem:[%s10802_s29 + $0x1010] sm:$0xff] }
 0x4b8   : > { %9771 = vmatprep.subr.bf16.mxu1 %v9770_v34  ;;  %5842 = vmatprep.mubr.f32.mxu0 %v11040_v31  ;;  %v912_v34 = vld [vmem:[%s10802_s29 + $0x1128] sm:$0xff]  ;;  %v9276_v37 = vpack.c.bf16 %v887_v26, %v875_v24  ;;  %v9788_v38 = vpack.c.bf16 %v889_v32, %v877_v27  ;;  %v9802_v24 = vpack.c.bf16 %v986_v14, %v974_v13  ;;  %v985_v26 = vld [vmem:[%s10802_s29 + $0x1370] sm:$0xff]  ;;  %v998_v32 = vld [vmem:[%s10802_s29 + $0x13d8] sm:$0xff] }
 0x4b9   : > { %6410 = vmatprep.mubr.f32.mxu1 %v11040_v31  ;;  %v864_v31 = vld [vmem:[%s10802_s29 + $0xfa8] sm:$0xff]  ;;  %v9278_v39 = vpack.c.bf16 %v912_v34, %v900_v33  ;;  %v1010_v33 = vld [vmem:[%s10802_s29 + $0x1438] sm:$0xff] }
 0x4ba   : > { %9261 = vmatpush1.bf16.msra.mxu0 %v9260_v41  ;;  %v9270_v6 = vpack.c.bf16 %v864_v31, %v852_v1  ;;  %v899_v41 = vld [vmem:[%s10802_s29 + $0x10c0] sm:$0xff]  ;;  %v962_v1 = vld [vmem:[%s10802_s29 + $0x12b8] sm:$0xff]  ;;  %v996_v27 = vld [vmem:[%s10802_s29 + $0x13c8] sm:$0xff] }
 0x4bb   : > { %9773 = vmatpush1.bf16.msra.mxu1 %v9772_v42  ;;  %9263 = vmatprep.subr.bf16.mxu0 %v9262_v44  ;;  %v911_v42 = vld [vmem:[%s10802_s29 + $0x1120] sm:$0xff]  ;;  %v901_v44 = vld [vmem:[%s10802_s29 + $0x10d0] sm:$0xff]  ;;  %v9798_v20 = vpack.c.bf16 %v962_v1, %v950_v0 }
 0x4bc   : > { %9775 = vmatprep.subr.bf16.mxu1 %v9774_v50  ;;  %v936_v50 = vld [vmem:[%s10802_s29 + $0x11e8] sm:$0xff]  ;;  %v9280_v53 = vpack.c.bf16 %v911_v42, %v899_v41  ;;  %v9792_v16 = vpack.c.bf16 %v913_v47, %v901_v44  ;;  %v9806_v41 = vpack.c.bf16 %v1010_v33, %v998_v32  ;;  %v1009_v42 = vld [vmem:[%s10802_s29 + $0x1430] sm:$0xff]  ;;  %v1022_v47 = vld [vmem:[%s10802_s29 + $0x1498] sm:$0xff] }
 0x4bd   : > { %v9282_v54 = vpack.c.bf16 %v936_v50, %v924_v49  ;;  %v1020_v44 = vld [vmem:[%s10802_s29 + $0x1488] sm:$0xff]  ;;  %v1034_v49 = vld [vmem:[%s10802_s29 + $0x14f8] sm:$0xff] }
 0x4be   : > { %9265 = vmatpush1.bf16.msra.mxu0 %v9264_v55  ;;  %v923_v55 = vld [vmem:[%s10802_s29 + $0x1180] sm:$0xff] }
 0x4bf   : > { %9777 = vmatpush1.bf16.msra.mxu1 %v9776_v56  ;;  %9267 = vmatprep.subr.bf16.mxu0 %v9266_v57  ;;  %v935_v56 = vld [vmem:[%s10802_s29 + $0x11e0] sm:$0xff]  ;;  %v925_v57 = vld [vmem:[%s10802_s29 + $0x1190] sm:$0xff] }
 0x4c0   : > { %9779 = vmatprep.subr.bf16.mxu1 %v9778_v63  ;;  %v960_v63 = vld [vmem:[%s10802_s29 + $0x12a8] sm:$0xff]  ;;  %v9284_v31 = vpack.c.bf16 %v935_v56, %v923_v55  ;;  %v9796_v2 = vpack.c.bf16 %v937_v59, %v925_v57  ;;  %v9810_v55 = vpack.c.bf16 %v1034_v49, %v1022_v47  ;;  %v1033_v56 = vld [vmem:[%s10802_s29 + $0x14f0] sm:$0xff]  ;;  %v1046_v59 = vld [vmem:[%s10802_s29 + $0x1558] sm:$0xff] }
 0x4c1   : > { %v9286_v3 = vpack.c.bf16 %v960_v63, %v948_v61  ;;  %v1044_v57 = vld [vmem:[%s10802_s29 + $0x1548] sm:$0xff]  ;;  %v1058_v61 = vld [vmem:[%s10802_s29 + $0x15b8] sm:$0xff] }
 0x4c2   : > { %9269 = vmatpush1.bf16.msra.mxu0 %v9268_v4  ;;  %v947_v4 = vld [vmem:[%s10802_s29 + $0x1240] sm:$0xff] }
 0x4c3   : > { %9781 = vmatpush1.bf16.msra.mxu1 %v9780_v5  ;;  %9271 = vmatprep.subr.bf16.mxu0 %v9270_v6  ;;  %v959_v5 = vld [vmem:[%s10802_s29 + $0x12a0] sm:$0xff]  ;;  %v949_v6 = vld [vmem:[%s10802_s29 + $0x1250] sm:$0xff] }
 0x4c4   : > { %9783 = vmatprep.subr.bf16.mxu1 %v9782_v12  ;;  %v984_v12 = vld [vmem:[%s10802_s29 + $0x1368] sm:$0xff]  ;;  %v9288_v15 = vpack.c.bf16 %v959_v5, %v947_v4  ;;  %v9800_v17 = vpack.c.bf16 %v961_v7, %v949_v6  ;;  %v9814_v4 = vpack.c.bf16 %v1058_v61, %v1046_v59  ;;  %v1057_v5 = vld [vmem:[%s10802_s29 + $0x15b0] sm:$0xff]  ;;  %v1070_v7 = vld [vmem:[%s10802_s29 + $0x1618] sm:$0xff] }
 0x4c5   : > { %v9290_v18 = vpack.c.bf16 %v984_v12, %v972_v10  ;;  %v1068_v6 = vld [vmem:[%s10802_s29 + $0x1608] sm:$0xff]  ;;  %v1082_v10 = vld [vmem:[%s10802_s29 + $0x1678] sm:$0xff] }
 0x4c6   : > { %9273 = vmatpush1.bf16.msra.mxu0 %v9272_v19  ;;  %v971_v19 = vld [vmem:[%s10802_s29 + $0x1300] sm:$0xff] }
 0x4c7   : > { %9785 = vmatpush1.bf16.msra.mxu1 %v9784_v21  ;;  %9275 = vmatprep.subr.bf16.mxu0 %v9274_v22  ;;  %v983_v21 = vld [vmem:[%s10802_s29 + $0x1360] sm:$0xff]  ;;  %v973_v22 = vld [vmem:[%s10802_s29 + $0x1310] sm:$0xff] }
 0x4c8   : > { %9787 = vmatprep.subr.bf16.mxu1 %v9786_v29  ;;  %v1008_v29 = vld [vmem:[%s10802_s29 + $0x1428] sm:$0xff]  ;;  %v9292_v34 = vpack.c.bf16 %v983_v21, %v971_v19  ;;  %v9804_v35 = vpack.c.bf16 %v985_v26, %v973_v22  ;;  %v9818_v19 = vpack.c.bf16 %v1082_v10, %v1070_v7  ;;  %v1081_v21 = vld [vmem:[%s10802_s29 + $0x1670] sm:$0xff]  ;;  %v1094_v26 = vld [vmem:[%s10802_s29 + $0x16d8] sm:$0xff] }
 0x4c9   : > { %v9294_v36 = vpack.c.bf16 %v1008_v29, %v996_v27  ;;  %v1092_v22 = vld [vmem:[%s10802_s29 + $0x16c8] sm:$0xff]  ;;  %v1106_v27 = vld [vmem:[%s10802_s29 + $0x1738] sm:$0xff] }
 0x4ca   : > { %9277 = vmatpush1.bf16.msra.mxu0 %v9276_v37  ;;  %v995_v37 = vld [vmem:[%s10802_s29 + $0x13c0] sm:$0xff] }
 0x4cb   : > { %9789 = vmatpush1.bf16.msra.mxu1 %v9788_v38  ;;  %9279 = vmatprep.subr.bf16.mxu0 %v9278_v39  ;;  %v1007_v38 = vld [vmem:[%s10802_s29 + $0x1420] sm:$0xff]  ;;  %v997_v39 = vld [vmem:[%s10802_s29 + $0x13d0] sm:$0xff] }
 0x4cc   : > { %9791 = vmatprep.subr.bf16.mxu1 %v9790_v46  ;;  %v1032_v46 = vld [vmem:[%s10802_s29 + $0x14e8] sm:$0xff]  ;;  %v9296_v50 = vpack.c.bf16 %v1007_v38, %v995_v37  ;;  %v9808_v51 = vpack.c.bf16 %v1009_v42, %v997_v39  ;;  %v9822_v37 = vpack.c.bf16 %v1106_v27, %v1094_v26  ;;  %v1105_v38 = vld [vmem:[%s10802_s29 + $0x1730] sm:$0xff]  ;;  %v1118_v42 = vld [vmem:[%s10802_s29 + $0x1798] sm:$0xff] }
 0x4cd   : > { %v9298_v52 = vpack.c.bf16 %v1032_v46, %v1020_v44  ;;  %v1116_v39 = vld [vmem:[%s10802_s29 + $0x1788] sm:$0xff]  ;;  %v1130_v44 = vld [vmem:[%s10802_s29 + $0x17f8] sm:$0xff] }
 0x4ce   : > { %9281 = vmatpush1.bf16.msra.mxu0 %v9280_v53  ;;  %v1019_v53 = vld [vmem:[%s10802_s29 + $0x1480] sm:$0xff] }
 0x4cf   : > { %9793 = vmatpush1.bf16.msra.mxu1 %v9792_v16  ;;  %9283 = vmatprep.subr.bf16.mxu0 %v9282_v54  ;;  %v1031_v16 = vld [vmem:[%s10802_s29 + $0x14e0] sm:$0xff]  ;;  %v1021_v54 = vld [vmem:[%s10802_s29 + $0x1490] sm:$0xff] }
 0x4d0   : > { %9795 = vmatprep.subr.bf16.mxu1 %v9794_v58  ;;  %v1056_v58 = vld [vmem:[%s10802_s29 + $0x15a8] sm:$0xff]  ;;  %v9300_v63 = vpack.c.bf16 %v1031_v16, %v1019_v53  ;;  %v9812_v0 = vpack.c.bf16 %v1033_v56, %v1021_v54  ;;  %v9826_v53 = vpack.c.bf16 %v1130_v44, %v1118_v42  ;;  %v1129_v16 = vld [vmem:[%s10802_s29 + $0x17f0] sm:$0xff]  ;;  %v1142_v56 = vld [vmem:[%s10802_s29 + $0x1858] sm:$0xff] }
 0x4d1   : > { %v9302_v1 = vpack.c.bf16 %v1056_v58, %v1044_v57  ;;  %v1140_v54 = vld [vmem:[%s10802_s29 + $0x1848] sm:$0xff]  ;;  %v1154_v57 = vld [vmem:[%s10802_s29 + $0x18b8] sm:$0xff]  ;;  %v1211_v44 = vld [vmem:[%s10802_s29 + $0x1a80] sm:$0xff] }
 0x4d2   : > { %9285 = vmatpush1.bf16.msra.mxu0 %v9284_v31  ;;  %v1043_v31 = vld [vmem:[%s10802_s29 + $0x1540] sm:$0xff] }
 0x4d3   : > { %9797 = vmatpush1.bf16.msra.mxu1 %v9796_v2  ;;  %9287 = vmatprep.subr.bf16.mxu0 %v9286_v3  ;;  %v1055_v2 = vld [vmem:[%s10802_s29 + $0x15a0] sm:$0xff]  ;;  %v1045_v3 = vld [vmem:[%s10802_s29 + $0x1550] sm:$0xff] }
 0x4d4   : > { %9799 = vmatprep.subr.bf16.mxu1 %v9798_v20  ;;  %v1080_v20 = vld [vmem:[%s10802_s29 + $0x1668] sm:$0xff]  ;;  %v9304_v12 = vpack.c.bf16 %v1055_v2, %v1043_v31  ;;  %v9816_v13 = vpack.c.bf16 %v1057_v5, %v1045_v3  ;;  %v9830_v31 = vpack.c.bf16 %v1154_v57, %v1142_v56  ;;  %v1153_v2 = vld [vmem:[%s10802_s29 + $0x18b0] sm:$0xff]  ;;  %v1166_v5 = vld [vmem:[%s10802_s29 + $0x1918] sm:$0xff] }
 0x4d5   : > { %v9306_v14 = vpack.c.bf16 %v1080_v20, %v1068_v6  ;;  %v1164_v3 = vld [vmem:[%s10802_s29 + $0x1908] sm:$0xff]  ;;  %v1178_v6 = vld [vmem:[%s10802_s29 + $0x1978] sm:$0xff]  ;;  %v1235_v56 = vld [vmem:[%s10802_s29 + $0x1b40] sm:$0xff] }
 0x4d6   : > { %9289 = vmatpush1.bf16.msra.mxu0 %v9288_v15  ;;  %v1067_v15 = vld [vmem:[%s10802_s29 + $0x1600] sm:$0xff] }
 0x4d7   : > { %9801 = vmatpush1.bf16.msra.mxu1 %v9800_v17  ;;  %9291 = vmatprep.subr.bf16.mxu0 %v9290_v18  ;;  %v1079_v17 = vld [vmem:[%s10802_s29 + $0x1660] sm:$0xff]  ;;  %v1069_v18 = vld [vmem:[%s10802_s29 + $0x1610] sm:$0xff] }
 0x4d8   : > { %9803 = vmatprep.subr.bf16.mxu1 %v9802_v24  ;;  %v1104_v24 = vld [vmem:[%s10802_s29 + $0x1728] sm:$0xff]  ;;  %v9308_v29 = vpack.c.bf16 %v1079_v17, %v1067_v15  ;;  %v9820_v32 = vpack.c.bf16 %v1081_v21, %v1069_v18  ;;  %v9834_v15 = vpack.c.bf16 %v1178_v6, %v1166_v5  ;;  %v1177_v17 = vld [vmem:[%s10802_s29 + $0x1970] sm:$0xff]  ;;  %v1190_v21 = vld [vmem:[%s10802_s29 + $0x19d8] sm:$0xff] }
 0x4d9   : > { %v9310_v33 = vpack.c.bf16 %v1104_v24, %v1092_v22  ;;  %v1188_v18 = vld [vmem:[%s10802_s29 + $0x19c8] sm:$0xff]  ;;  %v1202_v22 = vld [vmem:[%s10802_s29 + $0x1a38] sm:$0xff]  ;;  %v1247_v57 = vld [vmem:[%s10802_s29 + $0x1ba0] sm:$0xff] }
 0x4da   : > { %9293 = vmatpush1.bf16.msra.mxu0 %v9292_v34  ;;  %v1091_v34 = vld [vmem:[%s10802_s29 + $0x16c0] sm:$0xff] }
 0x4db   : > { %9805 = vmatpush1.bf16.msra.mxu1 %v9804_v35  ;;  %9295 = vmatprep.subr.bf16.mxu0 %v9294_v36  ;;  %v1103_v35 = vld [vmem:[%s10802_s29 + $0x1720] sm:$0xff]  ;;  %v1093_v36 = vld [vmem:[%s10802_s29 + $0x16d0] sm:$0xff] }
 0x4dc   : > { %9807 = vmatprep.subr.bf16.mxu1 %v9806_v41  ;;  %v1128_v41 = vld [vmem:[%s10802_s29 + $0x17e8] sm:$0xff]  ;;  %v9312_v46 = vpack.c.bf16 %v1103_v35, %v1091_v34  ;;  %v9824_v47 = vpack.c.bf16 %v1105_v38, %v1093_v36  ;;  %v9838_v34 = vpack.c.bf16 %v1202_v22, %v1190_v21  ;;  %v1201_v35 = vld [vmem:[%s10802_s29 + $0x1a30] sm:$0xff]  ;;  %v1226_v38 = vld [vmem:[%s10802_s29 + $0x1af8] sm:$0xff] }
 0x4dd   : > { %v9314_v49 = vpack.c.bf16 %v1128_v41, %v1116_v39  ;;  %v1212_v36 = vld [vmem:[%s10802_s29 + $0x1a88] sm:$0xff]  ;;  %v1259_v5 = vld [vmem:[%s10802_s29 + $0x1c00] sm:$0xff] }
 0x4de   : > { %9297 = vmatpush1.bf16.msra.mxu0 %v9296_v50  ;;  %v1115_v50 = vld [vmem:[%s10802_s29 + $0x1780] sm:$0xff] }
 0x4df   : > { %9809 = vmatpush1.bf16.msra.mxu1 %v9808_v51  ;;  %9299 = vmatprep.subr.bf16.mxu0 %v9298_v52  ;;  %v1127_v51 = vld [vmem:[%s10802_s29 + $0x17e0] sm:$0xff]  ;;  %v1117_v52 = vld [vmem:[%s10802_s29 + $0x1790] sm:$0xff] }
 0x4e0   : > { %9811 = vmatprep.subr.bf16.mxu1 %v9810_v55  ;;  %v1152_v55 = vld [vmem:[%s10802_s29 + $0x18a8] sm:$0xff]  ;;  %v9316_v58 = vpack.c.bf16 %v1127_v51, %v1115_v50  ;;  %v9828_v59 = vpack.c.bf16 %v1129_v16, %v1117_v52  ;;  %v1225_v50 = vld [vmem:[%s10802_s29 + $0x1af0] sm:$0xff]  ;;  %v1238_v52 = vld [vmem:[%s10802_s29 + $0x1b58] sm:$0xff] }
 0x4e1   : > { %v9318_v61 = vpack.c.bf16 %v1152_v55, %v1140_v54  ;;  %v1236_v51 = vld [vmem:[%s10802_s29 + $0x1b48] sm:$0xff]  ;;  %v1271_v6 = vld [vmem:[%s10802_s29 + $0x1c60] sm:$0xff] }
 0x4e2   : > { %9301 = vmatpush1.bf16.msra.mxu0 %v9300_v63  ;;  %v1139_v63 = vld [vmem:[%s10802_s29 + $0x1840] sm:$0xff] }
 0x4e3   : > { %9813 = vmatpush1.bf16.msra.mxu1 %v9812_v0  ;;  %9303 = vmatprep.subr.bf16.mxu0 %v9302_v1  ;;  %v1151_v0 = vld [vmem:[%s10802_s29 + $0x18a0] sm:$0xff]  ;;  %v1141_v1 = vld [vmem:[%s10802_s29 + $0x1850] sm:$0xff] }
 0x4e4   : > { %9815 = vmatprep.subr.bf16.mxu1 %v9814_v4  ;;  %v1176_v4 = vld [vmem:[%s10802_s29 + $0x1968] sm:$0xff]  ;;  %v9320_v20 = vpack.c.bf16 %v1151_v0, %v1139_v63  ;;  %v9832_v7 = vpack.c.bf16 %v1153_v2, %v1141_v1  ;;  %v1262_v1 = vld [vmem:[%s10802_s29 + $0x1c18] sm:$0xff]  ;;  %v9336_v2 = vpack.c.bf16 %v1247_v57, %v1235_v56  ;;  %v1283_v21 = vld [vmem:[%s10802_s29 + $0x1cc0] sm:$0xff] }
 0x4e5   : > { %v9322_v10 = vpack.c.bf16 %v1176_v4, %v1164_v3  ;;  %v1260_v63 = vld [vmem:[%s10802_s29 + $0x1c08] sm:$0xff]  ;;  %v1295_v22 = vld [vmem:[%s10802_s29 + $0x1d20] sm:$0xff] }
 0x4e6   : > { %9305 = vmatpush1.bf16.msra.mxu0 %v9304_v12  ;;  %v1163_v12 = vld [vmem:[%s10802_s29 + $0x1900] sm:$0xff]  ;;  %v1272_v0 = vld [vmem:[%s10802_s29 + $0x1c68] sm:$0xff] }
 0x4e7   : > { %9817 = vmatpush1.bf16.msra.mxu1 %v9816_v13  ;;  %9307 = vmatprep.subr.bf16.mxu0 %v9306_v14  ;;  %v1175_v13 = vld [vmem:[%s10802_s29 + $0x1960] sm:$0xff]  ;;  %v1165_v14 = vld [vmem:[%s10802_s29 + $0x1910] sm:$0xff]  ;;  %v9338_v4 = vpack.c.bf16 %v1272_v0, %v1260_v63  ;;  %v1356_v56 = vld [vmem:[%s10802_s29 + $0x1f08] sm:$0xff] }
 0x4e8   : > { %9819 = vmatprep.subr.bf16.mxu1 %v9818_v19  ;;  %v1200_v19 = vld [vmem:[%s10802_s29 + $0x1a28] sm:$0xff]  ;;  %v9324_v24 = vpack.c.bf16 %v1175_v13, %v1163_v12  ;;  %v9836_v26 = vpack.c.bf16 %v1177_v17, %v1165_v14  ;;  %v1286_v14 = vld [vmem:[%s10802_s29 + $0x1cd8] sm:$0xff]  ;;  %v9340_v17 = vpack.c.bf16 %v1271_v6, %v1259_v5 }
 0x4e9   : > { %v9326_v27 = vpack.c.bf16 %v1200_v19, %v1188_v18  ;;  %v1284_v12 = vld [vmem:[%s10802_s29 + $0x1cc8] sm:$0xff] }
 0x4ea   : > { %9309 = vmatpush1.bf16.msra.mxu0 %v9308_v29  ;;  %v1187_v29 = vld [vmem:[%s10802_s29 + $0x19c0] sm:$0xff]  ;;  %v1296_v13 = vld [vmem:[%s10802_s29 + $0x1d28] sm:$0xff] }
 0x4eb   : > { %9821 = vmatpush1.bf16.msra.mxu1 %v9820_v32  ;;  %9311 = vmatprep.subr.bf16.mxu0 %v9310_v33  ;;  %v1199_v32 = vld [vmem:[%s10802_s29 + $0x1a20] sm:$0xff]  ;;  %v1189_v33 = vld [vmem:[%s10802_s29 + $0x19d0] sm:$0xff]  ;;  %v9342_v19 = vpack.c.bf16 %v1296_v13, %v1284_v12  ;;  %v1368_v57 = vld [vmem:[%s10802_s29 + $0x1f68] sm:$0xff] }
 0x4ec   : > { %9823 = vmatprep.subr.bf16.mxu1 %v9822_v37  ;;  %v1224_v37 = vld [vmem:[%s10802_s29 + $0x1ae8] sm:$0xff]  ;;  %v9328_v39 = vpack.c.bf16 %v1199_v32, %v1187_v29  ;;  %v9840_v41 = vpack.c.bf16 %v1201_v35, %v1189_v33  ;;  %v1310_v33 = vld [vmem:[%s10802_s29 + $0x1d98] sm:$0xff]  ;;  %v9344_v35 = vpack.c.bf16 %v1295_v22, %v1283_v21  ;;  %v9354_v0 = vpack.c.bf16 %v1368_v57, %v1356_v56 }
 0x4ed   : > { %v9330_v42 = vpack.c.bf16 %v1224_v37, %v1212_v36  ;;  %v1308_v29 = vld [vmem:[%s10802_s29 + $0x1d88] sm:$0xff] }
 0x4ee   : > { %9313 = vmatpush1.bf16.msra.mxu0 %v9312_v46  ;;  %v1223_v46 = vld [vmem:[%s10802_s29 + $0x1ae0] sm:$0xff]  ;;  %v1320_v32 = vld [vmem:[%s10802_s29 + $0x1de8] sm:$0xff] }
 0x4ef   : > { %9825 = vmatpush1.bf16.msra.mxu1 %v9824_v47  ;;  %9315 = vmatprep.subr.bf16.mxu0 %v9314_v49  ;;  %v1213_v47 = vld [vmem:[%s10802_s29 + $0x1a90] sm:$0xff]  ;;  %v9332_v16 = vpack.c.bf16 %v1223_v46, %v1211_v44  ;;  %v9346_v37 = vpack.c.bf16 %v1320_v32, %v1308_v29  ;;  %v1332_v44 = vld [vmem:[%s10802_s29 + $0x1e48] sm:$0xff] }
 0x4f0   : > { %9827 = vmatprep.subr.bf16.mxu1 %v9826_v53  ;;  %v1250_v53 = vld [vmem:[%s10802_s29 + $0x1bb8] sm:$0xff]  ;;  %v9844_v54 = vpack.c.bf16 %v1225_v50, %v1213_v47  ;;  %v1344_v46 = vld [vmem:[%s10802_s29 + $0x1ea8] sm:$0xff] }
 0x4f1   : > { %v1334_v47 = vld [vmem:[%s10802_s29 + $0x1e58] sm:$0xff]  ;;  %v1380_v5 = vld [vmem:[%s10802_s29 + $0x1fc8] sm:$0xff] }
 0x4f2   : > { %9317 = vmatpush1.bf16.msra.mxu0 %v9316_v58  ;;  %v1237_v58 = vld [vmem:[%s10802_s29 + $0x1b50] sm:$0xff]  ;;  %v1392_v6 = vld [vmem:[%s10802_s29 + $0x2028] sm:$0xff] }
 0x4f3   : > { %9829 = vmatpush1.bf16.msra.mxu1 %v9828_v59  ;;  %9319 = vmatprep.subr.bf16.mxu0 %v9318_v61  ;;  %v9846_v59 = vpack.c.bf16 %v1250_v53, %v1238_v52  ;;  %v1249_v61 = vld [vmem:[%s10802_s29 + $0x1bb0] sm:$0xff]  ;;  %v1331_v52 = vld [vmem:[%s10802_s29 + $0x1e40] sm:$0xff]  ;;  %v9358_v13 = vpack.c.bf16 %v1392_v6, %v1380_v5  ;;  %v1404_v21 = vld [vmem:[%s10802_s29 + $0x2088] sm:$0xff] }
 0x4f4   : > { %9831 = vmatprep.subr.bf16.mxu1 %v9830_v31  ;;  %v1274_v31 = vld [vmem:[%s10802_s29 + $0x1c78] sm:$0xff]  ;;  %v9848_v3 = vpack.c.bf16 %v1249_v61, %v1237_v58  ;;  %v1343_v53 = vld [vmem:[%s10802_s29 + $0x1ea0] sm:$0xff]  ;;  %v1416_v22 = vld [vmem:[%s10802_s29 + $0x20e8] sm:$0xff] }
 0x4f5   : > { %5843 = vmatmul.mubr.f32.vlgmr.msra.gmra.mrb[4].mxu0 %v11123_v28  ;;  %v1358_v58 = vld [vmem:[%s10802_s29 + $0x1f18] sm:$0xff]  ;;  %v9352_v61 = vpack.c.bf16 %v1343_v53, %v1331_v52  ;;  %v9362_v32 = vpack.c.bf16 %v1416_v22, %v1404_v21  ;;  %v1452_v52 = vld [vmem:[%s10802_s29 + $0x2208] sm:$0xff] }
 0x4f6   : > { %9321 = vmatpush1.bf16.msra.mxu0 %v9320_v20  ;;  %6411 = vmatmul.mubr.f32.vlgmr.msra.gmra.mrb[4].mxu1 %v11123_v28  ;;  %v1214_v28 = vld [vmem:[%s10802_s29 + $0x1a98] sm:$0xff]  ;;  %v1261_v20 = vld [vmem:[%s10802_s29 + $0x1c10] sm:$0xff]  ;;  %v1464_v53 = vld [vmem:[%s10802_s29 + $0x2268] sm:$0xff] }
 0x4f7   : > { %9833 = vmatpush1.bf16.msra.mxu1 %v9832_v7  ;;  %9323 = vmatprep.subr.bf16.mxu0 %v9322_v10  ;;  %v9842_v49 = vpack.c.bf16 %v1226_v38, %v1214_v28  ;;  %v9850_v7 = vpack.c.bf16 %v1274_v31, %v1262_v1  ;;  %v1273_v10 = vld [vmem:[%s10802_s29 + $0x1c70] sm:$0xff]  ;;  %v1307_v28 = vld [vmem:[%s10802_s29 + $0x1d80] sm:$0xff]  ;;  %v9370_v57 = vpack.c.bf16 %v1464_v53, %v1452_v52 }
 0x4f8   : > { %9835 = vmatprep.subr.bf16.mxu1 %v9834_v15  ;;  %5913 = vmatprep.mubr.f32.mxu0 %v11134_v43  ;;  %v1298_v15 = vld [vmem:[%s10802_s29 + $0x1d38] sm:$0xff]  ;;  %v9852_v18 = vpack.c.bf16 %v1273_v10, %v1261_v20  ;;  %v1319_v38 = vld [vmem:[%s10802_s29 + $0x1de0] sm:$0xff] }
 0x4f9   : > { %6481 = vmatprep.mubr.f32.mxu1 %v11134_v43  ;;  %v1248_v43 = vld [vmem:[%s10802_s29 + $0x1ba8] sm:$0xff]  ;;  %v9348_v50 = vpack.c.bf16 %v1319_v38, %v1307_v28  ;;  %v1355_v1 = vld [vmem:[%s10802_s29 + $0x1f00] sm:$0xff]  ;;  %v1382_v20 = vld [vmem:[%s10802_s29 + $0x1fd8] sm:$0xff] }
 0x4fa   : > { %9325 = vmatpush1.bf16.msra.mxu0 %v9324_v24  ;;  %v9334_v55 = vpack.c.bf16 %v1248_v43, %v1236_v51  ;;  %v1285_v24 = vld [vmem:[%s10802_s29 + $0x1cd0] sm:$0xff]  ;;  %v9350_v43 = vpack.c.bf16 %v1344_v46, %v1332_v44  ;;  %v1367_v31 = vld [vmem:[%s10802_s29 + $0x1f60] sm:$0xff]  ;;  %v1428_v28 = vld [vmem:[%s10802_s29 + $0x2148] sm:$0xff] }
 0x4fb   : > { %9837 = vmatpush1.bf16.msra.mxu1 %v9836_v26  ;;  %9327 = vmatprep.subr.bf16.mxu0 %v9326_v27  ;;  %v9854_v26 = vpack.c.bf16 %v1298_v15, %v1286_v14  ;;  %v1297_v27 = vld [vmem:[%s10802_s29 + $0x1d30] sm:$0xff]  ;;  %v9356_v10 = vpack.c.bf16 %v1367_v31, %v1355_v1  ;;  %v1379_v14 = vld [vmem:[%s10802_s29 + $0x1fc0] sm:$0xff]  ;;  %v1440_v38 = vld [vmem:[%s10802_s29 + $0x21a8] sm:$0xff] }
 0x4fc   : > { %9839 = vmatprep.subr.bf16.mxu1 %v9838_v34  ;;  %v1322_v34 = vld [vmem:[%s10802_s29 + $0x1df8] sm:$0xff]  ;;  %v9856_v36 = vpack.c.bf16 %v1297_v27, %v1285_v24  ;;  %v1391_v15 = vld [vmem:[%s10802_s29 + $0x2020] sm:$0xff]  ;;  %v9366_v46 = vpack.c.bf16 %v1440_v38, %v1428_v28  ;;  %v1476_v1 = vld [vmem:[%s10802_s29 + $0x22c8] sm:$0xff] }
 0x4fd   : > { %v1406_v24 = vld [vmem:[%s10802_s29 + $0x2098] sm:$0xff]  ;;  %v9360_v27 = vpack.c.bf16 %v1391_v15, %v1379_v14  ;;  %v1488_v31 = vld [vmem:[%s10802_s29 + $0x2328] sm:$0xff] }
 0x4fe   : > { %9329 = vmatpush1.bf16.msra.mxu0 %v9328_v39  ;;  %v1309_v39 = vld [vmem:[%s10802_s29 + $0x1d90] sm:$0xff]  ;;  %v9374_v6 = vpack.c.bf16 %v1488_v31, %v1476_v1  ;;  %v1500_v14 = vld [vmem:[%s10802_s29 + $0x2388] sm:$0xff] }
 0x4ff   : > { %9841 = vmatpush1.bf16.msra.mxu1 %v9840_v41  ;;  %9331 = vmatprep.subr.bf16.mxu0 %v9330_v42  ;;  %v9858_v41 = vpack.c.bf16 %v1322_v34, %v1310_v33  ;;  %v1321_v42 = vld [vmem:[%s10802_s29 + $0x1df0] sm:$0xff]  ;;  %v1403_v33 = vld [vmem:[%s10802_s29 + $0x2080] sm:$0xff]  ;;  %v1512_v15 = vld [vmem:[%s10802_s29 + $0x23e8] sm:$0xff] }
 0x500   : > { %9843 = vmatprep.subr.bf16.mxu1 %v9842_v49  ;;  %v1346_v49 = vld [vmem:[%s10802_s29 + $0x1eb8] sm:$0xff]  ;;  %v9860_v51 = vpack.c.bf16 %v1321_v42, %v1309_v39  ;;  %v1415_v34 = vld [vmem:[%s10802_s29 + $0x20e0] sm:$0xff]  ;;  %v9378_v22 = vpack.c.bf16 %v1512_v15, %v1500_v14 }
 0x501   : > { %v1430_v39 = vld [vmem:[%s10802_s29 + $0x2158] sm:$0xff]  ;;  %v9364_v42 = vpack.c.bf16 %v1415_v34, %v1403_v33  ;;  %v1524_v33 = vld [vmem:[%s10802_s29 + $0x2448] sm:$0xff]  ;;  %v1595_v15 = vld [vmem:[%s10802_s29 + $0x2680] sm:$0xff] }
 0x502   : > { %9333 = vmatpush1.bf16.msra.mxu0 %v9332_v16  ;;  %v1333_v16 = vld [vmem:[%s10802_s29 + $0x1e50] sm:$0xff]  ;;  %v1536_v34 = vld [vmem:[%s10802_s29 + $0x24a8] sm:$0xff] }
 0x503   : > { %9845 = vmatpush1.bf16.msra.mxu1 %v9844_v54  ;;  %9335 = vmatprep.subr.bf16.mxu0 %v9334_v55  ;;  %v9862_v54 = vpack.c.bf16 %v1346_v49, %v1334_v47  ;;  %v1345_v55 = vld [vmem:[%s10802_s29 + $0x1eb0] sm:$0xff]  ;;  %v1427_v47 = vld [vmem:[%s10802_s29 + $0x2140] sm:$0xff]  ;;  %v9382_v38 = vpack.c.bf16 %v1536_v34, %v1524_v33 }
 0x504   : > { %9847 = vmatprep.subr.bf16.mxu1 %v9846_v59  ;;  %v1370_v59 = vld [vmem:[%s10802_s29 + $0x1f78] sm:$0xff]  ;;  %v9864_v63 = vpack.c.bf16 %v1345_v55, %v1333_v16  ;;  %v1439_v49 = vld [vmem:[%s10802_s29 + $0x21a0] sm:$0xff] }
 0x505   : > { %v1454_v16 = vld [vmem:[%s10802_s29 + $0x2218] sm:$0xff]  ;;  %v9368_v55 = vpack.c.bf16 %v1439_v49, %v1427_v47  ;;  %v1548_v47 = vld [vmem:[%s10802_s29 + $0x2508] sm:$0xff]  ;;  %v1619_v33 = vld [vmem:[%s10802_s29 + $0x2740] sm:$0xff] }
 0x506   : > { %9337 = vmatpush1.bf16.msra.mxu0 %v9336_v2  ;;  %v1357_v2 = vld [vmem:[%s10802_s29 + $0x1f10] sm:$0xff]  ;;  %v1560_v49 = vld [vmem:[%s10802_s29 + $0x2568] sm:$0xff]  ;;  %v1631_v34 = vld [vmem:[%s10802_s29 + $0x27a0] sm:$0xff] }
 0x507   : > { %9849 = vmatpush1.bf16.msra.mxu1 %v9848_v3  ;;  %9339 = vmatprep.subr.bf16.mxu0 %v9338_v4  ;;  %v9866_v3 = vpack.c.bf16 %v1370_v59, %v1358_v58  ;;  %v1369_v4 = vld [vmem:[%s10802_s29 + $0x1f70] sm:$0xff]  ;;  %v1451_v58 = vld [vmem:[%s10802_s29 + $0x2200] sm:$0xff]  ;;  %v9386_v53 = vpack.c.bf16 %v1560_v49, %v1548_v47 }
 0x508   : > { %9851 = vmatprep.subr.bf16.mxu1 %v9850_v7  ;;  %v1394_v7 = vld [vmem:[%s10802_s29 + $0x2038] sm:$0xff]  ;;  %v9868_v12 = vpack.c.bf16 %v1369_v4, %v1357_v2  ;;  %v1463_v59 = vld [vmem:[%s10802_s29 + $0x2260] sm:$0xff] }
 0x509   : > { %v1478_v2 = vld [vmem:[%s10802_s29 + $0x22d8] sm:$0xff]  ;;  %v9372_v4 = vpack.c.bf16 %v1463_v59, %v1451_v58  ;;  %v1572_v58 = vld [vmem:[%s10802_s29 + $0x25c8] sm:$0xff]  ;;  %v1643_v47 = vld [vmem:[%s10802_s29 + $0x2800] sm:$0xff] }
 0x50a   : > { %9341 = vmatpush1.bf16.msra.mxu0 %v9340_v17  ;;  %v1381_v17 = vld [vmem:[%s10802_s29 + $0x1fd0] sm:$0xff]  ;;  %v1584_v59 = vld [vmem:[%s10802_s29 + $0x2628] sm:$0xff]  ;;  %v1655_v49 = vld [vmem:[%s10802_s29 + $0x2860] sm:$0xff] }
 0x50b   : > { %9853 = vmatpush1.bf16.msra.mxu1 %v9852_v18  ;;  %9343 = vmatprep.subr.bf16.mxu0 %v9342_v19  ;;  %v9870_v18 = vpack.c.bf16 %v1394_v7, %v1382_v20  ;;  %v1393_v19 = vld [vmem:[%s10802_s29 + $0x2030] sm:$0xff]  ;;  %v1475_v20 = vld [vmem:[%s10802_s29 + $0x22c0] sm:$0xff]  ;;  %v9390_v31 = vpack.c.bf16 %v1584_v59, %v1572_v58  ;;  %v358_v58 = vld [vmem:[%s10826_s8 + $0x38] sm:$0xff]  ;;  %v9404_v59 = vpack.c.bf16 %v1655_v49, %v1643_v47 }
 0x50c   : > { %9855 = vmatprep.subr.bf16.mxu1 %v9854_v26  ;;  %v1418_v26 = vld [vmem:[%s10802_s29 + $0x20f8] sm:$0xff]  ;;  %v9872_v29 = vpack.c.bf16 %v1393_v19, %v1381_v17  ;;  %v1487_v7 = vld [vmem:[%s10802_s29 + $0x2320] sm:$0xff] }
 0x50d   : > { %v1502_v17 = vld [vmem:[%s10802_s29 + $0x2398] sm:$0xff]  ;;  %v9376_v19 = vpack.c.bf16 %v1487_v7, %v1475_v20  ;;  %v1596_v20 = vld [vmem:[%s10802_s29 + $0x2688] sm:$0xff] }
 0x50e   : > { %9345 = vmatpush1.bf16.msra.mxu0 %v9344_v35  ;;  %v1405_v35 = vld [vmem:[%s10802_s29 + $0x2090] sm:$0xff]  ;;  %v1608_v7 = vld [vmem:[%s10802_s29 + $0x26e8] sm:$0xff]  ;;  %v1742_v47 = vld [vmem:[%s10802_s29 + $0x2b18] sm:$0xff] }
 0x50f   : > { %9857 = vmatpush1.bf16.msra.mxu1 %v9856_v36  ;;  %9347 = vmatprep.subr.bf16.mxu0 %v9346_v37  ;;  %v9874_v36 = vpack.c.bf16 %v1418_v26, %v1406_v24  ;;  %v1417_v37 = vld [vmem:[%s10802_s29 + $0x20f0] sm:$0xff]  ;;  %v1499_v24 = vld [vmem:[%s10802_s29 + $0x2380] sm:$0xff]  ;;  %v9394_v14 = vpack.c.bf16 %v1608_v7, %v1596_v20  ;;  %v1754_v49 = vld [vmem:[%s10802_s29 + $0x2b78] sm:$0xff] }
 0x510   : > { %9859 = vmatprep.subr.bf16.mxu1 %v9858_v41  ;;  %v1442_v41 = vld [vmem:[%s10802_s29 + $0x21b8] sm:$0xff]  ;;  %v9876_v44 = vpack.c.bf16 %v1417_v37, %v1405_v35  ;;  %v1511_v26 = vld [vmem:[%s10802_s29 + $0x23e0] sm:$0xff] }
 0x511   : > { %v1526_v35 = vld [vmem:[%s10802_s29 + $0x2458] sm:$0xff]  ;;  %v9380_v37 = vpack.c.bf16 %v1511_v26, %v1499_v24 }
 0x512   : > { %9349 = vmatpush1.bf16.msra.mxu0 %v9348_v50  ;;  %v1429_v50 = vld [vmem:[%s10802_s29 + $0x2150] sm:$0xff]  ;;  %v1622_v24 = vld [vmem:[%s10802_s29 + $0x2758] sm:$0xff] }
 0x513   : > { %9861 = vmatpush1.bf16.msra.mxu1 %v9860_v51  ;;  %9351 = vmatprep.subr.bf16.mxu0 %v9350_v43  ;;  %v9878_v51 = vpack.c.bf16 %v1442_v41, %v1430_v39  ;;  %v1441_v43 = vld [vmem:[%s10802_s29 + $0x21b0] sm:$0xff]  ;;  %v1523_v39 = vld [vmem:[%s10802_s29 + $0x2440] sm:$0xff]  ;;  %v1634_v26 = vld [vmem:[%s10802_s29 + $0x27b8] sm:$0xff] }
 0x514   : > { %9863 = vmatprep.subr.bf16.mxu1 %v9862_v54  ;;  %v1466_v54 = vld [vmem:[%s10802_s29 + $0x2278] sm:$0xff]  ;;  %v9880_v56 = vpack.c.bf16 %v1441_v43, %v1429_v50  ;;  %v1535_v41 = vld [vmem:[%s10802_s29 + $0x24a0] sm:$0xff] }
 0x515   : > { %v1550_v50 = vld [vmem:[%s10802_s29 + $0x2518] sm:$0xff]  ;;  %v9384_v43 = vpack.c.bf16 %v1535_v41, %v1523_v39 }
 0x516   : > { %9353 = vmatpush1.bf16.msra.mxu0 %v9352_v61  ;;  %v1453_v61 = vld [vmem:[%s10802_s29 + $0x2210] sm:$0xff]  ;;  %v1646_v39 = vld [vmem:[%s10802_s29 + $0x2818] sm:$0xff] }
 0x517   : > { %9865 = vmatpush1.bf16.msra.mxu1 %v9864_v63  ;;  %9355 = vmatprep.subr.bf16.mxu0 %v9354_v0  ;;  %v9882_v63 = vpack.c.bf16 %v1466_v54, %v1454_v16  ;;  %v1465_v0 = vld [vmem:[%s10802_s29 + $0x2270] sm:$0xff]  ;;  %v1547_v16 = vld [vmem:[%s10802_s29 + $0x2500] sm:$0xff]  ;;  %v1658_v41 = vld [vmem:[%s10802_s29 + $0x2878] sm:$0xff] }
 0x518   : > { %9867 = vmatprep.subr.bf16.mxu1 %v9866_v3  ;;  %v1490_v3 = vld [vmem:[%s10802_s29 + $0x2338] sm:$0xff]  ;;  %v9884_v5 = vpack.c.bf16 %v1465_v0, %v1453_v61  ;;  %v1559_v54 = vld [vmem:[%s10802_s29 + $0x2560] sm:$0xff] }
 0x519   : > { %v1574_v61 = vld [vmem:[%s10802_s29 + $0x25d8] sm:$0xff]  ;;  %v9388_v0 = vpack.c.bf16 %v1559_v54, %v1547_v16  ;;  %v355_v16 = vld [vmem:[%s10826_s8 + $0x20] sm:$0xff] }
 0x51a   : > { %9357 = vmatpush1.bf16.msra.mxu0 %v9356_v10  ;;  %v1477_v10 = vld [vmem:[%s10802_s29 + $0x22d0] sm:$0xff]  ;;  %v1670_v54 = vld [vmem:[%s10802_s29 + $0x28d8] sm:$0xff] }
 0x51b   : > { %9869 = vmatpush1.bf16.msra.mxu1 %v9868_v12  ;;  %9359 = vmatprep.subr.bf16.mxu0 %v9358_v13  ;;  %v9886_v12 = vpack.c.bf16 %v1490_v3, %v1478_v2  ;;  %v1489_v13 = vld [vmem:[%s10802_s29 + $0x2330] sm:$0xff]  ;;  %v1571_v2 = vld [vmem:[%s10802_s29 + $0x25c0] sm:$0xff] }
 0x51c   : > { %9871 = vmatprep.subr.bf16.mxu1 %v9870_v18  ;;  %v1514_v18 = vld [vmem:[%s10802_s29 + $0x23f8] sm:$0xff]  ;;  %v9888_v21 = vpack.c.bf16 %v1489_v13, %v1477_v10  ;;  %v1583_v3 = vld [vmem:[%s10802_s29 + $0x2620] sm:$0xff] }
 0x51d   : > { %v1610_v10 = vld [vmem:[%s10802_s29 + $0x26f8] sm:$0xff] }
 0x51e   : > { %9361 = vmatpush1.bf16.msra.mxu0 %v9360_v27  ;;  %v1501_v27 = vld [vmem:[%s10802_s29 + $0x2390] sm:$0xff] }
 0x51f   : > { %9873 = vmatpush1.bf16.msra.mxu1 %v9872_v29  ;;  %9363 = vmatprep.subr.bf16.mxu0 %v9362_v32  ;;  %v9890_v29 = vpack.c.bf16 %v1514_v18, %v1502_v17  ;;  %v1513_v32 = vld [vmem:[%s10802_s29 + $0x23f0] sm:$0xff]  ;;  %v1607_v17 = vld [vmem:[%s10802_s29 + $0x26e0] sm:$0xff] }
 0x520   : > { %9875 = vmatprep.subr.bf16.mxu1 %v9874_v36  ;;  %v1538_v36 = vld [vmem:[%s10802_s29 + $0x24b8] sm:$0xff]  ;;  %v9892_v28 = vpack.c.bf16 %v1513_v32, %v1501_v27  ;;  %v1597_v18 = vld [vmem:[%s10802_s29 + $0x2690] sm:$0xff]  ;;  %v9396_v27 = vpack.c.bf16 %v1607_v17, %v1595_v15 }
 0x522   : > { %9365 = vmatpush1.bf16.msra.mxu0 %v9364_v42  ;;  %v1525_v42 = vld [vmem:[%s10802_s29 + $0x2450] sm:$0xff] }
 0x523   : > { %9877 = vmatpush1.bf16.msra.mxu1 %v9876_v44  ;;  %9367 = vmatprep.subr.bf16.mxu0 %v9366_v46  ;;  %v9894_v44 = vpack.c.bf16 %v1538_v36, %v1526_v35  ;;  %v1537_v46 = vld [vmem:[%s10802_s29 + $0x24b0] sm:$0xff]  ;;  %v9910_v36 = vpack.c.bf16 %v1634_v26, %v1622_v24 }
 0x524   : > { %9879 = vmatprep.subr.bf16.mxu1 %v9878_v51  ;;  %v1562_v51 = vld [vmem:[%s10802_s29 + $0x2578] sm:$0xff]  ;;  %v9896_v52 = vpack.c.bf16 %v1537_v46, %v1525_v42  ;;  %v1621_v35 = vld [vmem:[%s10802_s29 + $0x2750] sm:$0xff]  ;;  %v9400_v42 = vpack.c.bf16 %v1631_v34, %v1619_v33 }
 0x525   : > { %v1693_v24 = vld [vmem:[%s10802_s29 + $0x2990] sm:$0xff]  ;;  %v1718_v33 = vld [vmem:[%s10802_s29 + $0x2a58] sm:$0xff] }
 0x526   : > { %9369 = vmatpush1.bf16.msra.mxu0 %v9368_v55  ;;  %v1549_v55 = vld [vmem:[%s10802_s29 + $0x2510] sm:$0xff]  ;;  %v1730_v34 = vld [vmem:[%s10802_s29 + $0x2ab8] sm:$0xff] }
 0x527   : > { %9881 = vmatpush1.bf16.msra.mxu1 %v9880_v56  ;;  %9371 = vmatprep.subr.bf16.mxu0 %v9370_v57  ;;  %v9898_v56 = vpack.c.bf16 %v1562_v51, %v1550_v50  ;;  %v1561_v57 = vld [vmem:[%s10802_s29 + $0x2570] sm:$0xff]  ;;  %v9914_v51 = vpack.c.bf16 %v1658_v41, %v1646_v39  ;;  %v9926_v41 = vpack.c.bf16 %v1730_v34, %v1718_v33 }
 0x528   : > { %9883 = vmatprep.subr.bf16.mxu1 %v9882_v63  ;;  %v1586_v63 = vld [vmem:[%s10802_s29 + $0x2638] sm:$0xff]  ;;  %v9900_v1 = vpack.c.bf16 %v1561_v57, %v1549_v55  ;;  %v1645_v50 = vld [vmem:[%s10802_s29 + $0x2810] sm:$0xff]  ;;  %v356_v57 = vld [vmem:[%s10826_s8 + $0x28] sm:$0xff] }
 0x529   : > { %v1682_v55 = vld [vmem:[%s10802_s29 + $0x2938] sm:$0xff]  ;;  %v1717_v39 = vld [vmem:[%s10802_s29 + $0x2a50] sm:$0xff] }
 0x52a   : > { %9373 = vmatpush1.bf16.msra.mxu0 %v9372_v4  ;;  %v1573_v4 = vld [vmem:[%s10802_s29 + $0x25d0] sm:$0xff] }
 0x52b   : > { %9885 = vmatpush1.bf16.msra.mxu1 %v9884_v5  ;;  %9375 = vmatprep.subr.bf16.mxu0 %v9374_v6  ;;  %v9902_v5 = vpack.c.bf16 %v1586_v63, %v1574_v61  ;;  %v1585_v6 = vld [vmem:[%s10802_s29 + $0x2630] sm:$0xff] }
 0x52c   : > { %9887 = vmatprep.subr.bf16.mxu1 %v9886_v12  ;;  %v9392_v12 = vpack.c.bf16 %v1583_v3, %v1571_v2  ;;  %v9904_v13 = vpack.c.bf16 %v1585_v6, %v1573_v4  ;;  %v9918_v3 = vpack.c.bf16 %v1682_v55, %v1670_v54  ;;  %v1681_v4 = vld [vmem:[%s10802_s29 + $0x2930] sm:$0xff]  ;;  %v1704_v6 = vld [vmem:[%s10802_s29 + $0x29e8] sm:$0xff]  ;;  %v9930_v54 = vpack.c.bf16 %v1754_v49, %v1742_v47 }
 0x52d   : > { %v1753_v55 = vld [vmem:[%s10802_s29 + $0x2b70] sm:$0xff] }
 0x52e   : > { %9377 = vmatpush1.bf16.msra.mxu0 %v9376_v19  ;;  %v1813_v33 = vld [vmem:[%s10802_s29 + $0x2d50] sm:$0xff] }
 0x52f   : > { %9889 = vmatpush1.bf16.msra.mxu1 %v9888_v21  ;;  %9379 = vmatprep.subr.bf16.mxu0 %v9378_v22  ;;  %v1609_v21 = vld [vmem:[%s10802_s29 + $0x26f0] sm:$0xff]  ;;  %v1620_v22 = vld [vmem:[%s10802_s29 + $0x2748] sm:$0xff] }
 0x530   : > { %9891 = vmatprep.subr.bf16.mxu1 %v9890_v29  ;;  %v9908_v29 = vpack.c.bf16 %v1609_v21, %v1597_v18  ;;  %v1837_v47 = vld [vmem:[%s10802_s29 + $0x2e10] sm:$0xff] }
 0x532   : > { %9381 = vmatpush1.bf16.msra.mxu0 %v9380_v37  ;;  %v1633_v37 = vld [vmem:[%s10802_s29 + $0x27b0] sm:$0xff] }
 0x533   : > { %9893 = vmatpush1.bf16.msra.mxu1 %v9892_v28  ;;  %9383 = vmatprep.subr.bf16.mxu0 %v9382_v38  ;;  %v1644_v28 = vld [vmem:[%s10802_s29 + $0x2808] sm:$0xff] }
 0x534   : > { %9895 = vmatprep.subr.bf16.mxu1 %v9894_v44  ;;  %v1656_v38 = vld [vmem:[%s10802_s29 + $0x2868] sm:$0xff]  ;;  %v9912_v44 = vpack.c.bf16 %v1633_v37, %v1621_v35 }
 0x535   : > { %5914 = vmatmul.mubr.f32.vlgmr.msra.gmra.mrb[4].mxu0 %v11261_v48  ;;  %v9402_v46 = vpack.c.bf16 %v1656_v38, %v1644_v28  ;;  %v1715_v28 = vld [vmem:[%s10802_s29 + $0x2a40] sm:$0xff] }
 0x536   : > { %9385 = vmatpush1.bf16.msra.mxu0 %v9384_v43  ;;  %6482 = vmatmul.mubr.f32.vlgmr.msra.gmra.mrb[4].mxu1 %v11261_v48  ;;  %v1598_v48 = vld [vmem:[%s10802_s29 + $0x2698] sm:$0xff]  ;;  %v1657_v43 = vld [vmem:[%s10802_s29 + $0x2870] sm:$0xff]  ;;  %v1727_v38 = vld [vmem:[%s10802_s29 + $0x2aa0] sm:$0xff] }
 0x537   : > { %9897 = vmatpush1.bf16.msra.mxu1 %v9896_v52  ;;  %9387 = vmatprep.subr.bf16.mxu0 %v9386_v53  ;;  %v9906_v19 = vpack.c.bf16 %v1610_v10, %v1598_v48  ;;  %v1668_v52 = vld [vmem:[%s10802_s29 + $0x28c8] sm:$0xff]  ;;  %v9916_v61 = vpack.c.bf16 %v1657_v43, %v1645_v50  ;;  %v1694_v10 = vld [vmem:[%s10802_s29 + $0x2998] sm:$0xff]  ;;  %v9416_v50 = vpack.c.bf16 %v1727_v38, %v1715_v28 }
 0x538   : > { %9899 = vmatprep.subr.bf16.mxu1 %v9898_v56  ;;  %5984 = vmatprep.mubr.f32.mxu0 %v11272_v62  ;;  %v1680_v53 = vld [vmem:[%s10802_s29 + $0x2928] sm:$0xff]  ;;  %v357_v56 = vld [vmem:[%s10826_s8 + $0x30] sm:$0xff]  ;;  %v1838_v28 = vld [vmem:[%s10802_s29 + $0x2e18] sm:$0xff] }
 0x539   : > { %6552 = vmatprep.mubr.f32.mxu1 %v11272_v62  ;;  %v1632_v62 = vld [vmem:[%s10802_s29 + $0x27a8] sm:$0xff]  ;;  %v9406_v63 = vpack.c.bf16 %v1680_v53, %v1668_v52  ;;  %v1739_v52 = vld [vmem:[%s10802_s29 + $0x2b00] sm:$0xff]  ;;  %v1850_v38 = vld [vmem:[%s10802_s29 + $0x2e78] sm:$0xff] }
 0x53a   : > { %9389 = vmatpush1.bf16.msra.mxu0 %v9388_v0  ;;  %v9398_v32 = vpack.c.bf16 %v1632_v62, %v1620_v22  ;;  %v1667_v0 = vld [vmem:[%s10802_s29 + $0x28c0] sm:$0xff]  ;;  %v9946_v49 = vpack.c.bf16 %v1850_v38, %v1838_v28  ;;  %v1933_v28 = vld [vmem:[%s10802_s29 + $0x3110] sm:$0xff] }
 0x53b   : > { %9901 = vmatpush1.bf16.msra.mxu1 %v9900_v1  ;;  %9391 = vmatprep.subr.bf16.mxu0 %v9390_v31  ;;  %v1679_v1 = vld [vmem:[%s10802_s29 + $0x2920] sm:$0xff]  ;;  %v1669_v31 = vld [vmem:[%s10802_s29 + $0x28d0] sm:$0xff] }
 0x53c   : > { %9903 = vmatprep.subr.bf16.mxu1 %v9902_v5  ;;  %v1692_v5 = vld [vmem:[%s10802_s29 + $0x2988] sm:$0xff]  ;;  %v9408_v17 = vpack.c.bf16 %v1679_v1, %v1667_v0  ;;  %v1691_v22 = vld [vmem:[%s10802_s29 + $0x2980] sm:$0xff] }
 0x53d   : > { %v9410_v21 = vpack.c.bf16 %v1704_v6, %v1692_v5  ;;  %v1703_v62 = vld [vmem:[%s10802_s29 + $0x29e0] sm:$0xff]  ;;  %v1788_v5 = vld [vmem:[%s10802_s29 + $0x2c88] sm:$0xff] }
 0x53e   : > { %9393 = vmatpush1.bf16.msra.mxu0 %v9392_v12  ;;  %v1706_v12 = vld [vmem:[%s10802_s29 + $0x29f8] sm:$0xff]  ;;  %v9412_v35 = vpack.c.bf16 %v1703_v62, %v1691_v22  ;;  %v1751_v53 = vld [vmem:[%s10802_s29 + $0x2b60] sm:$0xff]  ;;  %v1800_v6 = vld [vmem:[%s10802_s29 + $0x2ce8] sm:$0xff] }
 0x53f   : > { %9905 = vmatpush1.bf16.msra.mxu1 %v9904_v13  ;;  %9395 = vmatprep.subr.bf16.mxu0 %v9394_v14  ;;  %v9922_v26 = vpack.c.bf16 %v1706_v12, %v1694_v10  ;;  %v1763_v1 = vld [vmem:[%s10802_s29 + $0x2bc0] sm:$0xff]  ;;  %v9426_v12 = vpack.c.bf16 %v1800_v6, %v1788_v5  ;;  %v1814_v22 = vld [vmem:[%s10802_s29 + $0x2d58] sm:$0xff] }
 0x540   : > { %9907 = vmatprep.subr.bf16.mxu1 %v9906_v19  ;;  %v9920_v19 = vpack.c.bf16 %v1681_v4, %v1669_v31  ;;  %v1775_v31 = vld [vmem:[%s10802_s29 + $0x2c20] sm:$0xff]  ;;  %v1777_v4 = vld [vmem:[%s10802_s29 + $0x2c30] sm:$0xff]  ;;  %v1826_v62 = vld [vmem:[%s10802_s29 + $0x2db8] sm:$0xff] }
 0x541   : > { %v9942_v34 = vpack.c.bf16 %v1826_v62, %v1814_v22  ;;  %v1883_v5 = vld [vmem:[%s10802_s29 + $0x2f80] sm:$0xff]  ;;  %v1909_v22 = vld [vmem:[%s10802_s29 + $0x3050] sm:$0xff] }
 0x542   : > { %9397 = vmatpush1.bf16.msra.mxu0 %v9396_v27  ;;  %v1705_v27 = vld [vmem:[%s10802_s29 + $0x29f0] sm:$0xff]  ;;  %v1895_v6 = vld [vmem:[%s10802_s29 + $0x2fe0] sm:$0xff] }
 0x543   : > { %9909 = vmatpush1.bf16.msra.mxu1 %v9908_v29  ;;  %9399 = vmatprep.subr.bf16.mxu0 %v9398_v32  ;;  %v1716_v29 = vld [vmem:[%s10802_s29 + $0x2a48] sm:$0xff] }
 0x544   : > { %9911 = vmatprep.subr.bf16.mxu1 %v9910_v36  ;;  %v1728_v32 = vld [vmem:[%s10802_s29 + $0x2aa8] sm:$0xff]  ;;  %v9924_v36 = vpack.c.bf16 %v1705_v27, %v1693_v24 }
 0x545   : > { %v9414_v37 = vpack.c.bf16 %v1728_v32, %v1716_v29  ;;  %v1811_v29 = vld [vmem:[%s10802_s29 + $0x2d40] sm:$0xff] }
 0x546   : > { %9401 = vmatpush1.bf16.msra.mxu0 %v9400_v42  ;;  %v1729_v42 = vld [vmem:[%s10802_s29 + $0x2ab0] sm:$0xff]  ;;  %v1823_v32 = vld [vmem:[%s10802_s29 + $0x2da0] sm:$0xff] }
 0x547   : > { %9913 = vmatpush1.bf16.msra.mxu1 %v9912_v44  ;;  %9403 = vmatprep.subr.bf16.mxu0 %v9402_v46  ;;  %v1740_v44 = vld [vmem:[%s10802_s29 + $0x2b08] sm:$0xff] }
 0x548   : > { %v5134_v2 = vpop.f32.mrb[2].mxu0  ;;  %9915 = vmatprep.subr.bf16.mxu1 %v9914_v51  ;;  %v1752_v46 = vld [vmem:[%s10802_s29 + $0x2b68] sm:$0xff]  ;;  %v9928_v51 = vpack.c.bf16 %v1729_v42, %v1717_v39  ;;  %v9432_v39 = vpack.c.bf16 %v1823_v32, %v1811_v29  ;;  %v1934_v29 = vld [vmem:[%s10802_s29 + $0x3118] sm:$0xff] }
 0x549   : > { %v6847_v20 = vadd.f32 %v5134_v2, %v355_v16  ;;  %v5702_v7 = vpop.f32.mrb[2].mxu1  ;;  %v5136_v48 = vpop.f32.mrb[3].mxu0  ;;  %v9418_v43 = vpack.c.bf16 %v1752_v46, %v1740_v44  ;;  %v1741_v16 = vld [vmem:[%s10802_s29 + $0x2b10] sm:$0xff]  ;;  %v1835_v44 = vld [vmem:[%s10802_s29 + $0x2e00] sm:$0xff]  ;;  %v1946_v32 = vld [vmem:[%s10802_s29 + $0x3178] sm:$0xff] }
 0x54a   : > { %v6849_v13 = vadd.f32 %v5702_v7, %v357_v56  ;;  %v6848_v14 = vadd.f32 %v5136_v48, %v356_v57  ;;  %v5704_v15 = vpop.f32.mrb[3].mxu1  ;;  %9405 = vmatpush1.bf16.msra.mxu0 %v9404_v59  ;;  %v1764_v56 = vld [vmem:[%s10802_s29 + $0x2bc8] sm:$0xff]  ;;  %v1778_v59 = vld [vmem:[%s10802_s29 + $0x2c38] sm:$0xff]  ;;  %v1765_v2 = vld [vmem:[%s10802_s29 + $0x2bd0] sm:$0xff]  ;;  %v9424_v48 = vpack.c.bf16 %v1775_v31, %v1763_v1  ;;  %v9962_v38 = vpack.c.bf16 %v1946_v32, %v1934_v29 }
 0x54b   : > { %6859 = vst [vmem:[%s10826_s8 + $0x20] sm:$0xff] %v6847_v20  ;;  %v6850_v18 = vadd.f32 %v5704_v15, %v358_v58  ;;  %9917 = vmatpush1.bf16.msra.mxu1 %v9916_v61  ;;  %9407 = vmatprep.subr.bf16.mxu0 %v9406_v63  ;;  %v1776_v57 = vld [vmem:[%s10802_s29 + $0x2c28] sm:$0xff]  ;;  %v1766_v58 = vld [vmem:[%s10802_s29 + $0x2bd8] sm:$0xff]  ;;  %v9420_v61 = vpack.c.bf16 %v1751_v53, %v1739_v52  ;;  %v1789_v15 = vld [vmem:[%s10802_s29 + $0x2c90] sm:$0xff] }
 0x54c   : > { %6861 = vst [vmem:[%s10826_s8 + $0x30] sm:$0xff] %v6849_v13  ;;  %6860 = vst [vmem:[%s10826_s8 + $0x28] sm:$0xff] %v6848_v14  ;;  %9919 = vmatprep.subr.bf16.mxu1 %v9918_v3  ;;  %v9932_v63 = vpack.c.bf16 %v1753_v55, %v1741_v16  ;;  %v9422_v0 = vpack.c.bf16 %v1776_v57, %v1764_v56  ;;  %v9934_v3 = vpack.c.bf16 %v1778_v59, %v1766_v58  ;;  %v1790_v20 = vld [vmem:[%s10802_s29 + $0x2c98] sm:$0xff]  ;;  %v1787_v13 = vld [vmem:[%s10802_s29 + $0x2c80] sm:$0xff] }
 0x54d   : > { %6862 = vst [vmem:[%s10826_s8 + $0x38] sm:$0xff] %v6850_v18  ;;  %v1802_v7 = vld [vmem:[%s10802_s29 + $0x2cf8] sm:$0xff]  ;;  %v9936_v10 = vpack.c.bf16 %v1777_v4, %v1765_v2  ;;  %v1799_v14 = vld [vmem:[%s10802_s29 + $0x2ce0] sm:$0xff]  ;;  %v1801_v18 = vld [vmem:[%s10802_s29 + $0x2cf0] sm:$0xff] }
 0x54e   : > { %9409 = vmatpush1.bf16.msra.mxu0 %v9408_v17  ;;  %v9938_v17 = vpack.c.bf16 %v1802_v7, %v1790_v20  ;;  %v9428_v24 = vpack.c.bf16 %v1799_v14, %v1787_v13  ;;  %v1847_v46 = vld [vmem:[%s10802_s29 + $0x2e60] sm:$0xff]  ;;  %v1862_v52 = vld [vmem:[%s10802_s29 + $0x2ed8] sm:$0xff]  ;;  %v1861_v58 = vld [vmem:[%s10802_s29 + $0x2ed0] sm:$0xff] }
 0x54f   : > { %9921 = vmatpush1.bf16.msra.mxu1 %v9920_v19  ;;  %9411 = vmatprep.subr.bf16.mxu0 %v9410_v21  ;;  %v1812_v19 = vld [vmem:[%s10802_s29 + $0x2d48] sm:$0xff]  ;;  %v1874_v53 = vld [vmem:[%s10802_s29 + $0x2f38] sm:$0xff]  ;;  %v9436_v16 = vpack.c.bf16 %v1847_v46, %v1835_v44  ;;  %v1859_v56 = vld [vmem:[%s10802_s29 + $0x2ec0] sm:$0xff] }
 0x550   : > { %9923 = vmatprep.subr.bf16.mxu1 %v9922_v26  ;;  %v1824_v21 = vld [vmem:[%s10802_s29 + $0x2da8] sm:$0xff]  ;;  %v9940_v26 = vpack.c.bf16 %v1801_v18, %v1789_v15  ;;  %v1871_v57 = vld [vmem:[%s10802_s29 + $0x2f20] sm:$0xff]  ;;  %v9950_v59 = vpack.c.bf16 %v1874_v53, %v1862_v52  ;;  %v1886_v1 = vld [vmem:[%s10802_s29 + $0x2f98] sm:$0xff]  ;;  %v9444_v15 = vpack.c.bf16 %v1895_v6, %v1883_v5 }
 0x551   : > { %v9430_v27 = vpack.c.bf16 %v1824_v21, %v1812_v19  ;;  %v1898_v31 = vld [vmem:[%s10802_s29 + $0x2ff8] sm:$0xff]  ;;  %v9440_v2 = vpack.c.bf16 %v1871_v57, %v1859_v56  ;;  %v1885_v20 = vld [vmem:[%s10802_s29 + $0x2f90] sm:$0xff]  ;;  %v1907_v19 = vld [vmem:[%s10802_s29 + $0x3040] sm:$0xff] }
 0x552   : > { %9413 = vmatpush1.bf16.msra.mxu0 %v9412_v35  ;;  %v1825_v35 = vld [vmem:[%s10802_s29 + $0x2db0] sm:$0xff]  ;;  %v9954_v7 = vpack.c.bf16 %v1898_v31, %v1886_v1  ;;  %v1910_v13 = vld [vmem:[%s10802_s29 + $0x3058] sm:$0xff]  ;;  %v1919_v21 = vld [vmem:[%s10802_s29 + $0x30a0] sm:$0xff] }
 0x553   : > { %9925 = vmatpush1.bf16.msra.mxu1 %v9924_v36  ;;  %9415 = vmatprep.subr.bf16.mxu0 %v9414_v37  ;;  %v1836_v36 = vld [vmem:[%s10802_s29 + $0x2e08] sm:$0xff]  ;;  %v1922_v14 = vld [vmem:[%s10802_s29 + $0x30b8] sm:$0xff]  ;;  %v1957_v52 = vld [vmem:[%s10802_s29 + $0x31d0] sm:$0xff] }
 0x554   : > { %9927 = vmatprep.subr.bf16.mxu1 %v9926_v41  ;;  %v1848_v37 = vld [vmem:[%s10802_s29 + $0x2e68] sm:$0xff]  ;;  %v9944_v41 = vpack.c.bf16 %v1825_v35, %v1813_v33  ;;  %v9958_v62 = vpack.c.bf16 %v1922_v14, %v1910_v13  ;;  %v9448_v33 = vpack.c.bf16 %v1919_v21, %v1907_v19  ;;  %v1958_v44 = vld [vmem:[%s10802_s29 + $0x31d8] sm:$0xff]  ;;  %v1993_v31 = vld [vmem:[%s10802_s29 + $0x32f0] sm:$0xff] }
 0x555   : > { %v9434_v42 = vpack.c.bf16 %v1848_v37, %v1836_v36  ;;  %v1931_v36 = vld [vmem:[%s10802_s29 + $0x3100] sm:$0xff]  ;;  %v1970_v46 = vld [vmem:[%s10802_s29 + $0x3238] sm:$0xff]  ;;  %v2017_v13 = vld [vmem:[%s10802_s29 + $0x33b0] sm:$0xff] }
 0x556   : > { %9417 = vmatpush1.bf16.msra.mxu0 %v9416_v50  ;;  %v1849_v50 = vld [vmem:[%s10802_s29 + $0x2e70] sm:$0xff]  ;;  %v1943_v37 = vld [vmem:[%s10802_s29 + $0x3160] sm:$0xff]  ;;  %v9966_v53 = vpack.c.bf16 %v1970_v46, %v1958_v44  ;;  %v1994_v56 = vld [vmem:[%s10802_s29 + $0x32f8] sm:$0xff] }
 0x557   : > { %9929 = vmatpush1.bf16.msra.mxu1 %v9928_v51  ;;  %9419 = vmatprep.subr.bf16.mxu0 %v9418_v43  ;;  %v1860_v51 = vld [vmem:[%s10802_s29 + $0x2ec8] sm:$0xff]  ;;  %v2041_v29 = vld [vmem:[%s10802_s29 + $0x3470] sm:$0xff] }
 0x558   : > { %9931 = vmatprep.subr.bf16.mxu1 %v9930_v54  ;;  %v1872_v43 = vld [vmem:[%s10802_s29 + $0x2f28] sm:$0xff]  ;;  %v9948_v54 = vpack.c.bf16 %v1849_v50, %v1837_v47  ;;  %v9452_v47 = vpack.c.bf16 %v1943_v37, %v1931_v36  ;;  %v2065_v44 = vld [vmem:[%s10802_s29 + $0x3530] sm:$0xff] }
 0x559   : > { %v9438_v55 = vpack.c.bf16 %v1872_v43, %v1860_v51  ;;  %v1955_v51 = vld [vmem:[%s10802_s29 + $0x31c0] sm:$0xff]  ;;  %v2028_v14 = vld [vmem:[%s10802_s29 + $0x3408] sm:$0xff] }
 0x55a   : > { %9421 = vmatpush1.bf16.msra.mxu0 %v9420_v61  ;;  %v1873_v61 = vld [vmem:[%s10802_s29 + $0x2f30] sm:$0xff]  ;;  %v1967_v43 = vld [vmem:[%s10802_s29 + $0x3220] sm:$0xff]  ;;  %v2052_v32 = vld [vmem:[%s10802_s29 + $0x34c8] sm:$0xff] }
 0x55b   : > { %9933 = vmatpush1.bf16.msra.mxu1 %v9932_v63  ;;  %9423 = vmatprep.subr.bf16.mxu0 %v9422_v0  ;;  %v1884_v63 = vld [vmem:[%s10802_s29 + $0x2f88] sm:$0xff]  ;;  %v9456_v57 = vpack.c.bf16 %v1967_v43, %v1955_v51 }
 0x55c   : > { %9935 = vmatprep.subr.bf16.mxu1 %v9934_v3  ;;  %v1896_v0 = vld [vmem:[%s10802_s29 + $0x2fe8] sm:$0xff]  ;;  %v9952_v3 = vpack.c.bf16 %v1873_v61, %v1861_v58  ;;  %v1979_v61 = vld [vmem:[%s10802_s29 + $0x3280] sm:$0xff] }
 0x55d   : > { %v9442_v4 = vpack.c.bf16 %v1896_v0, %v1884_v63  ;;  %v1991_v63 = vld [vmem:[%s10802_s29 + $0x32e0] sm:$0xff]  ;;  %v1981_v0 = vld [vmem:[%s10802_s29 + $0x3290] sm:$0xff]  ;;  %v2076_v46 = vld [vmem:[%s10802_s29 + $0x3588] sm:$0xff] }
 0x55e   : > { %9425 = vmatpush1.bf16.msra.mxu0 %v9424_v48  ;;  %v1897_v48 = vld [vmem:[%s10802_s29 + $0x2ff0] sm:$0xff]  ;;  %v9460_v5 = vpack.c.bf16 %v1991_v63, %v1979_v61  ;;  %v9972_v6 = vpack.c.bf16 %v1993_v31, %v1981_v0  ;;  %v2111_v31 = vld [vmem:[%s10802_s29 + $0x36a0] sm:$0xff] }
 0x55f   : > { %9937 = vmatpush1.bf16.msra.mxu1 %v9936_v10  ;;  %9427 = vmatprep.subr.bf16.mxu0 %v9426_v12  ;;  %v1908_v10 = vld [vmem:[%s10802_s29 + $0x3048] sm:$0xff] }
 0x560   : > { %9939 = vmatprep.subr.bf16.mxu1 %v9938_v17  ;;  %v1920_v12 = vld [vmem:[%s10802_s29 + $0x30a8] sm:$0xff]  ;;  %v9956_v17 = vpack.c.bf16 %v1897_v48, %v1885_v20  ;;  %v2015_v48 = vld [vmem:[%s10802_s29 + $0x33a0] sm:$0xff] }
 0x561   : > { %v9446_v18 = vpack.c.bf16 %v1920_v12, %v1908_v10  ;;  %v2005_v10 = vld [vmem:[%s10802_s29 + $0x3350] sm:$0xff] }
 0x562   : > { %9429 = vmatpush1.bf16.msra.mxu0 %v9428_v24  ;;  %v1921_v24 = vld [vmem:[%s10802_s29 + $0x30b0] sm:$0xff]  ;;  %v9976_v21 = vpack.c.bf16 %v2017_v13, %v2005_v10  ;;  %v2135_v13 = vld [vmem:[%s10802_s29 + $0x3760] sm:$0xff] }
 0x563   : > { %9941 = vmatpush1.bf16.msra.mxu1 %v9940_v26  ;;  %9431 = vmatprep.subr.bf16.mxu0 %v9430_v27  ;;  %v1932_v26 = vld [vmem:[%s10802_s29 + $0x3108] sm:$0xff] }
 0x564   : > { %9943 = vmatprep.subr.bf16.mxu1 %v9942_v34  ;;  %v1944_v27 = vld [vmem:[%s10802_s29 + $0x3168] sm:$0xff]  ;;  %v9960_v34 = vpack.c.bf16 %v1921_v24, %v1909_v22  ;;  %v2039_v24 = vld [vmem:[%s10802_s29 + $0x3460] sm:$0xff] }
 0x565   : > { %v9450_v35 = vpack.c.bf16 %v1944_v27, %v1932_v26  ;;  %v2029_v26 = vld [vmem:[%s10802_s29 + $0x3410] sm:$0xff] }
 0x566   : > { %9433 = vmatpush1.bf16.msra.mxu0 %v9432_v39  ;;  %v1945_v39 = vld [vmem:[%s10802_s29 + $0x3170] sm:$0xff]  ;;  %v9980_v37 = vpack.c.bf16 %v2041_v29, %v2029_v26  ;;  %v2159_v29 = vld [vmem:[%s10802_s29 + $0x3820] sm:$0xff] }
 0x567   : > { %9945 = vmatpush1.bf16.msra.mxu1 %v9944_v41  ;;  %9435 = vmatprep.subr.bf16.mxu0 %v9434_v42  ;;  %v1956_v41 = vld [vmem:[%s10802_s29 + $0x31c8] sm:$0xff] }
 0x568   : > { %9947 = vmatprep.subr.bf16.mxu1 %v9946_v49  ;;  %v1968_v42 = vld [vmem:[%s10802_s29 + $0x3228] sm:$0xff]  ;;  %v9964_v49 = vpack.c.bf16 %v1945_v39, %v1933_v28  ;;  %v2063_v39 = vld [vmem:[%s10802_s29 + $0x3520] sm:$0xff] }
 0x569   : > { %v9454_v50 = vpack.c.bf16 %v1968_v42, %v1956_v41  ;;  %v2053_v41 = vld [vmem:[%s10802_s29 + $0x34d0] sm:$0xff] }
 0x56a   : > { %9437 = vmatpush1.bf16.msra.mxu0 %v9436_v16  ;;  %v1969_v16 = vld [vmem:[%s10802_s29 + $0x3230] sm:$0xff]  ;;  %v9984_v43 = vpack.c.bf16 %v2065_v44, %v2053_v41  ;;  %v2183_v44 = vld [vmem:[%s10802_s29 + $0x38e0] sm:$0xff] }
 0x56b   : > { %9949 = vmatpush1.bf16.msra.mxu1 %v9948_v54  ;;  %9439 = vmatprep.subr.bf16.mxu0 %v9438_v55  ;;  %v1980_v54 = vld [vmem:[%s10802_s29 + $0x3288] sm:$0xff]  ;;  %v9968_v58 = vpack.c.bf16 %v1969_v16, %v1957_v52  ;;  %v2087_v16 = vld [vmem:[%s10802_s29 + $0x35e0] sm:$0xff] }
 0x56c   : > { %9951 = vmatprep.subr.bf16.mxu1 %v9950_v59  ;;  %v1992_v55 = vld [vmem:[%s10802_s29 + $0x32e8] sm:$0xff] }
 0x56d   : > { %v9458_v59 = vpack.c.bf16 %v1992_v55, %v1980_v54  ;;  %v2077_v54 = vld [vmem:[%s10802_s29 + $0x3590] sm:$0xff] }
 0x56e   : > { %9441 = vmatpush1.bf16.msra.mxu0 %v9440_v2  ;;  %v2004_v2 = vld [vmem:[%s10802_s29 + $0x3348] sm:$0xff] }
 0x56f   : > { %9953 = vmatpush1.bf16.msra.mxu1 %v9952_v3  ;;  %9443 = vmatprep.subr.bf16.mxu0 %v9442_v4  ;;  %v2006_v3 = vld [vmem:[%s10802_s29 + $0x3358] sm:$0xff] }
 0x570   : > { %9955 = vmatprep.subr.bf16.mxu1 %v9954_v7  ;;  %v2018_v4 = vld [vmem:[%s10802_s29 + $0x33b8] sm:$0xff]  ;;  %v2003_v7 = vld [vmem:[%s10802_s29 + $0x3340] sm:$0xff] }
 0x571   : > { %v9974_v12 = vpack.c.bf16 %v2018_v4, %v2006_v3  ;;  %v9464_v19 = vpack.c.bf16 %v2015_v48, %v2003_v7  ;;  %v2113_v3 = vld [vmem:[%s10802_s29 + $0x36b0] sm:$0xff]  ;;  %v2124_v4 = vld [vmem:[%s10802_s29 + $0x3708] sm:$0xff] }
 0x572   : > { %9445 = vmatpush1.bf16.msra.mxu0 %v9444_v15  ;;  %v2040_v15 = vld [vmem:[%s10802_s29 + $0x3468] sm:$0xff] }
 0x573   : > { %9957 = vmatpush1.bf16.msra.mxu1 %v9956_v17  ;;  %9447 = vmatprep.subr.bf16.mxu0 %v9446_v18  ;;  %v2030_v17 = vld [vmem:[%s10802_s29 + $0x3418] sm:$0xff]  ;;  %v9466_v22 = vpack.c.bf16 %v2040_v15, %v2028_v14  ;;  %v2125_v14 = vld [vmem:[%s10802_s29 + $0x3710] sm:$0xff] }
 0x574   : > { %9959 = vmatprep.subr.bf16.mxu1 %v9958_v62  ;;  %v2042_v18 = vld [vmem:[%s10802_s29 + $0x3478] sm:$0xff]  ;;  %v2027_v62 = vld [vmem:[%s10802_s29 + $0x3400] sm:$0xff] }
 0x575   : > { %5985 = vmatmul.mubr.f32.vlgmr.msra.gmra.mrb[4].mxu0 %v11399_v9  ;;  %v9978_v27 = vpack.c.bf16 %v2042_v18, %v2030_v17  ;;  %v9468_v36 = vpack.c.bf16 %v2039_v24, %v2027_v62  ;;  %v2137_v17 = vld [vmem:[%s10802_s29 + $0x3770] sm:$0xff]  ;;  %v2148_v18 = vld [vmem:[%s10802_s29 + $0x37c8] sm:$0xff] }
 0x576   : > { %9449 = vmatpush1.bf16.msra.mxu0 %v9448_v33  ;;  %6553 = vmatmul.mubr.f32.vlgmr.msra.gmra.mrb[4].mxu1 %v11399_v9  ;;  %v1982_v9 = vld [vmem:[%s10802_s29 + $0x3298] sm:$0xff]  ;;  %v2064_v33 = vld [vmem:[%s10802_s29 + $0x3528] sm:$0xff]  ;;  %v9996_v24 = vpack.c.bf16 %v2137_v17, %v2125_v14  ;;  %v2255_v17 = vld [vmem:[%s10802_s29 + $0x3b20] sm:$0xff] }
 0x577   : > { %9961 = vmatpush1.bf16.msra.mxu1 %v9960_v34  ;;  %9451 = vmatprep.subr.bf16.mxu0 %v9450_v35  ;;  %v9970_v1 = vpack.c.bf16 %v1994_v56, %v1982_v9  ;;  %v2054_v34 = vld [vmem:[%s10802_s29 + $0x34d8] sm:$0xff]  ;;  %v9470_v28 = vpack.c.bf16 %v2064_v33, %v2052_v32  ;;  %v2089_v9 = vld [vmem:[%s10802_s29 + $0x35f0] sm:$0xff]  ;;  %v2100_v56 = vld [vmem:[%s10802_s29 + $0x3648] sm:$0xff] }
 0x578   : > { %9963 = vmatprep.subr.bf16.mxu1 %v9962_v38  ;;  %6055 = vmatprep.mubr.f32.mxu0 %v11410_v25  ;;  %v2066_v35 = vld [vmem:[%s10802_s29 + $0x3538] sm:$0xff]  ;;  %v2051_v38 = vld [vmem:[%s10802_s29 + $0x34c0] sm:$0xff]  ;;  %v9988_v63 = vpack.c.bf16 %v2089_v9, %v2077_v54  ;;  %v2149_v32 = vld [vmem:[%s10802_s29 + $0x37d0] sm:$0xff] }
 0x579   : > { %6623 = vmatprep.mubr.f32.mxu1 %v11410_v25  ;;  %v2016_v25 = vld [vmem:[%s10802_s29 + $0x33a8] sm:$0xff]  ;;  %v9982_v42 = vpack.c.bf16 %v2066_v35, %v2054_v34  ;;  %v9472_v51 = vpack.c.bf16 %v2063_v39, %v2051_v38  ;;  %v2161_v34 = vld [vmem:[%s10802_s29 + $0x3830] sm:$0xff]  ;;  %v2207_v9 = vld [vmem:[%s10802_s29 + $0x39a0] sm:$0xff] }
 0x57a   : > { %9453 = vmatpush1.bf16.msra.mxu0 %v9452_v47  ;;  %v9462_v20 = vpack.c.bf16 %v2016_v25, %v2004_v2  ;;  %v2088_v47 = vld [vmem:[%s10802_s29 + $0x35e8] sm:$0xff]  ;;  %v2101_v2 = vld [vmem:[%s10802_s29 + $0x3650] sm:$0xff]  ;;  %v10000_v39 = vpack.c.bf16 %v2161_v34, %v2149_v32  ;;  %v2279_v34 = vld [vmem:[%s10802_s29 + $0x3be0] sm:$0xff] }
 0x57b   : > { %9965 = vmatpush1.bf16.msra.mxu1 %v9964_v49  ;;  %9455 = vmatprep.subr.bf16.mxu0 %v9454_v50  ;;  %v2078_v49 = vld [vmem:[%s10802_s29 + $0x3598] sm:$0xff]  ;;  %v9474_v52 = vpack.c.bf16 %v2088_v47, %v2076_v46  ;;  %v9992_v48 = vpack.c.bf16 %v2113_v3, %v2101_v2  ;;  %v2172_v35 = vld [vmem:[%s10802_s29 + $0x3888] sm:$0xff]  ;;  %v2173_v46 = vld [vmem:[%s10802_s29 + $0x3890] sm:$0xff] }
 0x57c   : > { %9967 = vmatprep.subr.bf16.mxu1 %v9966_v53  ;;  %v2090_v50 = vld [vmem:[%s10802_s29 + $0x35f8] sm:$0xff]  ;;  %v2075_v53 = vld [vmem:[%s10802_s29 + $0x3580] sm:$0xff] }
 0x57d   : > { %v9986_v55 = vpack.c.bf16 %v2090_v50, %v2078_v49  ;;  %v9476_v61 = vpack.c.bf16 %v2087_v16, %v2075_v53  ;;  %v2185_v49 = vld [vmem:[%s10802_s29 + $0x38f0] sm:$0xff]  ;;  %v2196_v50 = vld [vmem:[%s10802_s29 + $0x3948] sm:$0xff]  ;;  %v2231_v3 = vld [vmem:[%s10802_s29 + $0x3a60] sm:$0xff] }
 0x57e   : > { %9457 = vmatpush1.bf16.msra.mxu0 %v9456_v57  ;;  %v2112_v57 = vld [vmem:[%s10802_s29 + $0x36a8] sm:$0xff]  ;;  %v10004_v16 = vpack.c.bf16 %v2185_v49, %v2173_v46  ;;  %v2303_v49 = vld [vmem:[%s10802_s29 + $0x3ca0] sm:$0xff] }
 0x57f   : > { %9969 = vmatpush1.bf16.msra.mxu1 %v9968_v58  ;;  %9459 = vmatprep.subr.bf16.mxu0 %v9458_v59  ;;  %v2102_v58 = vld [vmem:[%s10802_s29 + $0x3658] sm:$0xff]  ;;  %v9478_v0 = vpack.c.bf16 %v2112_v57, %v2100_v56  ;;  %v2197_v56 = vld [vmem:[%s10802_s29 + $0x3950] sm:$0xff] }
 0x580   : > { %9971 = vmatprep.subr.bf16.mxu1 %v9970_v1  ;;  %v2114_v59 = vld [vmem:[%s10802_s29 + $0x36b8] sm:$0xff]  ;;  %v2099_v1 = vld [vmem:[%s10802_s29 + $0x3640] sm:$0xff] }
 0x581   : > { %v9990_v25 = vpack.c.bf16 %v2114_v59, %v2102_v58  ;;  %v9480_v7 = vpack.c.bf16 %v2111_v31, %v2099_v1  ;;  %v2209_v58 = vld [vmem:[%s10802_s29 + $0x39b0] sm:$0xff]  ;;  %v2220_v59 = vld [vmem:[%s10802_s29 + $0x3a08] sm:$0xff] }
 0x582   : > { %9461 = vmatpush1.bf16.msra.mxu0 %v9460_v5  ;;  %v2136_v5 = vld [vmem:[%s10802_s29 + $0x3768] sm:$0xff]  ;;  %v10008_v31 = vpack.c.bf16 %v2209_v58, %v2197_v56  ;;  %v2327_v58 = vld [vmem:[%s10802_s29 + $0x3d60] sm:$0xff] }
 0x583   : > { %9973 = vmatpush1.bf16.msra.mxu1 %v9972_v6  ;;  %9463 = vmatprep.subr.bf16.mxu0 %v9462_v20  ;;  %v2126_v6 = vld [vmem:[%s10802_s29 + $0x3718] sm:$0xff]  ;;  %v9482_v10 = vpack.c.bf16 %v2136_v5, %v2124_v4  ;;  %v2221_v4 = vld [vmem:[%s10802_s29 + $0x3a10] sm:$0xff] }
 0x584   : > { %9975 = vmatprep.subr.bf16.mxu1 %v9974_v12  ;;  %v2138_v20 = vld [vmem:[%s10802_s29 + $0x3778] sm:$0xff]  ;;  %v2123_v12 = vld [vmem:[%s10802_s29 + $0x3700] sm:$0xff] }
 0x585   : > { %v9994_v15 = vpack.c.bf16 %v2138_v20, %v2126_v6  ;;  %v9484_v62 = vpack.c.bf16 %v2135_v13, %v2123_v12  ;;  %v2233_v6 = vld [vmem:[%s10802_s29 + $0x3a70] sm:$0xff]  ;;  %v2244_v20 = vld [vmem:[%s10802_s29 + $0x3ac8] sm:$0xff] }
 0x586   : > { %9465 = vmatpush1.bf16.msra.mxu0 %v9464_v19  ;;  %v2160_v19 = vld [vmem:[%s10802_s29 + $0x3828] sm:$0xff]  ;;  %v10012_v13 = vpack.c.bf16 %v2233_v6, %v2221_v4  ;;  %v2351_v6 = vld [vmem:[%s10802_s29 + $0x3e20] sm:$0xff] }
 0x587   : > { %9977 = vmatpush1.bf16.msra.mxu1 %v9976_v21  ;;  %9467 = vmatprep.subr.bf16.mxu0 %v9466_v22  ;;  %v2150_v21 = vld [vmem:[%s10802_s29 + $0x37d8] sm:$0xff]  ;;  %v9486_v26 = vpack.c.bf16 %v2160_v19, %v2148_v18  ;;  %v2245_v18 = vld [vmem:[%s10802_s29 + $0x3ad0] sm:$0xff] }
 0x588   : > { %9979 = vmatprep.subr.bf16.mxu1 %v9978_v27  ;;  %v2162_v22 = vld [vmem:[%s10802_s29 + $0x3838] sm:$0xff]  ;;  %v2147_v27 = vld [vmem:[%s10802_s29 + $0x37c0] sm:$0xff] }
 0x589   : > { %v9998_v33 = vpack.c.bf16 %v2162_v22, %v2150_v21  ;;  %v9488_v38 = vpack.c.bf16 %v2159_v29, %v2147_v27  ;;  %v2257_v21 = vld [vmem:[%s10802_s29 + $0x3b30] sm:$0xff]  ;;  %v2268_v22 = vld [vmem:[%s10802_s29 + $0x3b88] sm:$0xff] }
 0x58a   : > { %9469 = vmatpush1.bf16.msra.mxu0 %v9468_v36  ;;  %v2184_v36 = vld [vmem:[%s10802_s29 + $0x38e8] sm:$0xff]  ;;  %v10016_v29 = vpack.c.bf16 %v2257_v21, %v2245_v18  ;;  %v2363_v18 = vld [vmem:[%s10802_s29 + $0x3e80] sm:$0xff]  ;;  %v2365_v21 = vld [vmem:[%s10802_s29 + $0x3e90] sm:$0xff] }
 0x58b   : > { %9981 = vmatpush1.bf16.msra.mxu1 %v9980_v37  ;;  %9471 = vmatprep.subr.bf16.mxu0 %v9470_v28  ;;  %v2174_v37 = vld [vmem:[%s10802_s29 + $0x3898] sm:$0xff]  ;;  %v9490_v41 = vpack.c.bf16 %v2184_v36, %v2172_v35  ;;  %v2269_v35 = vld [vmem:[%s10802_s29 + $0x3b90] sm:$0xff] }
 0x58c   : > { %9983 = vmatprep.subr.bf16.mxu1 %v9982_v42  ;;  %v2186_v28 = vld [vmem:[%s10802_s29 + $0x38f8] sm:$0xff]  ;;  %v2171_v42 = vld [vmem:[%s10802_s29 + $0x3880] sm:$0xff] }
 0x58d   : > { %v10002_v47 = vpack.c.bf16 %v2186_v28, %v2174_v37  ;;  %v9492_v53 = vpack.c.bf16 %v2183_v44, %v2171_v42  ;;  %v2281_v37 = vld [vmem:[%s10802_s29 + $0x3bf0] sm:$0xff]  ;;  %v2292_v28 = vld [vmem:[%s10802_s29 + $0x3c48] sm:$0xff] }
 0x58e   : > { %9473 = vmatpush1.bf16.msra.mxu0 %v9472_v51  ;;  %v2208_v51 = vld [vmem:[%s10802_s29 + $0x39a8] sm:$0xff]  ;;  %v10020_v44 = vpack.c.bf16 %v2281_v37, %v2269_v35  ;;  %v2399_v35 = vld [vmem:[%s10802_s29 + $0x3fa0] sm:$0xff] }
 0x58f   : > { %9985 = vmatpush1.bf16.msra.mxu1 %v9984_v43  ;;  %9475 = vmatprep.subr.bf16.mxu0 %v9474_v52  ;;  %v2198_v43 = vld [vmem:[%s10802_s29 + $0x3958] sm:$0xff]  ;;  %v9494_v54 = vpack.c.bf16 %v2208_v51, %v2196_v50  ;;  %v2293_v50 = vld [vmem:[%s10802_s29 + $0x3c50] sm:$0xff] }
 0x590   : > { %9987 = vmatprep.subr.bf16.mxu1 %v9986_v55  ;;  %v2210_v52 = vld [vmem:[%s10802_s29 + $0x39b8] sm:$0xff]  ;;  %v2195_v55 = vld [vmem:[%s10802_s29 + $0x3940] sm:$0xff] }
 0x591   : > { %v10006_v57 = vpack.c.bf16 %v2210_v52, %v2198_v43  ;;  %v9496_v1 = vpack.c.bf16 %v2207_v9, %v2195_v55  ;;  %v2305_v43 = vld [vmem:[%s10802_s29 + $0x3cb0] sm:$0xff]  ;;  %v2316_v52 = vld [vmem:[%s10802_s29 + $0x3d08] sm:$0xff] }
 0x592   : > { %9477 = vmatpush1.bf16.msra.mxu0 %v9476_v61  ;;  %v2232_v61 = vld [vmem:[%s10802_s29 + $0x3a68] sm:$0xff]  ;;  %v10024_v9 = vpack.c.bf16 %v2305_v43, %v2293_v50  ;;  %v2423_v50 = vld [vmem:[%s10802_s29 + $0x4060] sm:$0xff] }
 0x593   : > { %9989 = vmatpush1.bf16.msra.mxu1 %v9988_v63  ;;  %9479 = vmatprep.subr.bf16.mxu0 %v9478_v0  ;;  %v2222_v63 = vld [vmem:[%s10802_s29 + $0x3a18] sm:$0xff]  ;;  %v9498_v2 = vpack.c.bf16 %v2232_v61, %v2220_v59  ;;  %v2317_v59 = vld [vmem:[%s10802_s29 + $0x3d10] sm:$0xff] }
 0x594   : > { %9991 = vmatprep.subr.bf16.mxu1 %v9990_v25  ;;  %v2234_v0 = vld [vmem:[%s10802_s29 + $0x3a78] sm:$0xff]  ;;  %v2219_v25 = vld [vmem:[%s10802_s29 + $0x3a00] sm:$0xff] }
 0x595   : > { %v10010_v5 = vpack.c.bf16 %v2234_v0, %v2222_v63  ;;  %v9500_v12 = vpack.c.bf16 %v2231_v3, %v2219_v25  ;;  %v2329_v63 = vld [vmem:[%s10802_s29 + $0x3d70] sm:$0xff]  ;;  %v2340_v0 = vld [vmem:[%s10802_s29 + $0x3dc8] sm:$0xff] }
 0x596   : > { %9481 = vmatpush1.bf16.msra.mxu0 %v9480_v7  ;;  %v2256_v7 = vld [vmem:[%s10802_s29 + $0x3b28] sm:$0xff]  ;;  %v10028_v3 = vpack.c.bf16 %v2329_v63, %v2317_v59  ;;  %v2447_v59 = vld [vmem:[%s10802_s29 + $0x4120] sm:$0xff] }
 0x597   : > { %9993 = vmatpush1.bf16.msra.mxu1 %v9992_v48  ;;  %9483 = vmatprep.subr.bf16.mxu0 %v9482_v10  ;;  %v2246_v48 = vld [vmem:[%s10802_s29 + $0x3ad8] sm:$0xff]  ;;  %v9502_v14 = vpack.c.bf16 %v2256_v7, %v2244_v20  ;;  %v2341_v20 = vld [vmem:[%s10802_s29 + $0x3dd0] sm:$0xff] }
 0x598   : > { %9995 = vmatprep.subr.bf16.mxu1 %v9994_v15  ;;  %v2258_v10 = vld [vmem:[%s10802_s29 + $0x3b38] sm:$0xff]  ;;  %v2243_v15 = vld [vmem:[%s10802_s29 + $0x3ac0] sm:$0xff] }
 0x599   : > { %v10014_v19 = vpack.c.bf16 %v2258_v10, %v2246_v48  ;;  %v9504_v27 = vpack.c.bf16 %v2255_v17, %v2243_v15  ;;  %v2353_v48 = vld [vmem:[%s10802_s29 + $0x3e30] sm:$0xff]  ;;  %v2364_v10 = vld [vmem:[%s10802_s29 + $0x3e88] sm:$0xff] }
 0x59a   : > { %9485 = vmatpush1.bf16.msra.mxu0 %v9484_v62  ;;  %v2280_v62 = vld [vmem:[%s10802_s29 + $0x3be8] sm:$0xff]  ;;  %v10032_v15 = vpack.c.bf16 %v2353_v48, %v2341_v20  ;;  %v2471_v20 = vld [vmem:[%s10802_s29 + $0x41e0] sm:$0xff] }
 0x59b   : > { %9997 = vmatpush1.bf16.msra.mxu1 %v9996_v24  ;;  %9487 = vmatprep.subr.bf16.mxu0 %v9486_v26  ;;  %v2270_v24 = vld [vmem:[%s10802_s29 + $0x3b98] sm:$0xff]  ;;  %v9506_v32 = vpack.c.bf16 %v2280_v62, %v2268_v22  ;;  %v2377_v62 = vld [vmem:[%s10802_s29 + $0x3ef0] sm:$0xff] }
 0x59c   : > { %9999 = vmatprep.subr.bf16.mxu1 %v9998_v33  ;;  %v2282_v26 = vld [vmem:[%s10802_s29 + $0x3bf8] sm:$0xff]  ;;  %v2267_v33 = vld [vmem:[%s10802_s29 + $0x3b80] sm:$0xff] }
 0x59d   : > { %v10018_v36 = vpack.c.bf16 %v2282_v26, %v2270_v24  ;;  %v9508_v42 = vpack.c.bf16 %v2279_v34, %v2267_v33  ;;  %v2388_v24 = vld [vmem:[%s10802_s29 + $0x3f48] sm:$0xff]  ;;  %v2390_v26 = vld [vmem:[%s10802_s29 + $0x3f58] sm:$0xff]  ;;  %v2387_v34 = vld [vmem:[%s10802_s29 + $0x3f40] sm:$0xff] }
 0x59e   : > { %9489 = vmatpush1.bf16.msra.mxu0 %v9488_v38  ;;  %v2304_v38 = vld [vmem:[%s10802_s29 + $0x3ca8] sm:$0xff] }
 0x59f   : > { %10001 = vmatpush1.bf16.msra.mxu1 %v10000_v39  ;;  %9491 = vmatprep.subr.bf16.mxu0 %v9490_v41  ;;  %v2294_v39 = vld [vmem:[%s10802_s29 + $0x3c58] sm:$0xff]  ;;  %v9510_v46 = vpack.c.bf16 %v2304_v38, %v2292_v28  ;;  %v2401_v28 = vld [vmem:[%s10802_s29 + $0x3fb0] sm:$0xff]  ;;  %v2412_v38 = vld [vmem:[%s10802_s29 + $0x4008] sm:$0xff] }
 0x5a0   : > { %10003 = vmatprep.subr.bf16.mxu1 %v10002_v47  ;;  %v2306_v41 = vld [vmem:[%s10802_s29 + $0x3cb8] sm:$0xff]  ;;  %v2291_v47 = vld [vmem:[%s10802_s29 + $0x3c40] sm:$0xff] }
 0x5a1   : > { %v10022_v51 = vpack.c.bf16 %v2306_v41, %v2294_v39  ;;  %v9512_v55 = vpack.c.bf16 %v2303_v49, %v2291_v47  ;;  %v2424_v39 = vld [vmem:[%s10802_s29 + $0x4068] sm:$0xff]  ;;  %v2414_v41 = vld [vmem:[%s10802_s29 + $0x4018] sm:$0xff]  ;;  %v2411_v49 = vld [vmem:[%s10802_s29 + $0x4000] sm:$0xff] }
 0x5a2   : > { %9493 = vmatpush1.bf16.msra.mxu0 %v9492_v53  ;;  %v2328_v53 = vld [vmem:[%s10802_s29 + $0x3d68] sm:$0xff]  ;;  %v9530_v47 = vpack.c.bf16 %v2424_v39, %v2412_v38  ;;  %v2521_v38 = vld [vmem:[%s10802_s29 + $0x4370] sm:$0xff] }
 0x5a3   : > { %10005 = vmatpush1.bf16.msra.mxu1 %v10004_v16  ;;  %9495 = vmatprep.subr.bf16.mxu0 %v9494_v54  ;;  %v2318_v16 = vld [vmem:[%s10802_s29 + $0x3d18] sm:$0xff]  ;;  %v9514_v56 = vpack.c.bf16 %v2328_v53, %v2316_v52  ;;  %v2425_v52 = vld [vmem:[%s10802_s29 + $0x4070] sm:$0xff]  ;;  %v2436_v53 = vld [vmem:[%s10802_s29 + $0x40c8] sm:$0xff] }
 0x5a4   : > { %10007 = vmatprep.subr.bf16.mxu1 %v10006_v57  ;;  %v2330_v54 = vld [vmem:[%s10802_s29 + $0x3d78] sm:$0xff]  ;;  %v2315_v57 = vld [vmem:[%s10802_s29 + $0x3d00] sm:$0xff]  ;;  %v2532_v39 = vld [vmem:[%s10802_s29 + $0x43c8] sm:$0xff] }
 0x5a5   : > { %v10026_v61 = vpack.c.bf16 %v2330_v54, %v2318_v16  ;;  %v9516_v25 = vpack.c.bf16 %v2327_v58, %v2315_v57  ;;  %v2448_v16 = vld [vmem:[%s10802_s29 + $0x4128] sm:$0xff]  ;;  %v2438_v54 = vld [vmem:[%s10802_s29 + $0x40d8] sm:$0xff]  ;;  %v2435_v58 = vld [vmem:[%s10802_s29 + $0x40c0] sm:$0xff] }
 0x5a6   : > { %9497 = vmatpush1.bf16.msra.mxu0 %v9496_v1  ;;  %v2352_v1 = vld [vmem:[%s10802_s29 + $0x3e28] sm:$0xff]  ;;  %v9534_v57 = vpack.c.bf16 %v2448_v16, %v2436_v53  ;;  %v2545_v53 = vld [vmem:[%s10802_s29 + $0x4430] sm:$0xff] }
 0x5a7   : > { %10009 = vmatpush1.bf16.msra.mxu1 %v10008_v31  ;;  %9499 = vmatprep.subr.bf16.mxu0 %v9498_v2  ;;  %v2342_v31 = vld [vmem:[%s10802_s29 + $0x3dd8] sm:$0xff]  ;;  %v9518_v4 = vpack.c.bf16 %v2352_v1, %v2340_v0  ;;  %v2449_v0 = vld [vmem:[%s10802_s29 + $0x4130] sm:$0xff]  ;;  %v2460_v1 = vld [vmem:[%s10802_s29 + $0x4188] sm:$0xff] }
 0x5a8   : > { %10011 = vmatprep.subr.bf16.mxu1 %v10010_v5  ;;  %v2354_v2 = vld [vmem:[%s10802_s29 + $0x3e38] sm:$0xff]  ;;  %v2339_v5 = vld [vmem:[%s10802_s29 + $0x3dc0] sm:$0xff]  ;;  %v2556_v16 = vld [vmem:[%s10802_s29 + $0x4488] sm:$0xff] }
 0x5a9   : > { %v10030_v7 = vpack.c.bf16 %v2354_v2, %v2342_v31  ;;  %v2472_v31 = vld [vmem:[%s10802_s29 + $0x41e8] sm:$0xff]  ;;  %v2462_v2 = vld [vmem:[%s10802_s29 + $0x4198] sm:$0xff] }
 0x5aa   : > { %9501 = vmatpush1.bf16.msra.mxu0 %v9500_v12  ;;  %v2376_v12 = vld [vmem:[%s10802_s29 + $0x3ee8] sm:$0xff] }
 0x5ab   : > { %10013 = vmatpush1.bf16.msra.mxu1 %v10012_v13  ;;  %9503 = vmatprep.subr.bf16.mxu0 %v9502_v14  ;;  %v2378_v13 = vld [vmem:[%s10802_s29 + $0x3ef8] sm:$0xff]  ;;  %v9520_v14 = vpack.c.bf16 %v2351_v6, %v2339_v5  ;;  %v9522_v17 = vpack.c.bf16 %v2376_v12, %v2364_v10  ;;  %v9538_v5 = vpack.c.bf16 %v2472_v31, %v2460_v1  ;;  %v2459_v6 = vld [vmem:[%s10802_s29 + $0x4180] sm:$0xff]  ;;  %v2473_v10 = vld [vmem:[%s10802_s29 + $0x41f0] sm:$0xff] }
 0x5ac   : > { %10015 = vmatprep.subr.bf16.mxu1 %v10014_v19  ;;  %v2375_v19 = vld [vmem:[%s10802_s29 + $0x3ee0] sm:$0xff]  ;;  %v2484_v12 = vld [vmem:[%s10802_s29 + $0x4248] sm:$0xff]  ;;  %v2569_v1 = vld [vmem:[%s10802_s29 + $0x44f0] sm:$0xff] }
 0x5ad   : > { %v2580_v31 = vld [vmem:[%s10802_s29 + $0x4548] sm:$0xff] }
 0x5ae   : > { %9505 = vmatpush1.bf16.msra.mxu0 %v9504_v27  ;;  %v2402_v27 = vld [vmem:[%s10802_s29 + $0x3fb8] sm:$0xff] }
 0x5af   : > { %10017 = vmatpush1.bf16.msra.mxu1 %v10016_v29  ;;  %9507 = vmatprep.subr.bf16.mxu0 %v9506_v32  ;;  %v9524_v29 = vpack.c.bf16 %v2375_v19, %v2363_v18  ;;  %v10036_v32 = vpack.c.bf16 %v2377_v62, %v2365_v21  ;;  %v10038_v37 = vpack.c.bf16 %v2402_v27, %v2390_v26  ;;  %v2483_v19 = vld [vmem:[%s10802_s29 + $0x4240] sm:$0xff]  ;;  %v2520_v26 = vld [vmem:[%s10802_s29 + $0x4368] sm:$0xff]  ;;  %v2510_v27 = vld [vmem:[%s10802_s29 + $0x4318] sm:$0xff] }
 0x5b0   : > { %10019 = vmatprep.subr.bf16.mxu1 %v10018_v36  ;;  %v2389_v36 = vld [vmem:[%s10802_s29 + $0x3f50] sm:$0xff]  ;;  %v2495_v21 = vld [vmem:[%s10802_s29 + $0x42a0] sm:$0xff] }
 0x5b2   : > { %9509 = vmatpush1.bf16.msra.mxu0 %v9508_v42  ;;  %v2426_v42 = vld [vmem:[%s10802_s29 + $0x4078] sm:$0xff] }
 0x5b3   : > { %10021 = vmatpush1.bf16.msra.mxu1 %v10020_v44  ;;  %9511 = vmatprep.subr.bf16.mxu0 %v9510_v46  ;;  %v9528_v44 = vpack.c.bf16 %v2399_v35, %v2387_v34  ;;  %v10040_v46 = vpack.c.bf16 %v2401_v28, %v2389_v36  ;;  %v10042_v43 = vpack.c.bf16 %v2426_v42, %v2414_v41  ;;  %v2507_v35 = vld [vmem:[%s10802_s29 + $0x4300] sm:$0xff]  ;;  %v2544_v41 = vld [vmem:[%s10802_s29 + $0x4428] sm:$0xff]  ;;  %v2534_v42 = vld [vmem:[%s10802_s29 + $0x43d8] sm:$0xff] }
 0x5b4   : > { %10023 = vmatprep.subr.bf16.mxu1 %v10022_v51  ;;  %v2413_v51 = vld [vmem:[%s10802_s29 + $0x4010] sm:$0xff]  ;;  %v2519_v36 = vld [vmem:[%s10802_s29 + $0x4360] sm:$0xff] }
 0x5b5   : > { %6056 = vmatmul.mubr.f32.vlgmr.msra.gmra.mrb[4].mxu0 %v11537_v45 }
 0x5b6   : > { %9513 = vmatpush1.bf16.msra.mxu0 %v9512_v55  ;;  %6624 = vmatmul.mubr.f32.vlgmr.msra.gmra.mrb[4].mxu1 %v11537_v45  ;;  %v2366_v45 = vld [vmem:[%s10802_s29 + $0x3e98] sm:$0xff] }
 0x5b7   : > { %10025 = vmatpush1.bf16.msra.mxu1 %v10024_v9  ;;  %9515 = vmatprep.subr.bf16.mxu0 %v9514_v56  ;;  %v10034_v22 = vpack.c.bf16 %v2378_v13, %v2366_v45  ;;  %v2450_v55 = vld [vmem:[%s10802_s29 + $0x4138] sm:$0xff]  ;;  %v9532_v9 = vpack.c.bf16 %v2423_v50, %v2411_v49  ;;  %v10044_v56 = vpack.c.bf16 %v2425_v52, %v2413_v51  ;;  %v2496_v45 = vld [vmem:[%s10802_s29 + $0x42a8] sm:$0xff]  ;;  %v2531_v50 = vld [vmem:[%s10802_s29 + $0x43c0] sm:$0xff] }
 0x5b8   : > { %10027 = vmatprep.subr.bf16.mxu1 %v10026_v61  ;;  %6126 = vmatprep.mubr.f32.mxu0 %v11548_v60  ;;  %v2437_v61 = vld [vmem:[%s10802_s29 + $0x40d0] sm:$0xff]  ;;  %v10046_v63 = vpack.c.bf16 %v2450_v55, %v2438_v54  ;;  %v2486_v13 = vld [vmem:[%s10802_s29 + $0x4258] sm:$0xff]  ;;  %v9542_v18 = vpack.c.bf16 %v2496_v45, %v2484_v12  ;;  %v9550_v49 = vpack.c.bf16 %v2544_v41, %v2532_v39  ;;  %v2543_v51 = vld [vmem:[%s10802_s29 + $0x4420] sm:$0xff] }
 0x5b9   : > { %6694 = vmatprep.mubr.f32.mxu1 %v11548_v60  ;;  %v2400_v60 = vld [vmem:[%s10802_s29 + $0x3fa8] sm:$0xff]  ;;  %v2558_v55 = vld [vmem:[%s10802_s29 + $0x4498] sm:$0xff]  ;;  %v2593_v12 = vld [vmem:[%s10802_s29 + $0x45b0] sm:$0xff] }
 0x5ba   : > { %9517 = vmatpush1.bf16.msra.mxu0 %v9516_v25  ;;  %v9526_v33 = vpack.c.bf16 %v2400_v60, %v2388_v24  ;;  %v2474_v25 = vld [vmem:[%s10802_s29 + $0x41f8] sm:$0xff]  ;;  %v2497_v24 = vld [vmem:[%s10802_s29 + $0x42b0] sm:$0xff]  ;;  %v2508_v60 = vld [vmem:[%s10802_s29 + $0x4308] sm:$0xff] }
 0x5bb   : > { %10029 = vmatpush1.bf16.msra.mxu1 %v10028_v3  ;;  %9519 = vmatprep.subr.bf16.mxu0 %v9518_v4  ;;  %v9536_v3 = vpack.c.bf16 %v2447_v59, %v2435_v58  ;;  %v10048_v4 = vpack.c.bf16 %v2449_v0, %v2437_v61  ;;  %v10050_v48 = vpack.c.bf16 %v2474_v25, %v2462_v2  ;;  %v2568_v54 = vld [vmem:[%s10802_s29 + $0x44e8] sm:$0xff]  ;;  %v2555_v59 = vld [vmem:[%s10802_s29 + $0x4480] sm:$0xff]  ;;  %v2582_v25 = vld [vmem:[%s10802_s29 + $0x4558] sm:$0xff] }
 0x5bc   : > { %10031 = vmatprep.subr.bf16.mxu1 %v10030_v7  ;;  %v2461_v7 = vld [vmem:[%s10802_s29 + $0x4190] sm:$0xff]  ;;  %v9546_v34 = vpack.c.bf16 %v2520_v26, %v2508_v60  ;;  %v9554_v58 = vpack.c.bf16 %v2568_v54, %v2556_v16  ;;  %v2567_v61 = vld [vmem:[%s10802_s29 + $0x44e0] sm:$0xff]  ;;  %v2592_v2 = vld [vmem:[%s10802_s29 + $0x45a8] sm:$0xff] }
 0x5bd   : > { %v2604_v45 = vld [vmem:[%s10802_s29 + $0x4608] sm:$0xff]  ;;  %v2617_v60 = vld [vmem:[%s10802_s29 + $0x4670] sm:$0xff] }
 0x5be   : > { %9521 = vmatpush1.bf16.msra.mxu0 %v9520_v14  ;;  %v2498_v14 = vld [vmem:[%s10802_s29 + $0x42b8] sm:$0xff]  ;;  %v2628_v26 = vld [vmem:[%s10802_s29 + $0x46c8] sm:$0xff]  ;;  %v2641_v39 = vld [vmem:[%s10802_s29 + $0x4730] sm:$0xff] }
 0x5bf   : > { %10033 = vmatpush1.bf16.msra.mxu1 %v10032_v15  ;;  %9523 = vmatprep.subr.bf16.mxu0 %v9522_v17  ;;  %v9540_v15 = vpack.c.bf16 %v2471_v20, %v2459_v6  ;;  %v10052_v17 = vpack.c.bf16 %v2473_v10, %v2461_v7  ;;  %v10054_v62 = vpack.c.bf16 %v2498_v14, %v2486_v13  ;;  %v2579_v20 = vld [vmem:[%s10802_s29 + $0x4540] sm:$0xff]  ;;  %v2616_v13 = vld [vmem:[%s10802_s29 + $0x4668] sm:$0xff]  ;;  %v2606_v14 = vld [vmem:[%s10802_s29 + $0x4618] sm:$0xff] }
 0x5c0   : > { %10035 = vmatprep.subr.bf16.mxu1 %v10034_v22  ;;  %v2485_v22 = vld [vmem:[%s10802_s29 + $0x4250] sm:$0xff]  ;;  %v9558_v6 = vpack.c.bf16 %v2592_v2, %v2580_v31  ;;  %v2591_v7 = vld [vmem:[%s10802_s29 + $0x45a0] sm:$0xff]  ;;  %v2652_v41 = vld [vmem:[%s10802_s29 + $0x4788] sm:$0xff] }
 0x5c1   : > { %v2665_v16 = vld [vmem:[%s10802_s29 + $0x47f0] sm:$0xff]  ;;  %v2676_v54 = vld [vmem:[%s10802_s29 + $0x4848] sm:$0xff] }
 0x5c2   : > { %9525 = vmatpush1.bf16.msra.mxu0 %v9524_v29  ;;  %v2522_v29 = vld [vmem:[%s10802_s29 + $0x4378] sm:$0xff]  ;;  %v2689_v31 = vld [vmem:[%s10802_s29 + $0x48b0] sm:$0xff]  ;;  %v2700_v2 = vld [vmem:[%s10802_s29 + $0x4908] sm:$0xff] }
 0x5c3   : > { %10037 = vmatpush1.bf16.msra.mxu1 %v10036_v32  ;;  %9527 = vmatprep.subr.bf16.mxu0 %v9526_v33  ;;  %v9544_v32 = vpack.c.bf16 %v2495_v21, %v2483_v19  ;;  %v10056_v33 = vpack.c.bf16 %v2497_v24, %v2485_v22  ;;  %v10058_v28 = vpack.c.bf16 %v2522_v29, %v2510_v27  ;;  %v2603_v21 = vld [vmem:[%s10802_s29 + $0x4600] sm:$0xff]  ;;  %v2640_v27 = vld [vmem:[%s10802_s29 + $0x4728] sm:$0xff]  ;;  %v2630_v29 = vld [vmem:[%s10802_s29 + $0x46d8] sm:$0xff] }
 0x5c4   : > { %10039 = vmatprep.subr.bf16.mxu1 %v10038_v37  ;;  %v2509_v37 = vld [vmem:[%s10802_s29 + $0x4310] sm:$0xff]  ;;  %v9562_v19 = vpack.c.bf16 %v2616_v13, %v2604_v45  ;;  %v2615_v22 = vld [vmem:[%s10802_s29 + $0x4660] sm:$0xff]  ;;  %v2724_v13 = vld [vmem:[%s10802_s29 + $0x49c8] sm:$0xff] }
 0x5c5   : > { %v2713_v45 = vld [vmem:[%s10802_s29 + $0x4970] sm:$0xff] }
 0x5c6   : > { %9529 = vmatpush1.bf16.msra.mxu0 %v9528_v44  ;;  %v2546_v44 = vld [vmem:[%s10802_s29 + $0x4438] sm:$0xff] }
 0x5c7   : > { %10041 = vmatpush1.bf16.msra.mxu1 %v10040_v46  ;;  %9531 = vmatprep.subr.bf16.mxu0 %v9530_v47  ;;  %v9548_v46 = vpack.c.bf16 %v2519_v36, %v2507_v35  ;;  %v10060_v47 = vpack.c.bf16 %v2521_v38, %v2509_v37  ;;  %v10062_v52 = vpack.c.bf16 %v2546_v44, %v2534_v42  ;;  %v2627_v36 = vld [vmem:[%s10802_s29 + $0x46c0] sm:$0xff]  ;;  %v2664_v42 = vld [vmem:[%s10802_s29 + $0x47e8] sm:$0xff]  ;;  %v2654_v44 = vld [vmem:[%s10802_s29 + $0x4798] sm:$0xff] }
 0x5c8   : > { %10043 = vmatprep.subr.bf16.mxu1 %v10042_v43  ;;  %v2533_v43 = vld [vmem:[%s10802_s29 + $0x43d0] sm:$0xff]  ;;  %v9566_v35 = vpack.c.bf16 %v2640_v27, %v2628_v26  ;;  %v2639_v37 = vld [vmem:[%s10802_s29 + $0x4720] sm:$0xff]  ;;  %v2748_v27 = vld [vmem:[%s10802_s29 + $0x4a88] sm:$0xff] }
 0x5c9   : > { %v2737_v26 = vld [vmem:[%s10802_s29 + $0x4a30] sm:$0xff] }
 0x5ca   : > { %9533 = vmatpush1.bf16.msra.mxu0 %v9532_v9  ;;  %v2570_v9 = vld [vmem:[%s10802_s29 + $0x44f8] sm:$0xff] }
 0x5cb   : > { %10045 = vmatpush1.bf16.msra.mxu1 %v10044_v56  ;;  %9535 = vmatprep.subr.bf16.mxu0 %v9534_v57  ;;  %v9552_v56 = vpack.c.bf16 %v2543_v51, %v2531_v50  ;;  %v10064_v57 = vpack.c.bf16 %v2545_v53, %v2533_v43  ;;  %v10066_v0 = vpack.c.bf16 %v2570_v9, %v2558_v55  ;;  %v2651_v51 = vld [vmem:[%s10802_s29 + $0x4780] sm:$0xff]  ;;  %v2688_v55 = vld [vmem:[%s10802_s29 + $0x48a8] sm:$0xff]  ;;  %v2678_v9 = vld [vmem:[%s10802_s29 + $0x4858] sm:$0xff] }
 0x5cc   : > { %10047 = vmatprep.subr.bf16.mxu1 %v10046_v63  ;;  %v2557_v63 = vld [vmem:[%s10802_s29 + $0x4490] sm:$0xff]  ;;  %v9570_v50 = vpack.c.bf16 %v2664_v42, %v2652_v41  ;;  %v2663_v43 = vld [vmem:[%s10802_s29 + $0x47e0] sm:$0xff]  ;;  %v2772_v41 = vld [vmem:[%s10802_s29 + $0x4b48] sm:$0xff] }
 0x5cd   : > { %v2774_v42 = vld [vmem:[%s10802_s29 + $0x4b58] sm:$0xff] }
 0x5ce   : > { %9537 = vmatpush1.bf16.msra.mxu0 %v9536_v3  ;;  %v2594_v3 = vld [vmem:[%s10802_s29 + $0x45b8] sm:$0xff] }
 0x5cf   : > { %10049 = vmatpush1.bf16.msra.mxu1 %v10048_v4  ;;  %9539 = vmatprep.subr.bf16.mxu0 %v9538_v5  ;;  %v9556_v4 = vpack.c.bf16 %v2567_v61, %v2555_v59  ;;  %v10068_v5 = vpack.c.bf16 %v2569_v1, %v2557_v63  ;;  %v10070_v10 = vpack.c.bf16 %v2594_v3, %v2582_v25  ;;  %v2675_v61 = vld [vmem:[%s10802_s29 + $0x4840] sm:$0xff]  ;;  %v2712_v25 = vld [vmem:[%s10802_s29 + $0x4968] sm:$0xff]  ;;  %v2702_v3 = vld [vmem:[%s10802_s29 + $0x4918] sm:$0xff] }
 0x5d0   : > { %10051 = vmatprep.subr.bf16.mxu1 %v10050_v48  ;;  %v2581_v48 = vld [vmem:[%s10802_s29 + $0x4550] sm:$0xff]  ;;  %v9574_v59 = vpack.c.bf16 %v2688_v55, %v2676_v54  ;;  %v2687_v63 = vld [vmem:[%s10802_s29 + $0x48a0] sm:$0xff]  ;;  %v2808_v54 = vld [vmem:[%s10802_s29 + $0x4c68] sm:$0xff] }
 0x5d1   : > { %v2798_v55 = vld [vmem:[%s10802_s29 + $0x4c18] sm:$0xff] }
 0x5d2   : > { %9541 = vmatpush1.bf16.msra.mxu0 %v9540_v15  ;;  %v2618_v15 = vld [vmem:[%s10802_s29 + $0x4678] sm:$0xff] }
 0x5d3   : > { %10053 = vmatpush1.bf16.msra.mxu1 %v10052_v17  ;;  %9543 = vmatprep.subr.bf16.mxu0 %v9542_v18  ;;  %v9560_v17 = vpack.c.bf16 %v2591_v7, %v2579_v20  ;;  %v10072_v18 = vpack.c.bf16 %v2593_v12, %v2581_v48  ;;  %v10074_v24 = vpack.c.bf16 %v2618_v15, %v2606_v14  ;;  %v2699_v7 = vld [vmem:[%s10802_s29 + $0x4900] sm:$0xff]  ;;  %v2736_v14 = vld [vmem:[%s10802_s29 + $0x4a28] sm:$0xff]  ;;  %v2726_v15 = vld [vmem:[%s10802_s29 + $0x49d8] sm:$0xff] }
 0x5d4   : > { %10055 = vmatprep.subr.bf16.mxu1 %v10054_v62  ;;  %v2605_v62 = vld [vmem:[%s10802_s29 + $0x4610] sm:$0xff]  ;;  %v9578_v20 = vpack.c.bf16 %v2712_v25, %v2700_v2  ;;  %v2711_v48 = vld [vmem:[%s10802_s29 + $0x4960] sm:$0xff]  ;;  %v2832_v2 = vld [vmem:[%s10802_s29 + $0x4d28] sm:$0xff] }
 0x5d5   : > { %v2822_v25 = vld [vmem:[%s10802_s29 + $0x4cd8] sm:$0xff] }
 0x5d6   : > { %9545 = vmatpush1.bf16.msra.mxu0 %v9544_v32  ;;  %v2642_v32 = vld [vmem:[%s10802_s29 + $0x4738] sm:$0xff] }
 0x5d7   : > { %10057 = vmatpush1.bf16.msra.mxu1 %v10056_v33  ;;  %9547 = vmatprep.subr.bf16.mxu0 %v9546_v34  ;;  %v9564_v33 = vpack.c.bf16 %v2615_v22, %v2603_v21  ;;  %v10076_v34 = vpack.c.bf16 %v2617_v60, %v2605_v62  ;;  %v10078_v38 = vpack.c.bf16 %v2642_v32, %v2630_v29  ;;  %v2723_v22 = vld [vmem:[%s10802_s29 + $0x49c0] sm:$0xff]  ;;  %v2760_v29 = vld [vmem:[%s10802_s29 + $0x4ae8] sm:$0xff]  ;;  %v2762_v32 = vld [vmem:[%s10802_s29 + $0x4af8] sm:$0xff] }
 0x5d8   : > { %10059 = vmatprep.subr.bf16.mxu1 %v10058_v28  ;;  %v2629_v28 = vld [vmem:[%s10802_s29 + $0x46d0] sm:$0xff]  ;;  %v9582_v21 = vpack.c.bf16 %v2736_v14, %v2724_v13  ;;  %v2735_v62 = vld [vmem:[%s10802_s29 + $0x4a20] sm:$0xff]  ;;  %v2856_v13 = vld [vmem:[%s10802_s29 + $0x4de8] sm:$0xff] }
 0x5d9   : > { %v2846_v14 = vld [vmem:[%s10802_s29 + $0x4d98] sm:$0xff] }
 0x5da   : > { %9549 = vmatpush1.bf16.msra.mxu0 %v9548_v46  ;;  %v2666_v46 = vld [vmem:[%s10802_s29 + $0x47f8] sm:$0xff] }
 0x5db   : > { %10061 = vmatpush1.bf16.msra.mxu1 %v10060_v47  ;;  %9551 = vmatprep.subr.bf16.mxu0 %v9550_v49  ;;  %v9568_v47 = vpack.c.bf16 %v2639_v37, %v2627_v36  ;;  %v10080_v49 = vpack.c.bf16 %v2641_v39, %v2629_v28  ;;  %v10082_v53 = vpack.c.bf16 %v2666_v46, %v2654_v44  ;;  %v2747_v36 = vld [vmem:[%s10802_s29 + $0x4a80] sm:$0xff]  ;;  %v2749_v28 = vld [vmem:[%s10802_s29 + $0x4a90] sm:$0xff]  ;;  %v2786_v44 = vld [vmem:[%s10802_s29 + $0x4bb8] sm:$0xff] }
 0x5dc   : > { %10063 = vmatprep.subr.bf16.mxu1 %v10062_v52  ;;  %v2653_v52 = vld [vmem:[%s10802_s29 + $0x4790] sm:$0xff]  ;;  %v2759_v37 = vld [vmem:[%s10802_s29 + $0x4ae0] sm:$0xff] }
 0x5dd   : > { %v2761_v39 = vld [vmem:[%s10802_s29 + $0x4af0] sm:$0xff]  ;;  %v9588_v46 = vpack.c.bf16 %v2759_v37, %v2747_v36  ;;  %v2879_v36 = vld [vmem:[%s10802_s29 + $0x4ea0] sm:$0xff] }
 0x5de   : > { %9553 = vmatpush1.bf16.msra.mxu0 %v9552_v56  ;;  %v2690_v56 = vld [vmem:[%s10802_s29 + $0x48b8] sm:$0xff]  ;;  %v2869_v37 = vld [vmem:[%s10802_s29 + $0x4e50] sm:$0xff] }
 0x5df   : > { %10065 = vmatpush1.bf16.msra.mxu1 %v10064_v57  ;;  %9555 = vmatprep.subr.bf16.mxu0 %v9554_v58  ;;  %v9572_v57 = vpack.c.bf16 %v2663_v43, %v2651_v51  ;;  %v10084_v58 = vpack.c.bf16 %v2665_v16, %v2653_v52  ;;  %v10086_v1 = vpack.c.bf16 %v2690_v56, %v2678_v9  ;;  %v2783_v51 = vld [vmem:[%s10802_s29 + $0x4ba0] sm:$0xff]  ;;  %v2773_v43 = vld [vmem:[%s10802_s29 + $0x4b50] sm:$0xff]  ;;  %v2796_v16 = vld [vmem:[%s10802_s29 + $0x4c08] sm:$0xff] }
 0x5e0   : > { %10067 = vmatprep.subr.bf16.mxu1 %v10066_v0  ;;  %v2677_v0 = vld [vmem:[%s10802_s29 + $0x4850] sm:$0xff]  ;;  %v10102_v52 = vpack.c.bf16 %v2786_v44, %v2774_v42  ;;  %v2810_v9 = vld [vmem:[%s10802_s29 + $0x4c78] sm:$0xff] }
 0x5e1   : > { %v2906_v42 = vld [vmem:[%s10802_s29 + $0x4f78] sm:$0xff] }
 0x5e2   : > { %9557 = vmatpush1.bf16.msra.mxu0 %v9556_v4  ;;  %v2714_v4 = vld [vmem:[%s10802_s29 + $0x4978] sm:$0xff] }
 0x5e3   : > { %10069 = vmatpush1.bf16.msra.mxu1 %v10068_v5  ;;  %9559 = vmatprep.subr.bf16.mxu0 %v9558_v6  ;;  %v9576_v5 = vpack.c.bf16 %v2687_v63, %v2675_v61  ;;  %v10088_v6 = vpack.c.bf16 %v2689_v31, %v2677_v0  ;;  %v10090_v12 = vpack.c.bf16 %v2714_v4, %v2702_v3  ;;  %v2807_v61 = vld [vmem:[%s10802_s29 + $0x4c60] sm:$0xff]  ;;  %v2797_v63 = vld [vmem:[%s10802_s29 + $0x4c10] sm:$0xff]  ;;  %v2820_v31 = vld [vmem:[%s10802_s29 + $0x4cc8] sm:$0xff] }
 0x5e4   : > { %10071 = vmatprep.subr.bf16.mxu1 %v10070_v10  ;;  %v2701_v10 = vld [vmem:[%s10802_s29 + $0x4910] sm:$0xff]  ;;  %v10106_v0 = vpack.c.bf16 %v2810_v9, %v2798_v55  ;;  %v2834_v3 = vld [vmem:[%s10802_s29 + $0x4d38] sm:$0xff] }
 0x5e5   : > { %v2930_v55 = vld [vmem:[%s10802_s29 + $0x5038] sm:$0xff] }
 0x5e6   : > { %9561 = vmatpush1.bf16.msra.mxu0 %v9560_v17  ;;  %v2738_v17 = vld [vmem:[%s10802_s29 + $0x4a38] sm:$0xff] }
 0x5e7   : > { %10073 = vmatpush1.bf16.msra.mxu1 %v10072_v18  ;;  %9563 = vmatprep.subr.bf16.mxu0 %v9562_v19  ;;  %v9580_v18 = vpack.c.bf16 %v2711_v48, %v2699_v7  ;;  %v10092_v19 = vpack.c.bf16 %v2713_v45, %v2701_v10  ;;  %v10094_v60 = vpack.c.bf16 %v2738_v17, %v2726_v15  ;;  %v2831_v7 = vld [vmem:[%s10802_s29 + $0x4d20] sm:$0xff]  ;;  %v2821_v48 = vld [vmem:[%s10802_s29 + $0x4cd0] sm:$0xff]  ;;  %v2844_v45 = vld [vmem:[%s10802_s29 + $0x4d88] sm:$0xff] }
 0x5e8   : > { %10075 = vmatprep.subr.bf16.mxu1 %v10074_v24  ;;  %v2725_v24 = vld [vmem:[%s10802_s29 + $0x49d0] sm:$0xff]  ;;  %v10110_v10 = vpack.c.bf16 %v2834_v3, %v2822_v25  ;;  %v2858_v15 = vld [vmem:[%s10802_s29 + $0x4df8] sm:$0xff] }
 0x5e9   : > { %v2954_v25 = vld [vmem:[%s10802_s29 + $0x50f8] sm:$0xff] }
 0x5ea   : > { %9565 = vmatpush1.bf16.msra.mxu0 %v9564_v33  ;;  %v9584_v33 = vpack.c.bf16 %v2735_v62, %v2723_v22  ;;  %v2855_v22 = vld [vmem:[%s10802_s29 + $0x4de0] sm:$0xff]  ;;  %v2845_v62 = vld [vmem:[%s10802_s29 + $0x4d90] sm:$0xff] }
 0x5eb   : > { %10077 = vmatpush1.bf16.msra.mxu1 %v10076_v34  ;;  %9567 = vmatprep.subr.bf16.mxu0 %v9566_v35  ;;  %v10096_v34 = vpack.c.bf16 %v2737_v26, %v2725_v24  ;;  %v9586_v35 = vpack.c.bf16 %v2760_v29, %v2748_v27  ;;  %v10114_v24 = vpack.c.bf16 %v2858_v15, %v2846_v14  ;;  %v2868_v26 = vld [vmem:[%s10802_s29 + $0x4e48] sm:$0xff]  ;;  %v2870_v29 = vld [vmem:[%s10802_s29 + $0x4e58] sm:$0xff] }
 0x5ec   : > { %10079 = vmatprep.subr.bf16.mxu1 %v10078_v38  ;;  %v2880_v27 = vld [vmem:[%s10802_s29 + $0x4ea8] sm:$0xff]  ;;  %v2978_v14 = vld [vmem:[%s10802_s29 + $0x51b8] sm:$0xff] }
 0x5ee   : > { %9569 = vmatpush1.bf16.msra.mxu0 %v9568_v47  ;;  %v10100_v47 = vpack.c.bf16 %v2761_v39, %v2749_v28  ;;  %v2892_v39 = vld [vmem:[%s10802_s29 + $0x4f08] sm:$0xff] }
 0x5ef   : > { %10081 = vmatpush1.bf16.msra.mxu1 %v10080_v49  ;;  %9571 = vmatprep.subr.bf16.mxu0 %v9570_v50  ;;  %v2771_v50 = vld [vmem:[%s10802_s29 + $0x4b40] sm:$0xff] }
 0x5f0   : > { %10083 = vmatprep.subr.bf16.mxu1 %v10082_v53  ;;  %v2785_v53 = vld [vmem:[%s10802_s29 + $0x4bb0] sm:$0xff]  ;;  %v9592_v56 = vpack.c.bf16 %v2783_v51, %v2771_v50  ;;  %v2903_v50 = vld [vmem:[%s10802_s29 + $0x4f60] sm:$0xff] }
 0x5f1   : > { %v2893_v51 = vld [vmem:[%s10802_s29 + $0x4f10] sm:$0xff] }
 0x5f2   : > { %9573 = vmatpush1.bf16.msra.mxu0 %v9572_v57  ;;  %v10104_v57 = vpack.c.bf16 %v2785_v53, %v2773_v43  ;;  %v2916_v53 = vld [vmem:[%s10802_s29 + $0x4fc8] sm:$0xff] }
 0x5f3   : > { %10085 = vmatpush1.bf16.msra.mxu1 %v10084_v58  ;;  %9575 = vmatprep.subr.bf16.mxu0 %v9574_v59  ;;  %v9594_v58 = vpack.c.bf16 %v2808_v54, %v2796_v16  ;;  %v2795_v59 = vld [vmem:[%s10802_s29 + $0x4c00] sm:$0xff]  ;;  %v2928_v16 = vld [vmem:[%s10802_s29 + $0x5028] sm:$0xff]  ;;  %v2918_v54 = vld [vmem:[%s10802_s29 + $0x4fd8] sm:$0xff] }
 0x5f4   : > { %10087 = vmatprep.subr.bf16.mxu1 %v10086_v1  ;;  %v2809_v1 = vld [vmem:[%s10802_s29 + $0x4c70] sm:$0xff]  ;;  %v9596_v4 = vpack.c.bf16 %v2807_v61, %v2795_v59  ;;  %v2927_v59 = vld [vmem:[%s10802_s29 + $0x5020] sm:$0xff] }
 0x5f5   : > { %6127 = vmatmul.mubr.f32.vlgmr.msra.gmra.mrb[4].mxu0 %v11675_v23  ;;  %v2917_v61 = vld [vmem:[%s10802_s29 + $0x4fd0] sm:$0xff] }
 0x5f6   : > { %9577 = vmatpush1.bf16.msra.mxu0 %v9576_v5  ;;  %6695 = vmatmul.mubr.f32.vlgmr.msra.gmra.mrb[4].mxu1 %v11675_v23  ;;  %v2750_v23 = vld [vmem:[%s10802_s29 + $0x4a98] sm:$0xff]  ;;  %v10108_v5 = vpack.c.bf16 %v2809_v1, %v2797_v63  ;;  %v10126_v63 = vpack.c.bf16 %v2930_v55, %v2918_v54  ;;  %v2940_v1 = vld [vmem:[%s10802_s29 + $0x5088] sm:$0xff] }
 0x5f7   : > { %10089 = vmatpush1.bf16.msra.mxu1 %v10088_v6  ;;  %9579 = vmatprep.subr.bf16.mxu0 %v9578_v20  ;;  %v10098_v38 = vpack.c.bf16 %v2762_v32, %v2750_v23  ;;  %v9598_v6 = vpack.c.bf16 %v2832_v2, %v2820_v31  ;;  %v2819_v20 = vld [vmem:[%s10802_s29 + $0x4cc0] sm:$0xff]  ;;  %v2882_v23 = vld [vmem:[%s10802_s29 + $0x4eb8] sm:$0xff]  ;;  %v2952_v31 = vld [vmem:[%s10802_s29 + $0x50e8] sm:$0xff] }
 0x5f8   : > { %10091 = vmatprep.subr.bf16.mxu1 %v10090_v12  ;;  %6197 = vmatprep.mubr.f32.mxu0 %v11686_v40  ;;  %v2833_v12 = vld [vmem:[%s10802_s29 + $0x4d30] sm:$0xff]  ;;  %v9600_v17 = vpack.c.bf16 %v2831_v7, %v2819_v20  ;;  %v10118_v28 = vpack.c.bf16 %v2882_v23, %v2870_v29  ;;  %v2942_v2 = vld [vmem:[%s10802_s29 + $0x5098] sm:$0xff]  ;;  %v2951_v20 = vld [vmem:[%s10802_s29 + $0x50e0] sm:$0xff] }
 0x5f9   : > { %6765 = vmatprep.mubr.f32.mxu1 %v11686_v40  ;;  %v2784_v40 = vld [vmem:[%s10802_s29 + $0x4ba8] sm:$0xff]  ;;  %v2941_v7 = vld [vmem:[%s10802_s29 + $0x5090] sm:$0xff]  ;;  %v3002_v29 = vld [vmem:[%s10802_s29 + $0x5278] sm:$0xff] }
 0x5fa   : > { %9581 = vmatpush1.bf16.msra.mxu0 %v9580_v18  ;;  %v9590_v49 = vpack.c.bf16 %v2784_v40, %v2772_v41  ;;  %v10112_v18 = vpack.c.bf16 %v2833_v12, %v2821_v48  ;;  %v2904_v41 = vld [vmem:[%s10802_s29 + $0x4f68] sm:$0xff]  ;;  %v2894_v40 = vld [vmem:[%s10802_s29 + $0x4f18] sm:$0xff]  ;;  %v10130_v48 = vpack.c.bf16 %v2954_v25, %v2942_v2 }
 0x5fb   : > { %10093 = vmatpush1.bf16.msra.mxu1 %v10092_v19  ;;  %9583 = vmatprep.subr.bf16.mxu0 %v9582_v21  ;;  %v9602_v19 = vpack.c.bf16 %v2856_v13, %v2844_v45  ;;  %v2843_v21 = vld [vmem:[%s10802_s29 + $0x4d80] sm:$0xff]  ;;  %v10122_v43 = vpack.c.bf16 %v2906_v42, %v2894_v40  ;;  %v2964_v12 = vld [vmem:[%s10802_s29 + $0x5148] sm:$0xff]  ;;  %v2966_v13 = vld [vmem:[%s10802_s29 + $0x5158] sm:$0xff] }
 0x5fc   : > { %10095 = vmatprep.subr.bf16.mxu1 %v10094_v60  ;;  %v2857_v60 = vld [vmem:[%s10802_s29 + $0x4df0] sm:$0xff]  ;;  %v9604_v32 = vpack.c.bf16 %v2855_v22, %v2843_v21  ;;  %v2976_v45 = vld [vmem:[%s10802_s29 + $0x51a8] sm:$0xff]  ;;  %v2975_v21 = vld [vmem:[%s10802_s29 + $0x51a0] sm:$0xff] }
 0x5fd   : > { %v2965_v22 = vld [vmem:[%s10802_s29 + $0x5150] sm:$0xff]  ;;  %v3026_v40 = vld [vmem:[%s10802_s29 + $0x5338] sm:$0xff] }
 0x5fe   : > { %9585 = vmatpush1.bf16.msra.mxu0 %v9584_v33  ;;  %v10116_v33 = vpack.c.bf16 %v2857_v60, %v2845_v62  ;;  %v10134_v62 = vpack.c.bf16 %v2978_v14, %v2966_v13  ;;  %v2988_v60 = vld [vmem:[%s10802_s29 + $0x5208] sm:$0xff]  ;;  %v3050_v54 = vld [vmem:[%s10802_s29 + $0x53f8] sm:$0xff] }
 0x5ff   : > { %10097 = vmatpush1.bf16.msra.mxu1 %v10096_v34  ;;  %9587 = vmatprep.subr.bf16.mxu0 %v9586_v35  ;;  %v9606_v34 = vpack.c.bf16 %v2880_v27, %v2868_v26  ;;  %v2867_v35 = vld [vmem:[%s10802_s29 + $0x4e40] sm:$0xff]  ;;  %v3000_v26 = vld [vmem:[%s10802_s29 + $0x5268] sm:$0xff]  ;;  %v2990_v27 = vld [vmem:[%s10802_s29 + $0x5218] sm:$0xff] }
 0x600   : > { %10099 = vmatprep.subr.bf16.mxu1 %v10098_v38  ;;  %v2881_v38 = vld [vmem:[%s10802_s29 + $0x4eb0] sm:$0xff]  ;;  %v9608_v44 = vpack.c.bf16 %v2879_v36, %v2867_v35  ;;  %v2999_v35 = vld [vmem:[%s10802_s29 + $0x5260] sm:$0xff]  ;;  %v3074_v2 = vld [vmem:[%s10802_s29 + $0x54b8] sm:$0xff] }
 0x601   : > { %v2989_v36 = vld [vmem:[%s10802_s29 + $0x5210] sm:$0xff]  ;;  %v3098_v13 = vld [vmem:[%s10802_s29 + $0x5578] sm:$0xff] }
 0x602   : > { %9589 = vmatpush1.bf16.msra.mxu0 %v9588_v46  ;;  %v10120_v46 = vpack.c.bf16 %v2881_v38, %v2869_v37  ;;  %v10138_v37 = vpack.c.bf16 %v3002_v29, %v2990_v27  ;;  %v3012_v38 = vld [vmem:[%s10802_s29 + $0x52c8] sm:$0xff]  ;;  %v3122_v27 = vld [vmem:[%s10802_s29 + $0x5638] sm:$0xff] }
 0x603   : > { %10101 = vmatpush1.bf16.msra.mxu1 %v10100_v47  ;;  %9591 = vmatprep.subr.bf16.mxu0 %v9590_v49  ;;  %v9610_v47 = vpack.c.bf16 %v2904_v41, %v2892_v39  ;;  %v2891_v49 = vld [vmem:[%s10802_s29 + $0x4f00] sm:$0xff]  ;;  %v3024_v39 = vld [vmem:[%s10802_s29 + $0x5328] sm:$0xff]  ;;  %v3014_v41 = vld [vmem:[%s10802_s29 + $0x52d8] sm:$0xff] }
 0x604   : > { %10103 = vmatprep.subr.bf16.mxu1 %v10102_v52  ;;  %v2905_v52 = vld [vmem:[%s10802_s29 + $0x4f70] sm:$0xff]  ;;  %v9612_v9 = vpack.c.bf16 %v2903_v50, %v2891_v49  ;;  %v3023_v49 = vld [vmem:[%s10802_s29 + $0x5320] sm:$0xff] }
 0x605   : > { %v3013_v50 = vld [vmem:[%s10802_s29 + $0x52d0] sm:$0xff] }
 0x606   : > { %9593 = vmatpush1.bf16.msra.mxu0 %v9592_v56  ;;  %v10124_v56 = vpack.c.bf16 %v2905_v52, %v2893_v51  ;;  %v10142_v51 = vpack.c.bf16 %v3026_v40, %v3014_v41  ;;  %v3036_v52 = vld [vmem:[%s10802_s29 + $0x5388] sm:$0xff] }
 0x607   : > { %10105 = vmatpush1.bf16.msra.mxu1 %v10104_v57  ;;  %9595 = vmatprep.subr.bf16.mxu0 %v9594_v58  ;;  %v9614_v57 = vpack.c.bf16 %v2928_v16, %v2916_v53  ;;  %v2915_v58 = vld [vmem:[%s10802_s29 + $0x4fc0] sm:$0xff]  ;;  %v3048_v53 = vld [vmem:[%s10802_s29 + $0x53e8] sm:$0xff]  ;;  %v3038_v16 = vld [vmem:[%s10802_s29 + $0x5398] sm:$0xff] }
 0x608   : > { %10107 = vmatprep.subr.bf16.mxu1 %v10106_v0  ;;  %v2929_v0 = vld [vmem:[%s10802_s29 + $0x5030] sm:$0xff]  ;;  %v9616_v3 = vpack.c.bf16 %v2927_v59, %v2915_v58  ;;  %v3047_v58 = vld [vmem:[%s10802_s29 + $0x53e0] sm:$0xff] }
 0x609   : > { %v3037_v59 = vld [vmem:[%s10802_s29 + $0x5390] sm:$0xff] }
 0x60a   : > { %9597 = vmatpush1.bf16.msra.mxu0 %v9596_v4  ;;  %v10128_v4 = vpack.c.bf16 %v2929_v0, %v2917_v61  ;;  %v10146_v61 = vpack.c.bf16 %v3050_v54, %v3038_v16  ;;  %v3060_v0 = vld [vmem:[%s10802_s29 + $0x5448] sm:$0xff] }
 0x60b   : > { %10109 = vmatpush1.bf16.msra.mxu1 %v10108_v5  ;;  %9599 = vmatprep.subr.bf16.mxu0 %v9598_v6  ;;  %v9618_v5 = vpack.c.bf16 %v2952_v31, %v2940_v1  ;;  %v2939_v6 = vld [vmem:[%s10802_s29 + $0x5080] sm:$0xff]  ;;  %v3072_v1 = vld [vmem:[%s10802_s29 + $0x54a8] sm:$0xff]  ;;  %v3062_v31 = vld [vmem:[%s10802_s29 + $0x5458] sm:$0xff] }
 0x60c   : > { %10111 = vmatprep.subr.bf16.mxu1 %v10110_v10  ;;  %v2953_v10 = vld [vmem:[%s10802_s29 + $0x50f0] sm:$0xff]  ;;  %v9620_v15 = vpack.c.bf16 %v2951_v20, %v2939_v6  ;;  %v3071_v6 = vld [vmem:[%s10802_s29 + $0x54a0] sm:$0xff] }
 0x60d   : > { %v3061_v20 = vld [vmem:[%s10802_s29 + $0x5450] sm:$0xff] }
 0x60e   : > { %9601 = vmatpush1.bf16.msra.mxu0 %v9600_v17  ;;  %v10132_v17 = vpack.c.bf16 %v2953_v10, %v2941_v7  ;;  %v10150_v7 = vpack.c.bf16 %v3074_v2, %v3062_v31  ;;  %v3084_v10 = vld [vmem:[%s10802_s29 + $0x5508] sm:$0xff] }
 0x60f   : > { %10113 = vmatpush1.bf16.msra.mxu1 %v10112_v18  ;;  %9603 = vmatprep.subr.bf16.mxu0 %v9602_v19  ;;  %v9622_v18 = vpack.c.bf16 %v2976_v45, %v2964_v12  ;;  %v2963_v19 = vld [vmem:[%s10802_s29 + $0x5140] sm:$0xff]  ;;  %v3096_v12 = vld [vmem:[%s10802_s29 + $0x5568] sm:$0xff]  ;;  %v3086_v45 = vld [vmem:[%s10802_s29 + $0x5518] sm:$0xff] }
 0x610   : > { %10115 = vmatprep.subr.bf16.mxu1 %v10114_v24  ;;  %v2977_v24 = vld [vmem:[%s10802_s29 + $0x51b0] sm:$0xff]  ;;  %v9624_v23 = vpack.c.bf16 %v2975_v21, %v2963_v19  ;;  %v3095_v19 = vld [vmem:[%s10802_s29 + $0x5560] sm:$0xff] }
 0x611   : > { %v3085_v21 = vld [vmem:[%s10802_s29 + $0x5510] sm:$0xff] }
 0x612   : > { %9605 = vmatpush1.bf16.msra.mxu0 %v9604_v32  ;;  %v10136_v32 = vpack.c.bf16 %v2977_v24, %v2965_v22  ;;  %v10154_v22 = vpack.c.bf16 %v3098_v13, %v3086_v45  ;;  %v3108_v24 = vld [vmem:[%s10802_s29 + $0x55c8] sm:$0xff] }
 0x613   : > { %10117 = vmatpush1.bf16.msra.mxu1 %v10116_v33  ;;  %9607 = vmatprep.subr.bf16.mxu0 %v9606_v34  ;;  %v9626_v33 = vpack.c.bf16 %v3000_v26, %v2988_v60  ;;  %v2987_v34 = vld [vmem:[%s10802_s29 + $0x5200] sm:$0xff]  ;;  %v3120_v60 = vld [vmem:[%s10802_s29 + $0x5628] sm:$0xff]  ;;  %v3110_v26 = vld [vmem:[%s10802_s29 + $0x55d8] sm:$0xff] }
 0x614   : > { %10119 = vmatprep.subr.bf16.mxu1 %v10118_v28  ;;  %v3001_v28 = vld [vmem:[%s10802_s29 + $0x5270] sm:$0xff]  ;;  %v9628_v42 = vpack.c.bf16 %v2999_v35, %v2987_v34  ;;  %v3119_v34 = vld [vmem:[%s10802_s29 + $0x5620] sm:$0xff] }
 0x615   : > { %v3109_v35 = vld [vmem:[%s10802_s29 + $0x55d0] sm:$0xff] }
 0x616   : > { %9609 = vmatpush1.bf16.msra.mxu0 %v9608_v44  ;;  %v10140_v44 = vpack.c.bf16 %v3001_v28, %v2989_v36  ;;  %v10158_v36 = vpack.c.bf16 %v3122_v27, %v3110_v26  ;;  %v3132_v28 = vld [vmem:[%s10802_s29 + $0x5688] sm:$0xff] }
 0x617   : > { %10121 = vmatpush1.bf16.msra.mxu1 %v10120_v46  ;;  %9611 = vmatprep.subr.bf16.mxu0 %v9610_v47  ;;  %v9630_v46 = vpack.c.bf16 %v3024_v39, %v3012_v38  ;;  %v3011_v47 = vld [vmem:[%s10802_s29 + $0x52c0] sm:$0xff]  ;;  %v3144_v38 = vld [vmem:[%s10802_s29 + $0x56e8] sm:$0xff]  ;;  %v3146_v39 = vld [vmem:[%s10802_s29 + $0x56f8] sm:$0xff] }
 0x618   : > { %10123 = vmatprep.subr.bf16.mxu1 %v10122_v43  ;;  %v3025_v43 = vld [vmem:[%s10802_s29 + $0x5330] sm:$0xff]  ;;  %v9632_v55 = vpack.c.bf16 %v3023_v49, %v3011_v47 }
 0x619   : > { %v3133_v47 = vld [vmem:[%s10802_s29 + $0x5690] sm:$0xff] }
 0x61a   : > { %9613 = vmatpush1.bf16.msra.mxu0 %v9612_v9  ;;  %v10144_v9 = vpack.c.bf16 %v3025_v43, %v3013_v50  ;;  %v3145_v50 = vld [vmem:[%s10802_s29 + $0x56f0] sm:$0xff]  ;;  %v3158_v43 = vld [vmem:[%s10802_s29 + $0x5758] sm:$0xff] }
 0x61b   : > { %10125 = vmatpush1.bf16.msra.mxu1 %v10124_v56  ;;  %9615 = vmatprep.subr.bf16.mxu0 %v9614_v57  ;;  %v9634_v56 = vpack.c.bf16 %v3048_v53, %v3036_v52  ;;  %v3035_v57 = vld [vmem:[%s10802_s29 + $0x5380] sm:$0xff]  ;;  %v3170_v52 = vld [vmem:[%s10802_s29 + $0x57b8] sm:$0xff]  ;;  %v10164_v16 = vpack.c.bf16 %v3145_v50, %v3133_v47  ;;  %v3276_v47 = vld [vmem:[%s10802_s29 + $0x5b08] sm:$0xff] }
 0x61c   : > { %10127 = vmatprep.subr.bf16.mxu1 %v10126_v63  ;;  %v3049_v63 = vld [vmem:[%s10802_s29 + $0x53f0] sm:$0xff]  ;;  %v9636_v25 = vpack.c.bf16 %v3047_v58, %v3035_v57  ;;  %v10166_v57 = vpack.c.bf16 %v3170_v52, %v3158_v43  ;;  %v3278_v50 = vld [vmem:[%s10802_s29 + $0x5b18] sm:$0xff] }
 0x61d   : > { %v3169_v58 = vld [vmem:[%s10802_s29 + $0x57b0] sm:$0xff] }
 0x61e   : > { %9617 = vmatpush1.bf16.msra.mxu0 %v9616_v3  ;;  %v10148_v3 = vpack.c.bf16 %v3049_v63, %v3037_v59  ;;  %v3180_v59 = vld [vmem:[%s10802_s29 + $0x5808] sm:$0xff]  ;;  %v3182_v63 = vld [vmem:[%s10802_s29 + $0x5818] sm:$0xff] }
 0x61f   : > { %10129 = vmatpush1.bf16.msra.mxu1 %v10128_v4  ;;  %9619 = vmatprep.subr.bf16.mxu0 %v9618_v5  ;;  %v9638_v4 = vpack.c.bf16 %v3072_v1, %v3060_v0  ;;  %v3059_v5 = vld [vmem:[%s10802_s29 + $0x5440] sm:$0xff]  ;;  %v3194_v0 = vld [vmem:[%s10802_s29 + $0x5878] sm:$0xff] }
 0x620   : > { %10131 = vmatprep.subr.bf16.mxu1 %v10130_v48  ;;  %v3073_v48 = vld [vmem:[%s10802_s29 + $0x54b0] sm:$0xff]  ;;  %v9640_v14 = vpack.c.bf16 %v3071_v6, %v3059_v5  ;;  %v10170_v5 = vpack.c.bf16 %v3194_v0, %v3182_v63 }
 0x621   : > { %v3193_v6 = vld [vmem:[%s10802_s29 + $0x5870] sm:$0xff] }
 0x622   : > { %9621 = vmatpush1.bf16.msra.mxu0 %v9620_v15  ;;  %v10152_v15 = vpack.c.bf16 %v3073_v48, %v3061_v20  ;;  %v3204_v20 = vld [vmem:[%s10802_s29 + $0x58c8] sm:$0xff]  ;;  %v3206_v48 = vld [vmem:[%s10802_s29 + $0x58d8] sm:$0xff] }
 0x623   : > { %10133 = vmatpush1.bf16.msra.mxu1 %v10132_v17  ;;  %9623 = vmatprep.subr.bf16.mxu0 %v9622_v18  ;;  %v9642_v17 = vpack.c.bf16 %v3096_v12, %v3084_v10  ;;  %v3083_v18 = vld [vmem:[%s10802_s29 + $0x5500] sm:$0xff]  ;;  %v3218_v10 = vld [vmem:[%s10802_s29 + $0x5938] sm:$0xff] }
 0x624   : > { %10135 = vmatprep.subr.bf16.mxu1 %v10134_v62  ;;  %v3097_v62 = vld [vmem:[%s10802_s29 + $0x5570] sm:$0xff]  ;;  %v9644_v29 = vpack.c.bf16 %v3095_v19, %v3083_v18  ;;  %v10174_v18 = vpack.c.bf16 %v3218_v10, %v3206_v48 }
 0x625   : > { %v3217_v19 = vld [vmem:[%s10802_s29 + $0x5930] sm:$0xff] }
 0x626   : > { %9625 = vmatpush1.bf16.msra.mxu0 %v9624_v23  ;;  %v10156_v23 = vpack.c.bf16 %v3097_v62, %v3085_v21  ;;  %v3228_v21 = vld [vmem:[%s10802_s29 + $0x5988] sm:$0xff]  ;;  %v3230_v62 = vld [vmem:[%s10802_s29 + $0x5998] sm:$0xff] }
 0x627   : > { %10137 = vmatpush1.bf16.msra.mxu1 %v10136_v32  ;;  %9627 = vmatprep.subr.bf16.mxu0 %v9626_v33  ;;  %v9646_v32 = vpack.c.bf16 %v3120_v60, %v3108_v24  ;;  %v3107_v33 = vld [vmem:[%s10802_s29 + $0x55c0] sm:$0xff]  ;;  %v3242_v24 = vld [vmem:[%s10802_s29 + $0x59f8] sm:$0xff] }
 0x628   : > { %10139 = vmatprep.subr.bf16.mxu1 %v10138_v37  ;;  %v3121_v37 = vld [vmem:[%s10802_s29 + $0x5630] sm:$0xff]  ;;  %v9648_v41 = vpack.c.bf16 %v3119_v34, %v3107_v33  ;;  %v10178_v33 = vpack.c.bf16 %v3242_v24, %v3230_v62 }
 0x629   : > { %v10160_v40 = vpack.c.bf16 %v3121_v37, %v3109_v35  ;;  %v3241_v34 = vld [vmem:[%s10802_s29 + $0x59f0] sm:$0xff]  ;;  %v3252_v35 = vld [vmem:[%s10802_s29 + $0x5a48] sm:$0xff]  ;;  %v3254_v37 = vld [vmem:[%s10802_s29 + $0x5a58] sm:$0xff] }
 0x62a   : > { %9629 = vmatpush1.bf16.msra.mxu0 %v9628_v42  ;;  %v9650_v42 = vpack.c.bf16 %v3144_v38, %v3132_v28  ;;  %v3266_v28 = vld [vmem:[%s10802_s29 + $0x5ab8] sm:$0xff] }
 0x62b   : > { %10141 = vmatpush1.bf16.msra.mxu1 %v10140_v44  ;;  %9631 = vmatprep.subr.bf16.mxu0 %v9630_v46  ;;  %v3131_v44 = vld [vmem:[%s10802_s29 + $0x5680] sm:$0xff] }
 0x62c   : > { %10143 = vmatprep.subr.bf16.mxu1 %v10142_v51  ;;  %v3143_v46 = vld [vmem:[%s10802_s29 + $0x56e0] sm:$0xff]  ;;  %v3156_v51 = vld [vmem:[%s10802_s29 + $0x5748] sm:$0xff] }
 0x62d   : > { %v9652_v53 = vpack.c.bf16 %v3143_v46, %v3131_v44  ;;  %v10182_v44 = vpack.c.bf16 %v3266_v28, %v3254_v37  ;;  %v3265_v46 = vld [vmem:[%s10802_s29 + $0x5ab0] sm:$0xff] }
 0x62e   : > { %9633 = vmatpush1.bf16.msra.mxu0 %v9632_v55  ;;  %v3155_v55 = vld [vmem:[%s10802_s29 + $0x5740] sm:$0xff] }
 0x62f   : > { %10145 = vmatpush1.bf16.msra.mxu1 %v10144_v9  ;;  %9635 = vmatprep.subr.bf16.mxu0 %v9634_v56  ;;  %v3167_v9 = vld [vmem:[%s10802_s29 + $0x57a0] sm:$0xff]  ;;  %v3157_v56 = vld [vmem:[%s10802_s29 + $0x5750] sm:$0xff] }
 0x630   : > { %10147 = vmatprep.subr.bf16.mxu1 %v10146_v61  ;;  %v3192_v61 = vld [vmem:[%s10802_s29 + $0x5868] sm:$0xff]  ;;  %v9656_v1 = vpack.c.bf16 %v3167_v9, %v3155_v55  ;;  %v10168_v31 = vpack.c.bf16 %v3169_v58, %v3157_v56  ;;  %v3289_v9 = vld [vmem:[%s10802_s29 + $0x5b70] sm:$0xff]  ;;  %v3302_v58 = vld [vmem:[%s10802_s29 + $0x5bd8] sm:$0xff] }
 0x631   : > { %v9658_v2 = vpack.c.bf16 %v3192_v61, %v3180_v59  ;;  %v3300_v56 = vld [vmem:[%s10802_s29 + $0x5bc8] sm:$0xff]  ;;  %v3314_v59 = vld [vmem:[%s10802_s29 + $0x5c38] sm:$0xff] }
 0x632   : > { %9637 = vmatpush1.bf16.msra.mxu0 %v9636_v25  ;;  %v3179_v25 = vld [vmem:[%s10802_s29 + $0x5800] sm:$0xff] }
 0x633   : > { %10149 = vmatpush1.bf16.msra.mxu1 %v10148_v3  ;;  %9639 = vmatprep.subr.bf16.mxu0 %v9638_v4  ;;  %v3191_v3 = vld [vmem:[%s10802_s29 + $0x5860] sm:$0xff]  ;;  %v3181_v4 = vld [vmem:[%s10802_s29 + $0x5810] sm:$0xff] }
 0x634   : > { %10151 = vmatprep.subr.bf16.mxu1 %v10150_v7  ;;  %v3216_v7 = vld [vmem:[%s10802_s29 + $0x5928] sm:$0xff]  ;;  %v9660_v12 = vpack.c.bf16 %v3191_v3, %v3179_v25  ;;  %v10172_v45 = vpack.c.bf16 %v3193_v6, %v3181_v4  ;;  %v10190_v25 = vpack.c.bf16 %v3314_v59, %v3302_v58  ;;  %v3313_v3 = vld [vmem:[%s10802_s29 + $0x5c30] sm:$0xff]  ;;  %v3326_v6 = vld [vmem:[%s10802_s29 + $0x5c98] sm:$0xff] }
 0x635   : > { %6198 = vmatmul.mubr.f32.vlgmr.msra.gmra.mrb[4].mxu0 %v11813_v11  ;;  %v9662_v13 = vpack.c.bf16 %v3216_v7, %v3204_v20  ;;  %v3324_v4 = vld [vmem:[%s10802_s29 + $0x5c88] sm:$0xff]  ;;  %v3338_v20 = vld [vmem:[%s10802_s29 + $0x5cf8] sm:$0xff] }
 0x636   : > { %9641 = vmatpush1.bf16.msra.mxu0 %v9640_v14  ;;  %6766 = vmatmul.mubr.f32.vlgmr.msra.gmra.mrb[4].mxu1 %v11813_v11  ;;  %v3134_v11 = vld [vmem:[%s10802_s29 + $0x5698] sm:$0xff]  ;;  %v3203_v14 = vld [vmem:[%s10802_s29 + $0x58c0] sm:$0xff] }
 0x637   : > { %10153 = vmatpush1.bf16.msra.mxu1 %v10152_v15  ;;  %9643 = vmatprep.subr.bf16.mxu0 %v9642_v17  ;;  %v10162_v49 = vpack.c.bf16 %v3146_v39, %v3134_v11  ;;  %v3215_v15 = vld [vmem:[%s10802_s29 + $0x5920] sm:$0xff]  ;;  %v3205_v17 = vld [vmem:[%s10802_s29 + $0x58d0] sm:$0xff] }
 0x638   : > { %10155 = vmatprep.subr.bf16.mxu1 %v10154_v22  ;;  %6268 = vmatprep.mubr.f32.mxu0 %v11824_v30  ;;  %v3240_v22 = vld [vmem:[%s10802_s29 + $0x59e8] sm:$0xff]  ;;  %v9664_v60 = vpack.c.bf16 %v3215_v15, %v3203_v14  ;;  %v10176_v26 = vpack.c.bf16 %v3217_v19, %v3205_v17  ;;  %v10194_v14 = vpack.c.bf16 %v3338_v20, %v3326_v6  ;;  %v3337_v15 = vld [vmem:[%s10802_s29 + $0x5cf0] sm:$0xff]  ;;  %v3350_v19 = vld [vmem:[%s10802_s29 + $0x5d58] sm:$0xff] }
 0x639   : > { %6836 = vmatprep.mubr.f32.mxu1 %v11824_v30  ;;  %v3168_v30 = vld [vmem:[%s10802_s29 + $0x57a8] sm:$0xff]  ;;  %v9666_v27 = vpack.c.bf16 %v3240_v22, %v3228_v21  ;;  %v3362_v21 = vld [vmem:[%s10802_s29 + $0x5db8] sm:$0xff] }
 0x63a   : > { %9645 = vmatpush1.bf16.msra.mxu0 %v9644_v29  ;;  %v9654_v54 = vpack.c.bf16 %v3168_v30, %v3156_v51  ;;  %v3227_v29 = vld [vmem:[%s10802_s29 + $0x5980] sm:$0xff]  ;;  %v3290_v51 = vld [vmem:[%s10802_s29 + $0x5b78] sm:$0xff]  ;;  %v3348_v17 = vld [vmem:[%s10802_s29 + $0x5d48] sm:$0xff] }
 0x63b   : > { %10157 = vmatpush1.bf16.msra.mxu1 %v10156_v23  ;;  %9647 = vmatprep.subr.bf16.mxu0 %v9646_v32  ;;  %v3239_v23 = vld [vmem:[%s10802_s29 + $0x59e0] sm:$0xff]  ;;  %v3229_v32 = vld [vmem:[%s10802_s29 + $0x5990] sm:$0xff]  ;;  %v10186_v55 = vpack.c.bf16 %v3290_v51, %v3278_v50  ;;  %v362_v20 = vld [vmem:[%s10826_s8 + $0x58] sm:$0xff] }
 0x63c   : > { %10159 = vmatprep.subr.bf16.mxu1 %v10158_v36  ;;  %v3264_v36 = vld [vmem:[%s10802_s29 + $0x5aa8] sm:$0xff]  ;;  %v9668_v38 = vpack.c.bf16 %v3239_v23, %v3227_v29  ;;  %v10180_v11 = vpack.c.bf16 %v3241_v34, %v3229_v32  ;;  %v10198_v29 = vpack.c.bf16 %v3362_v21, %v3350_v19  ;;  %v3361_v23 = vld [vmem:[%s10802_s29 + $0x5db0] sm:$0xff]  ;;  %v3374_v34 = vld [vmem:[%s10802_s29 + $0x5e18] sm:$0xff] }
 0x63d   : > { %v9670_v39 = vpack.c.bf16 %v3264_v36, %v3252_v35  ;;  %v3372_v32 = vld [vmem:[%s10802_s29 + $0x5e08] sm:$0xff]  ;;  %v3386_v35 = vld [vmem:[%s10802_s29 + $0x5e78] sm:$0xff] }
 0x63e   : > { %9649 = vmatpush1.bf16.msra.mxu0 %v9648_v41  ;;  %v3251_v41 = vld [vmem:[%s10802_s29 + $0x5a40] sm:$0xff]  ;;  %v6872_v21 = vld [vmem:[%s10826_s8 + $0x8] sm:$0xff] (!%p7138_p0) }
 0x63f   : > { %10161 = vmatpush1.bf16.msra.mxu1 %v10160_v40  ;;  %9651 = vmatprep.subr.bf16.mxu0 %v9650_v42  ;;  %v3263_v40 = vld [vmem:[%s10802_s29 + $0x5aa0] sm:$0xff]  ;;  %v3253_v42 = vld [vmem:[%s10802_s29 + $0x5a50] sm:$0xff] }
 0x640   : > { %10163 = vmatprep.subr.bf16.mxu1 %v10162_v49  ;;  %v3288_v49 = vld [vmem:[%s10802_s29 + $0x5b68] sm:$0xff]  ;;  %v9672_v30 = vpack.c.bf16 %v3263_v40, %v3251_v41  ;;  %v10184_v43 = vpack.c.bf16 %v3265_v46, %v3253_v42  ;;  %v10202_v41 = vpack.c.bf16 %v3386_v35, %v3374_v34  ;;  %v3385_v40 = vld [vmem:[%s10802_s29 + $0x5e70] sm:$0xff]  ;;  %v3398_v46 = vld [vmem:[%s10802_s29 + $0x5ed8] sm:$0xff] }
 0x641   : > { %v9674_v52 = vpack.c.bf16 %v3288_v49, %v3276_v47  ;;  %v3396_v42 = vld [vmem:[%s10802_s29 + $0x5ec8] sm:$0xff]  ;;  %v3410_v47 = vld [vmem:[%s10802_s29 + $0x5f38] sm:$0xff] }
 0x642   : > { %9653 = vmatpush1.bf16.msra.mxu0 %v9652_v53  ;;  %v3275_v53 = vld [vmem:[%s10802_s29 + $0x5b00] sm:$0xff] }
 0x643   : > { %10165 = vmatpush1.bf16.msra.mxu1 %v10164_v16  ;;  %9655 = vmatprep.subr.bf16.mxu0 %v9654_v54  ;;  %v3287_v16 = vld [vmem:[%s10802_s29 + $0x5b60] sm:$0xff]  ;;  %v3277_v54 = vld [vmem:[%s10802_s29 + $0x5b10] sm:$0xff] }
 0x644   : > { %10167 = vmatprep.subr.bf16.mxu1 %v10166_v57  ;;  %v3312_v57 = vld [vmem:[%s10802_s29 + $0x5c28] sm:$0xff]  ;;  %v9676_v61 = vpack.c.bf16 %v3287_v16, %v3275_v53  ;;  %v10188_v63 = vpack.c.bf16 %v3289_v9, %v3277_v54  ;;  %v10206_v53 = vpack.c.bf16 %v3410_v47, %v3398_v46  ;;  %v3409_v16 = vld [vmem:[%s10802_s29 + $0x5f30] sm:$0xff]  ;;  %v3422_v9 = vld [vmem:[%s10802_s29 + $0x5f98] sm:$0xff] }
 0x645   : > { %v9678_v0 = vpack.c.bf16 %v3312_v57, %v3300_v56  ;;  %v3420_v54 = vld [vmem:[%s10802_s29 + $0x5f88] sm:$0xff]  ;;  %v3434_v56 = vld [vmem:[%s10802_s29 + $0x5ff8] sm:$0xff] }
 0x646   : > { %9657 = vmatpush1.bf16.msra.mxu0 %v9656_v1  ;;  %v3299_v1 = vld [vmem:[%s10802_s29 + $0x5bc0] sm:$0xff] }
 0x647   : > { %10169 = vmatpush1.bf16.msra.mxu1 %v10168_v31  ;;  %9659 = vmatprep.subr.bf16.mxu0 %v9658_v2  ;;  %v3311_v31 = vld [vmem:[%s10802_s29 + $0x5c20] sm:$0xff]  ;;  %v3301_v2 = vld [vmem:[%s10802_s29 + $0x5bd0] sm:$0xff] }
 0x648   : > { %10171 = vmatprep.subr.bf16.mxu1 %v10170_v5  ;;  %v3336_v5 = vld [vmem:[%s10802_s29 + $0x5ce8] sm:$0xff]  ;;  %v9680_v7 = vpack.c.bf16 %v3311_v31, %v3299_v1  ;;  %v10192_v48 = vpack.c.bf16 %v3313_v3, %v3301_v2  ;;  %v3421_v1 = vld [vmem:[%s10802_s29 + $0x5f90] sm:$0xff]  ;;  %v359_v3 = vld [vmem:[%s10826_s8 + $0x40] sm:$0xff] }
 0x649   : > { %v9682_v10 = vpack.c.bf16 %v3336_v5, %v3324_v4  ;;  %v3433_v31 = vld [vmem:[%s10802_s29 + $0x5ff0] sm:$0xff]  ;;  %v360_v5 = vld [vmem:[%s10826_s8 + $0x48] sm:$0xff] }
 0x64a   : > { %9661 = vmatpush1.bf16.msra.mxu0 %v9660_v12  ;;  %v3323_v12 = vld [vmem:[%s10802_s29 + $0x5c80] sm:$0xff]  ;;  %v361_v4 = vld [vmem:[%s10826_s8 + $0x50] sm:$0xff] }
 0x64b   : > { %10173 = vmatpush1.bf16.msra.mxu1 %v10172_v45  ;;  %9663 = vmatprep.subr.bf16.mxu0 %v9662_v13  ;;  %v3335_v45 = vld [vmem:[%s10802_s29 + $0x5ce0] sm:$0xff]  ;;  %v3325_v13 = vld [vmem:[%s10802_s29 + $0x5c90] sm:$0xff] }
 0x64c   : > { %10175 = vmatprep.subr.bf16.mxu1 %v10174_v18  ;;  %v3360_v18 = vld [vmem:[%s10802_s29 + $0x5da8] sm:$0xff]  ;;  %v9684_v22 = vpack.c.bf16 %v3335_v45, %v3323_v12  ;;  %v10196_v62 = vpack.c.bf16 %v3337_v15, %v3325_v13 }
 0x64d   : > { %v9686_v24 = vpack.c.bf16 %v3360_v18, %v3348_v17  ;;  %v6871_v17 = vld [vmem:[%s10826_s8] sm:$0xff] (!%p7138_p0) }
 0x64e   : > { %9665 = vmatpush1.bf16.msra.mxu0 %v9664_v60  ;;  %v3347_v60 = vld [vmem:[%s10802_s29 + $0x5d40] sm:$0xff] }
 0x64f   : > { %10177 = vmatpush1.bf16.msra.mxu1 %v10176_v26  ;;  %9667 = vmatprep.subr.bf16.mxu0 %v9666_v27  ;;  %v3359_v26 = vld [vmem:[%s10802_s29 + $0x5da0] sm:$0xff]  ;;  %v3349_v27 = vld [vmem:[%s10802_s29 + $0x5d50] sm:$0xff] }
 0x650   : > { %10179 = vmatprep.subr.bf16.mxu1 %v10178_v33  ;;  %v3384_v33 = vld [vmem:[%s10802_s29 + $0x5e68] sm:$0xff]  ;;  %v9688_v36 = vpack.c.bf16 %v3359_v26, %v3347_v60  ;;  %v10200_v37 = vpack.c.bf16 %v3361_v23, %v3349_v27  ;;  %v6874_v26 = vld [vmem:[%s10826_s8 + $0x18] sm:$0xff] (!%p7138_p0)  ;;  %v6875_v27 = vld [vmem:[%s10826_s8 + $0x20] sm:$0xff] (!%p7138_p0) }
 0x651   : > { %v9690_v28 = vpack.c.bf16 %v3384_v33, %v3372_v32  ;;  %v6883_v18 = vld [vmem:[%s239_s30] sm:$0xff] (!%p7138_p0) }
 0x652   : > { %9669 = vmatpush1.bf16.msra.mxu0 %v9668_v38  ;;  %v3371_v38 = vld [vmem:[%s10802_s29 + $0x5e00] sm:$0xff] }
 0x653   : > { %10181 = vmatpush1.bf16.msra.mxu1 %v10180_v11  ;;  %9671 = vmatprep.subr.bf16.mxu0 %v9670_v39  ;;  %v3383_v11 = vld [vmem:[%s10802_s29 + $0x5e60] sm:$0xff]  ;;  %v3373_v39 = vld [vmem:[%s10802_s29 + $0x5e10] sm:$0xff] }
 0x654   : > { %10183 = vmatprep.subr.bf16.mxu1 %v10182_v44  ;;  %v3408_v44 = vld [vmem:[%s10802_s29 + $0x5f28] sm:$0xff]  ;;  %v9692_v49 = vpack.c.bf16 %v3383_v11, %v3371_v38  ;;  %v10204_v50 = vpack.c.bf16 %v3385_v40, %v3373_v39  ;;  %v6877_v38 = vld [vmem:[%s10826_s8 + $0x30] sm:$0xff] (!%p7138_p0)  ;;  %v6878_v11 = vld [vmem:[%s10826_s8 + $0x38] sm:$0xff] (!%p7138_p0) }
 0x655   : > { %v9694_v51 = vpack.c.bf16 %v3408_v44, %v3396_v42 }
 0x656   : > { %9673 = vmatpush1.bf16.msra.mxu0 %v9672_v30  ;;  %v3395_v30 = vld [vmem:[%s10802_s29 + $0x5ec0] sm:$0xff] }
 0x657   : > { %10185 = vmatpush1.bf16.msra.mxu1 %v10184_v43  ;;  %9675 = vmatprep.subr.bf16.mxu0 %v9674_v52  ;;  %v3407_v43 = vld [vmem:[%s10802_s29 + $0x5f20] sm:$0xff]  ;;  %v3397_v52 = vld [vmem:[%s10802_s29 + $0x5ed0] sm:$0xff] }
 0x658   : > { %10187 = vmatprep.subr.bf16.mxu1 %v10186_v55  ;;  %v3432_v55 = vld [vmem:[%s10802_s29 + $0x5fe8] sm:$0xff]  ;;  %v9696_v57 = vpack.c.bf16 %v3407_v43, %v3395_v30  ;;  %v10208_v58 = vpack.c.bf16 %v3409_v16, %v3397_v52 }
 0x659   : > { %v9698_v59 = vpack.c.bf16 %v3432_v55, %v3420_v54  ;;  %v6884_v52 = vld [vmem:[%s239_s30 + $0x8] sm:$0xf] (!%p7138_p0) }
 0x65a   : > { %9677 = vmatpush1.bf16.msra.mxu0 %v9676_v61  ;;  %v3419_v61 = vld [vmem:[%s10802_s29 + $0x5f80] sm:$0xff] }
 0x65b   : > { %10189 = vmatpush1.bf16.msra.mxu1 %v10188_v63  ;;  %9679 = vmatprep.subr.bf16.mxu0 %v9678_v0  ;;  %v3431_v63 = vld [vmem:[%s10802_s29 + $0x5fe0] sm:$0xff]  ;;  %v10210_v0 = vpack.c.bf16 %v3434_v56, %v3422_v9 }
 0x65c   : > { %10191 = vmatprep.subr.bf16.mxu1 %v10190_v25  ;;  %v9700_v2 = vpack.c.bf16 %v3431_v63, %v3419_v61  ;;  %v10212_v25 = vpack.c.bf16 %v3433_v31, %v3421_v1 }
 0x65e   : > { %9681 = vmatpush1.bf16.msra.mxu0 %v9680_v7 }
 0x65f   : > { %10193 = vmatpush1.bf16.msra.mxu1 %v10192_v48  ;;  %9683 = vmatprep.subr.bf16.mxu0 %v9682_v10 }
 0x660   : > { %10195 = vmatprep.subr.bf16.mxu1 %v10194_v14 }
 0x662   : > { %9685 = vmatpush1.bf16.msra.mxu0 %v9684_v22 }
 0x663   : > { %10197 = vmatpush1.bf16.msra.mxu1 %v10196_v62  ;;  %9687 = vmatprep.subr.bf16.mxu0 %v9686_v24  ;;  %v6873_v62 = vld [vmem:[%s10826_s8 + $0x10] sm:$0xff] (!%p7138_p0) }
 0x664   : > { %10199 = vmatprep.subr.bf16.mxu1 %v10198_v29 }
 0x666   : > { %9689 = vmatpush1.bf16.msra.mxu0 %v9688_v36 }
 0x667   : > { %10201 = vmatpush1.bf16.msra.mxu1 %v10200_v37  ;;  %9691 = vmatprep.subr.bf16.mxu0 %v9690_v28  ;;  %v6876_v28 = vld [vmem:[%s10826_s8 + $0x28] sm:$0xff] (!%p7138_p0) }
 0x668   : > { %10203 = vmatprep.subr.bf16.mxu1 %v10202_v41 }
 0x66a   : > { %9693 = vmatpush1.bf16.msra.mxu0 %v9692_v49 }
 0x66b   : > { %10205 = vmatpush1.bf16.msra.mxu1 %v10204_v50  ;;  %9695 = vmatprep.subr.bf16.mxu0 %v9694_v51 }
 0x66c   : > { %10207 = vmatprep.subr.bf16.mxu1 %v10206_v53 }
 0x66e   : > { %9697 = vmatpush1.bf16.msra.mxu0 %v9696_v57 }
 0x66f   : > { %10209 = vmatpush1.bf16.msra.mxu1 %v10208_v58  ;;  %9699 = vmatprep.subr.bf16.mxu0 %v9698_v59 }
 0x670   : > { %10211 = vmatprep.subr.bf16.mxu1 %v10210_v0 }
 0x672   : > { %9701 = vmatpush1.bf16.msra.mxu0 %v9700_v2 }
 0x673   : > { %10213 = vmatpush1.bf16.msra.mxu1 %v10212_v25 }
 0x675   : > { %6269 = vmatmul.mubr.f32.vlgmr.msra.gmra.mrb[4].mxu0 %v11951_v8 }
 0x676   : > { %6837 = vmatmul.mubr.f32.vlgmr.msra.gmra.mrb[4].mxu1 %v11951_v8  ;;  %v6887_v8 = vlaneseq (!%p7138_p0) }
 0x678   : > { %v6888_v15 = vshrl.u32 (!%p7138_p0), %v6887_v8, 7 }
 0x67a   : > { %v6889_v19 = vsub.s32 (!%p7138_p0), 0, %v6888_v15  ;;  %v6893_v22 = vsub.s32 (!%p7138_p0), 1, %v6888_v15  ;;  %v6897_v24 = vsub.s32 (!%p7138_p0), 2, %v6888_v15  ;;  %v6901_v60 = vsub.s32 (!%p7138_p0), 3, %v6888_v15 }
 0x67b   : > { %v6905_v29 = vsub.s32 (!%p7138_p0), 4, %v6888_v15  ;;  %v6909_v23 = vsub.s32 (!%p7138_p0), 5, %v6888_v15  ;;  %v6913_v32 = vsub.s32 (!%p7138_p0), 6, %v6888_v15  ;;  %v6917_v33 = vsub.s32 (!%p7138_p0), 7, %v6888_v15 }
 0x67c   : > { %v6890_v34 = vrot.slane (!%p7138_p0), %v6883_v18, %v6889_v19  ;;  %v6894_v35 = vrot.slane (!%p7138_p0), %v6883_v18, %v6893_v22  ;;  %v6898_v36 = vrot.slane (!%p7138_p0), %v6883_v18, %v6897_v24  ;;  %v6902_v37 = vrot.slane (!%p7138_p0), %v6883_v18, %v6901_v60 }
 0x67d   : > { %v6906_v39 = vrot.slane (!%p7138_p0), %v6883_v18, %v6905_v29  ;;  %v6910_v41 = vrot.slane (!%p7138_p0), %v6883_v18, %v6909_v23  ;;  %v6914_v40 = vrot.slane (!%p7138_p0), %v6883_v18, %v6913_v32  ;;  %v6918_v42 = vrot.slane (!%p7138_p0), %v6883_v18, %v6917_v33 }
 0x67e   : > { %v6947_v44 = vadd.f32 (!%p7138_p0), %v6890_v34, %v6871_v17  ;;  %v6948_v46 = vadd.f32 (!%p7138_p0), %v6894_v35, %v6872_v21  ;;  %v6949_v47 = vadd.f32 (!%p7138_p0), %v6898_v36, %v6873_v62  ;;  %v6950_v49 = vadd.f32 (!%p7138_p0), %v6902_v37, %v6874_v26 }
 0x67f   : > { %v6951_v50 = vadd.f32 (!%p7138_p0), %v6906_v39, %v6875_v27  ;;  %v6952_v51 = vadd.f32 (!%p7138_p0), %v6910_v41, %v6876_v28  ;;  %v6953_v30 = vadd.f32 (!%p7138_p0), %v6914_v40, %v6877_v38  ;;  %v6954_v43 = vadd.f32 (!%p7138_p0), %v6918_v42, %v6878_v11 }
 0x680   : > { %v6959_v53 = vmax.f32 (!%p7138_p0), %v6947_v44, 0.0  ;;  %v6960_v16 = vmax.f32 (!%p7138_p0), %v6948_v46, 0.0  ;;  %v6961_v54 = vmax.f32 (!%p7138_p0), %v6949_v47, 0.0  ;;  %v6962_v55 = vmax.f32 (!%p7138_p0), %v6950_v49, 0.0 }
 0x681   : > { %v6963_v57 = vmax.f32 (!%p7138_p0), %v6951_v50, 0.0  ;;  %v6964_v58 = vmax.f32 (!%p7138_p0), %v6952_v51, 0.0  ;;  %v6965_v59 = vmax.f32 (!%p7138_p0), %v6953_v30, 0.0  ;;  %v6966_v61 = vmax.f32 (!%p7138_p0), %v6954_v43, 0.0 }
 0x682   : > { %6971 = vst [vmem:[%s10826_s8] sm:$0xff] (!%p7138_p0), %v6959_v53  ;;  %6972 = vst [vmem:[%s10826_s8 + $0x8] sm:$0xff] (!%p7138_p0), %v6960_v16  ;;  %v6922_v1 = vrot.slane (!%p7138_p0), %v6884_v52, %v6889_v19  ;;  %v6926_v31 = vrot.slane (!%p7138_p0), %v6884_v52, %v6893_v22  ;;  %v6930_v2 = vrot.slane (!%p7138_p0), %v6884_v52, %v6897_v24 }
 0x683   : > { %6973 = vst [vmem:[%s10826_s8 + $0x10] sm:$0xff] (!%p7138_p0), %v6961_v54  ;;  %6974 = vst [vmem:[%s10826_s8 + $0x18] sm:$0xff] (!%p7138_p0), %v6962_v55  ;;  %v6934_v25 = vrot.slane (!%p7138_p0), %v6884_v52, %v6901_v60 }
 0x684   : > { %6975 = vst [vmem:[%s10826_s8 + $0x20] sm:$0xff] (!%p7138_p0), %v6963_v57  ;;  %6976 = vst [vmem:[%s10826_s8 + $0x28] sm:$0xff] (!%p7138_p0), %v6964_v58 }
 0x685   : > { %6977 = vst [vmem:[%s10826_s8 + $0x30] sm:$0xff] (!%p7138_p0), %v6965_v59  ;;  %6978 = vst [vmem:[%s10826_s8 + $0x38] sm:$0xff] (!%p7138_p0), %v6966_v61 }
 0x747   : > { %6870 = sbr.rel (%p7138_p0) target bundleno = 1882 (0x75a), region = 48 }
 0x748   : > { %v6270_v6 = vpop.f32.mrb[4].mxu0 }
 0x749   : > { %v6851_v7 = vadd.f32 %v6270_v6, %v359_v3  ;;  %v6838_v48 = vpop.f32.mrb[4].mxu1  ;;  %v6272_v10 = vpop.f32.mrb[5].mxu0 }
 0x74a   : > { %v6853_v12 = vadd.f32 %v6838_v48, %v361_v4  ;;  %v6852_v45 = vadd.f32 %v6272_v10, %v360_v5  ;;  %v6840_v13 = vpop.f32.mrb[5].mxu1 }
 0x74b   : > { %6863 = vst [vmem:[%s10826_s8 + $0x40] sm:$0xff] %v6851_v7  ;;  %v6854_v14 = vadd.f32 %v6840_v13, %v362_v20 }
 0x74c   : > { %6865 = vst [vmem:[%s10826_s8 + $0x50] sm:$0xff] %v6853_v12  ;;  %6864 = vst [vmem:[%s10826_s8 + $0x48] sm:$0xff] %v6852_v45 }
 0x74d   : > { %6866 = vst [vmem:[%s10826_s8 + $0x58] sm:$0xff] %v6854_v14 }
 0x752   : > { %v6879_v9 = vld [vmem:[%s10826_s8 + $0x40] sm:$0xff] }
 0x753   : > { %v6880_v56 = vld [vmem:[%s10826_s8 + $0x48] sm:$0xff]  ;;  %v6881_v63 = vld [vmem:[%s10826_s8 + $0x50] sm:$0xff]  ;;  %v6955_v3 = vadd.f32 %v6922_v1, %v6879_v9 }
 0x754   : > { %v6882_v0 = vld [vmem:[%s10826_s8 + $0x58] sm:$0xff]  ;;  %v6956_v4 = vadd.f32 %v6926_v31, %v6880_v56  ;;  %v6957_v5 = vadd.f32 %v6930_v2, %v6881_v63 }
 0x755   : > { %v6958_v6 = vadd.f32 %v6934_v25, %v6882_v0  ;;  %v6967_v20 = vmax.f32 %v6955_v3, 0.0 }
 0x756   : > { %v6968_v7 = vmax.f32 %v6956_v4, 0.0  ;;  %v6969_v48 = vmax.f32 %v6957_v5, 0.0 }
 0x757   : > { %v6970_v10 = vmax.f32 %v6958_v6, 0.0  ;;  %6979 = vst [vmem:[%s10826_s8 + $0x40] sm:$0xff] %v6967_v20 }
 0x758   : > { %6980 = vst [vmem:[%s10826_s8 + $0x48] sm:$0xff] %v6968_v7  ;;  %6981 = vst [vmem:[%s10826_s8 + $0x50] sm:$0xff] %v6969_v48 }
 0x759   : > { %6982 = vst [vmem:[%s10826_s8 + $0x58] sm:$0xff] %v6970_v10 }
 0x75a PF: > { %s19_s22 = sadd.s32 1, %s10561_s22   ;;  %s14169_s5 = sld [smem:[#allocation8_spill]] }
 0x75b   : > { %p16_p11 = scmp.ge.s32.totalorder %s19_s22, 28   ;;  %s14170_s12 = smov %s10525_s13 }
 0x75c   : > { %s14171_s13 = smov %s10529_s14  ;;  %s14172_s14 = smov %s10753_s9 }
 0x75d   : > { %s14173_s15 = smov %s10537_s16  ;;  %s14174_s16 = smov %s10541_s17 }
 0x75e   : > { %s14175_s17 = smov %s10758_s26  ;;  %s14176_s18 = smov %s10553_s20 }
 0x75f   : > { %s14177_s19 = smov %s10557_s21  ;;  %s14178_s20 = smov %s14181_s23 }
 0x760   : > { %s14179_s21 = smov %s14169_s5  ;;  %18 = sbr.rel (!%p16_p11) target bundleno = 11 (0xb), region = 96 }
 0x767   :  { %7013 = vsyncpa [#allocation3], 1 }
 0x768   :  { %7015 = vsyncpa [#allocation3 + $0x1], 1 }
 0x769   :  { %7016 = vsyncpa [#allocation5], 1 }
 0x76a   :  { %7018 = vsyncpa [#allocation5 + $0x1], 1 }

</bundles_post_ra>
